<compile_context>
chip_gen: v6e
topology: v6e:2x2x1
jax: 0.10.0
libtpu: 0.0.40
codegen_flags: <defaults>
</compile_context>

<pallas_src>
import functools

import jax
import jax.numpy as jnp
import numpy as np
from jax import lax
from jax.experimental import pallas as pl
from jax.experimental.pallas import tpu as pltpu


# ------------------------------- fused kernel --------------------------------
def _fused_cnn_kernel(x_ref,
                      bw1_ref, cb1_ref, bw2_ref, cb2_ref,
                      bw3_ref, cb3_ref, bw4_ref, cb4_ref,
                      wf1_ref, fb1_ref, wf2_ref, fb2_ref,
                      o_ref,
                      pad2_ref, pad3_ref, pad4_ref):
    # x_ref   : (H+2, B, W*Cin) f32 input row slabs; rows 0 and H+1 are zero.
    # bw{i}   : (3, Lin_i, Lout_i) bf16 banded row-conv weights (one per ky).
    # cb{i}   : (1, Lout_i//2) f32 per-channel bias tiled across pooled x.
    # wf1     : (Hf, Wf*128, 256) bf16 fc1 (torch NCHW-flatten order folded in).
    # fb1     : (1, 256) f32.   wf2: (256, CP) bf16.   fb2: (1, CP) f32.
    # o_ref   : (B, CP) f32 logits (lane-dense, classes padded to CP).
    # pad{i}  : (H_i+2, B, Lin_i) f32 scratch = row-padded input of conv i.

    def conv_block(src_ref, bw_ref, b_ref):
        # Conv3x3(pad=1) + MaxPool2x2 + bias + ReLU on a row-padded slab.
        hp2, b, lin = src_ref.shape
        h = hp2 - 2
        lout = bw_ref.shape[-1]
        acc = None
        for ky in range(3):                       # 3 matmuls, one per conv row
            rows = src_ref[ky:ky + h].reshape(h * b, lin).astype(jnp.bfloat16)
            part = jnp.dot(rows, bw_ref[ky],
                           preferred_element_type=jnp.float32)
            acc = part if acc is None else acc + part
        y = acc.reshape(h // 2, 2, b, lout)
        y = jnp.maximum(y[:, 0], y[:, 1])         # max-pool over rows (H)
        half = lout // 2                          # even/odd pixel lane halves
        y = jnp.maximum(y[..., :half], y[..., half:])   # max-pool over cols (W)
        # bias + ReLU after the pool (exactly equivalent, 2x fewer rows)
        return jnp.maximum(y + b_ref[...][None], 0.0)   # (h//2, B, lout//2)

    def store_row_padded(dst_ref, val):
        # Write val into rows [1, Hp+1); keep the two border rows zero.
        hp, b, l = val.shape
        zrow = jnp.zeros((1, b, l), dst_ref.dtype)
        dst_ref[0:1] = zrow
        dst_ref[hp + 1:hp + 2] = zrow
        dst_ref[1:hp + 1] = val

    a1 = conv_block(x_ref, bw1_ref, cb1_ref)
    store_row_padded(pad2_ref, a1)
    a2 = conv_block(pad2_ref, bw2_ref, cb2_ref)
    store_row_padded(pad3_ref, a2)
    a3 = conv_block(pad3_ref, bw3_ref, cb3_ref)
    store_row_padded(pad4_ref, a3)
    a4 = conv_block(pad4_ref, bw4_ref, cb4_ref)   # (Hf, B, Wf*128)

    # ---- FC head (Dropout(0.5) is identity at inference) ----
    # TODO(synk): training-mode dropout (RNG mask) not implemented.
    h = None
    for yo in range(a4.shape[0]):
        part = jnp.dot(a4[yo].astype(jnp.bfloat16), wf1_ref[yo],
                       preferred_element_type=jnp.float32)
        h = part if h is None else h + part
    h = jnp.maximum(h + fb1_ref[...], 0.0)        # (B, 256) f32
    logits = jnp.dot(h.astype(jnp.bfloat16), wf2_ref[...],
                     preferred_element_type=jnp.float32) + fb2_ref[...]
    o_ref[...] = logits.astype(o_ref.dtype)       # lane-dense (B, CP) store


# ----------------------- trace-time weight preparation ------------------------
def _banded_conv_weights(w, width):
    """w: (3,3,Cin,Cout) HWIO conv weight.  Returns (3, width*Cin, width*Cout)
    bf16 banded matrices (one per kernel row ky) mapping a pixel-interleaved
    input row (lane = x*Cin + c) to a conv-output row whose even / odd output
    pixels occupy the lower / upper lane half:
        lane_out = (x % 2) * (width//2 * Cout) + (x // 2) * Cout + co."""
    cin, cout = w.shape[2], w.shape[3]
    xin = jnp.arange(width)[:, None]
    xout = jnp.arange(width)[None, :]
    kx = xin - xout + 1                                   # 3x3 tap column index
    valid = (kx >= 0) & (kx <= 2)                         # pad=1 boundaries
    kxc = jnp.clip(kx, 0, 2)
    order = jnp.concatenate([jnp.arange(0, width, 2),     # even output pixels
                             jnp.arange(1, width, 2)])    # then odd pixels
    mats = []
    for ky in range(3):
        t = w[ky][kxc]                                    # (W, W, Cin, Cout)
        t = jnp.where(valid[:, :, None, None], t, 0.0)
        t = t[:, order]                                   # split-half columns
        t = jnp.transpose(t, (0, 2, 1, 3))                # (xin, c, xout', co)
        mats.append(t.reshape(width * cin, width * cout))
    return jnp.stack(mats).astype(jnp.bfloat16)


def _round_up(x, m):
    return (x + m - 1) // m * m


# --------------------------------- forward -----------------------------------
@functools.partial(jax.jit, static_argnames=("block_b",))
def simple_cnn_forward(x_nchw, params, block_b=8):
    x = jnp.transpose(x_nchw, (0, 2, 3, 1)).astype(jnp.float32)   # NCHW -> NHWC
    N, H, W, Cin = x.shape
    assert H % 16 == 0 and W % 16 == 0, "spatial dims must be divisible by 16"

    n_pad = _round_up(max(N, block_b), block_b)
    # Lane-dense input row slabs: (H+2, Npad, W*Cin); rows 0 / H+1 are zero pad.
    x_rows = jnp.transpose(x.reshape(N, H, W * Cin), (1, 0, 2))
    x_rows = jnp.pad(x_rows, ((1, 1), (0, n_pad - N), (0, 0)))

    # Conv layers: banded row-conv weights + x-tiled biases, pad scratches.
    conv_args = []
    scratch_shapes = []
    h_i, w_i, c_in = H, W, Cin
    for i in range(4):
        w_conv = params[f"conv{i}_w"]                     # (3,3,Cin_i,Cout_i)
        if i > 0:
            scratch_shapes.append(
                pltpu.VMEM((h_i + 2, block_b, w_i * c_in), jnp.float32))
        bw = _banded_conv_weights(w_conv, w_i)            # (3, W*Cin, W*Cout)
        cb = jnp.tile(params[f"conv{i}_b"].reshape(-1),
                      w_i // 2)[None, :].astype(jnp.float32)
        conv_args += [bw, cb]
        h_i, w_i, c_in = h_i // 2, w_i // 2, w_conv.shape[3]

    hf, wf, cf = h_i, w_i, c_in                           # final feature map
    # fc1 rows reordered from torch's NCHW flatten (c*Hf*Wf + y*Wf + x) to the
    # kernel's (yo, xo*Cf + co) layout, folded into the weight at trace time.
    idx = (jnp.arange(cf)[None, None, :] * (hf * wf)
           + jnp.arange(hf)[:, None, None] * wf
           + jnp.arange(wf)[None, :, None])               # (Hf, Wf, Cf)
    wf1 = params["fc1_w"][idx].reshape(hf, wf * cf, -1).astype(jnp.bfloat16)
    fb1 = params["fc1_b"].reshape(1, -1).astype(jnp.float32)

    num_classes = params["fc2_w"].shape[-1]
    cp = _round_up(max(num_classes, 128), 128)            # lane-dense output
    wf2 = jnp.pad(params["fc2_w"],
                  ((0, 0), (0, cp - num_classes))).astype(jnp.bfloat16)
    fb2 = jnp.pad(params["fc2_b"].reshape(1, -1),
                  ((0, 0), (0, cp - num_classes))).astype(jnp.float32)

    weight_args = conv_args + [wf1, fb1, wf2, fb2]

    def const_spec(arr):
        zeros = (0,) * arr.ndim
        return pl.BlockSpec(tuple(arr.shape), lambda n, _z=zeros: _z)

    in_specs = [pl.BlockSpec((H + 2, block_b, W * Cin), lambda n: (0, n, 0))]
    in_specs += [const_spec(a) for a in weight_args]

    out = pl.pallas_call(
        _fused_cnn_kernel,
        out_shape=jax.ShapeDtypeStruct((n_pad, cp), jnp.float32),
        grid=(n_pad // block_b,),
        in_specs=in_specs,
        out_specs=pl.BlockSpec((block_b, cp), lambda n: (n, 0)),
        scratch_shapes=scratch_shapes,
        compiler_params=pltpu.CompilerParams(
            dimension_semantics=("parallel",),            # v7x: 2 TCs
            vmem_limit_bytes=32 * 1024 * 1024),
    )(x_rows, *weight_args)
    return out[:N, :num_classes]


# ------------------------------ params / reference ----------------------------
def init_params(key, in_channels, num_classes, hw):
    # NOTE: conv weights are HWIO (3,3,Cin,Cout); torch Conv2d weights are OIHW
    # and would need a (2,3,1,0) transpose before use.  Biases are 1-D as in
    # torch.
    chans = [in_channels, 16, 32, 64, 128]
    params = {}
    for i in range(4):
        key, k1, k2 = jax.random.split(key, 3)
        cin, cout = chans[i], chans[i + 1]
        params[f"conv{i}_w"] = (jax.random.normal(k1, (3, 3, cin, cout),
                                                  jnp.float32)
                                / jnp.sqrt(9.0 * cin))
        params[f"conv{i}_b"] = 0.02 * jax.random.normal(k2, (cout,), jnp.float32)
    flat = 128 * (hw[0] // 16) * (hw[1] // 16)
    key, k1, k2, k3, k4 = jax.random.split(key, 5)
    params["fc1_w"] = (jax.random.normal(k1, (flat, 256), jnp.float32)
                       / jnp.sqrt(float(flat)))
    params["fc1_b"] = 0.02 * jax.random.normal(k2, (256,), jnp.float32)
    params["fc2_w"] = (jax.random.normal(k3, (256, num_classes), jnp.float32)
                       / jnp.sqrt(256.0))
    params["fc2_b"] = 0.02 * jax.random.normal(k4, (num_classes,), jnp.float32)
    return params


def reference_forward(x_nchw, params):
    """Pure-JAX f32 reference matching the PyTorch module."""
    x = jnp.transpose(x_nchw, (0, 2, 3, 1)).astype(jnp.float32)
    for i in range(4):
        x = lax.conv_general_dilated(
            x, params[f"conv{i}_w"], window_strides=(1, 1), padding="SAME",
            dimension_numbers=("NHWC", "HWIO", "NHWC"))
        x = jnp.maximum(x + params[f"conv{i}_b"], 0.0)
        n, h, w, c = x.shape
        x = x.reshape(n, h // 2, 2, w // 2, 2, c).max(axis=(2, 4))
    x = jnp.transpose(x, (0, 3, 1, 2)).reshape(x.shape[0], -1)  # NCHW flatten
    h = jnp.maximum(x @ params["fc1_w"] + params["fc1_b"], 0.0)
    return h @ params["fc2_w"] + params["fc2_b"]


if __name__ == "__main__":
    num_classes = 10
    input_shape = (3, 32, 32)                    # (C, H, W), as in PyTorch
    batch = 16                                   # 8 images/step -> grid = (2,)

    key = jax.random.PRNGKey(0)
    key, kx = jax.random.split(key)
    x = jax.random.normal(kx, (batch,) + input_shape, jnp.float32)  # NCHW
    params = init_params(key, input_shape[0], num_classes,
                         (input_shape[1], input_shape[2]))

    out = jax.block_until_ready(simple_cnn_forward(x, params))
    assert out.shape == (batch, num_classes), out.shape

    ref = jax.block_until_ready(reference_forward(x, params))
    np.testing.assert_allclose(np.asarray(out), np.asarray(ref),
                               rtol=1e-1, atol=1e-1)   # bf16-MXU tolerance
    print("KERNEL_OK")
</pallas_src>

<mosaic_0001>
module attributes {stable_mosaic.version = 11 : i64} {
  func.func @_fused_cnn_kernel(%arg0: i32, %arg1: memref<34x8x96xf32, #tpu.memory_space<vmem>>, %arg2: memref<3x96x512xbf16, #tpu.memory_space<vmem>>, %arg3: memref<1x256xf32, #tpu.memory_space<vmem>>, %arg4: memref<3x256x512xbf16, #tpu.memory_space<vmem>>, %arg5: memref<1x256xf32, #tpu.memory_space<vmem>>, %arg6: memref<3x256x512xbf16, #tpu.memory_space<vmem>>, %arg7: memref<1x256xf32, #tpu.memory_space<vmem>>, %arg8: memref<3x256x512xbf16, #tpu.memory_space<vmem>>, %arg9: memref<1x256xf32, #tpu.memory_space<vmem>>, %arg10: memref<2x256x256xbf16, #tpu.memory_space<vmem>>, %arg11: memref<1x256xf32, #tpu.memory_space<vmem>>, %arg12: memref<256x128xbf16, #tpu.memory_space<vmem>>, %arg13: memref<1x128xf32, #tpu.memory_space<vmem>>, %arg14: memref<8x128xf32, #tpu.memory_space<vmem>>, %arg15: memref<18x8x256xf32, #tpu.memory_space<vmem>>, %arg16: memref<10x8x256xf32, #tpu.memory_space<vmem>>, %arg17: memref<6x8x256xf32, #tpu.memory_space<vmem>>) attributes {dimension_semantics = [#tpu.dimension_semantics<parallel>], iteration_bounds = array<i64: 2>, scalar_prefetch = 0 : i64, scratch_operands = 3 : i64, tpu.core_type = #tpu.core_type<tc>, window_params = [{transform_indices = @transform_0, window_bounds = array<i64: 34, 8, 96>}, {pipeline_mode = #tpu.pipeline_mode<synchronous>, transform_indices = @transform_1, window_bounds = array<i64: 3, 96, 512>}, {pipeline_mode = #tpu.pipeline_mode<synchronous>, transform_indices = @transform_2, window_bounds = array<i64: 1, 256>}, {pipeline_mode = #tpu.pipeline_mode<synchronous>, transform_indices = @transform_3, window_bounds = array<i64: 3, 256, 512>}, {pipeline_mode = #tpu.pipeline_mode<synchronous>, transform_indices = @transform_4, window_bounds = array<i64: 1, 256>}, {pipeline_mode = #tpu.pipeline_mode<synchronous>, transform_indices = @transform_5, window_bounds = array<i64: 3, 256, 512>}, {pipeline_mode = #tpu.pipeline_mode<synchronous>, transform_indices = @transform_6, window_bounds = array<i64: 1, 256>}, {pipeline_mode = #tpu.pipeline_mode<synchronous>, transform_indices = @transform_7, window_bounds = array<i64: 3, 256, 512>}, {pipeline_mode = #tpu.pipeline_mode<synchronous>, transform_indices = @transform_8, window_bounds = array<i64: 1, 256>}, {pipeline_mode = #tpu.pipeline_mode<synchronous>, transform_indices = @transform_9, window_bounds = array<i64: 2, 256, 256>}, {pipeline_mode = #tpu.pipeline_mode<synchronous>, transform_indices = @transform_10, window_bounds = array<i64: 1, 256>}, {pipeline_mode = #tpu.pipeline_mode<synchronous>, transform_indices = @transform_11, window_bounds = array<i64: 256, 128>}, {pipeline_mode = #tpu.pipeline_mode<synchronous>, transform_indices = @transform_12, window_bounds = array<i64: 1, 128>}, {transform_indices = @transform_13, window_bounds = array<i64: 8, 128>}]} {
    %c0 = arith.constant 0 : index
    %c0_0 = arith.constant 0 : index
    %c0_1 = arith.constant 0 : index
    %0 = vector.load %arg1[%c0, %c0_0, %c0_1] : memref<34x8x96xf32, #tpu.memory_space<vmem>>, vector<32x8x96xf32>
    %1 = vector.shape_cast %0 : vector<32x8x96xf32> to vector<256x96xf32>
    %2 = arith.truncf %1 : vector<256x96xf32> to vector<256x96xbf16>
    %c0_2 = arith.constant 0 : index
    %c0_3 = arith.constant 0 : index
    %c0_4 = arith.constant 0 : index
    %3 = vector.load %arg2[%c0_2, %c0_3, %c0_4] : memref<3x96x512xbf16, #tpu.memory_space<vmem>>, vector<1x96x512xbf16>
    %4 = vector.shape_cast %3 : vector<1x96x512xbf16> to vector<96x512xbf16>
    %cst = arith.constant dense<0.000000e+00> : vector<256x512xf32>
    %5 = tpu.matmul %2, %4, %cst {dimension_numbers = #tpu.dot_dimension_numbers<[1], [0], [0], [1], [0, 0, 1, 1], [], []>} : vector<256x96xbf16>, vector<96x512xbf16>, vector<256x512xf32> -> vector<256x512xf32>
    %c1 = arith.constant 1 : index
    %c0_5 = arith.constant 0 : index
    %c0_6 = arith.constant 0 : index
    %6 = vector.load %arg1[%c1, %c0_5, %c0_6] : memref<34x8x96xf32, #tpu.memory_space<vmem>>, vector<32x8x96xf32>
    %7 = vector.shape_cast %6 : vector<32x8x96xf32> to vector<256x96xf32>
    %8 = arith.truncf %7 : vector<256x96xf32> to vector<256x96xbf16>
    %c1_7 = arith.constant 1 : index
    %c0_8 = arith.constant 0 : index
    %c0_9 = arith.constant 0 : index
    %9 = vector.load %arg2[%c1_7, %c0_8, %c0_9] : memref<3x96x512xbf16, #tpu.memory_space<vmem>>, vector<1x96x512xbf16>
    %10 = vector.shape_cast %9 : vector<1x96x512xbf16> to vector<96x512xbf16>
    %cst_10 = arith.constant dense<0.000000e+00> : vector<256x512xf32>
    %11 = tpu.matmul %8, %10, %cst_10 {dimension_numbers = #tpu.dot_dimension_numbers<[1], [0], [0], [1], [0, 0, 1, 1], [], []>} : vector<256x96xbf16>, vector<96x512xbf16>, vector<256x512xf32> -> vector<256x512xf32>
    %12 = arith.addf %5, %11 : vector<256x512xf32>
    %c2 = arith.constant 2 : index
    %c0_11 = arith.constant 0 : index
    %c0_12 = arith.constant 0 : index
    %13 = vector.load %arg1[%c2, %c0_11, %c0_12] : memref<34x8x96xf32, #tpu.memory_space<vmem>>, vector<32x8x96xf32>
    %14 = vector.shape_cast %13 : vector<32x8x96xf32> to vector<256x96xf32>
    %15 = arith.truncf %14 : vector<256x96xf32> to vector<256x96xbf16>
    %c2_13 = arith.constant 2 : index
    %c0_14 = arith.constant 0 : index
    %c0_15 = arith.constant 0 : index
    %16 = vector.load %arg2[%c2_13, %c0_14, %c0_15] : memref<3x96x512xbf16, #tpu.memory_space<vmem>>, vector<1x96x512xbf16>
    %17 = vector.shape_cast %16 : vector<1x96x512xbf16> to vector<96x512xbf16>
    %cst_16 = arith.constant dense<0.000000e+00> : vector<256x512xf32>
    %18 = tpu.matmul %15, %17, %cst_16 {dimension_numbers = #tpu.dot_dimension_numbers<[1], [0], [0], [1], [0, 0, 1, 1], [], []>} : vector<256x96xbf16>, vector<96x512xbf16>, vector<256x512xf32> -> vector<256x512xf32>
    %19 = arith.addf %12, %18 : vector<256x512xf32>
    %20 = vector.shape_cast %19 : vector<256x512xf32> to vector<16x2x8x512xf32>
    %21 = vector.extract_strided_slice %20 {offsets = [0, 0, 0, 0], sizes = [16, 1, 8, 512], strides = [1, 1, 1, 1]} : vector<16x2x8x512xf32> to vector<16x1x8x512xf32>
    %22 = vector.shape_cast %21 : vector<16x1x8x512xf32> to vector<16x8x512xf32>
    %23 = vector.extract_strided_slice %20 {offsets = [0, 1, 0, 0], sizes = [16, 1, 8, 512], strides = [1, 1, 1, 1]} : vector<16x2x8x512xf32> to vector<16x1x8x512xf32>
    %24 = vector.shape_cast %23 : vector<16x1x8x512xf32> to vector<16x8x512xf32>
    %25 = arith.maximumf %22, %24 : vector<16x8x512xf32>
    %26 = vector.extract_strided_slice %25 {offsets = [0, 0, 0], sizes = [16, 8, 256], strides = [1, 1, 1]} : vector<16x8x512xf32> to vector<16x8x256xf32>
    %27 = vector.extract_strided_slice %25 {offsets = [0, 0, 256], sizes = [16, 8, 256], strides = [1, 1, 1]} : vector<16x8x512xf32> to vector<16x8x256xf32>
    %28 = arith.maximumf %26, %27 : vector<16x8x256xf32>
    %c0_17 = arith.constant 0 : index
    %c0_18 = arith.constant 0 : index
    %29 = vector.load %arg3[%c0_17, %c0_18] : memref<1x256xf32, #tpu.memory_space<vmem>>, vector<1x256xf32>
    %30 = vector.shape_cast %29 : vector<1x256xf32> to vector<1x1x256xf32>
    %31 = vector.broadcast %30 : vector<1x1x256xf32> to vector<16x8x256xf32>
    %32 = arith.addf %28, %31 : vector<16x8x256xf32>
    %cst_19 = arith.constant 0.000000e+00 : f32
    %33 = vector.broadcast %cst_19 : f32 to vector<16x8x256xf32>
    %34 = arith.maximumf %32, %33 : vector<16x8x256xf32>
    %cst_20 = arith.constant 0.000000e+00 : f32
    %35 = vector.broadcast %cst_20 : f32 to vector<1x8x256xf32>
    %c0_21 = arith.constant 0 : index
    %c0_22 = arith.constant 0 : index
    %c0_23 = arith.constant 0 : index
    %36 = vector.load %arg15[%c0_21, %c0_22, %c0_23] : memref<18x8x256xf32, #tpu.memory_space<vmem>>, vector<1x8x256xf32>
    tpu.vector_store %arg15[%c0_21, %c0_22, %c0_23], %35 {strides = array<i32>} : memref<18x8x256xf32, #tpu.memory_space<vmem>>, vector<1x8x256xf32>,
    %c17 = arith.constant 17 : index
    %c0_24 = arith.constant 0 : index
    %c0_25 = arith.constant 0 : index
    %37 = vector.load %arg15[%c17, %c0_24, %c0_25] : memref<18x8x256xf32, #tpu.memory_space<vmem>>, vector<1x8x256xf32>
    tpu.vector_store %arg15[%c17, %c0_24, %c0_25], %35 {strides = array<i32>} : memref<18x8x256xf32, #tpu.memory_space<vmem>>, vector<1x8x256xf32>,
    %c1_26 = arith.constant 1 : index
    %c0_27 = arith.constant 0 : index
    %c0_28 = arith.constant 0 : index
    %38 = vector.load %arg15[%c1_26, %c0_27, %c0_28] : memref<18x8x256xf32, #tpu.memory_space<vmem>>, vector<16x8x256xf32>
    tpu.vector_store %arg15[%c1_26, %c0_27, %c0_28], %34 {strides = array<i32>} : memref<18x8x256xf32, #tpu.memory_space<vmem>>, vector<16x8x256xf32>,
    %c0_29 = arith.constant 0 : index
    %c0_30 = arith.constant 0 : index
    %c0_31 = arith.constant 0 : index
    %39 = vector.load %arg15[%c0_29, %c0_30, %c0_31] : memref<18x8x256xf32, #tpu.memory_space<vmem>>, vector<16x8x256xf32>
    %40 = vector.shape_cast %39 : vector<16x8x256xf32> to vector<128x256xf32>
    %41 = arith.truncf %40 : vector<128x256xf32> to vector<128x256xbf16>
    %c0_32 = arith.constant 0 : index
    %c0_33 = arith.constant 0 : index
    %c0_34 = arith.constant 0 : index
    %42 = vector.load %arg4[%c0_32, %c0_33, %c0_34] : memref<3x256x512xbf16, #tpu.memory_space<vmem>>, vector<1x256x512xbf16>
    %43 = vector.shape_cast %42 : vector<1x256x512xbf16> to vector<256x512xbf16>
    %cst_35 = arith.constant dense<0.000000e+00> : vector<128x512xf32>
    %44 = tpu.matmul %41, %43, %cst_35 {dimension_numbers = #tpu.dot_dimension_numbers<[1], [0], [0], [1], [0, 0, 1, 1], [], []>} : vector<128x256xbf16>, vector<256x512xbf16>, vector<128x512xf32> -> vector<128x512xf32>
    %c1_36 = arith.constant 1 : index
    %c0_37 = arith.constant 0 : index
    %c0_38 = arith.constant 0 : index
    %45 = vector.load %arg15[%c1_36, %c0_37, %c0_38] : memref<18x8x256xf32, #tpu.memory_space<vmem>>, vector<16x8x256xf32>
    %46 = vector.shape_cast %45 : vector<16x8x256xf32> to vector<128x256xf32>
    %47 = arith.truncf %46 : vector<128x256xf32> to vector<128x256xbf16>
    %c1_39 = arith.constant 1 : index
    %c0_40 = arith.constant 0 : index
    %c0_41 = arith.constant 0 : index
    %48 = vector.load %arg4[%c1_39, %c0_40, %c0_41] : memref<3x256x512xbf16, #tpu.memory_space<vmem>>, vector<1x256x512xbf16>
    %49 = vector.shape_cast %48 : vector<1x256x512xbf16> to vector<256x512xbf16>
    %cst_42 = arith.constant dense<0.000000e+00> : vector<128x512xf32>
    %50 = tpu.matmul %47, %49, %cst_42 {dimension_numbers = #tpu.dot_dimension_numbers<[1], [0], [0], [1], [0, 0, 1, 1], [], []>} : vector<128x256xbf16>, vector<256x512xbf16>, vector<128x512xf32> -> vector<128x512xf32>
    %51 = arith.addf %44, %50 : vector<128x512xf32>
    %c2_43 = arith.constant 2 : index
    %c0_44 = arith.constant 0 : index
    %c0_45 = arith.constant 0 : index
    %52 = vector.load %arg15[%c2_43, %c0_44, %c0_45] : memref<18x8x256xf32, #tpu.memory_space<vmem>>, vector<16x8x256xf32>
    %53 = vector.shape_cast %52 : vector<16x8x256xf32> to vector<128x256xf32>
    %54 = arith.truncf %53 : vector<128x256xf32> to vector<128x256xbf16>
    %c2_46 = arith.constant 2 : index
    %c0_47 = arith.constant 0 : index
    %c0_48 = arith.constant 0 : index
    %55 = vector.load %arg4[%c2_46, %c0_47, %c0_48] : memref<3x256x512xbf16, #tpu.memory_space<vmem>>, vector<1x256x512xbf16>
    %56 = vector.shape_cast %55 : vector<1x256x512xbf16> to vector<256x512xbf16>
    %cst_49 = arith.constant dense<0.000000e+00> : vector<128x512xf32>
    %57 = tpu.matmul %54, %56, %cst_49 {dimension_numbers = #tpu.dot_dimension_numbers<[1], [0], [0], [1], [0, 0, 1, 1], [], []>} : vector<128x256xbf16>, vector<256x512xbf16>, vector<128x512xf32> -> vector<128x512xf32>
    %58 = arith.addf %51, %57 : vector<128x512xf32>
    %59 = vector.shape_cast %58 : vector<128x512xf32> to vector<8x2x8x512xf32>
    %60 = vector.extract_strided_slice %59 {offsets = [0, 0, 0, 0], sizes = [8, 1, 8, 512], strides = [1, 1, 1, 1]} : vector<8x2x8x512xf32> to vector<8x1x8x512xf32>
    %61 = vector.shape_cast %60 : vector<8x1x8x512xf32> to vector<8x8x512xf32>
    %62 = vector.extract_strided_slice %59 {offsets = [0, 1, 0, 0], sizes = [8, 1, 8, 512], strides = [1, 1, 1, 1]} : vector<8x2x8x512xf32> to vector<8x1x8x512xf32>
    %63 = vector.shape_cast %62 : vector<8x1x8x512xf32> to vector<8x8x512xf32>
    %64 = arith.maximumf %61, %63 : vector<8x8x512xf32>
    %65 = vector.extract_strided_slice %64 {offsets = [0, 0, 0], sizes = [8, 8, 256], strides = [1, 1, 1]} : vector<8x8x512xf32> to vector<8x8x256xf32>
    %66 = vector.extract_strided_slice %64 {offsets = [0, 0, 256], sizes = [8, 8, 256], strides = [1, 1, 1]} : vector<8x8x512xf32> to vector<8x8x256xf32>
    %67 = arith.maximumf %65, %66 : vector<8x8x256xf32>
    %c0_50 = arith.constant 0 : index
    %c0_51 = arith.constant 0 : index
    %68 = vector.load %arg5[%c0_50, %c0_51] : memref<1x256xf32, #tpu.memory_space<vmem>>, vector<1x256xf32>
    %69 = vector.shape_cast %68 : vector<1x256xf32> to vector<1x1x256xf32>
    %70 = vector.broadcast %69 : vector<1x1x256xf32> to vector<8x8x256xf32>
    %71 = arith.addf %67, %70 : vector<8x8x256xf32>
    %cst_52 = arith.constant 0.000000e+00 : f32
    %72 = vector.broadcast %cst_52 : f32 to vector<8x8x256xf32>
    %73 = arith.maximumf %71, %72 : vector<8x8x256xf32>
    %cst_53 = arith.constant 0.000000e+00 : f32
    %74 = vector.broadcast %cst_53 : f32 to vector<1x8x256xf32>
    %c0_54 = arith.constant 0 : index
    %c0_55 = arith.constant 0 : index
    %c0_56 = arith.constant 0 : index
    %75 = vector.load %arg16[%c0_54, %c0_55, %c0_56] : memref<10x8x256xf32, #tpu.memory_space<vmem>>, vector<1x8x256xf32>
    tpu.vector_store %arg16[%c0_54, %c0_55, %c0_56], %74 {strides = array<i32>} : memref<10x8x256xf32, #tpu.memory_space<vmem>>, vector<1x8x256xf32>,
    %c9 = arith.constant 9 : index
    %c0_57 = arith.constant 0 : index
    %c0_58 = arith.constant 0 : index
    %76 = vector.load %arg16[%c9, %c0_57, %c0_58] : memref<10x8x256xf32, #tpu.memory_space<vmem>>, vector<1x8x256xf32>
    tpu.vector_store %arg16[%c9, %c0_57, %c0_58], %74 {strides = array<i32>} : memref<10x8x256xf32, #tpu.memory_space<vmem>>, vector<1x8x256xf32>,
    %c1_59 = arith.constant 1 : index
    %c0_60 = arith.constant 0 : index
    %c0_61 = arith.constant 0 : index
    %77 = vector.load %arg16[%c1_59, %c0_60, %c0_61] : memref<10x8x256xf32, #tpu.memory_space<vmem>>, vector<8x8x256xf32>
    tpu.vector_store %arg16[%c1_59, %c0_60, %c0_61], %73 {strides = array<i32>} : memref<10x8x256xf32, #tpu.memory_space<vmem>>, vector<8x8x256xf32>,
    %c0_62 = arith.constant 0 : index
    %c0_63 = arith.constant 0 : index
    %c0_64 = arith.constant 0 : index
    %78 = vector.load %arg16[%c0_62, %c0_63, %c0_64] : memref<10x8x256xf32, #tpu.memory_space<vmem>>, vector<8x8x256xf32>
    %79 = vector.shape_cast %78 : vector<8x8x256xf32> to vector<64x256xf32>
    %80 = arith.truncf %79 : vector<64x256xf32> to vector<64x256xbf16>
    %c0_65 = arith.constant 0 : index
    %c0_66 = arith.constant 0 : index
    %c0_67 = arith.constant 0 : index
    %81 = vector.load %arg6[%c0_65, %c0_66, %c0_67] : memref<3x256x512xbf16, #tpu.memory_space<vmem>>, vector<1x256x512xbf16>
    %82 = vector.shape_cast %81 : vector<1x256x512xbf16> to vector<256x512xbf16>
    %cst_68 = arith.constant dense<0.000000e+00> : vector<64x512xf32>
    %83 = tpu.matmul %80, %82, %cst_68 {dimension_numbers = #tpu.dot_dimension_numbers<[1], [0], [0], [1], [0, 0, 1, 1], [], []>} : vector<64x256xbf16>, vector<256x512xbf16>, vector<64x512xf32> -> vector<64x512xf32>
    %c1_69 = arith.constant 1 : index
    %c0_70 = arith.constant 0 : index
    %c0_71 = arith.constant 0 : index
    %84 = vector.load %arg16[%c1_69, %c0_70, %c0_71] : memref<10x8x256xf32, #tpu.memory_space<vmem>>, vector<8x8x256xf32>
    %85 = vector.shape_cast %84 : vector<8x8x256xf32> to vector<64x256xf32>
    %86 = arith.truncf %85 : vector<64x256xf32> to vector<64x256xbf16>
    %c1_72 = arith.constant 1 : index
    %c0_73 = arith.constant 0 : index
    %c0_74 = arith.constant 0 : index
    %87 = vector.load %arg6[%c1_72, %c0_73, %c0_74] : memref<3x256x512xbf16, #tpu.memory_space<vmem>>, vector<1x256x512xbf16>
    %88 = vector.shape_cast %87 : vector<1x256x512xbf16> to vector<256x512xbf16>
    %cst_75 = arith.constant dense<0.000000e+00> : vector<64x512xf32>
    %89 = tpu.matmul %86, %88, %cst_75 {dimension_numbers = #tpu.dot_dimension_numbers<[1], [0], [0], [1], [0, 0, 1, 1], [], []>} : vector<64x256xbf16>, vector<256x512xbf16>, vector<64x512xf32> -> vector<64x512xf32>
    %90 = arith.addf %83, %89 : vector<64x512xf32>
    %c2_76 = arith.constant 2 : index
    %c0_77 = arith.constant 0 : index
    %c0_78 = arith.constant 0 : index
    %91 = vector.load %arg16[%c2_76, %c0_77, %c0_78] : memref<10x8x256xf32, #tpu.memory_space<vmem>>, vector<8x8x256xf32>
    %92 = vector.shape_cast %91 : vector<8x8x256xf32> to vector<64x256xf32>
    %93 = arith.truncf %92 : vector<64x256xf32> to vector<64x256xbf16>
    %c2_79 = arith.constant 2 : index
    %c0_80 = arith.constant 0 : index
    %c0_81 = arith.constant 0 : index
    %94 = vector.load %arg6[%c2_79, %c0_80, %c0_81] : memref<3x256x512xbf16, #tpu.memory_space<vmem>>, vector<1x256x512xbf16>
    %95 = vector.shape_cast %94 : vector<1x256x512xbf16> to vector<256x512xbf16>
    %cst_82 = arith.constant dense<0.000000e+00> : vector<64x512xf32>
    %96 = tpu.matmul %93, %95, %cst_82 {dimension_numbers = #tpu.dot_dimension_numbers<[1], [0], [0], [1], [0, 0, 1, 1], [], []>} : vector<64x256xbf16>, vector<256x512xbf16>, vector<64x512xf32> -> vector<64x512xf32>
    %97 = arith.addf %90, %96 : vector<64x512xf32>
    %98 = vector.shape_cast %97 : vector<64x512xf32> to vector<4x2x8x512xf32>
    %99 = vector.extract_strided_slice %98 {offsets = [0, 0, 0, 0], sizes = [4, 1, 8, 512], strides = [1, 1, 1, 1]} : vector<4x2x8x512xf32> to vector<4x1x8x512xf32>
    %100 = vector.shape_cast %99 : vector<4x1x8x512xf32> to vector<4x8x512xf32>
    %101 = vector.extract_strided_slice %98 {offsets = [0, 1, 0, 0], sizes = [4, 1, 8, 512], strides = [1, 1, 1, 1]} : vector<4x2x8x512xf32> to vector<4x1x8x512xf32>
    %102 = vector.shape_cast %101 : vector<4x1x8x512xf32> to vector<4x8x512xf32>
    %103 = arith.maximumf %100, %102 : vector<4x8x512xf32>
    %104 = vector.extract_strided_slice %103 {offsets = [0, 0, 0], sizes = [4, 8, 256], strides = [1, 1, 1]} : vector<4x8x512xf32> to vector<4x8x256xf32>
    %105 = vector.extract_strided_slice %103 {offsets = [0, 0, 256], sizes = [4, 8, 256], strides = [1, 1, 1]} : vector<4x8x512xf32> to vector<4x8x256xf32>
    %106 = arith.maximumf %104, %105 : vector<4x8x256xf32>
    %c0_83 = arith.constant 0 : index
    %c0_84 = arith.constant 0 : index
    %107 = vector.load %arg7[%c0_83, %c0_84] : memref<1x256xf32, #tpu.memory_space<vmem>>, vector<1x256xf32>
    %108 = vector.shape_cast %107 : vector<1x256xf32> to vector<1x1x256xf32>
    %109 = vector.broadcast %108 : vector<1x1x256xf32> to vector<4x8x256xf32>
    %110 = arith.addf %106, %109 : vector<4x8x256xf32>
    %cst_85 = arith.constant 0.000000e+00 : f32
    %111 = vector.broadcast %cst_85 : f32 to vector<4x8x256xf32>
    %112 = arith.maximumf %110, %111 : vector<4x8x256xf32>
    %cst_86 = arith.constant 0.000000e+00 : f32
    %113 = vector.broadcast %cst_86 : f32 to vector<1x8x256xf32>
    %c0_87 = arith.constant 0 : index
    %c0_88 = arith.constant 0 : index
    %c0_89 = arith.constant 0 : index
    %114 = vector.load %arg17[%c0_87, %c0_88, %c0_89] : memref<6x8x256xf32, #tpu.memory_space<vmem>>, vector<1x8x256xf32>
    tpu.vector_store %arg17[%c0_87, %c0_88, %c0_89], %113 {strides = array<i32>} : memref<6x8x256xf32, #tpu.memory_space<vmem>>, vector<1x8x256xf32>,
    %c5 = arith.constant 5 : index
    %c0_90 = arith.constant 0 : index
    %c0_91 = arith.constant 0 : index
    %115 = vector.load %arg17[%c5, %c0_90, %c0_91] : memref<6x8x256xf32, #tpu.memory_space<vmem>>, vector<1x8x256xf32>
    tpu.vector_store %arg17[%c5, %c0_90, %c0_91], %113 {strides = array<i32>} : memref<6x8x256xf32, #tpu.memory_space<vmem>>, vector<1x8x256xf32>,
    %c1_92 = arith.constant 1 : index
    %c0_93 = arith.constant 0 : index
    %c0_94 = arith.constant 0 : index
    %116 = vector.load %arg17[%c1_92, %c0_93, %c0_94] : memref<6x8x256xf32, #tpu.memory_space<vmem>>, vector<4x8x256xf32>
    tpu.vector_store %arg17[%c1_92, %c0_93, %c0_94], %112 {strides = array<i32>} : memref<6x8x256xf32, #tpu.memory_space<vmem>>, vector<4x8x256xf32>,
    %c0_95 = arith.constant 0 : index
    %c0_96 = arith.constant 0 : index
    %c0_97 = arith.constant 0 : index
    %117 = vector.load %arg17[%c0_95, %c0_96, %c0_97] : memref<6x8x256xf32, #tpu.memory_space<vmem>>, vector<4x8x256xf32>
    %118 = vector.shape_cast %117 : vector<4x8x256xf32> to vector<32x256xf32>
    %119 = arith.truncf %118 : vector<32x256xf32> to vector<32x256xbf16>
    %c0_98 = arith.constant 0 : index
    %c0_99 = arith.constant 0 : index
    %c0_100 = arith.constant 0 : index
    %120 = vector.load %arg8[%c0_98, %c0_99, %c0_100] : memref<3x256x512xbf16, #tpu.memory_space<vmem>>, vector<1x256x512xbf16>
    %121 = vector.shape_cast %120 : vector<1x256x512xbf16> to vector<256x512xbf16>
    %cst_101 = arith.constant dense<0.000000e+00> : vector<32x512xf32>
    %122 = tpu.matmul %119, %121, %cst_101 {dimension_numbers = #tpu.dot_dimension_numbers<[1], [0], [0], [1], [0, 0, 1, 1], [], []>} : vector<32x256xbf16>, vector<256x512xbf16>, vector<32x512xf32> -> vector<32x512xf32>
    %c1_102 = arith.constant 1 : index
    %c0_103 = arith.constant 0 : index
    %c0_104 = arith.constant 0 : index
    %123 = vector.load %arg17[%c1_102, %c0_103, %c0_104] : memref<6x8x256xf32, #tpu.memory_space<vmem>>, vector<4x8x256xf32>
    %124 = vector.shape_cast %123 : vector<4x8x256xf32> to vector<32x256xf32>
    %125 = arith.truncf %124 : vector<32x256xf32> to vector<32x256xbf16>
    %c1_105 = arith.constant 1 : index
    %c0_106 = arith.constant 0 : index
    %c0_107 = arith.constant 0 : index
    %126 = vector.load %arg8[%c1_105, %c0_106, %c0_107] : memref<3x256x512xbf16, #tpu.memory_space<vmem>>, vector<1x256x512xbf16>
    %127 = vector.shape_cast %126 : vector<1x256x512xbf16> to vector<256x512xbf16>
    %cst_108 = arith.constant dense<0.000000e+00> : vector<32x512xf32>
    %128 = tpu.matmul %125, %127, %cst_108 {dimension_numbers = #tpu.dot_dimension_numbers<[1], [0], [0], [1], [0, 0, 1, 1], [], []>} : vector<32x256xbf16>, vector<256x512xbf16>, vector<32x512xf32> -> vector<32x512xf32>
    %129 = arith.addf %122, %128 : vector<32x512xf32>
    %c2_109 = arith.constant 2 : index
    %c0_110 = arith.constant 0 : index
    %c0_111 = arith.constant 0 : index
    %130 = vector.load %arg17[%c2_109, %c0_110, %c0_111] : memref<6x8x256xf32, #tpu.memory_space<vmem>>, vector<4x8x256xf32>
    %131 = vector.shape_cast %130 : vector<4x8x256xf32> to vector<32x256xf32>
    %132 = arith.truncf %131 : vector<32x256xf32> to vector<32x256xbf16>
    %c2_112 = arith.constant 2 : index
    %c0_113 = arith.constant 0 : index
    %c0_114 = arith.constant 0 : index
    %133 = vector.load %arg8[%c2_112, %c0_113, %c0_114] : memref<3x256x512xbf16, #tpu.memory_space<vmem>>, vector<1x256x512xbf16>
    %134 = vector.shape_cast %133 : vector<1x256x512xbf16> to vector<256x512xbf16>
    %cst_115 = arith.constant dense<0.000000e+00> : vector<32x512xf32>
    %135 = tpu.matmul %132, %134, %cst_115 {dimension_numbers = #tpu.dot_dimension_numbers<[1], [0], [0], [1], [0, 0, 1, 1], [], []>} : vector<32x256xbf16>, vector<256x512xbf16>, vector<32x512xf32> -> vector<32x512xf32>
    %136 = arith.addf %129, %135 : vector<32x512xf32>
    %137 = vector.shape_cast %136 : vector<32x512xf32> to vector<2x2x8x512xf32>
    %138 = vector.extract_strided_slice %137 {offsets = [0, 0, 0, 0], sizes = [2, 1, 8, 512], strides = [1, 1, 1, 1]} : vector<2x2x8x512xf32> to vector<2x1x8x512xf32>
    %139 = vector.shape_cast %138 : vector<2x1x8x512xf32> to vector<2x8x512xf32>
    %140 = vector.extract_strided_slice %137 {offsets = [0, 1, 0, 0], sizes = [2, 1, 8, 512], strides = [1, 1, 1, 1]} : vector<2x2x8x512xf32> to vector<2x1x8x512xf32>
    %141 = vector.shape_cast %140 : vector<2x1x8x512xf32> to vector<2x8x512xf32>
    %142 = arith.maximumf %139, %141 : vector<2x8x512xf32>
    %143 = vector.extract_strided_slice %142 {offsets = [0, 0, 0], sizes = [2, 8, 256], strides = [1, 1, 1]} : vector<2x8x512xf32> to vector<2x8x256xf32>
    %144 = vector.extract_strided_slice %142 {offsets = [0, 0, 256], sizes = [2, 8, 256], strides = [1, 1, 1]} : vector<2x8x512xf32> to vector<2x8x256xf32>
    %145 = arith.maximumf %143, %144 : vector<2x8x256xf32>
    %c0_116 = arith.constant 0 : index
    %c0_117 = arith.constant 0 : index
    %146 = vector.load %arg9[%c0_116, %c0_117] : memref<1x256xf32, #tpu.memory_space<vmem>>, vector<1x256xf32>
    %147 = vector.shape_cast %146 : vector<1x256xf32> to vector<1x1x256xf32>
    %148 = vector.broadcast %147 : vector<1x1x256xf32> to vector<2x8x256xf32>
    %149 = arith.addf %145, %148 : vector<2x8x256xf32>
    %cst_118 = arith.constant 0.000000e+00 : f32
    %150 = vector.broadcast %cst_118 : f32 to vector<2x8x256xf32>
    %151 = arith.maximumf %149, %150 : vector<2x8x256xf32>
    %152 = vector.extract_strided_slice %151 {offsets = [0, 0, 0], sizes = [1, 8, 256], strides = [1, 1, 1]} : vector<2x8x256xf32> to vector<1x8x256xf32>
    %153 = vector.shape_cast %152 : vector<1x8x256xf32> to vector<8x256xf32>
    %154 = arith.truncf %153 : vector<8x256xf32> to vector<8x256xbf16>
    %c0_119 = arith.constant 0 : index
    %c0_120 = arith.constant 0 : index
    %c0_121 = arith.constant 0 : index
    %155 = vector.load %arg10[%c0_119, %c0_120, %c0_121] : memref<2x256x256xbf16, #tpu.memory_space<vmem>>, vector<1x256x256xbf16>
    %156 = vector.shape_cast %155 : vector<1x256x256xbf16> to vector<256x256xbf16>
    %cst_122 = arith.constant dense<0.000000e+00> : vector<8x256xf32>
    %157 = tpu.matmul %154, %156, %cst_122 {dimension_numbers = #tpu.dot_dimension_numbers<[1], [0], [0], [1], [0, 0, 1, 1], [], []>} : vector<8x256xbf16>, vector<256x256xbf16>, vector<8x256xf32> -> vector<8x256xf32>
    %158 = vector.extract_strided_slice %151 {offsets = [1, 0, 0], sizes = [1, 8, 256], strides = [1, 1, 1]} : vector<2x8x256xf32> to vector<1x8x256xf32>
    %159 = vector.shape_cast %158 : vector<1x8x256xf32> to vector<8x256xf32>
    %160 = arith.truncf %159 : vector<8x256xf32> to vector<8x256xbf16>
    %c1_123 = arith.constant 1 : index
    %c0_124 = arith.constant 0 : index
    %c0_125 = arith.constant 0 : index
    %161 = vector.load %arg10[%c1_123, %c0_124, %c0_125] : memref<2x256x256xbf16, #tpu.memory_space<vmem>>, vector<1x256x256xbf16>
    %162 = vector.shape_cast %161 : vector<1x256x256xbf16> to vector<256x256xbf16>
    %cst_126 = arith.constant dense<0.000000e+00> : vector<8x256xf32>
    %163 = tpu.matmul %160, %162, %cst_126 {dimension_numbers = #tpu.dot_dimension_numbers<[1], [0], [0], [1], [0, 0, 1, 1], [], []>} : vector<8x256xbf16>, vector<256x256xbf16>, vector<8x256xf32> -> vector<8x256xf32>
    %164 = arith.addf %157, %163 : vector<8x256xf32>
    %c0_127 = arith.constant 0 : index
    %c0_128 = arith.constant 0 : index
    %165 = vector.load %arg11[%c0_127, %c0_128] : memref<1x256xf32, #tpu.memory_space<vmem>>, vector<1x256xf32>
    %166 = vector.broadcast %165 : vector<1x256xf32> to vector<8x256xf32>
    %167 = arith.addf %164, %166 : vector<8x256xf32>
    %cst_129 = arith.constant 0.000000e+00 : f32
    %168 = vector.broadcast %cst_129 : f32 to vector<8x256xf32>
    %169 = arith.maximumf %167, %168 : vector<8x256xf32>
    %170 = arith.truncf %169 : vector<8x256xf32> to vector<8x256xbf16>
    %c0_130 = arith.constant 0 : index
    %c0_131 = arith.constant 0 : index
    %171 = vector.load %arg12[%c0_130, %c0_131] : memref<256x128xbf16, #tpu.memory_space<vmem>>, vector<256x128xbf16>
    %cst_132 = arith.constant dense<0.000000e+00> : vector<8x128xf32>
    %172 = tpu.matmul %170, %171, %cst_132 {dimension_numbers = #tpu.dot_dimension_numbers<[1], [0], [0], [1], [0, 0, 1, 1], [], []>} : vector<8x256xbf16>, vector<256x128xbf16>, vector<8x128xf32> -> vector<8x128xf32>
    %c0_133 = arith.constant 0 : index
    %c0_134 = arith.constant 0 : index
    %173 = vector.load %arg13[%c0_133, %c0_134] : memref<1x128xf32, #tpu.memory_space<vmem>>, vector<1x128xf32>
    %174 = vector.broadcast %173 : vector<1x128xf32> to vector<8x128xf32>
    %175 = arith.addf %172, %174 : vector<8x128xf32>
    %c0_135 = arith.constant 0 : index
    %c0_136 = arith.constant 0 : index
    %176 = vector.load %arg14[%c0_135, %c0_136] : memref<8x128xf32, #tpu.memory_space<vmem>>, vector<8x128xf32>
    tpu.vector_store %arg14[%c0_135, %c0_136], %175 {strides = array<i32>} : memref<8x128xf32, #tpu.memory_space<vmem>>, vector<8x128xf32>,
    return
  }
  func.func @transform_0(%arg0: i32) -> (i32, i32, i32) {
    %c0_i32 = arith.constant 0 : i32
    %c0_i32_0 = arith.constant 0 : i32
    %c0_i32_1 = arith.constant 0 : i32
    return %c0_i32, %arg0, %c0_i32_0 : i32, i32, i32
  }
  func.func @transform_1(%arg0: i32) -> (i32, i32, i32) {
    %c0_i32 = arith.constant 0 : i32
    %c0_i32_0 = arith.constant 0 : i32
    %c0_i32_1 = arith.constant 0 : i32
    %c0_i32_2 = arith.constant 0 : i32
    return %c0_i32, %c0_i32_0, %c0_i32_1 : i32, i32, i32
  }
  func.func @transform_2(%arg0: i32) -> (i32, i32) {
    %c0_i32 = arith.constant 0 : i32
    %c0_i32_0 = arith.constant 0 : i32
    %c0_i32_1 = arith.constant 0 : i32
    return %c0_i32, %c0_i32_0 : i32, i32
  }
  func.func @transform_3(%arg0: i32) -> (i32, i32, i32) {
    %c0_i32 = arith.constant 0 : i32
    %c0_i32_0 = arith.constant 0 : i32
    %c0_i32_1 = arith.constant 0 : i32
    %c0_i32_2 = arith.constant 0 : i32
    return %c0_i32, %c0_i32_0, %c0_i32_1 : i32, i32, i32
  }
  func.func @transform_4(%arg0: i32) -> (i32, i32) {
    %c0_i32 = arith.constant 0 : i32
    %c0_i32_0 = arith.constant 0 : i32
    %c0_i32_1 = arith.constant 0 : i32
    return %c0_i32, %c0_i32_0 : i32, i32
  }
  func.func @transform_5(%arg0: i32) -> (i32, i32, i32) {
    %c0_i32 = arith.constant 0 : i32
    %c0_i32_0 = arith.constant 0 : i32
    %c0_i32_1 = arith.constant 0 : i32
    %c0_i32_2 = arith.constant 0 : i32
    return %c0_i32, %c0_i32_0, %c0_i32_1 : i32, i32, i32
  }
  func.func @transform_6(%arg0: i32) -> (i32, i32) {
    %c0_i32 = arith.constant 0 : i32
    %c0_i32_0 = arith.constant 0 : i32
    %c0_i32_1 = arith.constant 0 : i32
    return %c0_i32, %c0_i32_0 : i32, i32
  }
  func.func @transform_7(%arg0: i32) -> (i32, i32, i32) {
    %c0_i32 = arith.constant 0 : i32
    %c0_i32_0 = arith.constant 0 : i32
    %c0_i32_1 = arith.constant 0 : i32
    %c0_i32_2 = arith.constant 0 : i32
    return %c0_i32, %c0_i32_0, %c0_i32_1 : i32, i32, i32
  }
  func.func @transform_8(%arg0: i32) -> (i32, i32) {
    %c0_i32 = arith.constant 0 : i32
    %c0_i32_0 = arith.constant 0 : i32
    %c0_i32_1 = arith.constant 0 : i32
    return %c0_i32, %c0_i32_0 : i32, i32
  }
  func.func @transform_9(%arg0: i32) -> (i32, i32, i32) {
    %c0_i32 = arith.constant 0 : i32
    %c0_i32_0 = arith.constant 0 : i32
    %c0_i32_1 = arith.constant 0 : i32
    %c0_i32_2 = arith.constant 0 : i32
    return %c0_i32, %c0_i32_0, %c0_i32_1 : i32, i32, i32
  }
  func.func @transform_10(%arg0: i32) -> (i32, i32) {
    %c0_i32 = arith.constant 0 : i32
    %c0_i32_0 = arith.constant 0 : i32
    %c0_i32_1 = arith.constant 0 : i32
    return %c0_i32, %c0_i32_0 : i32, i32
  }
  func.func @transform_11(%arg0: i32) -> (i32, i32) {
    %c0_i32 = arith.constant 0 : i32
    %c0_i32_0 = arith.constant 0 : i32
    %c0_i32_1 = arith.constant 0 : i32
    return %c0_i32, %c0_i32_0 : i32, i32
  }
  func.func @transform_12(%arg0: i32) -> (i32, i32) {
    %c0_i32 = arith.constant 0 : i32
    %c0_i32_0 = arith.constant 0 : i32
    %c0_i32_1 = arith.constant 0 : i32
    return %c0_i32, %c0_i32_0 : i32, i32
  }
  func.func @transform_13(%arg0: i32) -> (i32, i32) {
    %c0_i32 = arith.constant 0 : i32
    %c0_i32_0 = arith.constant 0 : i32
    return %arg0, %c0_i32 : i32, i32
  }
}

</mosaic_0001>

<bundles_post_ra>
// kernel: tile.23
= control target key start
LH: loop header
LB: loop body
LE: loop exit
PB: predicated region body
PF: predicated region fallthrough
CT: control target
= control target key end

     0   :  { %s28_s0 = inlined_call_operand.vmem [shape: f32[16], index: 0, kind: input, shape index: {}]   ;;  %s29_s1 = inlined_call_operand.vmem [shape: f32[16,16], index: 1, kind: output, shape index: {}]  }
   0x1   :  { %v4_v0 = vld [vmem:[%s28_s0] ss:$0 sm:$0xff] }
   0x2   :  { %5 = vst [vmem:[%s29_s1] sm:$0xff] %v4_v0  ;;  %8 = vst [vmem:[%s29_s1 + $0x8] sm:$0xff] %v4_v0 }

// kernel: tile.24
= control target key start
LH: loop header
LB: loop body
LE: loop exit
PB: predicated region body
PF: predicated region fallthrough
CT: control target
= control target key end

     0   :  { %s7_s6 = smov 3  ;;  %s21_s9 = smov 3  ;;  %vm4_vm0 = vcmask 130048   ;;  %vm11_vm1 = vcmask 1048448   ;;  %vm18_vm2 = vcmask 917248   ;;  %vm25_vm3 = vcmask 786048   ;;  %s131_s0 = inlined_call_operand.vmem [shape: f32[16,16], index: 0, kind: input, shape index: {}]   ;;  %s132_s1 = inlined_call_operand.vmem [shape: f32[1,256], index: 1, kind: output, shape index: {}]  }
   0x1   :  { %v69_v0 = vld [vmem:[%s131_s0 + $0x7] ss:$8 sm:%s7_s6]   ;;  %s84_s10 = smov 112   ;;  %v71_v1 = vld [vmem:[%s131_s0 + $0x5] ss:$8 sm:%s21_s9]   ;;  %s14_s13 = smov 3 }
   0x2   :  { %9 = vrot.lane.b32.xlu0 %v69_v0, %s84_s10  ;;  %s85_s14 = smov 80   ;;  %v70_v2 = vld [vmem:[%s131_s0 + $0x6] ss:$8 sm:%s14_s13]   ;;  %s28_s17 = smov 3  ;;  %vm32_vm4 = vcmask 654848   ;;  %vm39_vm5 = vcmask 523648  }
   0x3   :  { %23 = vrot.lane.b32.xlu1 %v71_v1, %s85_s14  ;;  %v72_v3 = vld [vmem:[%s131_s0 + $0x4] ss:$8 sm:%s28_s17]   ;;  %s35_s20 = smov 3  ;;  %s42_s21 = smov 3  ;;  %vm46_vm6 = vcmask 392448   ;;  %vm53_vm7 = vcmask 261248  }
   0x4   :  { %s86_s22 = smov 96   ;;  %s87_s23 = smov 64   ;;  %v73_v4 = vld [vmem:[%s131_s0 + $0x3] ss:$8 sm:%s35_s20]   ;;  %v74_v5 = vld [vmem:[%s131_s0 + $0x2] ss:$8 sm:%s42_s21]  }
   0x5   :  { %s2_s26 = smov 3  ;;  %s49_s29 = smov 3 }
   0x6   :  { %16 = vrot.lane.b32.xlu0 %v70_v2, %s86_s22  ;;  %v3_v6 = vld [vmem:[%s131_s0] ss:$8 sm:%s2_s26]   ;;  %s88_s3 = smov 48   ;;  %s89_s4 = smov 32  }
   0x7   :  { %30 = vrot.lane.b32.xlu1 %v72_v3, %s87_s23  ;;  %5 = vst.msk [vmem:[#allocation0] ss:$8 sm:$0x3] %vm4_vm0, %v3_v6   ;;  %v75_v7 = vld [vmem:[%s131_s0 + $0x1] ss:$8 sm:%s49_s29]   ;;  %s90_s0 = smov 16  }
   0xa   :  { %37 = vrot.lane.b32.xlu0 %v73_v4, %s88_s3 }
   0xb   :  { %44 = vrot.lane.b32.xlu1 %v74_v5, %s89_s4 }
   0xe   :  { %51 = vrot.lane.b32.xlu0 %v75_v7, %s90_s0 }
  0x74   :  { %v10_v8 = vpop.permute.xlu0 %9  }
  0x75   :  { %12 = vst.msk [vmem:[#allocation0] ss:$8 sm:$0x3] %vm11_vm1, %v10_v8   ;;  %v24_v9 = vpop.permute.xlu1 %23  }
  0x78   :  { %v17_v10 = vpop.permute.xlu0 %16  }
  0x79   :  { %19 = vst.msk [vmem:[#allocation0] ss:$8 sm:$0x3] %vm18_vm2, %v17_v10   ;;  %v31_v11 = vpop.permute.xlu1 %30  }
  0x7a   :  { %26 = vst.msk [vmem:[#allocation0] ss:$8 sm:$0x3] %vm25_vm3, %v24_v9  }
  0x7b   :  { %33 = vst.msk [vmem:[#allocation0] ss:$8 sm:$0x3] %vm32_vm4, %v31_v11  }
  0x7c   :  { %v38_v12 = vpop.permute.xlu0 %37  }
  0x7d   :  { %40 = vst.msk [vmem:[#allocation0] ss:$8 sm:$0x3] %vm39_vm5, %v38_v12   ;;  %v45_v13 = vpop.permute.xlu1 %44  }
  0x7e   :  { %47 = vst.msk [vmem:[#allocation0] ss:$8 sm:$0x3] %vm46_vm6, %v45_v13  }
  0x80   :  { %v52_v14 = vpop.permute.xlu0 %51  }
  0x81   :  { %54 = vst.msk [vmem:[#allocation0] ss:$8 sm:$0x3] %vm53_vm7, %v52_v14  }
  0x88   :  { %v59_v15 = vld [vmem:[#allocation0] sm:$0x1]  ;;  %v64_v16 = vld [vmem:[#allocation0 + $0x8] sm:$0x1] }
  0x89   :  { %62 = vst [vmem:[%s132_s1] sm:$0x1] %v59_v15  ;;  %76 = vst [vmem:[%s132_s1 + $0x1] sm:$0x1] %v64_v16 }

// kernel: tile.28
= control target key start
LH: loop header
LB: loop body
LE: loop exit
PB: predicated region body
PF: predicated region fallthrough
CT: control target
= control target key end

     0   :  { %s22_s0 = inlined_call_operand.vmem [shape: f32[32], index: 0, kind: input, shape index: {}]   ;;  %s23_s1 = inlined_call_operand.vmem [shape: f32[8,32], index: 1, kind: output, shape index: {}]  }
   0x1   :  { %v4_v0 = vld [vmem:[%s22_s0] ss:$0 sm:$0xff] }
   0x2   :  { %5 = vst [vmem:[%s23_s1] sm:$0xff] %v4_v0 }

// kernel: tile.29
= control target key start
LH: loop header
LB: loop body
LE: loop exit
PB: predicated region body
PF: predicated region fallthrough
CT: control target
= control target key end

     0   :  { %s7_s6 = smov 3  ;;  %s14_s9 = smov 3  ;;  %vm4_vm0 = vcmask 261120   ;;  %vm11_vm1 = vcmask 1048320   ;;  %vm18_vm2 = vcmask 785920   ;;  %vm25_vm3 = vcmask 523520   ;;  %s79_s0 = inlined_call_operand.vmem [shape: f32[8,32], index: 0, kind: input, shape index: {}]   ;;  %s80_s1 = inlined_call_operand.vmem [shape: f32[1,256], index: 1, kind: output, shape index: {}]  }
   0x1   :  { %v41_v0 = vld [vmem:[%s79_s0 + $0x3] ss:$4 sm:%s7_s6]   ;;  %s48_s10 = smov 96   ;;  %s21_s11 = smov 3  ;;  %v42_v1 = vld [vmem:[%s79_s0 + $0x2] ss:$4 sm:%s14_s9]  }
   0x2   :  { %9 = vrot.lane.b32.xlu0 %v41_v0, %s48_s10  ;;  %v43_v2 = vld [vmem:[%s79_s0 + $0x1] ss:$4 sm:%s21_s11]   ;;  %s2_s16 = smov 3  ;;  %s49_s17 = smov 32  }
   0x3   :  { %23 = vrot.lane.b32.xlu1 %v43_v2, %s49_s17  ;;  %v3_v3 = vld [vmem:[%s79_s0] ss:$4 sm:%s2_s16]   ;;  %s50_s0 = smov 64  }
   0x4   :  { %5 = vst.msk [vmem:[#allocation0] ss:$8 sm:$0x3] %vm4_vm0, %v3_v3  }
   0x6   :  { %16 = vrot.lane.b32.xlu0 %v42_v1, %s50_s0 }
  0x74   :  { %v10_v4 = vpop.permute.xlu0 %9  }
  0x75   :  { %12 = vst.msk [vmem:[#allocation0] ss:$8 sm:$0x3] %vm11_vm1, %v10_v4   ;;  %v24_v5 = vpop.permute.xlu1 %23  }
  0x78   :  { %v17_v6 = vpop.permute.xlu0 %16  }
  0x79   :  { %19 = vst.msk [vmem:[#allocation0] ss:$8 sm:$0x3] %vm18_vm2, %v17_v6  }
  0x7a   :  { %26 = vst.msk [vmem:[#allocation0] ss:$8 sm:$0x3] %vm25_vm3, %v24_v5  }
  0x81   :  { %v31_v7 = vld [vmem:[#allocation0] sm:$0x1]  ;;  %v36_v8 = vld [vmem:[#allocation0 + $0x8] sm:$0x1] }
  0x82   :  { %34 = vst [vmem:[%s80_s1] sm:$0x1] %v31_v7  ;;  %44 = vst [vmem:[%s80_s1 + $0x1] sm:$0x1] %v36_v8 }

// kernel: tile.33
= control target key start
LH: loop header
LB: loop body
LE: loop exit
PB: predicated region body
PF: predicated region fallthrough
CT: control target
= control target key end

     0   :  { %s22_s0 = inlined_call_operand.vmem [shape: f32[64], index: 0, kind: input, shape index: {}]   ;;  %s23_s1 = inlined_call_operand.vmem [shape: f32[4,64], index: 1, kind: output, shape index: {}]  }
   0x1   :  { %v4_v0 = vld [vmem:[%s22_s0] ss:$0 sm:$0xff] }
   0x2   :  { %5 = vst [vmem:[%s23_s1] sm:$0xf] %v4_v0 }

// kernel: tile.34
= control target key start
LH: loop header
LB: loop body
LE: loop exit
PB: predicated region body
PF: predicated region fallthrough
CT: control target
= control target key end

     0   :  { %s7_s8 = smov 3  ;;  %vm9_vm0 = vcmask 523264   ;;  %s34_s9 = smov 64   ;;  %vm16_vm1 = vcmask 1048064   ;;  %s54_s0 = inlined_call_operand.vmem [shape: f32[4,64], index: 0, kind: input, shape index: {}]   ;;  %s55_s1 = inlined_call_operand.vmem [shape: f32[1,256], index: 1, kind: output, shape index: {}]  }
   0x1   :  { %v5_v0 = vld [vmem:[%s54_s0] sm:$0xf]  ;;  %s12_s0 = smov 3 }
   0x2   :  { %6 = vst [vmem:[#allocation1] sm:$0xf] %v5_v0 }
   0x9   :  { %v13_v1 = vld [vmem:[#allocation1 + $0x1] ss:$2 sm:%s12_s0]   ;;  %v8_v2 = vld [vmem:[#allocation1] ss:$2 sm:%s7_s8]  }
   0xa   :  { %14 = vrot.lane.b32.xlu0 %v13_v1, %s34_s9  ;;  %10 = vst.msk [vmem:[#allocation0] ss:$8 sm:$0x3] %vm9_vm0, %v8_v2  }
  0x7c   :  { %v15_v3 = vpop.permute.xlu0 %14  }
  0x7d   :  { %17 = vst.msk [vmem:[#allocation0] ss:$8 sm:$0x3] %vm16_vm1, %v15_v3  }
  0x84   :  { %v22_v4 = vld [vmem:[#allocation0] sm:$0x1]  ;;  %v27_v5 = vld [vmem:[#allocation0 + $0x8] sm:$0x1] }
  0x85   :  { %25 = vst [vmem:[%s55_s1] sm:$0x1] %v22_v4  ;;  %32 = vst [vmem:[%s55_s1 + $0x1] sm:$0x1] %v27_v5 }

// kernel: tile.38
= control target key start
LH: loop header
LB: loop body
LE: loop exit
PB: predicated region body
PF: predicated region fallthrough
CT: control target
= control target key end

     0   :  { %s22_s0 = inlined_call_operand.vmem [shape: f32[128], index: 0, kind: input, shape index: {}]   ;;  %s23_s1 = inlined_call_operand.vmem [shape: f32[2,128], index: 1, kind: output, shape index: {}]  }
   0x1   :  { %v4_v0 = vld [vmem:[%s22_s0] ss:$0 sm:$0xff] }
   0x2   :  { %5 = vst [vmem:[%s23_s1] sm:$0x3] %v4_v0 }

// kernel: simple_cnn_forward.1
= control target key start
LH: loop header
LB: loop body
LE: loop exit
PB: predicated region body
PF: predicated region fallthrough
CT: control target
= control target key end

     0   :  { %s16247_s0 = inlined_call_operand.vmem [shape: f32[34,16,96], index: 0, kind: input, shape index: {}]   ;;  %s16248_s1 = inlined_call_operand.vmem [shape: bf16[3,96,512], index: 1, kind: input, shape index: {}]   ;;  %s16249_s2 = inlined_call_operand.vmem [shape: f32[1,256], index: 2, kind: input, shape index: {}]   ;;  %s16250_s3 = inlined_call_operand.vmem [shape: bf16[3,256,512], index: 3, kind: input, shape index: {}]   ;;  %s16251_s4 = inlined_call_operand.vmem [shape: f32[1,256], index: 4, kind: input, shape index: {}]   ;;  %s16252_s5 = inlined_call_operand.vmem [shape: bf16[3,256,512], index: 5, kind: input, shape index: {}]   ;;  %s16253_s6 = inlined_call_operand.vmem [shape: f32[1,256], index: 6, kind: input, shape index: {}]   ;;  %s16254_s7 = inlined_call_operand.vmem [shape: bf16[3,256,512], index: 7, kind: input, shape index: {}]   ;;  %s16255_s8 = inlined_call_operand.vmem [shape: f32[1,256], index: 8, kind: input, shape index: {}]   ;;  %s16256_s9 = inlined_call_operand.vmem [shape: bf16[2,256,256], index: 9, kind: input, shape index: {}]   ;;  %s16257_s10 = inlined_call_operand.vmem [shape: f32[1,256], index: 10, kind: input, shape index: {}]   ;;  %s16258_s11 = inlined_call_operand.vmem [shape: bf16[256,128], index: 11, kind: input, shape index: {}]   ;;  %s16259_s12 = inlined_call_operand.vmem [shape: f32[1,128], index: 12, kind: input, shape index: {}]   ;;  %s16260_s13 = inlined_call_operand.hbm [shape: f32[16,128], index: 13, kind: output, shape index: {}]  }
   0x1   :  { %16268 = sst [smem:[#allocation220_spill]] %s16247_s0 }
   0x2   :  { %18 = vsyncpa [#allocation7], 0 }
   0x3   :  { %20 = vsyncpa [#allocation7 + $0x1], 0  ;;  %s11708_s25 = smov 0   ;;  %s11710_s26 = smov 0  }
   0x4   :  { %s11712_s27 = smov 0   ;;  %s11714_s28 = smov 0  }
   0x5 LB: > { %16269 = sst [smem:[#allocation9_spill]] %s11629_s27  ;;  %s16261_s29 = sadd.s32 4294967295, %s11633_s28   ;;  %s11633_s28 = sphi %s11714_s28, %s16891_s28   ;;  %s11629_s27 = sphi %s11712_s27, %s16890_s27   ;;  %s11625_s26 = sphi %s11710_s26, %s16889_s26   ;;  %s11621_s25 = sphi %s11708_s25, %s16888_s25  }
   0x6   : > { %s9047_s30 = sadd.s32 4294967294, %s11633_s28   ;;  %s11731_s14 = sadd.s32 1, %s11633_s28  }
   0x7   : > { %s33_s15 = sadd.s32 1, %s11629_s27  ;;  %s30_s16 = ssub.s32 %s11633_s28, %s11731_s14 }
   0x8   : > { %p40_p0 = scmp.ne.s32.totalorder %s11629_s27, %s11625_s26  ;;  %p31_p1 = scmp.eq.s32.totalorder %s30_s16, 0 }
   0x9   : > { %p41_p2 = scmp.eq.s32.totalorder %s11633_s28, 0  ;;  %p322_p3 = scmp.eq.s32.totalorder %s16261_s29, 1 }
   0xa   : > { %p327_p4 = scmp.ne.s32.totalorder %s11625_s26, %s11621_s25  ;;  %p328_p7 = scmp.eq.s32.totalorder %s9047_s30, 1 }
   0xb   : > { %s11744_s17 = scalar_select %p31_p1, %s11629_s27, %s33_s15  }
   0xc   : > { %p42_p5 = por %p41_p2, %p40_p0  ;;  %p11746_p6 = por %p322_p3, %p40_p0 }
   0xd   : > { %16270 = sst [smem:[#allocation10_spill]] %s11744_s17  ;;  %p11750_p8 = por %p328_p7, %p327_p4 }
   0xe   : > { %p9049_p9 = scmp.ge.s32.totalorder %s11633_s28, 2 }
  0x10   : > { %380 = sbr.rel (%p9049_p9) target bundleno = 48 (0x30), region = 64 }
  0x15   : > { %383 = sbr.rel (!%p42_p5) target bundleno = 48 (0x30), region = 68  ;;  %s385_s20 = sand.u32 (%p42_p5), 1, %s11629_s27  }
  0x16   : > { %s9050_s21 = sshll.u32 (%p42_p5), %s11633_s28, 3  ;;  %s10432_s22 = smul.u32 (%p42_p5), 272, %s385_s20 }
  0x17   : > { %s16273_s0 = sld [smem:[#allocation220_spill]] (%p42_p5) }
  0x18   : > { %s11770_s30 = scalar_lea.vmem (%p42_p5), [#allocation5], %s10432_s22 }
  0x1d   : > { %s11762_s15 = scalar_lea.vmem %s16273_s0, %s9050_s21 }
  0x1e   : > { %v484_v0 = vld [vmem:[%s11762_s15] sm:$0xff]  ;;  %v486_v1 = vld [vmem:[%s11762_s15 + $0x10] sm:$0xff] }
  0x1f   : > { %v488_v2 = vld [vmem:[%s11762_s15 + $0x20] sm:$0xff]  ;;  %v490_v3 = vld [vmem:[%s11762_s15 + $0x30] sm:$0xff]  ;;  %485 = vst [vmem:[%s11770_s30] sm:$0xff] %v484_v0  ;;  %487 = vst [vmem:[%s11770_s30 + $0x8] sm:$0xff] %v486_v1 }
  0x20   : > { %v492_v4 = vld [vmem:[%s11762_s15 + $0x40] sm:$0xff]  ;;  %v494_v5 = vld [vmem:[%s11762_s15 + $0x50] sm:$0xff]  ;;  %489 = vst [vmem:[%s11770_s30 + $0x10] sm:$0xff] %v488_v2  ;;  %491 = vst [vmem:[%s11770_s30 + $0x18] sm:$0xff] %v490_v3 }
  0x21   : > { %493 = vst [vmem:[%s11770_s30 + $0x20] sm:$0xff] %v492_v4  ;;  %495 = vst [vmem:[%s11770_s30 + $0x28] sm:$0xff] %v494_v5  ;;  %v496_v6 = vld [vmem:[%s11762_s15 + $0x60] sm:$0xff]  ;;  %v498_v7 = vld [vmem:[%s11762_s15 + $0x70] sm:$0xff] }
  0x22   : > { %v500_v8 = vld [vmem:[%s11762_s15 + $0x80] sm:$0xff]  ;;  %497 = vst [vmem:[%s11770_s30 + $0x30] sm:$0xff] %v496_v6  ;;  %499 = vst [vmem:[%s11770_s30 + $0x38] sm:$0xff] %v498_v7  ;;  %v502_v9 = vld [vmem:[%s11762_s15 + $0x90] sm:$0xff] }
  0x23   : > { %501 = vst [vmem:[%s11770_s30 + $0x40] sm:$0xff] %v500_v8  ;;  %v504_v10 = vld [vmem:[%s11762_s15 + $0xa0] sm:$0xff]  ;;  %v506_v11 = vld [vmem:[%s11762_s15 + $0xb0] sm:$0xff]  ;;  %503 = vst [vmem:[%s11770_s30 + $0x48] sm:$0xff] %v502_v9 }
  0x24   : > { %505 = vst [vmem:[%s11770_s30 + $0x50] sm:$0xff] %v504_v10  ;;  %507 = vst [vmem:[%s11770_s30 + $0x58] sm:$0xff] %v506_v11  ;;  %v508_v12 = vld [vmem:[%s11762_s15 + $0xc0] sm:$0xff]  ;;  %v510_v13 = vld [vmem:[%s11762_s15 + $0xd0] sm:$0xff] }
  0x25   : > { %v512_v14 = vld [vmem:[%s11762_s15 + $0xe0] sm:$0xff]  ;;  %509 = vst [vmem:[%s11770_s30 + $0x60] sm:$0xff] %v508_v12  ;;  %511 = vst [vmem:[%s11770_s30 + $0x68] sm:$0xff] %v510_v13  ;;  %v514_v15 = vld [vmem:[%s11762_s15 + $0xf0] sm:$0xff] }
  0x26   : > { %513 = vst [vmem:[%s11770_s30 + $0x70] sm:$0xff] %v512_v14  ;;  %v516_v16 = vld [vmem:[%s11762_s15 + $0x100] sm:$0xff]  ;;  %v518_v17 = vld [vmem:[%s11762_s15 + $0x110] sm:$0xff]  ;;  %515 = vst [vmem:[%s11770_s30 + $0x78] sm:$0xff] %v514_v15 }
  0x27   : > { %517 = vst [vmem:[%s11770_s30 + $0x80] sm:$0xff] %v516_v16  ;;  %519 = vst [vmem:[%s11770_s30 + $0x88] sm:$0xff] %v518_v17  ;;  %v520_v18 = vld [vmem:[%s11762_s15 + $0x120] sm:$0xff]  ;;  %v522_v19 = vld [vmem:[%s11762_s15 + $0x130] sm:$0xff] }
  0x28   : > { %v524_v20 = vld [vmem:[%s11762_s15 + $0x140] sm:$0xff]  ;;  %521 = vst [vmem:[%s11770_s30 + $0x90] sm:$0xff] %v520_v18  ;;  %523 = vst [vmem:[%s11770_s30 + $0x98] sm:$0xff] %v522_v19  ;;  %v526_v21 = vld [vmem:[%s11762_s15 + $0x150] sm:$0xff] }
  0x29   : > { %525 = vst [vmem:[%s11770_s30 + $0xa0] sm:$0xff] %v524_v20  ;;  %v528_v22 = vld [vmem:[%s11762_s15 + $0x160] sm:$0xff]  ;;  %v530_v23 = vld [vmem:[%s11762_s15 + $0x170] sm:$0xff]  ;;  %527 = vst [vmem:[%s11770_s30 + $0xa8] sm:$0xff] %v526_v21 }
  0x2a   : > { %529 = vst [vmem:[%s11770_s30 + $0xb0] sm:$0xff] %v528_v22  ;;  %531 = vst [vmem:[%s11770_s30 + $0xb8] sm:$0xff] %v530_v23  ;;  %v532_v24 = vld [vmem:[%s11762_s15 + $0x180] sm:$0xff]  ;;  %v534_v25 = vld [vmem:[%s11762_s15 + $0x190] sm:$0xff] }
  0x2b   : > { %v536_v26 = vld [vmem:[%s11762_s15 + $0x1a0] sm:$0xff]  ;;  %533 = vst [vmem:[%s11770_s30 + $0xc0] sm:$0xff] %v532_v24  ;;  %535 = vst [vmem:[%s11770_s30 + $0xc8] sm:$0xff] %v534_v25  ;;  %v538_v27 = vld [vmem:[%s11762_s15 + $0x1b0] sm:$0xff] }
  0x2c   : > { %537 = vst [vmem:[%s11770_s30 + $0xd0] sm:$0xff] %v536_v26  ;;  %v540_v28 = vld [vmem:[%s11762_s15 + $0x1c0] sm:$0xff]  ;;  %v542_v29 = vld [vmem:[%s11762_s15 + $0x1d0] sm:$0xff]  ;;  %539 = vst [vmem:[%s11770_s30 + $0xd8] sm:$0xff] %v538_v27 }
  0x2d   : > { %541 = vst [vmem:[%s11770_s30 + $0xe0] sm:$0xff] %v540_v28  ;;  %543 = vst [vmem:[%s11770_s30 + $0xe8] sm:$0xff] %v542_v29  ;;  %v544_v30 = vld [vmem:[%s11762_s15 + $0x1e0] sm:$0xff]  ;;  %v546_v31 = vld [vmem:[%s11762_s15 + $0x1f0] sm:$0xff] }
  0x2e   : > { %v548_v32 = vld [vmem:[%s11762_s15 + $0x200] sm:$0xff]  ;;  %545 = vst [vmem:[%s11770_s30 + $0xf0] sm:$0xff] %v544_v30  ;;  %547 = vst [vmem:[%s11770_s30 + $0xf8] sm:$0xff] %v546_v31  ;;  %v550_v33 = vld [vmem:[%s11762_s15 + $0x210] sm:$0xff] }
  0x2f   : > { %549 = vst [vmem:[%s11770_s30 + $0x100] sm:$0xff] %v548_v32  ;;  %551 = vst [vmem:[%s11770_s30 + $0x108] sm:$0xff] %v550_v33 }
  0x30 PF: > { %p9051_p10 = scmp.ge.s32.totalorder %s11633_s28, 1  ;;  %p556_p11 = scmp.lt.s32.totalorder %s11633_s28, 3 }
  0x32   : > { %p557_p12 = pnand %p9051_p10, %p556_p11 }
  0x34   : > { %560 = sbr.rel (%p557_p12) target bundleno = 2080 (0x820), region = 106 }
  0x39   : > { %v10475_v34 = vld [vmem:[%s16248_s1 + $0x164] ss:$16 sps:$4 sm:$0xff]   ;;  %v10477_v35 = vld [vmem:[%s16248_s1 + $0x16c] ss:$16 sps:$4 sm:$0xff]   ;;  %v16263_v36 = vmov 0   ;;  %s11881_s16 = sand.u32 1, %s11625_s26  }
  0x3a   : > { %954 = vmatprep.mubr.bf16.mxu0 %v16263_v36  ;;  %1147 = vmatprep.mubr.bf16.mxu1 %v16263_v36  ;;  %v10479_v37 = vld [vmem:[%s16248_s1 + $0x160] ss:$16 sps:$4 sm:$0xff]   ;;  %v10480_v38 = vld [vmem:[%s16248_s1 + $0x168] ss:$16 sps:$4 sm:$0xff]   ;;  %v10481_v39 = vld [vmem:[%s16248_s1 + $0x144] ss:$16 sps:$4 sm:$0xff]  }
  0x3b   : > { %926 = vmatprep.subr.bf16.mxu0 %v10475_v34  ;;  %1119 = vmatprep.subr.bf16.mxu1 %v10477_v35  ;;  %v10483_v40 = vld [vmem:[%s16248_s1 + $0x14c] ss:$16 sps:$4 sm:$0xff]   ;;  %v10485_v41 = vld [vmem:[%s16248_s1 + $0x140] ss:$16 sps:$4 sm:$0xff]   ;;  %v10486_v42 = vld [vmem:[%s16248_s1 + $0x148] ss:$16 sps:$4 sm:$0xff]  }
  0x3c   : > { %927 = vmatpush1.bf16.msra.mxu0 %v10479_v37  ;;  %1120 = vmatpush1.bf16.msra.mxu1 %v10480_v38  ;;  %v10487_v43 = vld [vmem:[%s16248_s1 + $0x124] ss:$16 sps:$4 sm:$0xff]   ;;  %v10489_v44 = vld [vmem:[%s16248_s1 + $0x12c] ss:$16 sps:$4 sm:$0xff]   ;;  %v10491_v45 = vld [vmem:[%s16248_s1 + $0x120] ss:$16 sps:$4 sm:$0xff]  }
  0x3d   : > { %928 = vmatprep.subr.bf16.mxu0 %v10481_v39  ;;  %1121 = vmatprep.subr.bf16.mxu1 %v10483_v40  ;;  %v10492_v46 = vld [vmem:[%s16248_s1 + $0x128] ss:$16 sps:$4 sm:$0xff]   ;;  %v10493_v47 = vld [vmem:[%s16248_s1 + $0x104] ss:$16 sps:$4 sm:$0xff]   ;;  %v10495_v48 = vld [vmem:[%s16248_s1 + $0x10c] ss:$16 sps:$4 sm:$0xff]  }
  0x3e   : > { %v10497_v49 = vld [vmem:[%s16248_s1 + $0x100] ss:$16 sps:$4 sm:$0xff]   ;;  %v10498_v50 = vld [vmem:[%s16248_s1 + $0x108] ss:$16 sps:$4 sm:$0xff]   ;;  %v10499_v51 = vld [vmem:[%s16248_s1 + $0xe4] ss:$16 sps:$4 sm:$0xff]  }
  0x3f   : > { %v10501_v52 = vld [vmem:[%s16248_s1 + $0xec] ss:$16 sps:$4 sm:$0xff]   ;;  %s10433_s30 = smul.u32 272, %s11881_s16  ;;  %v10503_v53 = vld [vmem:[%s16248_s1 + $0xe0] ss:$16 sps:$4 sm:$0xff]   ;;  %vm873_vm0 = vcmask 785408  }
  0x40   : > { %929 = vmatpush1.bf16.msra.mxu0 %v10485_v41  ;;  %1122 = vmatpush1.bf16.msra.mxu1 %v10486_v42  ;;  %v10504_v54 = vld [vmem:[%s16248_s1 + $0xe8] ss:$16 sps:$4 sm:$0xff]   ;;  %v10505_v55 = vld [vmem:[%s16248_s1 + $0xc4] ss:$16 sps:$4 sm:$0xff]   ;;  %v10507_v56 = vld [vmem:[%s16248_s1 + $0xcc] ss:$16 sps:$4 sm:$0xff]  }
  0x41   : > { %930 = vmatprep.subr.bf16.mxu0 %v10487_v43  ;;  %1123 = vmatprep.subr.bf16.mxu1 %v10489_v44  ;;  %v10509_v57 = vld [vmem:[%s16248_s1 + $0xc0] ss:$16 sps:$4 sm:$0xff]   ;;  %v10510_v58 = vld [vmem:[%s16248_s1 + $0xc8] ss:$16 sps:$4 sm:$0xff]   ;;  %s11914_s17 = scalar_lea.vmem [#allocation5], %s10433_s30  ;;  %s9052_s21 = sshll.u32 %s11881_s16, 3 }
  0x42   : > { %v11917_v59 = vld [vmem:[%s11914_s17 + $0x8] sm:$0xff]  ;;  %v9054_v60 = vld [vmem:[%s11914_s17 + $0x10] sm:$0xff]  ;;  %v9055_v4 = vld [vmem:[%s11914_s17 + $0x18] sm:$0xff]  ;;  %s16885_s27 = sadd.s32 4294967295, %s11633_s28   ;;  %s8969_s20 = scalar_lea.sflag [#allocation7], %s11881_s16 }
  0x43   : > { %v10513_v61 = vld [vmem:[%s16248_s1 + $0xa4] ss:$16 sps:$4 sm:$0xff]   ;;  %v10516_v62 = vld [vmem:[%s16248_s1 + $0xac] ss:$16 sps:$4 sm:$0xff]   ;;  %v712_v63 = vpack.c.bf16 %v9054_v60, %v11917_v59  ;;  %v10511_v0 = vld [vmem:[%s16248_s1 + $0xa0] ss:$16 sps:$4 sm:$0xff]   ;;  %v11957_v10 = vpack.c.bf16 %v9055_v4, %v9054_v60 }
  0x44   : > { %931 = vmatpush1.bf16.msra.mxu0 %v10491_v45  ;;  %1124 = vmatpush1.bf16.msra.mxu1 %v10492_v46  ;;  %v10514_v1 = vld [vmem:[%s16248_s1 + $0xa8] ss:$16 sps:$4 sm:$0xff]   ;;  %v10519_v2 = vld [vmem:[%s16248_s1 + $0x84] ss:$16 sps:$4 sm:$0xff]   ;;  %v10522_v3 = vld [vmem:[%s16248_s1 + $0x8c] ss:$16 sps:$4 sm:$0xff]  }
  0x45   : > { %932 = vmatprep.subr.bf16.mxu0 %v10493_v47  ;;  %1125 = vmatprep.subr.bf16.mxu1 %v10495_v48  ;;  %v9056_v5 = vld [vmem:[%s11914_s17 + $0x20] sm:$0xff]  ;;  %v10520_v7 = vld [vmem:[%s16248_s1 + $0x88] ss:$16 sps:$4 sm:$0xff]   ;;  %v10528_v9 = vld [vmem:[%s16248_s1 + $0x6c] ss:$16 sps:$4 sm:$0xff]   ;;  %s10407_s29 = sshll.u32 %s16885_s27, 7 }
  0x46   : > { %v10517_v6 = vld [vmem:[%s16248_s1 + $0x80] ss:$16 sps:$4 sm:$0xff]   ;;  %v10525_v8 = vld [vmem:[%s16248_s1 + $0x64] ss:$16 sps:$4 sm:$0xff]   ;;  %v713_v11 = vpack.c.bf16 %v9056_v5, %v9055_v4  ;;  %v10526_v13 = vld [vmem:[%s16248_s1 + $0x68] ss:$16 sps:$4 sm:$0xff]   ;;  %s16210_s15 = scalar_lea.hbm %s16260_s13, %s10407_s29 }
  0x47   : > { %v10523_v12 = vld [vmem:[%s16248_s1 + $0x60] ss:$16 sps:$4 sm:$0xff]   ;;  %v10531_v14 = vld [vmem:[%s16248_s1 + $0x44] ss:$16 sps:$4 sm:$0xff]   ;;  %v10534_v15 = vld [vmem:[%s16248_s1 + $0x4c] ss:$16 sps:$4 sm:$0xff]  }
  0x48   : > { %933 = vmatpush1.bf16.msra.mxu0 %v10497_v49  ;;  %1126 = vmatpush1.bf16.msra.mxu1 %v10498_v50  ;;  %v9057_v16 = vld [vmem:[%s11914_s17 + $0x28] sm:$0xff]  ;;  %v9058_v17 = vld [vmem:[%s11914_s17 + $0x30] sm:$0xff]  ;;  %v9059_v28 = vld [vmem:[%s11914_s17 + $0x38] sm:$0xff]  ;;  %s11637_s0 = smov [#allocation6]  }
  0x49   : > { %934 = vmatprep.subr.bf16.mxu0 %v10499_v51  ;;  %1127 = vmatprep.subr.bf16.mxu1 %v10501_v52  ;;  %v11977_v18 = vpack.c.bf16 %v9057_v16, %v9056_v5  ;;  %v10529_v19 = vld [vmem:[%s16248_s1 + $0x40] ss:$16 sps:$4 sm:$0xff]   ;;  %v10532_v20 = vld [vmem:[%s16248_s1 + $0x48] ss:$16 sps:$4 sm:$0xff]   ;;  %v10537_v21 = vld [vmem:[%s16248_s1 + $0x24] ss:$16 sps:$4 sm:$0xff]   ;;  %v714_v23 = vpack.c.bf16 %v9058_v17, %v9057_v16  ;;  %v12009_v30 = vpack.c.bf16 %v9059_v28, %v9058_v17 }
  0x4a   : > { %v10540_v22 = vld [vmem:[%s16248_s1 + $0x2c] ss:$16 sps:$4 sm:$0xff]   ;;  %v10535_v24 = vld [vmem:[%s16248_s1 + $0x20] ss:$16 sps:$4 sm:$0xff]   ;;  %v10538_v25 = vld [vmem:[%s16248_s1 + $0x28] ss:$16 sps:$4 sm:$0xff]  }
  0x4b   : > { %v10543_v26 = vld [vmem:[%s16248_s1 + $0x4] ss:$16 sps:$4 sm:$0xff]   ;;  %v10546_v27 = vld [vmem:[%s16248_s1 + $0xc] ss:$16 sps:$4 sm:$0xff]   ;;  %v10541_v31 = vld [vmem:[%s16248_s1] ss:$16 sps:$4 sm:$0xff]  }
  0x4c   : > { %935 = vmatpush1.bf16.msra.mxu0 %v10503_v53  ;;  %1128 = vmatpush1.bf16.msra.mxu1 %v10504_v54  ;;  %v9060_v29 = vld [vmem:[%s11914_s17 + $0x40] sm:$0xff]  ;;  %v10544_v32 = vld [vmem:[%s16248_s1 + $0x8] ss:$16 sps:$4 sm:$0xff]   ;;  %v10552_v34 = vld [vmem:[%s16248_s1 + $0x22c] ss:$16 sps:$4 sm:$0xff]  }
  0x4d   : > { %936 = vmatprep.subr.bf16.mxu0 %v10505_v55  ;;  %1129 = vmatprep.subr.bf16.mxu1 %v10507_v56  ;;  %v10549_v33 = vld [vmem:[%s16248_s1 + $0x224] ss:$16 sps:$4 sm:$0xff]   ;;  %v715_v35 = vpack.c.bf16 %v9060_v29, %v9059_v28  ;;  %v9061_v37 = vld [vmem:[%s11914_s17 + $0x48] sm:$0xff]  ;;  %v9063_v41 = vld [vmem:[%s11914_s17 + $0x58] sm:$0xff] }
  0x4e   : > { %v9062_v38 = vld [vmem:[%s11914_s17 + $0x50] sm:$0xff]  ;;  %v12029_v39 = vpack.c.bf16 %v9061_v37, %v9060_v29  ;;  %v9064_v42 = vld [vmem:[%s11914_s17 + $0x60] sm:$0xff]  ;;  %v9065_v45 = vld [vmem:[%s11914_s17 + $0x68] sm:$0xff] }
  0x4f   : > { %v716_v40 = vpack.c.bf16 %v9062_v38, %v9061_v37  ;;  %v12037_v43 = vpack.c.bf16 %v9063_v41, %v9062_v38  ;;  %v717_v44 = vpack.c.bf16 %v9064_v42, %v9063_v41  ;;  %v9066_v46 = vld [vmem:[%s11914_s17 + $0x70] sm:$0xff]  ;;  %v12045_v47 = vpack.c.bf16 %v9065_v45, %v9064_v42  ;;  %v9067_v49 = vld [vmem:[%s11914_s17 + $0x78] sm:$0xff]  ;;  %v9068_v50 = vld [vmem:[%s11914_s17 + $0x80] sm:$0xff] }
  0x50   : > { %937 = vmatpush1.bf16.msra.mxu0 %v10509_v57  ;;  %1130 = vmatpush1.bf16.msra.mxu1 %v10510_v58  ;;  %v718_v48 = vpack.c.bf16 %v9066_v46, %v9065_v45  ;;  %v12053_v51 = vpack.c.bf16 %v9067_v49, %v9066_v46  ;;  %v719_v52 = vpack.c.bf16 %v9068_v50, %v9067_v49  ;;  %v9069_v53 = vld [vmem:[%s11914_s17 + $0x88] sm:$0xff]  ;;  %v9070_v54 = vld [vmem:[%s11914_s17 + $0x90] sm:$0xff]  ;;  %v9071_v57 = vld [vmem:[%s11914_s17 + $0x98] sm:$0xff] }
  0x51   : > { %1480 = vmatprep.subr.bf16.mxu0 %v10513_v61  ;;  %1673 = vmatprep.subr.bf16.mxu1 %v10516_v62  ;;  %v720_v55 = vpack.c.bf16 %v9070_v54, %v9069_v53  ;;  %v12061_v56 = vpack.c.bf16 %v9069_v53, %v9068_v50  ;;  %v9072_v58 = vld [vmem:[%s11914_s17 + $0xa0] sm:$0xff]  ;;  %v9073_v61 = vld [vmem:[%s11914_s17 + $0xa8] sm:$0xff]  ;;  %v9074_v62 = vld [vmem:[%s11914_s17 + $0xb0] sm:$0xff] }
  0x52   : > { %v721_v60 = vpack.c.bf16 %v9072_v58, %v9071_v57  ;;  %v9078_v4 = vld [vmem:[%s11914_s17 + $0xd0] sm:$0xff]  ;;  %v607_v16 = vld [vmem:[%s11914_s17] sm:$0xff]  ;;  %v10570_v29 = vld [vmem:[%s16248_s1 + $0x1cc] ss:$16 sps:$4 sm:$0xff]  }
  0x53   : > { %9133 = vmatmul.mubr.msk.bf16.vlgmr.msra.gmra.mxu0 %vm873_vm0, %v712_v63  ;;  %9149 = vmatmul.mubr.msk.bf16.vlgmr.msra.gmra.mxu1 %vm873_vm0, %v712_v63  ;;  %v722_v63 = vpack.c.bf16 %v9074_v62, %v9073_v61  ;;  %v10547_v17 = vld [vmem:[%s16248_s1 + $0x220] ss:$16 sps:$4 sm:$0xff]   ;;  %v10567_v28 = vld [vmem:[%s16248_s1 + $0x1c4] ss:$16 sps:$4 sm:$0xff]   ;;  %v10574_v37 = vld [vmem:[%s16248_s1 + $0x1a8] ss:$16 sps:$4 sm:$0xff]  }
  0x54   : > { %1481 = vmatpush1.bf16.msra.mxu0 %v10511_v0  ;;  %1674 = vmatpush1.bf16.msra.mxu1 %v10514_v1  ;;  %v9075_v0 = vld [vmem:[%s11914_s17 + $0xb8] sm:$0xff]  ;;  %v9076_v1 = vld [vmem:[%s11914_s17 + $0xc0] sm:$0xff] }
  0x55   : > { %964 = vmatprep.mubr.bf16.mxu0 %v16263_v36  ;;  %1157 = vmatprep.mubr.bf16.mxu1 %v16263_v36  ;;  %v10579_v38 = vld [vmem:[%s16248_s1 + $0x184] ss:$16 sps:$4 sm:$0xff]   ;;  %v10577_v41 = vld [vmem:[%s16248_s1 + $0x180] ss:$16 sps:$4 sm:$0xff]   ;;  %v10580_v42 = vld [vmem:[%s16248_s1 + $0x188] ss:$16 sps:$4 sm:$0xff]  }
  0x56   : > { %1482 = vmatprep.subr.bf16.mxu0 %v10519_v2  ;;  %1675 = vmatprep.subr.bf16.mxu1 %v10522_v3  ;;  %v723_v2 = vpack.c.bf16 %v9076_v1, %v9075_v0  ;;  %v9077_v3 = vld [vmem:[%s11914_s17 + $0xc8] sm:$0xff]  ;;  %v11560_v53 = vld [vmem:[%s11914_s17 + $0x98] sm:$0xff]  ;;  %v11561_v1 = vld [vmem:[%s11914_s17 + $0xa0] sm:$0xff] }
  0x57   : > { %v724_v5 = vpack.c.bf16 %v9078_v4, %v9077_v3 }
  0x58   : > { %1483 = vmatpush1.bf16.msra.mxu0 %v10517_v6  ;;  %1676 = vmatpush1.bf16.msra.mxu1 %v10520_v7  ;;  %v9079_v6 = vld [vmem:[%s11914_s17 + $0xd8] sm:$0xff]  ;;  %v9080_v7 = vld [vmem:[%s11914_s17 + $0xe0] sm:$0xff] }
  0x59   : > { %1484 = vmatprep.subr.bf16.mxu0 %v10525_v8  ;;  %1677 = vmatprep.subr.bf16.mxu1 %v10528_v9  ;;  %v725_v8 = vpack.c.bf16 %v9080_v7, %v9079_v6  ;;  %v9081_v9 = vld [vmem:[%s11914_s17 + $0xe8] sm:$0xff] }
  0x5b   : > { %9134 = vmatmul.mubr.msk.bf16.gmra.mxu0 %vm873_vm0, %v713_v11  ;;  %9150 = vmatmul.mubr.msk.bf16.gmra.mxu1 %vm873_vm0, %v713_v11  ;;  %v9082_v11 = vld [vmem:[%s11914_s17 + $0xf0] sm:$0xff] }
  0x5c   : > { %974 = vmatprep.mubr.bf16.mxu0 %v16263_v36  ;;  %1167 = vmatprep.mubr.bf16.mxu1 %v16263_v36 }
  0x5d   : > { %1485 = vmatpush1.bf16.msra.mxu0 %v10523_v12  ;;  %1678 = vmatpush1.bf16.msra.mxu1 %v10526_v13  ;;  %v726_v12 = vpack.c.bf16 %v9082_v11, %v9081_v9  ;;  %v9083_v13 = vld [vmem:[%s11914_s17 + $0xf8] sm:$0xff] }
  0x5e   : > { %1486 = vmatprep.subr.bf16.mxu0 %v10531_v14  ;;  %1679 = vmatprep.subr.bf16.mxu1 %v10534_v15  ;;  %v9084_v14 = vld [vmem:[%s11914_s17 + $0x100] sm:$0xff] }
  0x5f   : > { %v727_v15 = vpack.c.bf16 %v9084_v14, %v9083_v13  ;;  %v11563_v13 = vld [vmem:[%s11914_s17 + $0xb0] sm:$0xff]  ;;  %v11564_v14 = vld [vmem:[%s11914_s17 + $0xb8] sm:$0xff] }
  0x61   : > { %1487 = vmatpush1.bf16.msra.mxu0 %v10529_v19  ;;  %1680 = vmatpush1.bf16.msra.mxu1 %v10532_v20  ;;  %v10550_v19 = vld [vmem:[%s16248_s1 + $0x228] ss:$16 sps:$4 sm:$0xff]   ;;  %v639_v20 = vpack.c.bf16 %v11917_v59, %v607_v16  ;;  %v10561_v59 = vld [vmem:[%s16248_s1 + $0x1e4] ss:$16 sps:$4 sm:$0xff]  }
  0x62   : > { %1488 = vmatprep.subr.bf16.mxu0 %v10537_v21  ;;  %1681 = vmatprep.subr.bf16.mxu1 %v10540_v22  ;;  %v10555_v21 = vld [vmem:[%s16248_s1 + $0x204] ss:$16 sps:$4 sm:$0xff]   ;;  %v10558_v22 = vld [vmem:[%s16248_s1 + $0x20c] ss:$16 sps:$4 sm:$0xff]  }
  0x63   : > { %9135 = vmatmul.mubr.msk.bf16.gmra.mxu0 %vm873_vm0, %v714_v23  ;;  %9151 = vmatmul.mubr.msk.bf16.gmra.mxu1 %vm873_vm0, %v714_v23  ;;  %v10553_v23 = vld [vmem:[%s16248_s1 + $0x200] ss:$16 sps:$4 sm:$0xff]  }
  0x64   : > { %984 = vmatprep.mubr.bf16.mxu0 %v16263_v36  ;;  %1177 = vmatprep.mubr.bf16.mxu1 %v16263_v36 }
  0x65   : > { %1489 = vmatpush1.bf16.msra.mxu0 %v10535_v24  ;;  %1682 = vmatpush1.bf16.msra.mxu1 %v10538_v25  ;;  %v10556_v24 = vld [vmem:[%s16248_s1 + $0x208] ss:$16 sps:$4 sm:$0xff]   ;;  %v10564_v25 = vld [vmem:[%s16248_s1 + $0x1ec] ss:$16 sps:$4 sm:$0xff]  }
  0x66   : > { %1490 = vmatprep.subr.bf16.mxu0 %v10543_v26  ;;  %1683 = vmatprep.subr.bf16.mxu1 %v10546_v27  ;;  %v10559_v26 = vld [vmem:[%s16248_s1 + $0x1e0] ss:$16 sps:$4 sm:$0xff]   ;;  %v10562_v27 = vld [vmem:[%s16248_s1 + $0x1e8] ss:$16 sps:$4 sm:$0xff]  }
  0x69   : > { %1491 = vmatpush1.bf16.msra.mxu0 %v10541_v31  ;;  %1684 = vmatpush1.bf16.msra.mxu1 %v10544_v32  ;;  %v10565_v31 = vld [vmem:[%s16248_s1 + $0x1c0] ss:$16 sps:$4 sm:$0xff]   ;;  %v10568_v32 = vld [vmem:[%s16248_s1 + $0x1c8] ss:$16 sps:$4 sm:$0xff]  }
  0x6a   : > { %2108 = vmatprep.subr.bf16.mxu0 %v10549_v33  ;;  %2301 = vmatprep.subr.bf16.mxu1 %v10552_v34  ;;  %v10573_v33 = vld [vmem:[%s16248_s1 + $0x1a4] ss:$16 sps:$4 sm:$0xff]   ;;  %v10576_v34 = vld [vmem:[%s16248_s1 + $0x1ac] ss:$16 sps:$4 sm:$0xff]  }
  0x6b   : > { %9136 = vmatmul.mubr.msk.bf16.gmra.mxu0 %vm873_vm0, %v715_v35  ;;  %9152 = vmatmul.mubr.msk.bf16.gmra.mxu1 %vm873_vm0, %v715_v35  ;;  %v10571_v35 = vld [vmem:[%s16248_s1 + $0x1a0] ss:$16 sps:$4 sm:$0xff]  }
  0x6c   : > { %994 = vmatprep.mubr.bf16.mxu0 %v16263_v36  ;;  %1187 = vmatprep.mubr.bf16.mxu1 %v16263_v36 }
  0x73   : > { %9137 = vmatmul.mubr.msk.bf16.gmra.mxu0 %vm873_vm0, %v716_v40  ;;  %9153 = vmatmul.mubr.msk.bf16.gmra.mxu1 %vm873_vm0, %v716_v40  ;;  %v10582_v40 = vld [vmem:[%s16248_s1 + $0x18c] ss:$16 sps:$4 sm:$0xff]  }
  0x74   : > { %1004 = vmatprep.mubr.bf16.mxu0 %v16263_v36  ;;  %1197 = vmatprep.mubr.bf16.mxu1 %v16263_v36 }
  0x7b   : > { %9138 = vmatmul.mubr.msk.bf16.gmra.mxu0 %vm873_vm0, %v717_v44  ;;  %9154 = vmatmul.mubr.msk.bf16.gmra.mxu1 %vm873_vm0, %v717_v44 }
  0x7c   : > { %1014 = vmatprep.mubr.bf16.mxu0 %v16263_v36  ;;  %1207 = vmatprep.mubr.bf16.mxu1 %v16263_v36 }
  0x83   : > { %9139 = vmatmul.mubr.msk.bf16.gmra.mxu0 %vm873_vm0, %v718_v48  ;;  %9155 = vmatmul.mubr.msk.bf16.gmra.mxu1 %vm873_vm0, %v718_v48 }
  0x84   : > { %1024 = vmatprep.mubr.bf16.mxu0 %v16263_v36  ;;  %1217 = vmatprep.mubr.bf16.mxu1 %v16263_v36 }
  0x8b   : > { %9140 = vmatmul.mubr.msk.bf16.gmra.mxu0 %vm873_vm0, %v719_v52  ;;  %9156 = vmatmul.mubr.msk.bf16.gmra.mxu1 %vm873_vm0, %v719_v52  ;;  %v11559_v52 = vld [vmem:[%s11914_s17 + $0x90] sm:$0xff] }
  0x8c   : > { %1034 = vmatprep.mubr.bf16.mxu0 %v16263_v36  ;;  %1227 = vmatprep.mubr.bf16.mxu1 %v16263_v36  ;;  %v12243_v54 = vpack.c.bf16 %v11560_v53, %v11559_v52 }
  0x93   : > { %9141 = vmatmul.mubr.msk.bf16.gmra.mxu0 %vm873_vm0, %v720_v55  ;;  %9157 = vmatmul.mubr.msk.bf16.gmra.mxu1 %vm873_vm0, %v720_v55 }
  0x94   : > { %1044 = vmatprep.mubr.bf16.mxu0 %v16263_v36  ;;  %1237 = vmatprep.mubr.bf16.mxu1 %v16263_v36 }
  0x9b   : > { %9142 = vmatmul.mubr.msk.bf16.gmra.mxu0 %vm873_vm0, %v721_v60  ;;  %9158 = vmatmul.mubr.msk.bf16.gmra.mxu1 %vm873_vm0, %v721_v60 }
  0x9c   : > { %1054 = vmatprep.mubr.bf16.mxu0 %v16263_v36  ;;  %1247 = vmatprep.mubr.bf16.mxu1 %v16263_v36 }
  0xa3   : > { %9143 = vmatmul.mubr.msk.bf16.gmra.mxu0 %vm873_vm0, %v722_v63  ;;  %9159 = vmatmul.mubr.msk.bf16.gmra.mxu1 %vm873_vm0, %v722_v63 }
  0xa4   : > { %1064 = vmatprep.mubr.bf16.mxu0 %v16263_v36  ;;  %1257 = vmatprep.mubr.bf16.mxu1 %v16263_v36 }
  0xab   : > { %9144 = vmatmul.mubr.msk.bf16.gmra.mxu0 %vm873_vm0, %v723_v2  ;;  %9160 = vmatmul.mubr.msk.bf16.gmra.mxu1 %vm873_vm0, %v723_v2  ;;  %v11562_v2 = vld [vmem:[%s11914_s17 + $0xa8] sm:$0xff] }
  0xac   : > { %1074 = vmatprep.mubr.bf16.mxu0 %v16263_v36  ;;  %1267 = vmatprep.mubr.bf16.mxu1 %v16263_v36  ;;  %v12269_v3 = vpack.c.bf16 %v11562_v2, %v11561_v1 }
  0xb3   : > { %9145 = vmatmul.mubr.msk.bf16.gmra.mxu0 %vm873_vm0, %v724_v5  ;;  %9161 = vmatmul.mubr.msk.bf16.gmra.mxu1 %vm873_vm0, %v724_v5 }
  0xb4   : > { %1084 = vmatprep.mubr.bf16.mxu0 %v16263_v36  ;;  %1277 = vmatprep.mubr.bf16.mxu1 %v16263_v36 }
  0xbb   : > { %9146 = vmatmul.mubr.msk.bf16.gmra.mxu0 %vm873_vm0, %v725_v8  ;;  %9162 = vmatmul.mubr.msk.bf16.gmra.mxu1 %vm873_vm0, %v725_v8 }
  0xbc   : > { %1094 = vmatprep.mubr.bf16.mxu0 %v16263_v36  ;;  %1287 = vmatprep.mubr.bf16.mxu1 %v16263_v36 }
  0xc3   : > { %9147 = vmatmul.mubr.msk.bf16.gmra.mxu0 %vm873_vm0, %v726_v12  ;;  %9163 = vmatmul.mubr.msk.bf16.gmra.mxu1 %vm873_vm0, %v726_v12 }
  0xc4   : > { %1104 = vmatprep.mubr.bf16.mxu0 %v16263_v36  ;;  %1297 = vmatprep.mubr.bf16.mxu1 %v16263_v36 }
  0xcb   : > { %9148 = vmatmul.mubr.msk.bf16.gmra.mxu0 %vm873_vm0, %v727_v15  ;;  %9164 = vmatmul.mubr.msk.bf16.gmra.mxu1 %vm873_vm0, %v727_v15  ;;  %v12295_v15 = vpack.c.bf16 %v11564_v14, %v11563_v13 }
  0xcc   : > { %1508 = vmatprep.mubr.bf16.mxu0 %v16263_v36  ;;  %1701 = vmatprep.mubr.bf16.mxu1 %v16263_v36 }
  0xd3   : > { %9189 = vmatmul.mubr.msk.bf16.vlgmr.msra.gmra.mxu0 %vm873_vm0, %v639_v20  ;;  %9205 = vmatmul.mubr.msk.bf16.vlgmr.msra.gmra.mxu1 %vm873_vm0, %v639_v20 }
  0xd4   : > { %2109 = vmatpush1.bf16.msra.mxu0 %v10547_v17  ;;  %2302 = vmatpush1.bf16.msra.mxu1 %v10550_v19 }
  0xd5   : > { %1518 = vmatprep.mubr.bf16.mxu0 %v16263_v36  ;;  %1711 = vmatprep.mubr.bf16.mxu1 %v16263_v36 }
  0xd6   : > { %2110 = vmatprep.subr.bf16.mxu0 %v10555_v21  ;;  %2303 = vmatprep.subr.bf16.mxu1 %v10558_v22 }
  0xd8   : > { %2111 = vmatpush1.bf16.msra.mxu0 %v10553_v23  ;;  %2304 = vmatpush1.bf16.msra.mxu1 %v10556_v24 }
  0xd9   : > { %2112 = vmatprep.subr.bf16.mxu0 %v10561_v59  ;;  %2305 = vmatprep.subr.bf16.mxu1 %v10564_v25  ;;  %v11565_v59 = vld [vmem:[%s11914_s17 + $0xc0] sm:$0xff]  ;;  %v11566_v25 = vld [vmem:[%s11914_s17 + $0xc8] sm:$0xff] }
  0xdb   : > { %9190 = vmatmul.mubr.msk.bf16.gmra.mxu0 %vm873_vm0, %v11957_v10  ;;  %9206 = vmatmul.mubr.msk.bf16.gmra.mxu1 %vm873_vm0, %v11957_v10 }
  0xdc   : > { %1528 = vmatprep.mubr.bf16.mxu0 %v16263_v36  ;;  %1721 = vmatprep.mubr.bf16.mxu1 %v16263_v36 }
  0xdd   : > { %2113 = vmatpush1.bf16.msra.mxu0 %v10559_v26  ;;  %2306 = vmatpush1.bf16.msra.mxu1 %v10562_v27  ;;  %v12321_v26 = vpack.c.bf16 %v11566_v25, %v11565_v59  ;;  %v11569_v59 = vld [vmem:[%s11914_s17 + $0xe0] sm:$0xff]  ;;  %v12373_v25 = vld [vmem:[%s11914_s17 + $0xe8] sm:$0xff] }
  0xde   : > { %2114 = vmatprep.subr.bf16.mxu0 %v10567_v28  ;;  %2307 = vmatprep.subr.bf16.mxu1 %v10570_v29 }
  0xe1   : > { %2115 = vmatpush1.bf16.msra.mxu0 %v10565_v31  ;;  %2308 = vmatpush1.bf16.msra.mxu1 %v10568_v32 }
  0xe2   : > { %2116 = vmatprep.subr.bf16.mxu0 %v10573_v33  ;;  %2309 = vmatprep.subr.bf16.mxu1 %v10576_v34 }
  0xe3   : > { %9191 = vmatmul.mubr.msk.bf16.gmra.mxu0 %vm873_vm0, %v11977_v18  ;;  %9207 = vmatmul.mubr.msk.bf16.gmra.mxu1 %vm873_vm0, %v11977_v18 }
  0xe4   : > { %1538 = vmatprep.mubr.bf16.mxu0 %v16263_v36  ;;  %1731 = vmatprep.mubr.bf16.mxu1 %v16263_v36 }
  0xe5   : > { %2117 = vmatpush1.bf16.msra.mxu0 %v10571_v35  ;;  %2310 = vmatpush1.bf16.msra.mxu1 %v10574_v37  ;;  %v11567_v37 = vld [vmem:[%s11914_s17 + $0xd0] sm:$0xff] }
  0xe6   : > { %2118 = vmatprep.subr.bf16.mxu0 %v10579_v38  ;;  %2311 = vmatprep.subr.bf16.mxu1 %v10582_v40  ;;  %v11568_v38 = vld [vmem:[%s11914_s17 + $0xd8] sm:$0xff] }
  0xe7   : > { %v12347_v40 = vpack.c.bf16 %v11568_v38, %v11567_v37  ;;  %v653_v37 = vpack.c.bf16 %v12373_v25, %v11569_v59 }
  0xe9   : > { %2119 = vmatpush1.bf16.msra.mxu0 %v10577_v41  ;;  %2312 = vmatpush1.bf16.msra.mxu1 %v10580_v42 }
  0xeb   : > { %9192 = vmatmul.mubr.msk.bf16.gmra.mxu0 %vm873_vm0, %v12009_v30  ;;  %9208 = vmatmul.mubr.msk.bf16.gmra.mxu1 %vm873_vm0, %v12009_v30 }
  0xec   : > { %1548 = vmatprep.mubr.bf16.mxu0 %v16263_v36  ;;  %1741 = vmatprep.mubr.bf16.mxu1 %v16263_v36 }
  0xf3   : > { %9193 = vmatmul.mubr.msk.bf16.gmra.mxu0 %vm873_vm0, %v12029_v39  ;;  %9209 = vmatmul.mubr.msk.bf16.gmra.mxu1 %vm873_vm0, %v12029_v39 }
  0xf4   : > { %1558 = vmatprep.mubr.bf16.mxu0 %v16263_v36  ;;  %1751 = vmatprep.mubr.bf16.mxu1 %v16263_v36 }
  0xfb   : > { %9194 = vmatmul.mubr.msk.bf16.gmra.mxu0 %vm873_vm0, %v12037_v43  ;;  %9210 = vmatmul.mubr.msk.bf16.gmra.mxu1 %vm873_vm0, %v12037_v43 }
  0xfc   : > { %1568 = vmatprep.mubr.bf16.mxu0 %v16263_v36  ;;  %1761 = vmatprep.mubr.bf16.mxu1 %v16263_v36 }
 0x103   : > { %9195 = vmatmul.mubr.msk.bf16.gmra.mxu0 %vm873_vm0, %v12045_v47  ;;  %9211 = vmatmul.mubr.msk.bf16.gmra.mxu1 %vm873_vm0, %v12045_v47 }
 0x104   : > { %1578 = vmatprep.mubr.bf16.mxu0 %v16263_v36  ;;  %1771 = vmatprep.mubr.bf16.mxu1 %v16263_v36 }
 0x10b   : > { %9196 = vmatmul.mubr.msk.bf16.gmra.mxu0 %vm873_vm0, %v12053_v51  ;;  %9212 = vmatmul.mubr.msk.bf16.gmra.mxu1 %vm873_vm0, %v12053_v51 }
 0x10c   : > { %1588 = vmatprep.mubr.bf16.mxu0 %v16263_v36  ;;  %1781 = vmatprep.mubr.bf16.mxu1 %v16263_v36 }
 0x113   : > { %v12223_v44 = vpop.f32.mrf.mxu0  ;;  %v12225_v45 = vpop.f32.mrf.mxu1  ;;  %9197 = vmatmul.mubr.msk.bf16.gmra.mxu0 %vm873_vm0, %v12061_v56  ;;  %9213 = vmatmul.mubr.msk.bf16.gmra.mxu1 %vm873_vm0, %v12061_v56 }
 0x114   : > { %1598 = vmatprep.mubr.bf16.mxu0 %v16263_v36  ;;  %1791 = vmatprep.mubr.bf16.mxu1 %v16263_v36 }
 0x115   : > { %v12233_v46 = vpop.f32.mrf.mxu0  ;;  %v12235_v48 = vpop.f32.mrf.mxu1 }
 0x117   : > { %v12237_v49 = vpop.f32.mrf.mxu0  ;;  %v12239_v50 = vpop.f32.mrf.mxu1 }
 0x119   : > { %v12245_v55 = vpop.f32.mrf.mxu0  ;;  %v12247_v57 = vpop.f32.mrf.mxu1 }
 0x11b   : > { %v12249_v58 = vpop.f32.mrf.mxu0  ;;  %v12251_v60 = vpop.f32.mrf.mxu1  ;;  %9198 = vmatmul.mubr.msk.bf16.gmra.mxu0 %vm873_vm0, %v12243_v54  ;;  %9214 = vmatmul.mubr.msk.bf16.gmra.mxu1 %vm873_vm0, %v12243_v54 }
 0x11c   : > { %1608 = vmatprep.mubr.bf16.mxu0 %v16263_v36  ;;  %1801 = vmatprep.mubr.bf16.mxu1 %v16263_v36 }
 0x11d   : > { %v12259_v61 = vpop.f32.mrf.mxu0  ;;  %v12261_v62 = vpop.f32.mrf.mxu1 }
 0x11f   : > { %v12263_v63 = vpop.f32.mrf.mxu0  ;;  %v12265_v0 = vpop.f32.mrf.mxu1 }
 0x121   : > { %v12271_v4 = vpop.f32.mrf.mxu0  ;;  %v12273_v5 = vpop.f32.mrf.mxu1 }
 0x123   : > { %v12275_v6 = vpop.f32.mrf.mxu0  ;;  %v12277_v7 = vpop.f32.mrf.mxu1  ;;  %9199 = vmatmul.mubr.msk.bf16.gmra.mxu0 %vm873_vm0, %v12269_v3  ;;  %9215 = vmatmul.mubr.msk.bf16.gmra.mxu1 %vm873_vm0, %v12269_v3 }
 0x124   : > { %1618 = vmatprep.mubr.bf16.mxu0 %v16263_v36  ;;  %1811 = vmatprep.mubr.bf16.mxu1 %v16263_v36 }
 0x125   : > { %v12285_v8 = vpop.f32.mrf.mxu0  ;;  %v12287_v9 = vpop.f32.mrf.mxu1 }
 0x127   : > { %v12289_v11 = vpop.f32.mrf.mxu0  ;;  %v12291_v12 = vpop.f32.mrf.mxu1 }
 0x129   : > { %v12297_v16 = vpop.f32.mrf.mxu0  ;;  %v12299_v17 = vpop.f32.mrf.mxu1 }
 0x12b   : > { %v12301_v19 = vpop.f32.mrf.mxu0  ;;  %v12303_v20 = vpop.f32.mrf.mxu1  ;;  %9200 = vmatmul.mubr.msk.bf16.gmra.mxu0 %vm873_vm0, %v12295_v15  ;;  %9216 = vmatmul.mubr.msk.bf16.gmra.mxu1 %vm873_vm0, %v12295_v15 }
 0x12c   : > { %16274 = vst [vmem:[#allocation11_spill] sm:$0xff] %v12301_v19  ;;  %16275 = vst [vmem:[#allocation12_spill] sm:$0xff] %v12303_v20  ;;  %1628 = vmatprep.mubr.bf16.mxu0 %v16263_v36  ;;  %1821 = vmatprep.mubr.bf16.mxu1 %v16263_v36 }
 0x12d   : > { %v12311_v21 = vpop.f32.mrf.mxu0  ;;  %v12313_v22 = vpop.f32.mrf.mxu1 }
 0x12e   : > { %16276 = vst [vmem:[#allocation13_spill] sm:$0xff] %v12311_v21  ;;  %16277 = vst [vmem:[#allocation14_spill] sm:$0xff] %v12313_v22 }
 0x12f   : > { %v12315_v23 = vpop.f32.mrf.mxu0  ;;  %v12317_v24 = vpop.f32.mrf.mxu1 }
 0x130   : > { %16278 = vst [vmem:[#allocation15_spill] sm:$0xff] %v12315_v23  ;;  %16279 = vst [vmem:[#allocation16_spill] sm:$0xff] %v12317_v24 }
 0x131   : > { %v12323_v27 = vpop.f32.mrf.mxu0  ;;  %v12325_v28 = vpop.f32.mrf.mxu1 }
 0x132   : > { %16280 = vst [vmem:[#allocation17_spill] sm:$0xff] %v12323_v27  ;;  %16281 = vst [vmem:[#allocation18_spill] sm:$0xff] %v12325_v28  ;;  %v10667_v28 = vld [vmem:[%s16250_s3 + $0x320] ss:$16 sps:$4 sm:$0xff]   ;;  %v10678_v27 = vld [vmem:[%s16250_s3 + $0x30c] ss:$16 sps:$4 sm:$0xff]  }
 0x133   : > { %v12327_v29 = vpop.f32.mrf.mxu0  ;;  %v12329_v31 = vpop.f32.mrf.mxu1  ;;  %9201 = vmatmul.mubr.msk.bf16.gmra.mxu0 %vm873_vm0, %v12321_v26  ;;  %9217 = vmatmul.mubr.msk.bf16.gmra.mxu1 %vm873_vm0, %v12321_v26 }
 0x134   : > { %16282 = vst [vmem:[#allocation19_spill] sm:$0xff] %v12327_v29  ;;  %16283 = vst [vmem:[#allocation20_spill] sm:$0xff] %v12329_v31  ;;  %1638 = vmatprep.mubr.bf16.mxu0 %v16263_v36  ;;  %1831 = vmatprep.mubr.bf16.mxu1 %v16263_v36 }
 0x135   : > { %v12337_v32 = vpop.f32.mrf.mxu0  ;;  %v12339_v33 = vpop.f32.mrf.mxu1 }
 0x136   : > { %16284 = vst [vmem:[#allocation21_spill] sm:$0xff] %v12337_v32  ;;  %16285 = vst [vmem:[#allocation22_spill] sm:$0xff] %v12339_v33  ;;  %v10672_v32 = vld [vmem:[%s16250_s3 + $0x32c] ss:$16 sps:$4 sm:$0xff]  }
 0x137   : > { %v12341_v34 = vpop.f32.mrf.mxu0  ;;  %v12343_v35 = vpop.f32.mrf.mxu1 }
 0x138   : > { %16286 = vst [vmem:[#allocation23_spill] sm:$0xff] %v12341_v34  ;;  %16287 = vst [vmem:[#allocation24_spill] sm:$0xff] %v12343_v35  ;;  %v10666_v35 = vld [vmem:[%s16250_s3 + $0x34c] ss:$16 sps:$4 sm:$0xff]  }
 0x139   : > { %v12349_v41 = vpop.f32.mrf.mxu0  ;;  %v12351_v42 = vpop.f32.mrf.mxu1 }
 0x13a   : > { %16288 = vst [vmem:[#allocation25_spill] sm:$0xff] %v12349_v41  ;;  %16289 = vst [vmem:[#allocation26_spill] sm:$0xff] %v12351_v42 }
 0x13b   : > { %v12353_v52 = vpop.f32.mrf.mxu0  ;;  %v12355_v53 = vpop.f32.mrf.mxu1  ;;  %9202 = vmatmul.mubr.msk.bf16.gmra.mxu0 %vm873_vm0, %v12347_v40  ;;  %9218 = vmatmul.mubr.msk.bf16.gmra.mxu1 %vm873_vm0, %v12347_v40 }
 0x13c   : > { %16290 = vst [vmem:[#allocation27_spill] sm:$0xff] %v12353_v52  ;;  %16291 = vst [vmem:[#allocation28_spill] sm:$0xff] %v12355_v53  ;;  %1648 = vmatprep.mubr.bf16.mxu0 %v16263_v36  ;;  %1841 = vmatprep.mubr.bf16.mxu1 %v16263_v36 }
 0x13d   : > { %v12363_v1 = vpop.f32.mrf.mxu0  ;;  %v12365_v2 = vpop.f32.mrf.mxu1 }
 0x13e   : > { %16292 = vst [vmem:[#allocation29_spill] sm:$0xff] %v12363_v1  ;;  %16293 = vst [vmem:[#allocation30_spill] sm:$0xff] %v12365_v2 }
 0x13f   : > { %v12367_v13 = vpop.f32.mrf.mxu0  ;;  %v12369_v14 = vpop.f32.mrf.mxu1 }
 0x140   : > { %16294 = vst [vmem:[#allocation31_spill] sm:$0xff] %v12367_v13  ;;  %16295 = vst [vmem:[#allocation32_spill] sm:$0xff] %v12369_v14  ;;  %v16300_v14 = vmov 0  }
 0x141   : > { %v12376_v38 = vpop.f32.mrf.mxu0  ;;  %v12378_v53 = vpop.f32.mrf.mxu1 }
 0x142   : > { %16296 = vst [vmem:[#allocation33_spill] sm:$0xff] %v12376_v38  ;;  %16297 = vst [vmem:[#allocation34_spill] sm:$0xff] %v12378_v53  ;;  %v11571_v53 = vld [vmem:[%s11914_s17 + $0xf0] sm:$0xff] }
 0x143   : > { %v12380_v36 = vpop.f32.mrf.mxu0  ;;  %v12382_v1 = vpop.f32.mrf.mxu1  ;;  %9203 = vmatmul.mubr.msk.bf16.gmra.mxu0 %vm873_vm0, %v653_v37  ;;  %9219 = vmatmul.mubr.msk.bf16.gmra.mxu1 %vm873_vm0, %v653_v37 }
 0x144   : > { %16298 = vst [vmem:[#allocation35_spill] sm:$0xff] %v12380_v36  ;;  %16299 = vst [vmem:[#allocation36_spill] sm:$0xff] %v12382_v1  ;;  %1658 = vmatprep.mubr.bf16.mxu0 %v16300_v14  ;;  %1851 = vmatprep.mubr.bf16.mxu1 %v16300_v14  ;;  %v11572_v36 = vld [vmem:[%s11914_s17 + $0xf8] sm:$0xff] }
 0x145   : > { %v12388_v13 = vpop.f32.mrf.mxu0  ;;  %v12390_v2 = vpop.f32.mrf.mxu1  ;;  %v654_v52 = vpack.c.bf16 %v11572_v36, %v11571_v53 }
 0x146   : > { %16301 = vst [vmem:[#allocation37_spill] sm:$0xff] %v12388_v13  ;;  %16302 = vst [vmem:[#allocation38_spill] sm:$0xff] %v12390_v2  ;;  %v10655_v13 = vld [vmem:[%s16250_s3 + $0x360] ss:$16 sps:$4 sm:$0xff]  }
 0x147   : > { %v12392_v59 = vpop.f32.mrf.mxu0  ;;  %v12394_v38 = vpop.f32.mrf.mxu1 }
 0x148   : > { %16303 = vst [vmem:[#allocation39_spill] sm:$0xff] %v12392_v59  ;;  %16304 = vst [vmem:[#allocation40_spill] sm:$0xff] %v12394_v38 }
 0x149   : > { %v12398_v1 = vpop.f32.mrf.mxu0  ;;  %v12400_v42 = vpop.f32.mrf.mxu1 }
 0x14a   : > { %16305 = vst [vmem:[#allocation41_spill] sm:$0xff] %v12398_v1  ;;  %16306 = vst [vmem:[#allocation42_spill] sm:$0xff] %v12400_v42 }
 0x14b   : > { %v12402_v37 = vpop.f32.mrf.mxu0  ;;  %v12404_v41 = vpop.f32.mrf.mxu1  ;;  %9204 = vmatmul.mubr.msk.bf16.gmra.mxu0 %vm873_vm0, %v654_v52  ;;  %9220 = vmatmul.mubr.msk.bf16.gmra.mxu1 %vm873_vm0, %v654_v52 }
 0x14c   : > { %16307 = vst [vmem:[#allocation43_spill] sm:$0xff] %v12402_v37  ;;  %16308 = vst [vmem:[#allocation44_spill] sm:$0xff] %v12404_v41  ;;  %2136 = vmatprep.mubr.bf16.mxu0 %v16300_v14  ;;  %2329 = vmatprep.mubr.bf16.mxu1 %v16300_v14 }
 0x14d   : > { %v12410_v38 = vpop.f32.mrf.mxu0  ;;  %v12412_v59 = vpop.f32.mrf.mxu1 }
 0x14e   : > { %16309 = vst [vmem:[#allocation45_spill] sm:$0xff] %v12410_v38  ;;  %16310 = vst [vmem:[#allocation46_spill] sm:$0xff] %v12412_v59 }
 0x14f   : > { %v12414_v36 = vpop.f32.mrf.mxu0  ;;  %v12416_v53 = vpop.f32.mrf.mxu1 }
 0x150   : > { %16311 = vst [vmem:[#allocation47_spill] sm:$0xff] %v12414_v36  ;;  %16312 = vst [vmem:[#allocation48_spill] sm:$0xff] %v12416_v53 }
 0x151   : > { %v12418_v42 = vpop.f32.mrf.mxu0  ;;  %v12420_v37 = vpop.f32.mrf.mxu1 }
 0x152   : > { %16313 = vst [vmem:[#allocation49_spill] sm:$0xff] %v12418_v42  ;;  %16314 = vst [vmem:[#allocation50_spill] sm:$0xff] %v12420_v37 }
 0x153   : > { %v12422_v41 = vpop.f32.mrf.mxu0  ;;  %v12424_v1 = vpop.f32.mrf.mxu1  ;;  %9301 = vmatmul.mubr.msk.bf16.vlgmr.msra.gmra.mxu0 %vm873_vm0, %v11957_v10  ;;  %9317 = vmatmul.mubr.msk.bf16.vlgmr.msra.gmra.mxu1 %vm873_vm0, %v11957_v10 }
 0x154   : > { %16315 = vst [vmem:[#allocation51_spill] sm:$0xff] %v12422_v41  ;;  %16316 = vst [vmem:[#allocation52_spill] sm:$0xff] %v12424_v1  ;;  %2146 = vmatprep.mubr.bf16.mxu0 %v16300_v14  ;;  %2339 = vmatprep.mubr.bf16.mxu1 %v16300_v14 }
 0x155   : > { %v12432_v52 = vpop.f32.mrf.mxu0  ;;  %v12434_v53 = vpop.f32.mrf.mxu1 }
 0x156   : > { %16317 = vst [vmem:[#allocation53_spill] sm:$0xff] %v12432_v52  ;;  %16318 = vst [vmem:[#allocation54_spill] sm:$0xff] %v12434_v53  ;;  %v10660_v52 = vld [vmem:[%s16250_s3 + $0x36c] ss:$16 sps:$4 sm:$0xff]  }
 0x157   : > { %v12436_v42 = vpop.f32.mrf.mxu0  ;;  %v12438_v37 = vpop.f32.mrf.mxu1 }
 0x158   : > { %16319 = vst [vmem:[#allocation55_spill] sm:$0xff] %v12436_v42  ;;  %16320 = vst [vmem:[#allocation56_spill] sm:$0xff] %v12438_v37 }
 0x159   : > { %v12440_v41 = vpop.f32.mrf.mxu0  ;;  %v12442_v1 = vpop.f32.mrf.mxu1 }
 0x15a   : > { %16321 = vst [vmem:[#allocation57_spill] sm:$0xff] %v12440_v41  ;;  %16322 = vst [vmem:[#allocation58_spill] sm:$0xff] %v12442_v1 }
 0x15b   : > { %v12444_v36 = vpop.f32.mrf.mxu0  ;;  %v12446_v59 = vpop.f32.mrf.mxu1  ;;  %9302 = vmatmul.mubr.msk.bf16.gmra.mxu0 %vm873_vm0, %v11977_v18  ;;  %9318 = vmatmul.mubr.msk.bf16.gmra.mxu1 %vm873_vm0, %v11977_v18 }
 0x15c   : > { %16323 = vst [vmem:[#allocation59_spill] sm:$0xff] %v12444_v36  ;;  %16324 = vst [vmem:[#allocation60_spill] sm:$0xff] %v12446_v59  ;;  %2156 = vmatprep.mubr.bf16.mxu0 %v16300_v14  ;;  %2349 = vmatprep.mubr.bf16.mxu1 %v16300_v14 }
 0x15d   : > { %v12454_v10 = vpop.f32.mrf.mxu0  ;;  %v12456_v37 = vpop.f32.mrf.mxu1 }
 0x15e   : > { %16325 = vst [vmem:[#allocation61_spill] sm:$0xff] %v12454_v10  ;;  %16326 = vst [vmem:[#allocation62_spill] sm:$0xff] %v12456_v37 }
 0x15f   : > { %v12458_v41 = vpop.f32.mrf.mxu0  ;;  %v12460_v1 = vpop.f32.mrf.mxu1 }
 0x160   : > { %16327 = vst [vmem:[#allocation63_spill] sm:$0xff] %v12458_v41  ;;  %16328 = vst [vmem:[#allocation64_spill] sm:$0xff] %v12460_v1 }
 0x161   : > { %v12462_v36 = vpop.f32.mrf.mxu0  ;;  %v12464_v59 = vpop.f32.mrf.mxu1 }
 0x162   : > { %16329 = vst [vmem:[#allocation65_spill] sm:$0xff] %v12462_v36  ;;  %16330 = vst [vmem:[#allocation66_spill] sm:$0xff] %v12464_v59 }
 0x163   : > { %v12466_v42 = vpop.f32.mrf.mxu0  ;;  %v12468_v53 = vpop.f32.mrf.mxu1  ;;  %9303 = vmatmul.mubr.msk.bf16.gmra.mxu0 %vm873_vm0, %v12009_v30  ;;  %9319 = vmatmul.mubr.msk.bf16.gmra.mxu1 %vm873_vm0, %v12009_v30  ;;  %v10583_v30 = vld [vmem:[%s16250_s3 + $0x2e0] ss:$16 sps:$4 sm:$0xff]  }
 0x164   : > { %16331 = vst [vmem:[#allocation67_spill] sm:$0xff] %v12466_v42  ;;  %16332 = vst [vmem:[#allocation68_spill] sm:$0xff] %v12468_v53  ;;  %2166 = vmatprep.mubr.bf16.mxu0 %v16300_v14  ;;  %2359 = vmatprep.mubr.bf16.mxu1 %v16300_v14  ;;  %v10585_v53 = vld [vmem:[%s16250_s3 + $0x2e4] ss:$16 sps:$4 sm:$0xff]  }
 0x165   : > { %v12476_v18 = vpop.f32.mrf.mxu0  ;;  %v12478_v1 = vpop.f32.mrf.mxu1  ;;  %3373 = vmatprep.subr.bf16.mxu0 %v10585_v53 }
 0x166   : > { %16333 = vst [vmem:[#allocation69_spill] sm:$0xff] %v12476_v18  ;;  %16334 = vst [vmem:[#allocation70_spill] sm:$0xff] %v12478_v1  ;;  %v10588_v1 = vld [vmem:[%s16250_s3 + $0x2ec] ss:$16 sps:$4 sm:$0xff]   ;;  %3374 = vmatpush1.bf16.msra.mxu0 %v10583_v30 }
 0x167   : > { %v12480_v36 = vpop.f32.mrf.mxu0  ;;  %v12482_v59 = vpop.f32.mrf.mxu1  ;;  %3486 = vmatprep.subr.bf16.mxu1 %v10588_v1  ;;  %v10594_v1 = vld [vmem:[%s16250_s3 + $0x2cc] ss:$16 sps:$4 sm:$0xff]  }
 0x168   : > { %16335 = vst [vmem:[#allocation71_spill] sm:$0xff] %v12480_v36  ;;  %16336 = vst [vmem:[#allocation72_spill] sm:$0xff] %v12482_v59  ;;  %v10586_v59 = vld [vmem:[%s16250_s3 + $0x2e8] ss:$16 sps:$4 sm:$0xff]  }
 0x169   : > { %v12487_v42 = vpop.f32.mrf.mxu0  ;;  %v12489_v41 = vpop.f32.mrf.mxu1  ;;  %3487 = vmatpush1.bf16.msra.mxu1 %v10586_v59  ;;  %v10592_v59 = vld [vmem:[%s16250_s3 + $0x2c8] ss:$16 sps:$4 sm:$0xff]  }
 0x16a   : > { %16337 = vst [vmem:[#allocation73_spill] sm:$0xff] %v12487_v42  ;;  %16338 = vst [vmem:[#allocation74_spill] sm:$0xff] %v12489_v41  ;;  %v10591_v42 = vld [vmem:[%s16250_s3 + $0x2c4] ss:$16 sps:$4 sm:$0xff]   ;;  %3488 = vmatprep.subr.bf16.mxu1 %v10594_v1 }
 0x16b   : > { %v12500_v36 = vpop.f32.mrf.mxu0  ;;  %v12502_v18 = vpop.f32.mrf.mxu1  ;;  %9304 = vmatmul.mubr.msk.bf16.gmra.mxu0 %vm873_vm0, %v12029_v39  ;;  %9320 = vmatmul.mubr.msk.bf16.gmra.mxu1 %vm873_vm0, %v12029_v39 }
 0x16c   : > { %16339 = vst [vmem:[#allocation75_spill] sm:$0xff] %v12500_v36  ;;  %16340 = vst [vmem:[#allocation76_spill] sm:$0xff] %v12502_v18  ;;  %2176 = vmatprep.mubr.bf16.mxu0 %v16300_v14  ;;  %2369 = vmatprep.mubr.bf16.mxu1 %v16300_v14 }
 0x16d   : > { %v12510_v41 = vpop.f32.mrf.mxu0  ;;  %v12512_v53 = vpop.f32.mrf.mxu1  ;;  %3375 = vmatprep.subr.bf16.mxu0 %v10591_v42  ;;  %3489 = vmatpush1.bf16.msra.mxu1 %v10592_v59  ;;  %v10603_v59 = vld [vmem:[%s16250_s3 + $0x284] ss:$16 sps:$4 sm:$0xff]  }
 0x16e   : > { %16341 = vst [vmem:[#allocation77_spill] sm:$0xff] %v12510_v41  ;;  %16342 = vst [vmem:[#allocation78_spill] sm:$0xff] %v12512_v53  ;;  %v10589_v41 = vld [vmem:[%s16250_s3 + $0x2c0] ss:$16 sps:$4 sm:$0xff]  }
 0x16f   : > { %v12514_v36 = vpop.f32.mrf.mxu0  ;;  %v12516_v18 = vpop.f32.mrf.mxu1  ;;  %3376 = vmatpush1.bf16.msra.mxu0 %v10589_v41 }
 0x170   : > { %16343 = vst [vmem:[#allocation79_spill] sm:$0xff] %v12514_v36  ;;  %16344 = vst [vmem:[#allocation80_spill] sm:$0xff] %v12516_v18  ;;  %v10606_v36 = vld [vmem:[%s16250_s3 + $0x28c] ss:$16 sps:$4 sm:$0xff]  }
 0x171   : > { %v12521_v39 = vpop.f32.mrf.mxu0  ;;  %v12523_v37 = vpop.f32.mrf.mxu1 }
 0x172   : > { %16345 = vst [vmem:[#allocation81_spill] sm:$0xff] %v12521_v39  ;;  %16346 = vst [vmem:[#allocation82_spill] sm:$0xff] %v12523_v37 }
 0x173   : > { %v12534_v30 = vpop.f32.mrf.mxu0  ;;  %v12536_v18 = vpop.f32.mrf.mxu1  ;;  %9305 = vmatmul.mubr.msk.bf16.gmra.mxu0 %vm873_vm0, %v12037_v43  ;;  %9321 = vmatmul.mubr.msk.bf16.gmra.mxu1 %vm873_vm0, %v12037_v43  ;;  %v10595_v43 = vld [vmem:[%s16250_s3 + $0x2a0] ss:$16 sps:$4 sm:$0xff]  }
 0x174   : > { %16347 = vst [vmem:[#allocation83_spill] sm:$0xff] %v12534_v30  ;;  %16348 = vst [vmem:[#allocation84_spill] sm:$0xff] %v12536_v18  ;;  %2186 = vmatprep.mubr.bf16.mxu0 %v16300_v14  ;;  %2379 = vmatprep.mubr.bf16.mxu1 %v16300_v14  ;;  %v10597_v18 = vld [vmem:[%s16250_s3 + $0x2a4] ss:$16 sps:$4 sm:$0xff]   ;;  %v10600_v30 = vld [vmem:[%s16250_s3 + $0x2ac] ss:$16 sps:$4 sm:$0xff]  }
 0x175   : > { %v12544_v37 = vpop.f32.mrf.mxu0  ;;  %v12546_v42 = vpop.f32.mrf.mxu1  ;;  %3377 = vmatprep.subr.bf16.mxu0 %v10597_v18  ;;  %3490 = vmatprep.subr.bf16.mxu1 %v10600_v30  ;;  %v10604_v18 = vld [vmem:[%s16250_s3 + $0x288] ss:$16 sps:$4 sm:$0xff]  }
 0x176   : > { %16349 = vst [vmem:[#allocation85_spill] sm:$0xff] %v12544_v37  ;;  %16350 = vst [vmem:[#allocation86_spill] sm:$0xff] %v12546_v42  ;;  %v10598_v37 = vld [vmem:[%s16250_s3 + $0x2a8] ss:$16 sps:$4 sm:$0xff]   ;;  %3378 = vmatpush1.bf16.msra.mxu0 %v10595_v43 }
 0x177   : > { %v12560_v42 = vpop.f32.mrf.mxu0  ;;  %v12562_v41 = vpop.f32.mrf.mxu1  ;;  %3491 = vmatpush1.bf16.msra.mxu1 %v10598_v37  ;;  %3379 = vmatprep.subr.bf16.mxu0 %v10603_v59 }
 0x178   : > { %16351 = vst [vmem:[#allocation87_spill] sm:$0xff] %v12560_v42  ;;  %16352 = vst [vmem:[#allocation88_spill] sm:$0xff] %v12562_v41  ;;  %v10601_v41 = vld [vmem:[%s16250_s3 + $0x280] ss:$16 sps:$4 sm:$0xff]   ;;  %3492 = vmatprep.subr.bf16.mxu1 %v10606_v36 }
 0x179   : > { %v12564_v1 = vpop.f32.mrf.mxu0  ;;  %v12566_v39 = vpop.f32.mrf.mxu1 }
 0x17a   : > { %16353 = vst [vmem:[#allocation89_spill] sm:$0xff] %v12564_v1  ;;  %16354 = vst [vmem:[#allocation90_spill] sm:$0xff] %v12566_v39  ;;  %3380 = vmatpush1.bf16.msra.mxu0 %v10601_v41  ;;  %v10615_v41 = vld [vmem:[%s16250_s3 + $0x244] ss:$16 sps:$4 sm:$0xff]  }
 0x17b   : > { %v12580_v30 = vpop.f32.mrf.mxu0  ;;  %v12582_v43 = vpop.f32.mrf.mxu1  ;;  %9306 = vmatmul.mubr.msk.bf16.gmra.mxu0 %vm873_vm0, %v12045_v47  ;;  %9322 = vmatmul.mubr.msk.bf16.gmra.mxu1 %vm873_vm0, %v12045_v47  ;;  %v10607_v47 = vld [vmem:[%s16250_s3 + $0x260] ss:$16 sps:$4 sm:$0xff]  }
 0x17c   : > { %16355 = vst [vmem:[#allocation91_spill] sm:$0xff] %v12580_v30  ;;  %16356 = vst [vmem:[#allocation92_spill] sm:$0xff] %v12582_v43  ;;  %2196 = vmatprep.mubr.bf16.mxu0 %v16300_v14  ;;  %2389 = vmatprep.mubr.bf16.mxu1 %v16300_v14  ;;  %v10609_v43 = vld [vmem:[%s16250_s3 + $0x264] ss:$16 sps:$4 sm:$0xff]   ;;  %v10612_v30 = vld [vmem:[%s16250_s3 + $0x26c] ss:$16 sps:$4 sm:$0xff]  }
 0x17d   : > { %v12590_v37 = vpop.f32.mrf.mxu0  ;;  %v12592_v39 = vpop.f32.mrf.mxu1  ;;  %3493 = vmatpush1.bf16.msra.mxu1 %v10604_v18  ;;  %3381 = vmatprep.subr.bf16.mxu0 %v10609_v43  ;;  %v10618_v18 = vld [vmem:[%s16250_s3 + $0x24c] ss:$16 sps:$4 sm:$0xff]  }
 0x17e   : > { %16357 = vst [vmem:[#allocation93_spill] sm:$0xff] %v12590_v37  ;;  %16358 = vst [vmem:[#allocation94_spill] sm:$0xff] %v12592_v39  ;;  %v10610_v39 = vld [vmem:[%s16250_s3 + $0x268] ss:$16 sps:$4 sm:$0xff]   ;;  %3494 = vmatprep.subr.bf16.mxu1 %v10612_v30  ;;  %3382 = vmatpush1.bf16.msra.mxu0 %v10607_v47 }
 0x17f   : > { %v12606_v59 = vpop.f32.mrf.mxu0  ;;  %v12608_v36 = vpop.f32.mrf.mxu1  ;;  %v10616_v30 = vld [vmem:[%s16250_s3 + $0x248] ss:$16 sps:$4 sm:$0xff]   ;;  %3383 = vmatprep.subr.bf16.mxu0 %v10615_v41 }
 0x180   : > { %16359 = vst [vmem:[#allocation95_spill] sm:$0xff] %v12606_v59  ;;  %16360 = vst [vmem:[#allocation96_spill] sm:$0xff] %v12608_v36  ;;  %v10613_v36 = vld [vmem:[%s16250_s3 + $0x240] ss:$16 sps:$4 sm:$0xff]  }
 0x181   : > { %v12610_v37 = vpop.f32.mrf.mxu0  ;;  %v12612_v1 = vpop.f32.mrf.mxu1  ;;  %3495 = vmatpush1.bf16.msra.mxu1 %v10610_v39 }
 0x182   : > { %16361 = vst [vmem:[#allocation97_spill] sm:$0xff] %v12610_v37  ;;  %16362 = vst [vmem:[#allocation98_spill] sm:$0xff] %v12612_v1  ;;  %3496 = vmatprep.subr.bf16.mxu1 %v10618_v18  ;;  %3384 = vmatpush1.bf16.msra.mxu0 %v10613_v36  ;;  %v10627_v36 = vld [vmem:[%s16250_s3 + $0x204] ss:$16 sps:$4 sm:$0xff]  }
 0x183   : > { %v12626_v43 = vpop.f32.mrf.mxu0  ;;  %v12628_v1 = vpop.f32.mrf.mxu1  ;;  %9307 = vmatmul.mubr.msk.bf16.gmra.mxu0 %vm873_vm0, %v12053_v51  ;;  %9323 = vmatmul.mubr.msk.bf16.gmra.mxu1 %vm873_vm0, %v12053_v51  ;;  %v10619_v51 = vld [vmem:[%s16250_s3 + $0x220] ss:$16 sps:$4 sm:$0xff]  }
 0x184   : > { %16363 = vst [vmem:[#allocation99_spill] sm:$0xff] %v12626_v43  ;;  %16364 = vst [vmem:[#allocation100_spill] sm:$0xff] %v12628_v1  ;;  %2206 = vmatprep.mubr.bf16.mxu0 %v16300_v14  ;;  %2399 = vmatprep.mubr.bf16.mxu1 %v16300_v14  ;;  %v10621_v1 = vld [vmem:[%s16250_s3 + $0x224] ss:$16 sps:$4 sm:$0xff]   ;;  %v10624_v43 = vld [vmem:[%s16250_s3 + $0x22c] ss:$16 sps:$4 sm:$0xff]  }
 0x185   : > { %v12636_v39 = vpop.f32.mrf.mxu0  ;;  %v12638_v47 = vpop.f32.mrf.mxu1  ;;  %3497 = vmatpush1.bf16.msra.mxu1 %v10616_v30  ;;  %3385 = vmatprep.subr.bf16.mxu0 %v10621_v1  ;;  %v10630_v30 = vld [vmem:[%s16250_s3 + $0x20c] ss:$16 sps:$4 sm:$0xff]   ;;  %v10628_v1 = vld [vmem:[%s16250_s3 + $0x208] ss:$16 sps:$4 sm:$0xff]  }
 0x186   : > { %16365 = vst [vmem:[#allocation101_spill] sm:$0xff] %v12636_v39  ;;  %16366 = vst [vmem:[#allocation102_spill] sm:$0xff] %v12638_v47  ;;  %v10622_v47 = vld [vmem:[%s16250_s3 + $0x228] ss:$16 sps:$4 sm:$0xff]   ;;  %3498 = vmatprep.subr.bf16.mxu1 %v10624_v43  ;;  %3386 = vmatpush1.bf16.msra.mxu0 %v10619_v51 }
 0x187   : > { %v12652_v41 = vpop.f32.mrf.mxu0  ;;  %v12654_v18 = vpop.f32.mrf.mxu1  ;;  %3387 = vmatprep.subr.bf16.mxu0 %v10627_v36 }
 0x188   : > { %16367 = vst [vmem:[#allocation103_spill] sm:$0xff] %v12652_v41  ;;  %16368 = vst [vmem:[#allocation104_spill] sm:$0xff] %v12654_v18  ;;  %v10625_v18 = vld [vmem:[%s16250_s3 + $0x200] ss:$16 sps:$4 sm:$0xff]   ;;  %v10646_v41 = vld [vmem:[%s16250_s3 + $0x3a8] ss:$16 sps:$4 sm:$0xff]  }
 0x189   : > { %v12656_v39 = vpop.f32.mrf.mxu0  ;;  %v12658_v37 = vpop.f32.mrf.mxu1  ;;  %3499 = vmatpush1.bf16.msra.mxu1 %v10622_v47 }
 0x18a   : > { %16369 = vst [vmem:[#allocation105_spill] sm:$0xff] %v12656_v39  ;;  %16370 = vst [vmem:[#allocation106_spill] sm:$0xff] %v12658_v37  ;;  %3500 = vmatprep.subr.bf16.mxu1 %v10630_v30  ;;  %3388 = vmatpush1.bf16.msra.mxu0 %v10625_v18  ;;  %v10639_v18 = vld [vmem:[%s16250_s3 + $0x3c4] ss:$16 sps:$4 sm:$0xff]  }
 0x18b   : > { %v12672_v43 = vpop.f32.mrf.mxu0  ;;  %v12674_v37 = vpop.f32.mrf.mxu1  ;;  %9308 = vmatmul.mubr.msk.bf16.gmra.mxu0 %vm873_vm0, %v12061_v56  ;;  %9324 = vmatmul.mubr.msk.bf16.gmra.mxu1 %vm873_vm0, %v12061_v56  ;;  %v10631_v56 = vld [vmem:[%s16250_s3 + $0x3e0] ss:$16 sps:$4 sm:$0xff]  }
 0x18c   : > { %16371 = vst [vmem:[#allocation107_spill] sm:$0xff] %v12672_v43  ;;  %16372 = vst [vmem:[#allocation108_spill] sm:$0xff] %v12674_v37  ;;  %2216 = vmatprep.mubr.bf16.mxu0 %v16300_v14  ;;  %2409 = vmatprep.mubr.bf16.mxu1 %v16300_v14  ;;  %v10633_v37 = vld [vmem:[%s16250_s3 + $0x3e4] ss:$16 sps:$4 sm:$0xff]   ;;  %v10636_v43 = vld [vmem:[%s16250_s3 + $0x3ec] ss:$16 sps:$4 sm:$0xff]  }
 0x18d   : > { %v12682_v47 = vpop.f32.mrf.mxu0  ;;  %v12684_v51 = vpop.f32.mrf.mxu1  ;;  %3501 = vmatpush1.bf16.msra.mxu1 %v10628_v1  ;;  %3389 = vmatprep.subr.bf16.mxu0 %v10633_v37  ;;  %v10642_v1 = vld [vmem:[%s16250_s3 + $0x3cc] ss:$16 sps:$4 sm:$0xff]   ;;  %v10640_v37 = vld [vmem:[%s16250_s3 + $0x3c8] ss:$16 sps:$4 sm:$0xff]  }
 0x18e   : > { %16373 = vst [vmem:[#allocation109_spill] sm:$0xff] %v12682_v47  ;;  %16374 = vst [vmem:[#allocation110_spill] sm:$0xff] %v12684_v51  ;;  %v10634_v51 = vld [vmem:[%s16250_s3 + $0x3e8] ss:$16 sps:$4 sm:$0xff]   ;;  %3502 = vmatprep.subr.bf16.mxu1 %v10636_v43  ;;  %3390 = vmatpush2.bf16.msra.mxu0 %v10631_v56 }
 0x18f   : > { %v12698_v36 = vpop.f32.mrf.mxu0  ;;  %v12700_v30 = vpop.f32.mrf.mxu1  ;;  %3391 = vmatprep.subr.bf16.mxu0 %v10639_v18 }
 0x190   : > { %16375 = vst [vmem:[#allocation111_spill] sm:$0xff] %v12698_v36  ;;  %16376 = vst [vmem:[#allocation112_spill] sm:$0xff] %v12700_v30  ;;  %v10637_v30 = vld [vmem:[%s16250_s3 + $0x3c0] ss:$16 sps:$4 sm:$0xff]   ;;  %v10648_v36 = vld [vmem:[%s16250_s3 + $0x3ac] ss:$16 sps:$4 sm:$0xff]  }
 0x191   : > { %v12702_v47 = vpop.f32.mrf.mxu0  ;;  %v12704_v39 = vpop.f32.mrf.mxu1  ;;  %3503 = vmatpush2.bf16.msra.mxu1 %v10634_v51 }
 0x192   : > { %16377 = vst [vmem:[#allocation113_spill] sm:$0xff] %v12702_v47  ;;  %16378 = vst [vmem:[#allocation114_spill] sm:$0xff] %v12704_v39  ;;  %3504 = vmatprep.subr.bf16.mxu1 %v10642_v1  ;;  %v10645_v47 = vld [vmem:[%s16250_s3 + $0x3a4] ss:$16 sps:$4 sm:$0xff]   ;;  %3392 = vmatpush2.bf16.msra.mxu0 %v10637_v30 }
 0x193   : > { %v12718_v43 = vpop.f32.mrf.mxu0  ;;  %v12720_v39 = vpop.f32.mrf.mxu1  ;;  %9309 = vmatmul.mubr.msk.bf16.gmra.mxu0 %vm873_vm0, %v12243_v54  ;;  %9325 = vmatmul.mubr.msk.bf16.gmra.mxu1 %vm873_vm0, %v12243_v54  ;;  %v10643_v54 = vld [vmem:[%s16250_s3 + $0x3a0] ss:$16 sps:$4 sm:$0xff]   ;;  %v10651_v30 = vld [vmem:[%s16250_s3 + $0x384] ss:$16 sps:$4 sm:$0xff]  }
 0x194   : > { %2226 = vmatprep.mubr.bf16.mxu0 %v16300_v14  ;;  %2419 = vmatprep.mubr.bf16.mxu1 %v16300_v14 }
 0x195   : > { %v12728_v51 = vpop.f32.mrf.mxu0  ;;  %v12730_v56 = vpop.f32.mrf.mxu1  ;;  %3505 = vmatpush2.bf16.msra.mxu1 %v10640_v37  ;;  %3393 = vmatprep.subr.bf16.mxu0 %v10645_v47  ;;  %v10654_v37 = vld [vmem:[%s16250_s3 + $0x38c] ss:$16 sps:$4 sm:$0xff]   ;;  %v10652_v47 = vld [vmem:[%s16250_s3 + $0x388] ss:$16 sps:$4 sm:$0xff]  }
 0x196   : > { %3506 = vmatprep.subr.bf16.mxu1 %v10648_v36  ;;  %3394 = vmatpush2.bf16.msra.mxu0 %v10643_v54 }
 0x197   : > { %v12744_v18 = vpop.f32.mrf.mxu0  ;;  %v12746_v1 = vpop.f32.mrf.mxu1  ;;  %3395 = vmatprep.subr.bf16.mxu0 %v10651_v30  ;;  %v10658_v30 = vld [vmem:[%s16250_s3 + $0x368] ss:$16 sps:$4 sm:$0xff]  }
 0x199   : > { %v12748_v59 = vpop.f32.mrf.mxu0  ;;  %v12750_v42 = vpop.f32.mrf.mxu1  ;;  %3507 = vmatpush2.bf16.msra.mxu1 %v10646_v41  ;;  %v10649_v41 = vld [vmem:[%s16250_s3 + $0x380] ss:$16 sps:$4 sm:$0xff]  }
 0x19a   : > { %3508 = vmatprep.subr.bf16.mxu1 %v10654_v37  ;;  %3396 = vmatpush2.bf16.msra.mxu0 %v10649_v41 }
 0x19b   : > { %v12758_v53 = vpop.f32.mrf.mxu0  ;;  %v12760_v10 = vpop.f32.mrf.mxu1  ;;  %9310 = vmatmul.mubr.msk.bf16.gmra.mxu0 %vm873_vm0, %v12269_v3  ;;  %9326 = vmatmul.mubr.msk.bf16.gmra.mxu1 %vm873_vm0, %v12269_v3  ;;  %v10657_v3 = vld [vmem:[%s16250_s3 + $0x364] ss:$16 sps:$4 sm:$0xff]  }
 0x19c   : > { %2236 = vmatprep.mubr.bf16.mxu0 %v16300_v14  ;;  %2429 = vmatprep.mubr.bf16.mxu1 %v16300_v14 }
 0x19d   : > { %v12774_v36 = vpop.f32.mrf.mxu0  ;;  %v12776_v54 = vpop.f32.mrf.mxu1  ;;  %3509 = vmatpush2.bf16.msra.mxu1 %v10652_v47  ;;  %3397 = vmatprep.subr.bf16.mxu0 %v10657_v3  ;;  %v10663_v47 = vld [vmem:[%s16250_s3 + $0x344] ss:$16 sps:$4 sm:$0xff]  }
 0x19e   : > { %3510 = vmatprep.subr.bf16.mxu1 %v10660_v52  ;;  %3398 = vmatpush2.bf16.msra.mxu0 %v10655_v13  ;;  %v10661_v13 = vld [vmem:[%s16250_s3 + $0x340] ss:$16 sps:$4 sm:$0xff]   ;;  %v10664_v52 = vld [vmem:[%s16250_s3 + $0x348] ss:$16 sps:$4 sm:$0xff]  }
 0x19f   : > { %v12784_v38 = vpop.f32.mrf.mxu0  ;;  %v12786_v2 = vpop.f32.mrf.mxu1  ;;  %3399 = vmatprep.subr.bf16.mxu0 %v10663_v47 }
 0x1a1   : > { %v12794_v37 = vpop.f32.mrf.mxu0  ;;  %v12796_v41 = vpop.f32.mrf.mxu1  ;;  %3511 = vmatpush2.bf16.msra.mxu1 %v10658_v30 }
 0x1a2   : > { %3512 = vmatprep.subr.bf16.mxu1 %v10666_v35  ;;  %3400 = vmatpush2.bf16.msra.mxu0 %v10661_v13  ;;  %v10670_v35 = vld [vmem:[%s16250_s3 + $0x328] ss:$16 sps:$4 sm:$0xff]  }
 0x1a3   : > { %v12804_v34 = vpop.f32.mrf.mxu0  ;;  %v12806_v33 = vpop.f32.mrf.mxu1  ;;  %9311 = vmatmul.mubr.msk.bf16.gmra.mxu0 %vm873_vm0, %v12295_v15  ;;  %9327 = vmatmul.mubr.msk.bf16.gmra.mxu1 %vm873_vm0, %v12295_v15  ;;  %v10669_v15 = vld [vmem:[%s16250_s3 + $0x324] ss:$16 sps:$4 sm:$0xff]  }
 0x1a4   : > { %2246 = vmatprep.mubr.bf16.mxu0 %v16300_v14  ;;  %2439 = vmatprep.mubr.bf16.mxu1 %v16300_v14 }
 0x1a5   : > { %v12820_v3 = vpop.f32.mrf.mxu0  ;;  %v12822_v30 = vpop.f32.mrf.mxu1  ;;  %3513 = vmatpush2.bf16.msra.mxu1 %v10664_v52  ;;  %3401 = vmatprep.subr.bf16.mxu0 %v10669_v15  ;;  %v10675_v52 = vld [vmem:[%s16250_s3 + $0x304] ss:$16 sps:$4 sm:$0xff]  }
 0x1a6   : > { %3514 = vmatprep.subr.bf16.mxu1 %v10672_v32  ;;  %3402 = vmatpush2.bf16.msra.mxu0 %v10667_v28  ;;  %v10673_v28 = vld [vmem:[%s16250_s3 + $0x300] ss:$16 sps:$4 sm:$0xff]   ;;  %v10676_v32 = vld [vmem:[%s16250_s3 + $0x308] ss:$16 sps:$4 sm:$0xff]  }
 0x1a7   : > { %v12830_v31 = vpop.f32.mrf.mxu0  ;;  %v12832_v29 = vpop.f32.mrf.mxu1  ;;  %3403 = vmatprep.subr.bf16.mxu0 %v10675_v52 }
 0x1a9   : > { %v12840_v47 = vpop.f32.mrf.mxu0  ;;  %v12842_v13 = vpop.f32.mrf.mxu1  ;;  %3515 = vmatpush2.bf16.msra.mxu1 %v10670_v35 }
 0x1aa   : > { %16379 = vst [vmem:[#allocation115_spill] sm:$0xff] %v12842_v13  ;;  %3516 = vmatprep.subr.bf16.mxu1 %v10678_v27  ;;  %3404 = vmatpush2.bf16.msra.mxu0 %v10673_v28  ;;  %v9247_v27 = vld [vmem:[%s11914_s17 + $0xe0] sm:$0xff] }
 0x1ab   : > { %v12850_v24 = vpop.f32.mrf.mxu0  ;;  %v12852_v23 = vpop.f32.mrf.mxu1  ;;  %9312 = vmatmul.mubr.msk.bf16.gmra.mxu0 %vm873_vm0, %v12321_v26  ;;  %9328 = vmatmul.mubr.msk.bf16.gmra.mxu1 %vm873_vm0, %v12321_v26 }
 0x1ac   : > { %16380 = vst [vmem:[#allocation116_spill] sm:$0xff] %v12850_v24  ;;  %16381 = vst [vmem:[#allocation117_spill] sm:$0xff] %v12852_v23  ;;  %2256 = vmatprep.mubr.bf16.mxu0 %v16300_v14  ;;  %2449 = vmatprep.mubr.bf16.mxu1 %v16300_v14 }
 0x1ad   : > { %v12866_v15 = vpop.f32.mrf.mxu0  ;;  %v12868_v35 = vpop.f32.mrf.mxu1  ;;  %3517 = vmatpush2.bf16.msra.mxu1 %v10676_v32 }
 0x1ae   : > { %16382 = vst [vmem:[#allocation118_spill] sm:$0xff] %v12866_v15  ;;  %16383 = vst [vmem:[#allocation119_spill] sm:$0xff] %v12868_v35 }
 0x1af   : > { %v12870_v26 = vpop.f32.mrf.mxu0  ;;  %v12872_v22 = vpop.f32.mrf.mxu1 }
 0x1b0   : > { %16384 = vst [vmem:[#allocation120_spill] sm:$0xff] %v12870_v26  ;;  %16385 = vst [vmem:[#allocation121_spill] sm:$0xff] %v12872_v22 }
 0x1b1   : > { %v12874_v21 = vpop.f32.mrf.mxu0  ;;  %v12876_v23 = vpop.f32.mrf.mxu1 }
 0x1b2   : > { %16386 = vst [vmem:[#allocation122_spill] sm:$0xff] %v12874_v21  ;;  %16387 = vst [vmem:[#allocation123_spill] sm:$0xff] %v12876_v23 }
 0x1b3   : > { %v12878_v20 = vpop.f32.mrf.mxu0  ;;  %v12880_v24 = vpop.f32.mrf.mxu1  ;;  %9313 = vmatmul.mubr.msk.bf16.gmra.mxu0 %vm873_vm0, %v12347_v40  ;;  %9329 = vmatmul.mubr.msk.bf16.gmra.mxu1 %vm873_vm0, %v12347_v40 }
 0x1b4   : > { %16388 = vst [vmem:[#allocation124_spill] sm:$0xff] %v12878_v20  ;;  %16389 = vst [vmem:[#allocation125_spill] sm:$0xff] %v12880_v24  ;;  %2266 = vmatprep.mubr.bf16.mxu0 %v16300_v14  ;;  %2459 = vmatprep.mubr.bf16.mxu1 %v16300_v14  ;;  %v1908_v20 = vpack.c.bf16 %v12373_v25, %v9247_v27  ;;  %v9250_v25 = vld [vmem:[%s11914_s17 + $0xf8] sm:$0xff] }
 0x1b5   : > { %v12889_v52 = vpop.f32.mrf.mxu0  ;;  %v12891_v28 = vpop.f32.mrf.mxu1 }
 0x1b6   : > { %16390 = vst [vmem:[#allocation126_spill] sm:$0xff] %v12889_v52  ;;  %16391 = vst [vmem:[#allocation127_spill] sm:$0xff] %v12891_v28 }
 0x1b7   : > { %v12893_v32 = vpop.f32.mrf.mxu0  ;;  %v12895_v24 = vpop.f32.mrf.mxu1 }
 0x1b8   : > { %16392 = vst [vmem:[#allocation128_spill] sm:$0xff] %v12893_v32  ;;  %16393 = vst [vmem:[#allocation129_spill] sm:$0xff] %v12895_v24  ;;  %v9249_v24 = vld [vmem:[%s11914_s17 + $0xf0] sm:$0xff] }
 0x1b9   : > { %v12898_v23 = vpop.f32.mrf.mxu0  ;;  %v12900_v40 = vpop.f32.mrf.mxu1 }
 0x1ba   : > { %16394 = vst [vmem:[#allocation130_spill] sm:$0xff] %v12898_v23  ;;  %16395 = vst [vmem:[#allocation131_spill] sm:$0xff] %v12900_v40 }
 0x1bb   : > { %v12902_v21 = vpop.f32.mrf.mxu0  ;;  %v12904_v22 = vpop.f32.mrf.mxu1  ;;  %9314 = vmatmul.mubr.msk.bf16.gmra.mxu0 %vm873_vm0, %v1908_v20  ;;  %9330 = vmatmul.mubr.msk.bf16.gmra.mxu1 %vm873_vm0, %v1908_v20 }
 0x1bc   : > { %16396 = vst [vmem:[#allocation132_spill] sm:$0xff] %v12902_v21  ;;  %16397 = vst [vmem:[#allocation133_spill] sm:$0xff] %v12904_v22  ;;  %2276 = vmatprep.mubr.bf16.mxu0 %v16300_v14  ;;  %2469 = vmatprep.mubr.bf16.mxu1 %v16300_v14  ;;  %v1909_v22 = vpack.c.bf16 %v9250_v25, %v9249_v24 }
 0x1bd   : > { %v12912_v27 = vpop.f32.mrf.mxu0  ;;  %v12914_v23 = vpop.f32.mrf.mxu1 }
 0x1be   : > { %16398 = vst [vmem:[#allocation134_spill] sm:$0xff] %v12912_v27  ;;  %16399 = vst [vmem:[#allocation135_spill] sm:$0xff] %v12914_v23  ;;  %v9252_v23 = vld [vmem:[%s11914_s17 + $0x108] sm:$0xff] }
 0x1bf   : > { %v12916_v40 = vpop.f32.mrf.mxu0  ;;  %v12918_v21 = vpop.f32.mrf.mxu1 }
 0x1c0   : > { %16400 = vst [vmem:[#allocation136_spill] sm:$0xff] %v12916_v40  ;;  %16401 = vst [vmem:[#allocation137_spill] sm:$0xff] %v12918_v21  ;;  %v9251_v40 = vld [vmem:[%s11914_s17 + $0x100] sm:$0xff]  ;;  %s605_s17 = scalar_lea.vmem [#allocation6], %s9052_s21  ;;  %s11577_s21 = sshll.u32 %s11637_s0, 4  ;;  %s11578_s21 = int_to_ptr.vmem [resolvable:$false] %s11577_s21 }
 0x1c1   : > { %v12920_v32 = vpop.f32.mrf.mxu0  ;;  %v12922_v20 = vpop.f32.mrf.mxu1  ;;  %s8982_s30 = sshll.u32 %s605_s17, 4  ;;  %s11579_s27 = scalar_lea.vmem %s11578_s21, 256  ;;  %s8983_s30 = int_to_ptr.vmem [resolvable:$true] %s8982_s30 }
 0x1c2   : > { %16402 = vst [vmem:[#allocation138_spill] sm:$0xff] %v12920_v32  ;;  %16403 = vst [vmem:[#allocation139_spill] sm:$0xff] %v12922_v20  ;;  %s11573_s22 = scalar_lea.vmem %s8983_s30, 128  ;;  %p11580_p2 = scmp.lt.s32.totalorder %s8983_s30, %s11578_s21 }
 0x1c3   : > { %v12924_v28 = vpop.f32.mrf.mxu0  ;;  %v12926_v52 = vpop.f32.mrf.mxu1  ;;  %9315 = vmatmul.mubr.msk.bf16.gmra.mxu0 %vm873_vm0, %v1909_v22  ;;  %9331 = vmatmul.mubr.msk.bf16.gmra.mxu1 %vm873_vm0, %v1909_v22  ;;  %p11574_p13 = scmp.ne.s32.totalorder %s8983_s30, %s11573_s22  ;;  %p11581_p3 = scmp.lt.s32.totalorder %s11579_s27, %s11573_s22 }
 0x1c4   : > { %16404 = vst [vmem:[#allocation140_spill] sm:$0xff] %v12924_v28  ;;  %16405 = vst [vmem:[#allocation141_spill] sm:$0xff] %v12926_v52  ;;  %2286 = vmatprep.mubr.bf16.mxu0 %v16300_v14  ;;  %2479 = vmatprep.mubr.bf16.mxu1 %v16300_v14  ;;  %v1910_v28 = vpack.c.bf16 %v9252_v23, %v9251_v40 }
 0x1c5   : > { %v12934_v21 = vpop.f32.mrf.mxu0  ;;  %v12936_v24 = vpop.f32.mrf.mxu1  ;;  %p11575_p0 = pnand %p11574_p13, %p11746_p6  ;;  %p11582_p4 = por %p11581_p3, %p11580_p2 }
 0x1c6   : > { %16406 = vst [vmem:[#allocation142_spill] sm:$0xff] %v12934_v21  ;;  %16407 = vst [vmem:[#allocation143_spill] sm:$0xff] %v12936_v24 }
 0x1c7   : > { %v12938_v25 = vpop.f32.mrf.mxu0  ;;  %v12940_v20 = vpop.f32.mrf.mxu1  ;;  %p11576_p1 = pneg %p11575_p0 }
 0x1c8   : > { %16408 = vst [vmem:[#allocation144_spill] sm:$0xff] %v12938_v25  ;;  %16409 = vst [vmem:[#allocation145_spill] sm:$0xff] %v12940_v20 }
 0x1c9   : > { %v12942_v52 = vpop.f32.mrf.mxu0  ;;  %v12944_v32 = vpop.f32.mrf.mxu1  ;;  %p11583_p5 = pnand %p11582_p4, %p11576_p1 }
 0x1ca   : > { %16410 = vst [vmem:[#allocation146_spill] sm:$0xff] %v12942_v52  ;;  %16411 = vst [vmem:[#allocation147_spill] sm:$0xff] %v12944_v32 }
 0x1cb   : > { %v12946_v22 = vpop.f32.mrf.mxu0  ;;  %v12948_v27 = vpop.f32.mrf.mxu1  ;;  %9316 = vmatmul.mubr.msk.bf16.gmra.mxu0 %vm873_vm0, %v1910_v28  ;;  %9332 = vmatmul.mubr.msk.bf16.gmra.mxu1 %vm873_vm0, %v1910_v28 }
 0x1cc   : > { %16412 = vst [vmem:[#allocation148_spill] sm:$0xff] %v12946_v22  ;;  %16413 = vst [vmem:[#allocation149_spill] sm:$0xff] %v12948_v27 }
 0x1cd   : > { %v12952_v14 = vpop.f32.mrf.mxu0  ;;  %v12954_v24 = vpop.f32.mrf.mxu1 }
 0x1ce   : > { %16414 = vst [vmem:[#allocation150_spill] sm:$0xff] %v12952_v14  ;;  %16415 = vst [vmem:[#allocation151_spill] sm:$0xff] %v12954_v24 }
 0x1cf   : > { %v12956_v25 = vpop.f32.mrf.mxu0  ;;  %v12958_v20 = vpop.f32.mrf.mxu1 }
 0x1d0   : > { %16416 = vst [vmem:[#allocation152_spill] sm:$0xff] %v12956_v25  ;;  %16417 = vst [vmem:[#allocation153_spill] sm:$0xff] %v12958_v20 }
 0x1d1   : > { %v12960_v23 = vpop.f32.mrf.mxu0  ;;  %v12962_v40 = vpop.f32.mrf.mxu1 }
 0x1d2   : > { %16418 = vst [vmem:[#allocation154_spill] sm:$0xff] %v12960_v23  ;;  %16419 = vst [vmem:[#allocation155_spill] sm:$0xff] %v12962_v40 }
 0x1d3   : > { %v12964_v32 = vpop.f32.mrf.mxu0  ;;  %v12966_v22 = vpop.f32.mrf.mxu1 }
 0x1d4   : > { %16420 = vst [vmem:[#allocation156_spill] sm:$0xff] %v12964_v32  ;;  %16421 = vst [vmem:[#allocation157_spill] sm:$0xff] %v12966_v22 }
 0x1d5   : > { %v12968_v27 = vpop.f32.mrf.mxu0  ;;  %v12970_v52 = vpop.f32.mrf.mxu1 }
 0x1d6   : > { %16422 = vst [vmem:[#allocation158_spill] sm:$0xff] %v12968_v27  ;;  %16423 = vst [vmem:[#allocation159_spill] sm:$0xff] %v12970_v52 }
 0x1d7   : > { %v12972_v28 = vpop.f32.mrf.mxu0  ;;  %v12974_v14 = vpop.f32.mrf.mxu1 }
 0x1d8   : > { %16424 = vst [vmem:[#allocation160_spill] sm:$0xff] %v12972_v28  ;;  %16425 = vst [vmem:[#allocation161_spill] sm:$0xff] %v12974_v14 }
 0x1d9   : > { %v12976_v24 = vpop.f32.mrf.mxu0  ;;  %v12978_v25 = vpop.f32.mrf.mxu1 }
 0x1da   : > { %16426 = vst [vmem:[#allocation162_spill] sm:$0xff] %v12976_v24  ;;  %16427 = vst [vmem:[#allocation163_spill] sm:$0xff] %v12978_v25 }
 0x1db   : > { %v12980_v20 = vpop.f32.mrf.mxu0  ;;  %v12982_v23 = vpop.f32.mrf.mxu1 }
 0x1dc   : > { %16428 = vst [vmem:[#allocation164_spill] sm:$0xff] %v12980_v20  ;;  %16429 = vst [vmem:[#allocation165_spill] sm:$0xff] %v12982_v23 }
 0x1dd   : > { %v12984_v40 = vpop.f32.mrf.mxu0  ;;  %v12986_v32 = vpop.f32.mrf.mxu1 }
 0x1de   : > { %16430 = vst [vmem:[#allocation166_spill] sm:$0xff] %v12984_v40  ;;  %16431 = vst [vmem:[#allocation167_spill] sm:$0xff] %v12986_v32  ;;  %v10681_v32 = vld [vmem:[%s16250_s3 + $0xe4] ss:$16 sps:$4 sm:$0xff]  }
 0x1df   : > { %v12988_v22 = vpop.f32.mrf.mxu0  ;;  %v12990_v27 = vpop.f32.mrf.mxu1  ;;  %3919 = vmatprep.subr.bf16.mxu0 %v10681_v32 }
 0x1e0   : > { %16432 = vst [vmem:[#allocation168_spill] sm:$0xff] %v12988_v22  ;;  %16433 = vst [vmem:[#allocation169_spill] sm:$0xff] %v12990_v27  ;;  %v10684_v27 = vld [vmem:[%s16250_s3 + $0xec] ss:$16 sps:$4 sm:$0xff]  }
 0x1e1   : > { %v12992_v52 = vpop.f32.mrf.mxu0  ;;  %v12994_v28 = vpop.f32.mrf.mxu1  ;;  %4032 = vmatprep.subr.bf16.mxu1 %v10684_v27 }
 0x1e2   : > { %16434 = vst [vmem:[#allocation170_spill] sm:$0xff] %v12992_v52  ;;  %16435 = vst [vmem:[#allocation171_spill] sm:$0xff] %v12994_v28 }
 0x1e3   : > { %v12996_v14 = vpop.f32.mrf.mxu0  ;;  %v12998_v24 = vpop.f32.mrf.mxu1 }
 0x1e4   : > { %16436 = vst [vmem:[#allocation172_spill] sm:$0xff] %v12996_v14  ;;  %16437 = vst [vmem:[#allocation173_spill] sm:$0xff] %v12998_v24 }
 0x1e5   : > { %v13000_v25 = vpop.f32.mrf.mxu0  ;;  %v13002_v20 = vpop.f32.mrf.mxu1 }
 0x1e6   : > { %16438 = vst [vmem:[#allocation174_spill] sm:$0xff] %v13000_v25  ;;  %16439 = vst [vmem:[#allocation175_spill] sm:$0xff] %v13002_v20 }
 0x1e7   : > { %v13010_v22 = vpop.f32.mrf.mxu0  ;;  %v13012_v52 = vpop.f32.mrf.mxu1 }
 0x1e8   : > { %16440 = vst [vmem:[#allocation176_spill] sm:$0xff] %v13010_v22  ;;  %16441 = vst [vmem:[#allocation177_spill] sm:$0xff] %v13012_v52  ;;  %v2716_v52 = vlaneseq }
 0x1e9   : > { %v13014_v14 = vpop.f32.mrf.mxu0  ;;  %v13016_v24 = vpop.f32.mrf.mxu1 }
 0x1ea   : > { %16442 = vst [vmem:[#allocation178_spill] sm:$0xff] %v13014_v14  ;;  %16443 = vst [vmem:[#allocation179_spill] sm:$0xff] %v13016_v24 }
 0x1eb   : > { %v13018_v25 = vpop.f32.mrf.mxu0  ;;  %v13020_v20 = vpop.f32.mrf.mxu1 }
 0x1ec   : > { %16444 = vst [vmem:[#allocation180_spill] sm:$0xff] %v13018_v25  ;;  %16445 = vst [vmem:[#allocation181_spill] sm:$0xff] %v13020_v20 }
 0x1ed   : > { %v13022_v28 = vpop.f32.mrf.mxu0  ;;  %v13024_v40 = vpop.f32.mrf.mxu1 }
 0x1ee   : > { %16446 = vst [vmem:[#allocation182_spill] sm:$0xff] %v13022_v28  ;;  %16447 = vst [vmem:[#allocation183_spill] sm:$0xff] %v13024_v40 }
 0x1ef   : > { %v13026_v23 = vpop.f32.mrf.mxu0  ;;  %v13028_v21 = vpop.f32.mrf.mxu1 }
 0x1f0   : > { %16448 = vst [vmem:[#allocation184_spill] sm:$0xff] %v13026_v23  ;;  %16449 = vst [vmem:[#allocation185_spill] sm:$0xff] %v13028_v21 }
 0x1f1   : > { %v13030_v22 = vpop.f32.mrf.mxu0  ;;  %v13032_v32 = vpop.f32.mrf.mxu1 }
 0x1f2   : > { %16450 = vst [vmem:[#allocation186_spill] sm:$0xff] %v13030_v22  ;;  %16451 = vst [vmem:[#allocation187_spill] sm:$0xff] %v13032_v32 }
 0x1f3   : > { %v13034_v27 = vpop.f32.mrf.mxu0  ;;  %v13036_v14 = vpop.f32.mrf.mxu1 }
 0x1f4   : > { %16452 = vst [vmem:[#allocation188_spill] sm:$0xff] %v13034_v27  ;;  %16453 = vst [vmem:[#allocation189_spill] sm:$0xff] %v13036_v14 }
 0x1f5   : > { %v13038_v24 = vpop.f32.mrf.mxu0  ;;  %v13040_v25 = vpop.f32.mrf.mxu1 }
 0x1f6   : > { %16454 = vst [vmem:[#allocation190_spill] sm:$0xff] %v13038_v24  ;;  %16455 = vst [vmem:[#allocation191_spill] sm:$0xff] %v13040_v25 }
 0x1f7   : > { %v13042_v20 = vpop.f32.mrf.mxu0  ;;  %v13044_v28 = vpop.f32.mrf.mxu1 }
 0x1f8   : > { %16456 = vst [vmem:[#allocation192_spill] sm:$0xff] %v13042_v20  ;;  %16457 = vst [vmem:[#allocation193_spill] sm:$0xff] %v13044_v28 }
 0x1f9   : > { %v13046_v40 = vpop.f32.mrf.mxu0  ;;  %v13048_v23 = vpop.f32.mrf.mxu1 }
 0x1fa   : > { %16458 = vst [vmem:[#allocation194_spill] sm:$0xff] %v13046_v40  ;;  %16459 = vst [vmem:[#allocation195_spill] sm:$0xff] %v13048_v23 }
 0x1fb   : > { %v13050_v21 = vpop.f32.mrf.mxu0  ;;  %v13052_v22 = vpop.f32.mrf.mxu1 }
 0x1fc   : > { %16460 = vst [vmem:[#allocation196_spill] sm:$0xff] %v13050_v21  ;;  %16461 = vst [vmem:[#allocation197_spill] sm:$0xff] %v13052_v22 }
 0x1fd   : > { %v13054_v32 = vpop.f32.mrf.mxu0  ;;  %v13056_v27 = vpop.f32.mrf.mxu1 }
 0x1fe   : > { %16462 = vst [vmem:[#allocation198_spill] sm:$0xff] %v13054_v32  ;;  %16463 = vst [vmem:[#allocation199_spill] sm:$0xff] %v13056_v27 }
 0x1ff   : > { %v13058_v14 = vpop.f32.mrf.mxu0  ;;  %v13060_v24 = vpop.f32.mrf.mxu1 }
 0x200   : > { %16464 = vst [vmem:[#allocation200_spill] sm:$0xff] %v13058_v14  ;;  %16465 = vst [vmem:[#allocation201_spill] sm:$0xff] %v13060_v24 }
 0x201   : > { %v13062_v25 = vpop.f32.mrf.mxu0  ;;  %v13064_v20 = vpop.f32.mrf.mxu1 }
 0x202   : > { %16466 = vst [vmem:[#allocation202_spill] sm:$0xff] %v13062_v25  ;;  %16467 = vst [vmem:[#allocation203_spill] sm:$0xff] %v13064_v20 }
 0x203   : > { %v13066_v28 = vpop.f32.mrf.mxu0  ;;  %v13068_v40 = vpop.f32.mrf.mxu1 }
 0x204   : > { %16468 = vst [vmem:[#allocation204_spill] sm:$0xff] %v13066_v28  ;;  %16469 = vst [vmem:[#allocation205_spill] sm:$0xff] %v13068_v40 }
 0x205   : > { %v13070_v23 = vpop.f32.mrf.mxu0  ;;  %v13072_v21 = vpop.f32.mrf.mxu1 }
 0x206   : > { %16470 = vst [vmem:[#allocation206_spill] sm:$0xff] %v13070_v23  ;;  %16471 = vst [vmem:[#allocation207_spill] sm:$0xff] %v13072_v21 }
 0x207   : > { %v13074_v22 = vpop.f32.mrf.mxu0  ;;  %v13076_v32 = vpop.f32.mrf.mxu1 }
 0x208   : > { %16472 = vst [vmem:[#allocation208_spill] sm:$0xff] %v13074_v22  ;;  %16473 = vst [vmem:[#allocation209_spill] sm:$0xff] %v13076_v32 }
 0x209   : > { %v13078_v27 = vpop.f32.mrf.mxu0  ;;  %v13080_v14 = vpop.f32.mrf.mxu1 }
 0x20a   : > { %16474 = vst [vmem:[#allocation210_spill] sm:$0xff] %v13078_v27  ;;  %16475 = vst [vmem:[#allocation211_spill] sm:$0xff] %v13080_v14 }
 0x20b   : > { %v13082_v24 = vpop.f32.mrf.mxu0  ;;  %v13084_v25 = vpop.f32.mrf.mxu1 }
 0x20c   : > { %16476 = vst [vmem:[#allocation212_spill] sm:$0xff] %v13082_v24  ;;  %16477 = vst [vmem:[#allocation213_spill] sm:$0xff] %v13084_v25  ;;  %v1511_v24 = vadd.f32 %v12718_v43, %v12223_v44  ;;  %v1517_v44 = vadd.f32 %v12748_v59, %v12245_v55  ;;  %v1710_v43 = vadd.f32 %v12750_v42, %v12247_v57  ;;  %v2714_v42 = vld [vmem:[%s16249_s2] sm:$0x3] }
 0x20d   : > { %v13086_v20 = vpop.f32.mrf.mxu0  ;;  %v13088_v28 = vpop.f32.mrf.mxu1 }
 0x20e   : > { %16478 = vst [vmem:[#allocation214_spill] sm:$0xff] %v13086_v20  ;;  %16479 = vst [vmem:[#allocation215_spill] sm:$0xff] %v13088_v28  ;;  %v1704_v20 = vadd.f32 %v12720_v39, %v12225_v45  ;;  %v2717_v39 = vshrl.u32 %v2716_v52, 7 }
 0x20f   : > { %v13090_v40 = vpop.f32.mrf.mxu0  ;;  %v13092_v23 = vpop.f32.mrf.mxu1 }
 0x210   : > { %16480 = vst [vmem:[#allocation216_spill] sm:$0xff] %v13090_v40  ;;  %16481 = vst [vmem:[#allocation217_spill] sm:$0xff] %v13092_v23  ;;  %v1513_v40 = vadd.f32 %v12728_v51, %v12233_v46  ;;  %v1515_v23 = vadd.f32 %v12744_v18, %v12237_v49  ;;  %v13114_v13 = vsub.s32 0, %v2717_v39 }
 0x211   : > { %v13094_v21 = vpop.f32.mrf.mxu0  ;;  %v13096_v22 = vpop.f32.mrf.mxu1 }
 0x212   : > { %16482 = vst [vmem:[#allocation218_spill] sm:$0xff] %v13094_v21  ;;  %16483 = vst [vmem:[#allocation219_spill] sm:$0xff] %v13096_v22  ;;  %v1708_v22 = vadd.f32 %v12746_v1, %v12239_v50  ;;  %v1706_v21 = vadd.f32 %v12730_v56, %v12235_v48 }
 0x213   : > { %v2138_v32 = vpop.f32.mrf.mxu0  ;;  %v2331_v27 = vpop.f32.mrf.mxu1 }
 0x214   : > { %v2490_v26 = vadd.f32 %v2138_v32, %v1511_v24  ;;  %v2492_v46 = vadd.f32 %v2331_v27, %v1704_v20 }
 0x215   : > { %v2140_v14 = vpop.f32.mrf.mxu0  ;;  %v2333_v25 = vpop.f32.mrf.mxu1 }
 0x216   : > { %v2491_v49 = vadd.f32 %v2140_v14, %v1513_v40  ;;  %v2493_v18 = vadd.f32 %v2333_v25, %v1706_v21  ;;  %v1521_v21 = vadd.f32 %v12758_v53, %v12249_v58  ;;  %v1527_v14 = vadd.f32 %v12794_v37, %v12271_v4 }
 0x217   : > { %v2142_v28 = vpop.f32.mrf.mxu0  ;;  %v2335_v45 = vpop.f32.mrf.mxu1  ;;  %v13132_v58 = vrot.slane %v2714_v42, %v13114_v13  ;;  %v13134_v40 = vsub.s32 1, %v2717_v39 }
 0x218   : > { %v2494_v51 = vadd.f32 %v2142_v28, %v1515_v23  ;;  %v2496_v35 = vadd.f32 %v2335_v45, %v1708_v22  ;;  %v1523_v22 = vadd.f32 %v12774_v36, %v12259_v61  ;;  %v1720_v61 = vadd.f32 %v12796_v41, %v12273_v5 }
 0x219   : > { %v2144_v15 = vpop.f32.mrf.mxu0  ;;  %v2337_v50 = vpop.f32.mrf.mxu1  ;;  %v1531_v5 = vadd.f32 %v12804_v34, %v12275_v6  ;;  %v1724_v41 = vadd.f32 %v12806_v33, %v12277_v7 }
 0x21a   : > { %v2618_v1 = vmax.f32 %v2490_v26, %v2494_v51  ;;  %v2620_v19 = vmax.f32 %v2492_v46, %v2496_v35  ;;  %v2495_v48 = vadd.f32 %v2144_v15, %v1517_v44  ;;  %v2497_v56 = vadd.f32 %v2337_v50, %v1710_v43 }
 0x21b   : > { %v2148_v55 = vpop.f32.mrf.mxu0  ;;  %v2341_v59 = vpop.f32.mrf.mxu1  ;;  %v1714_v15 = vadd.f32 %v12760_v10, %v12251_v60  ;;  %v1525_v35 = vadd.f32 %v12784_v38, %v12263_v63  ;;  %v13144_v46 = vrot.slane %v2714_v42, %v13134_v40  ;;  %v1533_v51 = vadd.f32 %v12820_v3, %v12285_v8 }
 0x21c   : > { %v2682_v57 = vmax.f32 %v2618_v1, %v2620_v19  ;;  %v2619_v52 = vmax.f32 %v2491_v49, %v2495_v48  ;;  %v2621_v20 = vmax.f32 %v2493_v18, %v2497_v56  ;;  %v1718_v19 = vadd.f32 %v12786_v2, %v12265_v0 }
 0x21d   : > { %v2150_v24 = vpop.f32.mrf.mxu0  ;;  %v2343_v25 = vpop.f32.mrf.mxu1  ;;  %v2498_v60 = vadd.f32 %v2148_v55, %v1521_v21  ;;  %v2500_v10 = vadd.f32 %v2341_v59, %v1714_v15  ;;  %v1716_v0 = vadd.f32 %v12776_v54, %v12261_v62  ;;  %v1535_v1 = vadd.f32 %v12830_v31, %v12289_v11 }
 0x21e   : > { %v2683_v26 = vmax.f32 %v2619_v52, %v2621_v20  ;;  %v2499_v4 = vadd.f32 %v2150_v24, %v1523_v22  ;;  %v13141_v27 = vadd.f32 %v13132_v58, %v2682_v57  ;;  %v1728_v48 = vadd.f32 %v12832_v29, %v12291_v12  ;;  %v16484_v29 = vld [vmem:[#allocation115_spill] sm:$0xff] }
 0x21f   : > { %v2152_v53 = vpop.f32.mrf.mxu0  ;;  %v2345_v23 = vpop.f32.mrf.mxu1  ;;  %v2501_v44 = vadd.f32 %v2343_v25, %v1716_v0  ;;  %v1537_v56 = vadd.f32 %v12840_v47, %v12297_v16  ;;  %v1726_v16 = vadd.f32 %v12822_v30, %v12287_v9  ;;  %v1730_v47 = vadd.f32 %v16484_v29, %v12299_v17  ;;  %v16485_v22 = vld [vmem:[#allocation11_spill] sm:$0xff]  ;;  %v16489_v0 = vld [vmem:[#allocation13_spill] sm:$0xff] }
 0x220   : > { %v2502_v63 = vadd.f32 %v2152_v53, %v1525_v35  ;;  %v2504_v38 = vadd.f32 %v2345_v23, %v1718_v19  ;;  %v2758_v7 = vmax.f32 %v13141_v27, 0.0  ;;  %v13163_v55 = vadd.f32 %v13144_v46, %v2683_v26  ;;  %v16487_v23 = vld [vmem:[#allocation12_spill] sm:$0xff]  ;;  %v10781_v27 = vld [vmem:[%s16250_s3 + $0x4c0] ss:$16 sps:$4 sm:$0xff]  }
 0x221   : > { %v2154_v2 = vpop.f32.mrf.mxu0  ;;  %v2347_v36 = vpop.f32.mrf.mxu1 }
 0x222   : > { %v2622_v37 = vmax.f32 %v2498_v60, %v2502_v63  ;;  %v2624_v28 = vmax.f32 %v2500_v10, %v2504_v38  ;;  %v2503_v32 = vadd.f32 %v2154_v2, %v1527_v14  ;;  %v2505_v43 = vadd.f32 %v2347_v36, %v1720_v61  ;;  %v16486_v14 = vld [vmem:[#allocation116_spill] sm:$0xff]  ;;  %v16488_v60 = vld [vmem:[#allocation117_spill] sm:$0xff]  ;;  %v16490_v61 = vld [vmem:[#allocation118_spill] sm:$0xff] }
 0x223   : > { %v2158_v45 = vpop.f32.mrf.mxu0  ;;  %v2351_v39 = vpop.f32.mrf.mxu1  ;;  %v2759_v17 = vmax.f32 %v13163_v55, 0.0  ;;  %v1541_v53 = vadd.f32 %v16486_v14, %v16485_v22  ;;  %v1734_v10 = vadd.f32 %v16488_v60, %v16487_v23  ;;  %v1543_v2 = vadd.f32 %v16490_v61, %v16489_v0  ;;  %v16491_v36 = vld [vmem:[#allocation14_spill] sm:$0xff]  ;;  %v16501_v23 = vld [vmem:[#allocation19_spill] sm:$0xff]  ;;  %v16502_v60 = vld [vmem:[#allocation124_spill] sm:$0xff] }
 0x224   : > { %v2684_v62 = vmax.f32 %v2622_v37, %v2624_v28  ;;  %v2623_v54 = vmax.f32 %v2499_v4, %v2503_v32  ;;  %v2625_v49 = vmax.f32 %v2501_v44, %v2505_v43  ;;  %v2506_v34 = vadd.f32 %v2158_v45, %v1531_v5  ;;  %v16492_v4 = vld [vmem:[#allocation119_spill] sm:$0xff]  ;;  %v10696_v61 = vld [vmem:[%s16250_s3 + $0xac] ss:$16 sps:$4 sm:$0xff]  }
 0x225   : > { %v2160_v18 = vpop.f32.mrf.mxu0  ;;  %v2353_v50 = vpop.f32.mrf.mxu1  ;;  %v2508_v31 = vadd.f32 %v2351_v39, %v1724_v41  ;;  %v1736_v37 = vadd.f32 %v16492_v4, %v16491_v36  ;;  %v10679_v45 = vld [vmem:[%s16250_s3 + $0xe0] ss:$16 sps:$4 sm:$0xff]   ;;  %v10682_v39 = vld [vmem:[%s16250_s3 + $0xe8] ss:$16 sps:$4 sm:$0xff]   ;;  %v10783_v55 = vld [vmem:[%s16250_s3 + $0x4c4] ss:$16 sps:$4 sm:$0xff]  }
 0x226   : > { %v13159_v6 = vadd.f32 %v13132_v58, %v2684_v62  ;;  %v2685_v33 = vmax.f32 %v2623_v54, %v2625_v49  ;;  %v2507_v57 = vadd.f32 %v2160_v18, %v1533_v51  ;;  %v2509_v35 = vadd.f32 %v2353_v50, %v1726_v16  ;;  %v16493_v62 = vld [vmem:[#allocation15_spill] sm:$0xff]  ;;  %v16494_v54 = vld [vmem:[#allocation120_spill] sm:$0xff]  ;;  %v16496_v51 = vld [vmem:[#allocation121_spill] sm:$0xff] }
 0x227   : > { %v2162_v8 = vpop.f32.mrf.mxu0  ;;  %v2355_v3 = vpop.f32.mrf.mxu1  ;;  %v1545_v5 = vadd.f32 %v16494_v54, %v16493_v62  ;;  %v16495_v41 = vld [vmem:[#allocation16_spill] sm:$0xff]  ;;  %v16497_v18 = vld [vmem:[#allocation17_spill] sm:$0xff]  ;;  %v16498_v50 = vld [vmem:[#allocation122_spill] sm:$0xff] }
 0x228   : > { %v2760_v11 = vmax.f32 %v13159_v6, 0.0  ;;  %v2510_v59 = vadd.f32 %v2162_v8, %v1535_v1  ;;  %v2512_v12 = vadd.f32 %v2355_v3, %v1728_v48  ;;  %v13171_v20 = vadd.f32 %v13144_v46, %v2685_v33  ;;  %v16499_v33 = vld [vmem:[#allocation18_spill] sm:$0xff]  ;;  %v16503_v36 = vld [vmem:[#allocation20_spill] sm:$0xff]  ;;  %v16504_v4 = vld [vmem:[#allocation125_spill] sm:$0xff] }
 0x229   : > { %v2164_v42 = vpop.f32.mrf.mxu0  ;;  %v2357_v52 = vpop.f32.mrf.mxu1  ;;  %v1738_v49 = vadd.f32 %v16496_v51, %v16495_v41  ;;  %v1547_v1 = vadd.f32 %v16498_v50, %v16497_v18  ;;  %v10690_v16 = vld [vmem:[%s16250_s3 + $0xcc] ss:$16 sps:$4 sm:$0xff]   ;;  %v16508_v54 = vld [vmem:[#allocation127_spill] sm:$0xff] }
 0x22a   : > { %v2972_v21 = vpack.c.bf16 %v2760_v11, %v2758_v7  ;;  %v2626_v24 = vmax.f32 %v2506_v34, %v2510_v59  ;;  %v2628_v25 = vmax.f32 %v2508_v31, %v2512_v12  ;;  %v2511_v15 = vadd.f32 %v2164_v42, %v1537_v56  ;;  %v10687_v56 = vld [vmem:[%s16250_s3 + $0xc4] ss:$16 sps:$4 sm:$0xff]   ;;  %v16507_v62 = vld [vmem:[#allocation22_spill] sm:$0xff]  ;;  %v10691_v6 = vld [vmem:[%s16250_s3 + $0xa0] ss:$16 sps:$4 sm:$0xff]  }
 0x22b   : > { %v2513_v19 = vadd.f32 %v2357_v52, %v1730_v47  ;;  %v2168_v9 = vpop.f32.mrf.mxu0  ;;  %v2361_v30 = vpop.f32.mrf.mxu1  ;;  %v2761_v26 = vmax.f32 %v13171_v20, 0.0  ;;  %v16500_v34 = vld [vmem:[#allocation123_spill] sm:$0xff]  ;;  %v16510_v50 = vld [vmem:[#allocation128_spill] sm:$0xff]  ;;  %v16513_v20 = vld [vmem:[#allocation25_spill] sm:$0xff] }
 0x22c   : > { %v2686_v63 = vmax.f32 %v2626_v24, %v2628_v25  ;;  %v2627_v38 = vmax.f32 %v2507_v57, %v2511_v15  ;;  %v1740_v8 = vadd.f32 %v16500_v34, %v16499_v33  ;;  %v2514_v31 = vadd.f32 %v2168_v9, %v1541_v53  ;;  %v10688_v9 = vld [vmem:[%s16250_s3 + $0xc8] ss:$16 sps:$4 sm:$0xff]   ;;  %v10693_v53 = vld [vmem:[%s16250_s3 + $0xa4] ss:$16 sps:$4 sm:$0xff]  }
 0x22d   : > { %v2629_v28 = vmax.f32 %v2509_v35, %v2513_v19  ;;  %v2170_v32 = vpop.f32.mrf.mxu0  ;;  %v2363_v44 = vpop.f32.mrf.mxu1  ;;  %v2973_v43 = vpack.c.bf16 %v2761_v26, %v2759_v17  ;;  %v2516_v47 = vadd.f32 %v2361_v30, %v1734_v10  ;;  %v10685_v19 = vld [vmem:[%s16250_s3 + $0xc0] ss:$16 sps:$4 sm:$0xff]   ;;  %v1551_v10 = vadd.f32 %v16502_v60, %v16501_v23  ;;  %v10700_v60 = vld [vmem:[%s16250_s3 + $0x88] ss:$16 sps:$4 sm:$0xff]  }
 0x22e   : > { %v13204_v48 = vadd.f32 %v13132_v58, %v2686_v63  ;;  %v2515_v52 = vadd.f32 %v2170_v32, %v1543_v2  ;;  %v2517_v24 = vadd.f32 %v2363_v44, %v1736_v37  ;;  %v1744_v37 = vadd.f32 %v16504_v4, %v16503_v36  ;;  %v16509_v18 = vld [vmem:[#allocation23_spill] sm:$0xff]  ;;  %v16512_v33 = vld [vmem:[#allocation129_spill] sm:$0xff] }
 0x22f   : > { %v2687_v3 = vmax.f32 %v2627_v38, %v2629_v28  ;;  %3405 = vmatprep.mubr.bf16.mxu0 %v2973_v43  ;;  %3518 = vmatprep.mubr.bf16.mxu1 %v2973_v43  ;;  %v2172_v59 = vpop.f32.mrf.mxu0  ;;  %v2365_v12 = vpop.f32.mrf.mxu1  ;;  %v16505_v43 = vld [vmem:[#allocation21_spill] sm:$0xff]  ;;  %v16517_v4 = vld [vmem:[#allocation27_spill] sm:$0xff] }
 0x230   : > { %v2762_v29 = vmax.f32 %v13204_v48, 0.0  ;;  %v2518_v57 = vadd.f32 %v2172_v59, %v1545_v5  ;;  %v2520_v42 = vadd.f32 %v2365_v12, %v1738_v49  ;;  %3406 = vmatmul.mubr.bf16.vlgmr.msra.gmra.mxu0 %v2972_v21  ;;  %3519 = vmatmul.mubr.bf16.vlgmr.msra.gmra.mxu1 %v2972_v21  ;;  %v1746_v5 = vadd.f32 %v16508_v54, %v16507_v62  ;;  %v16514_v59 = vld [vmem:[#allocation130_spill] sm:$0xff]  ;;  %v10697_v23 = vld [vmem:[%s16250_s3 + $0x80] ss:$16 sps:$4 sm:$0xff]   ;;  %v10705_v36 = vld [vmem:[%s16250_s3 + $0x64] ss:$16 sps:$4 sm:$0xff]  }
 0x231   : > { %v2174_v25 = vpop.f32.mrf.mxu0  ;;  %v2367_v15 = vpop.f32.mrf.mxu1  ;;  %v13216_v35 = vadd.f32 %v13144_v46, %v2687_v3  ;;  %3920 = vmatpush1.bf16.msra.mxu0 %v10679_v45  ;;  %4033 = vmatpush1.bf16.msra.mxu1 %v10682_v39  ;;  %v16506_v45 = vld [vmem:[#allocation126_spill] sm:$0xff]  ;;  %v1557_v12 = vadd.f32 %v16514_v59, %v16513_v20 }
 0x232   : > { %v2630_v30 = vmax.f32 %v2514_v31, %v2518_v57  ;;  %v2632_v22 = vmax.f32 %v2516_v47, %v2520_v42  ;;  %v2519_v21 = vadd.f32 %v2174_v25, %v1547_v1  ;;  %v2521_v14 = vadd.f32 %v2367_v15, %v1740_v8  ;;  %3921 = vmatprep.subr.bf16.mxu0 %v10687_v56  ;;  %v16511_v56 = vld [vmem:[#allocation24_spill] sm:$0xff]  ;;  %v10699_v31 = vld [vmem:[%s16250_s3 + $0x84] ss:$16 sps:$4 sm:$0xff]  }
 0x233   : > { %v2178_v63 = vpop.f32.mrf.mxu0  ;;  %v2371_v38 = vpop.f32.mrf.mxu1  ;;  %v2763_v0 = vmax.f32 %v13216_v35, 0.0  ;;  %4034 = vmatprep.subr.bf16.mxu1 %v10690_v16  ;;  %v13237_v2 = vpack.c.bf16 %v2762_v29, %v2760_v11  ;;  %v1553_v39 = vadd.f32 %v16506_v45, %v16505_v43  ;;  %v10694_v11 = vld [vmem:[%s16250_s3 + $0xa8] ss:$16 sps:$4 sm:$0xff]   ;;  %v1555_v1 = vadd.f32 %v16510_v50, %v16509_v18  ;;  %v16516_v16 = vld [vmem:[#allocation131_spill] sm:$0xff]  ;;  %v10702_v25 = vld [vmem:[%s16250_s3 + $0x8c] ss:$16 sps:$4 sm:$0xff]  }
 0x234   : > { %v2688_v28 = vmax.f32 %v2630_v30, %v2632_v22  ;;  %v2631_v32 = vmax.f32 %v2515_v52, %v2519_v21  ;;  %v2633_v44 = vmax.f32 %v2517_v24, %v2521_v14  ;;  %v1748_v34 = vadd.f32 %v16512_v33, %v16511_v56  ;;  %v16523_v50 = vld [vmem:[#allocation30_spill] sm:$0xff]  ;;  %v16525_v33 = vld [vmem:[#allocation31_spill] sm:$0xff] }
 0x235   : > { %v2180_v41 = vpop.f32.mrf.mxu0  ;;  %v2373_v51 = vpop.f32.mrf.mxu1  ;;  %3922 = vmatpush1.bf16.msra.mxu0 %v10685_v19  ;;  %4035 = vmatpush1.bf16.msra.mxu1 %v10688_v9  ;;  %v13255_v49 = vpack.c.bf16 %v2763_v0, %v2761_v26  ;;  %v16515_v26 = vld [vmem:[#allocation26_spill] sm:$0xff]  ;;  %v2522_v57 = vadd.f32 %v2178_v63, %v1551_v10  ;;  %v2524_v42 = vadd.f32 %v2371_v38, %v1744_v37  ;;  %v16518_v37 = vld [vmem:[#allocation132_spill] sm:$0xff] }
 0x236   : > { %v13262_v8 = vadd.f32 %v13132_v58, %v2688_v28  ;;  %v2689_v3 = vmax.f32 %v2631_v32, %v2633_v44  ;;  %3923 = vmatprep.subr.bf16.mxu0 %v10693_v53  ;;  %v1750_v47 = vadd.f32 %v16516_v16, %v16515_v26  ;;  %4036 = vmatprep.subr.bf16.mxu1 %v10696_v61  ;;  %v16519_v32 = vld [vmem:[#allocation28_spill] sm:$0xff]  ;;  %v16520_v44 = vld [vmem:[#allocation133_spill] sm:$0xff] }
 0x237   : > { %v2182_v52 = vpop.f32.mrf.mxu0  ;;  %v2375_v24 = vpop.f32.mrf.mxu1  ;;  %v2523_v22 = vadd.f32 %v2180_v41, %v1553_v39  ;;  %v2525_v21 = vadd.f32 %v2373_v51, %v1746_v5  ;;  %v1561_v28 = vadd.f32 %v16518_v37, %v16517_v4  ;;  %v1754_v43 = vadd.f32 %v16520_v44, %v16519_v32  ;;  %v16521_v5 = vld [vmem:[#allocation29_spill] sm:$0xff]  ;;  %v16522_v41 = vld [vmem:[#allocation134_spill] sm:$0xff] }
 0x238   : > { %v2764_v15 = vmax.f32 %v13262_v8, 0.0  ;;  %v2526_v19 = vadd.f32 %v2182_v52, %v1555_v1  ;;  %v2528_v9 = vadd.f32 %v2375_v24, %v1748_v34  ;;  %v13276_v30 = vadd.f32 %v13144_v46, %v2689_v3  ;;  %v16524_v1 = vld [vmem:[#allocation135_spill] sm:$0xff]  ;;  %v16526_v34 = vld [vmem:[#allocation136_spill] sm:$0xff]  ;;  %v16528_v26 = vld [vmem:[#allocation137_spill] sm:$0xff] }
 0x239   : > { %v2184_v14 = vpop.f32.mrf.mxu0  ;;  %v2377_v53 = vpop.f32.mrf.mxu1  ;;  %3924 = vmatpush1.bf16.msra.mxu0 %v10691_v6  ;;  %4037 = vmatpush1.bf16.msra.mxu1 %v10694_v11  ;;  %v1563_v51 = vadd.f32 %v16522_v41, %v16521_v5  ;;  %v1756_v56 = vadd.f32 %v16524_v1, %v16523_v50  ;;  %v1565_v3 = vadd.f32 %v16526_v34, %v16525_v33  ;;  %v10708_v59 = vld [vmem:[%s16250_s3 + $0x6c] ss:$16 sps:$4 sm:$0xff]   ;;  %v10706_v52 = vld [vmem:[%s16250_s3 + $0x68] ss:$16 sps:$4 sm:$0xff]   ;;  %v16536_v33 = vld [vmem:[#allocation141_spill] sm:$0xff] }
 0x23a   : > { %v2634_v10 = vmax.f32 %v2522_v57, %v2526_v19  ;;  %v2636_v63 = vmax.f32 %v2524_v42, %v2528_v9  ;;  %v2527_v38 = vadd.f32 %v2184_v14, %v1557_v12  ;;  %v2529_v61 = vadd.f32 %v2377_v53, %v1750_v47  ;;  %3925 = vmatprep.subr.bf16.mxu0 %v10699_v31  ;;  %v16527_v12 = vld [vmem:[#allocation32_spill] sm:$0xff]  ;;  %v16529_v47 = vld [vmem:[#allocation33_spill] sm:$0xff]  ;;  %v16530_v57 = vld [vmem:[#allocation138_spill] sm:$0xff] }
 0x23b   : > { %v2188_v45 = vpop.f32.mrf.mxu0  ;;  %v2381_v39 = vpop.f32.mrf.mxu1  ;;  %v2765_v62 = vmax.f32 %v13276_v30, 0.0  ;;  %v2974_v54 = vpack.c.bf16 %v2764_v15, %v2762_v29  ;;  %4038 = vmatprep.subr.bf16.mxu1 %v10702_v25  ;;  %v10703_v29 = vld [vmem:[%s16250_s3 + $0x60] ss:$16 sps:$4 sm:$0xff]   ;;  %v1758_v16 = vadd.f32 %v16528_v26, %v16527_v12  ;;  %v1567_v42 = vadd.f32 %v16530_v57, %v16529_v47  ;;  %v16531_v24 = vld [vmem:[#allocation34_spill] sm:$0xff]  ;;  %v10711_v53 = vld [vmem:[%s16250_s3 + $0x44] ss:$16 sps:$4 sm:$0xff]  }
 0x23c   : > { %v2690_v6 = vmax.f32 %v2634_v10, %v2636_v63  ;;  %v2635_v11 = vmax.f32 %v2523_v22, %v2527_v38  ;;  %v2637_v18 = vmax.f32 %v2525_v21, %v2529_v61  ;;  %v16532_v25 = vld [vmem:[#allocation139_spill] sm:$0xff]  ;;  %v2530_v9 = vadd.f32 %v2188_v45, %v1561_v28  ;;  %v16534_v5 = vld [vmem:[#allocation140_spill] sm:$0xff]  ;;  %v16539_v12 = vld [vmem:[#allocation38_spill] sm:$0xff] }
 0x23d   : > { %v2190_v31 = vpop.f32.mrf.mxu0  ;;  %v2383_v20 = vpop.f32.mrf.mxu1  ;;  %v2975_v48 = vpack.c.bf16 %v2765_v62, %v2763_v0  ;;  %3926 = vmatpush1.bf16.msra.mxu0 %v10697_v23  ;;  %4039 = vmatpush1.bf16.msra.mxu1 %v10700_v60  ;;  %v1760_v19 = vadd.f32 %v16532_v25, %v16531_v24  ;;  %v2532_v22 = vadd.f32 %v2381_v39, %v1754_v43  ;;  %v10714_v23 = vld [vmem:[%s16250_s3 + $0x4c] ss:$16 sps:$4 sm:$0xff]   ;;  %v10709_v28 = vld [vmem:[%s16250_s3 + $0x40] ss:$16 sps:$4 sm:$0xff]   ;;  %v10712_v39 = vld [vmem:[%s16250_s3 + $0x48] ss:$16 sps:$4 sm:$0xff]  }
 0x23e   : > { %v13317_v35 = vadd.f32 %v13132_v58, %v2690_v6  ;;  %v2691_v0 = vmax.f32 %v2635_v11, %v2637_v18  ;;  %3927 = vmatprep.subr.bf16.mxu0 %v10705_v36  ;;  %v2531_v61 = vadd.f32 %v2190_v31, %v1563_v51  ;;  %v2533_v36 = vadd.f32 %v2383_v20, %v1756_v56  ;;  %v10717_v18 = vld [vmem:[%s16250_s3 + $0x24] ss:$16 sps:$4 sm:$0xff]   ;;  %v10720_v50 = vld [vmem:[%s16250_s3 + $0x2c] ss:$16 sps:$4 sm:$0xff]  }
 0x23f   : > { %3415 = vmatprep.mubr.bf16.mxu0 %v2975_v48  ;;  %3528 = vmatprep.mubr.bf16.mxu1 %v2975_v48  ;;  %v2192_v21 = vpop.f32.mrf.mxu0  ;;  %v2385_v14 = vpop.f32.mrf.mxu1  ;;  %v16535_v56 = vld [vmem:[#allocation36_spill] sm:$0xff]  ;;  %v16537_v48 = vld [vmem:[#allocation37_spill] sm:$0xff]  ;;  %v16540_v26 = vld [vmem:[#allocation143_spill] sm:$0xff] }
 0x240   : > { %v2766_v60 = vmax.f32 %v13317_v35, 0.0  ;;  %v2534_v10 = vadd.f32 %v2192_v21, %v1565_v3  ;;  %v2536_v63 = vadd.f32 %v2385_v14, %v1758_v16  ;;  %3416 = vmatmul.mubr.bf16.gmra.mxu0 %v2974_v54  ;;  %3529 = vmatmul.mubr.bf16.gmra.mxu1 %v2974_v54  ;;  %v13332_v38 = vadd.f32 %v13144_v46, %v2691_v0  ;;  %v16533_v54 = vld [vmem:[#allocation35_spill] sm:$0xff]  ;;  %v16542_v57 = vld [vmem:[#allocation144_spill] sm:$0xff]  ;;  %v16544_v25 = vld [vmem:[#allocation145_spill] sm:$0xff] }
 0x241   : > { %v2194_v4 = vpop.f32.mrf.mxu0  ;;  %v2387_v37 = vpop.f32.mrf.mxu1  ;;  %4040 = vmatprep.subr.bf16.mxu1 %v10708_v59  ;;  %3928 = vmatpush1.bf16.msra.mxu0 %v10703_v29  ;;  %v1571_v41 = vadd.f32 %v16534_v5, %v16533_v54  ;;  %v1764_v34 = vadd.f32 %v16536_v33, %v16535_v56  ;;  %v16538_v29 = vld [vmem:[#allocation142_spill] sm:$0xff]  ;;  %v1766_v16 = vadd.f32 %v16540_v26, %v16539_v12  ;;  %v16541_v47 = vld [vmem:[#allocation39_spill] sm:$0xff]  ;;  %v16543_v24 = vld [vmem:[#allocation40_spill] sm:$0xff] }
 0x242   : > { %v2638_v32 = vmax.f32 %v2530_v9, %v2534_v10  ;;  %v2640_v44 = vmax.f32 %v2532_v22, %v2536_v63  ;;  %v2535_v43 = vadd.f32 %v2194_v4, %v1567_v42  ;;  %v2537_v45 = vadd.f32 %v2387_v37, %v1760_v19  ;;  %4041 = vmatpush1.bf16.msra.mxu1 %v10706_v52  ;;  %v16545_v9 = vld [vmem:[#allocation41_spill] sm:$0xff]  ;;  %v16546_v22 = vld [vmem:[#allocation146_spill] sm:$0xff]  ;;  %v16548_v10 = vld [vmem:[#allocation147_spill] sm:$0xff] }
 0x243   : > { %v2198_v51 = vpop.f32.mrf.mxu0  ;;  %v2391_v6 = vpop.f32.mrf.mxu1  ;;  %v2767_v11 = vmax.f32 %v13332_v38, 0.0  ;;  %3929 = vmatprep.subr.bf16.mxu0 %v10711_v53  ;;  %4042 = vmatprep.subr.bf16.mxu1 %v10714_v23  ;;  %v13353_v1 = vpack.c.bf16 %v2766_v60, %v2764_v15  ;;  %v1573_v59 = vadd.f32 %v16538_v29, %v16537_v48  ;;  %v1575_v42 = vadd.f32 %v16542_v57, %v16541_v47  ;;  %v10715_v15 = vld [vmem:[%s16250_s3 + $0x20] ss:$16 sps:$4 sm:$0xff]   ;;  %v10718_v23 = vld [vmem:[%s16250_s3 + $0x28] ss:$16 sps:$4 sm:$0xff]  }
 0x244   : > { %v2692_v3 = vmax.f32 %v2638_v32, %v2640_v44  ;;  %v2639_v31 = vmax.f32 %v2531_v61, %v2535_v43  ;;  %v2641_v20 = vmax.f32 %v2533_v36, %v2537_v45  ;;  %v1768_v19 = vadd.f32 %v16544_v25, %v16543_v24  ;;  %v16547_v30 = vld [vmem:[#allocation42_spill] sm:$0xff]  ;;  %v10723_v37 = vld [vmem:[%s16250_s3 + $0x4] ss:$16 sps:$4 sm:$0xff]   ;;  %v16551_v12 = vld [vmem:[#allocation44_spill] sm:$0xff] }
 0x245   : > { %v2200_v8 = vpop.f32.mrf.mxu0  ;;  %v2393_v0 = vpop.f32.mrf.mxu1  ;;  %3930 = vmatpush1.bf16.msra.mxu0 %v10709_v28  ;;  %v13370_v52 = vpack.c.bf16 %v2767_v11, %v2765_v62  ;;  %v1577_v21 = vadd.f32 %v16546_v22, %v16545_v9  ;;  %v1770_v63 = vadd.f32 %v16548_v10, %v16547_v30  ;;  %v2538_v62 = vadd.f32 %v2198_v51, %v1571_v41  ;;  %v10726_v28 = vld [vmem:[%s16250_s3 + $0xc] ss:$16 sps:$4 sm:$0xff]   ;;  %v10721_v51 = vld [vmem:[%s16250_s3] ss:$16 sps:$4 sm:$0xff]   ;;  %v10724_v33 = vld [vmem:[%s16250_s3 + $0x8] ss:$16 sps:$4 sm:$0xff]  }
 0x246   : > { %v13377_v14 = vadd.f32 %v13132_v58, %v2692_v3  ;;  %v2693_v53 = vmax.f32 %v2639_v31, %v2641_v20  ;;  %4043 = vmatpush1.bf16.msra.mxu1 %v10712_v39  ;;  %v2540_v61 = vadd.f32 %v2391_v6, %v1764_v34  ;;  %3931 = vmatprep.subr.bf16.mxu0 %v10717_v18  ;;  %v16549_v34 = vld [vmem:[#allocation43_spill] sm:$0xff]  ;;  %v16550_v3 = vld [vmem:[#allocation148_spill] sm:$0xff]  ;;  %v16552_v26 = vld [vmem:[#allocation149_spill] sm:$0xff] }
 0x247   : > { %v2202_v36 = vpop.f32.mrf.mxu0  ;;  %v2395_v4 = vpop.f32.mrf.mxu1  ;;  %4044 = vmatprep.subr.bf16.mxu1 %v10720_v50  ;;  %v2539_v39 = vadd.f32 %v2200_v8, %v1573_v59  ;;  %v2541_v54 = vadd.f32 %v2393_v0, %v1766_v16  ;;  %v1581_v31 = vadd.f32 %v16550_v3, %v16549_v34  ;;  %v1774_v16 = vadd.f32 %v16552_v26, %v16551_v12  ;;  %v16553_v8 = vld [vmem:[#allocation45_spill] sm:$0xff]  ;;  %v16554_v0 = vld [vmem:[#allocation150_spill] sm:$0xff]  ;;  %v16556_v25 = vld [vmem:[#allocation151_spill] sm:$0xff] }
 0x248   : > { %v2768_v32 = vmax.f32 %v13377_v14, 0.0  ;;  %v2542_v44 = vadd.f32 %v2202_v36, %v1575_v42  ;;  %v2544_v43 = vadd.f32 %v2395_v4, %v1768_v19  ;;  %v13392_v45 = vadd.f32 %v13144_v46, %v2693_v53  ;;  %v16555_v24 = vld [vmem:[#allocation46_spill] sm:$0xff]  ;;  %v16557_v9 = vld [vmem:[#allocation47_spill] sm:$0xff]  ;;  %v16558_v22 = vld [vmem:[#allocation152_spill] sm:$0xff] }
 0x249   : > { %v2204_v5 = vpop.f32.mrf.mxu0  ;;  %v2397_v41 = vpop.f32.mrf.mxu1  ;;  %3932 = vmatpush1.bf16.msra.mxu0 %v10715_v15  ;;  %v1583_v15 = vadd.f32 %v16554_v0, %v16553_v8  ;;  %v1776_v19 = vadd.f32 %v16556_v25, %v16555_v24  ;;  %v1585_v35 = vadd.f32 %v16558_v22, %v16557_v9  ;;  %v10732_v30 = vld [vmem:[%s16250_s3 + $0x1ec] ss:$16 sps:$4 sm:$0xff]   ;;  %v10736_v25 = vld [vmem:[%s16250_s3 + $0x1c8] ss:$16 sps:$4 sm:$0xff]   ;;  %v16572_v14 = vld [vmem:[#allocation159_spill] sm:$0xff] }
 0x24a   : > { %v2642_v6 = vmax.f32 %v2538_v62, %v2542_v44  ;;  %v2644_v18 = vmax.f32 %v2540_v61, %v2544_v43  ;;  %v2543_v50 = vadd.f32 %v2204_v5, %v1577_v21  ;;  %v2545_v56 = vadd.f32 %v2397_v41, %v1770_v63  ;;  %4045 = vmatpush1.bf16.msra.mxu1 %v10718_v23  ;;  %v10729_v23 = vld [vmem:[%s16250_s3 + $0x1e4] ss:$16 sps:$4 sm:$0xff]   ;;  %v16559_v10 = vld [vmem:[#allocation48_spill] sm:$0xff]  ;;  %v16562_v36 = vld [vmem:[#allocation154_spill] sm:$0xff] }
 0x24b   : > { %v2208_v20 = vpop.f32.mrf.mxu0  ;;  %v2401_v48 = vpop.f32.mrf.mxu1  ;;  %v2769_v29 = vmax.f32 %v13392_v45, 0.0  ;;  %v2976_v59 = vpack.c.bf16 %v2768_v32, %v2766_v60  ;;  %3933 = vmatprep.subr.bf16.mxu0 %v10723_v37  ;;  %4046 = vmatprep.subr.bf16.mxu1 %v10726_v28  ;;  %v16560_v63 = vld [vmem:[#allocation153_spill] sm:$0xff]  ;;  %v16563_v28 = vld [vmem:[#allocation50_spill] sm:$0xff]  ;;  %v16564_v44 = vld [vmem:[#allocation155_spill] sm:$0xff] }
 0x24c   : > { %v2694_v47 = vmax.f32 %v2642_v6, %v2644_v18  ;;  %v2643_v57 = vmax.f32 %v2539_v39, %v2543_v50  ;;  %v2645_v42 = vmax.f32 %v2541_v54, %v2545_v56  ;;  %v1778_v62 = vadd.f32 %v16560_v63, %v16559_v10  ;;  %v16561_v61 = vld [vmem:[#allocation49_spill] sm:$0xff]  ;;  %v10738_v34 = vld [vmem:[%s16250_s3 + $0x1cc] ss:$16 sps:$4 sm:$0xff]  }
 0x24d   : > { %v2210_v21 = vpop.f32.mrf.mxu0  ;;  %v2403_v53 = vpop.f32.mrf.mxu1  ;;  %v2977_v60 = vpack.c.bf16 %v2769_v29, %v2767_v11  ;;  %3934 = vmatpush1.bf16.msra.mxu0 %v10721_v51  ;;  %v1587_v4 = vadd.f32 %v16562_v36, %v16561_v61  ;;  %v10727_v11 = vld [vmem:[%s16250_s3 + $0x1e0] ss:$16 sps:$4 sm:$0xff]   ;;  %v1780_v43 = vadd.f32 %v16564_v44, %v16563_v28  ;;  %v2546_v39 = vadd.f32 %v2208_v20, %v1581_v31  ;;  %v10730_v51 = vld [vmem:[%s16250_s3 + $0x1e8] ss:$16 sps:$4 sm:$0xff]   ;;  %v10735_v6 = vld [vmem:[%s16250_s3 + $0x1c4] ss:$16 sps:$4 sm:$0xff]  }
 0x24e   : > { %v13430_v38 = vadd.f32 %v13132_v58, %v2694_v47  ;;  %v2695_v37 = vmax.f32 %v2643_v57, %v2645_v42  ;;  %4047 = vmatpush1.bf16.msra.mxu1 %v10724_v33  ;;  %v2548_v54 = vadd.f32 %v2401_v48, %v1774_v16  ;;  %v2547_v3 = vadd.f32 %v2210_v21, %v1583_v15  ;;  %v16565_v57 = vld [vmem:[#allocation51_spill] sm:$0xff]  ;;  %v16566_v42 = vld [vmem:[#allocation156_spill] sm:$0xff]  ;;  %v16569_v10 = vld [vmem:[#allocation53_spill] sm:$0xff] }
 0x24f   : > { %3425 = vmatprep.mubr.bf16.mxu0 %v2977_v60  ;;  %3538 = vmatprep.mubr.bf16.mxu1 %v2977_v60  ;;  %v2212_v5 = vpop.f32.mrf.mxu0  ;;  %v2405_v41 = vpop.f32.mrf.mxu1  ;;  %v2549_v31 = vadd.f32 %v2403_v53, %v1776_v19  ;;  %v1591_v8 = vadd.f32 %v16566_v42, %v16565_v57  ;;  %v10741_v19 = vld [vmem:[%s16250_s3 + $0x1a4] ss:$16 sps:$4 sm:$0xff]   ;;  %v16567_v22 = vld [vmem:[#allocation52_spill] sm:$0xff]  ;;  %v16570_v63 = vld [vmem:[#allocation158_spill] sm:$0xff] }
 0x250   : > { %v2770_v18 = vmax.f32 %v13430_v38, 0.0  ;;  %v2550_v50 = vadd.f32 %v2212_v5, %v1585_v35  ;;  %v2552_v56 = vadd.f32 %v2405_v41, %v1778_v62  ;;  %3426 = vmatmul.mubr.bf16.gmra.mxu0 %v2976_v59  ;;  %3539 = vmatmul.mubr.bf16.gmra.mxu1 %v2976_v59  ;;  %v13445_v33 = vadd.f32 %v13144_v46, %v2695_v37  ;;  %v10733_v59 = vld [vmem:[%s16250_s3 + $0x1c0] ss:$16 sps:$4 sm:$0xff]   ;;  %v16571_v61 = vld [vmem:[#allocation54_spill] sm:$0xff]  ;;  %v16590_v38 = vld [vmem:[#allocation168_spill] sm:$0xff] }
 0x251   : > { %v2214_v20 = vpop.f32.mrf.mxu0  ;;  %v2407_v48 = vpop.f32.mrf.mxu1  ;;  %3935 = vmatprep.subr.bf16.mxu0 %v10729_v23  ;;  %4048 = vmatprep.subr.bf16.mxu1 %v10732_v30  ;;  %v16568_v35 = vld [vmem:[#allocation157_spill] sm:$0xff]  ;;  %v10744_v30 = vld [vmem:[%s16250_s3 + $0x1ac] ss:$16 sps:$4 sm:$0xff]   ;;  %v1593_v62 = vadd.f32 %v16570_v63, %v16569_v10  ;;  %v1786_v36 = vadd.f32 %v16572_v14, %v16571_v61 }
 0x252   : > { %v2646_v12 = vmax.f32 %v2546_v39, %v2550_v50  ;;  %v2648_v26 = vmax.f32 %v2548_v54, %v2552_v56  ;;  %v2551_v16 = vadd.f32 %v2214_v20, %v1587_v4  ;;  %v2553_v47 = vadd.f32 %v2407_v48, %v1780_v43  ;;  %3936 = vmatpush2.bf16.msra.mxu0 %v10727_v11  ;;  %v16573_v4 = vld [vmem:[#allocation55_spill] sm:$0xff]  ;;  %v16575_v43 = vld [vmem:[#allocation56_spill] sm:$0xff]  ;;  %v16576_v39 = vld [vmem:[#allocation161_spill] sm:$0xff] }
 0x253   : > { %v2218_v0 = vpop.f32.mrf.mxu0  ;;  %v2411_v24 = vpop.f32.mrf.mxu1  ;;  %v2771_v15 = vmax.f32 %v13445_v33, 0.0  ;;  %4049 = vmatpush2.bf16.msra.mxu1 %v10730_v51  ;;  %3937 = vmatprep.subr.bf16.mxu0 %v10735_v6  ;;  %v13466_v9 = vpack.c.bf16 %v2770_v18, %v2768_v32  ;;  %v1784_v21 = vadd.f32 %v16568_v35, %v16567_v22  ;;  %v16574_v32 = vld [vmem:[#allocation160_spill] sm:$0xff]  ;;  %v1788_v54 = vadd.f32 %v16576_v39, %v16575_v43  ;;  %v16577_v5 = vld [vmem:[#allocation57_spill] sm:$0xff]  ;;  %v16578_v41 = vld [vmem:[#allocation162_spill] sm:$0xff] }
 0x254   : > { %v2696_v53 = vmax.f32 %v2646_v12, %v2648_v26  ;;  %v2647_v60 = vmax.f32 %v2547_v3, %v2551_v16  ;;  %v2649_v23 = vmax.f32 %v2549_v31, %v2553_v47  ;;  %4050 = vmatprep.subr.bf16.mxu1 %v10738_v34  ;;  %v1595_v37 = vadd.f32 %v16574_v32, %v16573_v4  ;;  %v10739_v56 = vld [vmem:[%s16250_s3 + $0x1a0] ss:$16 sps:$4 sm:$0xff]   ;;  %v16579_v45 = vld [vmem:[#allocation58_spill] sm:$0xff]  ;;  %v10747_v26 = vld [vmem:[%s16250_s3 + $0x184] ss:$16 sps:$4 sm:$0xff]  }
 0x255   : > { %v2220_v11 = vpop.f32.mrf.mxu0  ;;  %v2413_v28 = vpop.f32.mrf.mxu1  ;;  %v13483_v44 = vpack.c.bf16 %v2771_v15, %v2769_v29  ;;  %v1597_v51 = vadd.f32 %v16578_v41, %v16577_v5  ;;  %v16580_v34 = vld [vmem:[#allocation163_spill] sm:$0xff]  ;;  %v2554_v29 = vadd.f32 %v2218_v0, %v1591_v8  ;;  %v2556_v31 = vadd.f32 %v2411_v24, %v1784_v21  ;;  %v10742_v12 = vld [vmem:[%s16250_s3 + $0x1a8] ss:$16 sps:$4 sm:$0xff]   ;;  %v10750_v42 = vld [vmem:[%s16250_s3 + $0x18c] ss:$16 sps:$4 sm:$0xff]  }
 0x256   : > { %v13490_v6 = vadd.f32 %v13132_v58, %v2696_v53  ;;  %v2697_v50 = vmax.f32 %v2647_v60, %v2649_v23  ;;  %3938 = vmatpush2.bf16.msra.mxu0 %v10733_v59  ;;  %v1790_v3 = vadd.f32 %v16580_v34, %v16579_v45  ;;  %v2555_v8 = vadd.f32 %v2220_v11, %v1593_v62  ;;  %v10745_v53 = vld [vmem:[%s16250_s3 + $0x180] ss:$16 sps:$4 sm:$0xff]   ;;  %v16582_v23 = vld [vmem:[#allocation164_spill] sm:$0xff]  ;;  %v16586_v43 = vld [vmem:[#allocation166_spill] sm:$0xff] }
 0x257   : > { %v2222_v20 = vpop.f32.mrf.mxu0  ;;  %v2415_v48 = vpop.f32.mrf.mxu1  ;;  %4051 = vmatpush2.bf16.msra.mxu1 %v10736_v25  ;;  %3939 = vmatprep.subr.bf16.mxu0 %v10741_v19  ;;  %v2557_v0 = vadd.f32 %v2413_v28, %v1786_v36  ;;  %v16581_v60 = vld [vmem:[#allocation59_spill] sm:$0xff]  ;;  %v16583_v14 = vld [vmem:[#allocation60_spill] sm:$0xff]  ;;  %v16584_v36 = vld [vmem:[#allocation165_spill] sm:$0xff] }
 0x258   : > { %v2772_v16 = vmax.f32 %v13490_v6, 0.0  ;;  %v2558_v47 = vadd.f32 %v2222_v20, %v1595_v37  ;;  %v2560_v59 = vadd.f32 %v2415_v48, %v1788_v54  ;;  %v13505_v57 = vadd.f32 %v13144_v46, %v2697_v50  ;;  %4052 = vmatprep.subr.bf16.mxu1 %v10744_v30  ;;  %v16585_v28 = vld [vmem:[#allocation61_spill] sm:$0xff]  ;;  %v16587_v54 = vld [vmem:[#allocation62_spill] sm:$0xff]  ;;  %v16588_v5 = vld [vmem:[#allocation167_spill] sm:$0xff] }
 0x259   : > { %v2224_v24 = vpop.f32.mrf.mxu0  ;;  %v2417_v25 = vpop.f32.mrf.mxu1  ;;  %v1601_v30 = vadd.f32 %v16582_v23, %v16581_v60  ;;  %v1794_v4 = vadd.f32 %v16584_v36, %v16583_v14  ;;  %v1603_v39 = vadd.f32 %v16586_v43, %v16585_v28  ;;  %v1796_v41 = vadd.f32 %v16588_v5, %v16587_v54  ;;  %v10748_v34 = vld [vmem:[%s16250_s3 + $0x188] ss:$16 sps:$4 sm:$0xff]   ;;  %v16593_v48 = vld [vmem:[#allocation65_spill] sm:$0xff] }
 0x25a   : > { %v2650_v19 = vmax.f32 %v2554_v29, %v2558_v47  ;;  %v2652_v22 = vmax.f32 %v2556_v31, %v2560_v59  ;;  %v2559_v35 = vadd.f32 %v2224_v24, %v1597_v51  ;;  %v2561_v21 = vadd.f32 %v2417_v25, %v1790_v3  ;;  %3940 = vmatpush2.bf16.msra.mxu0 %v10739_v56  ;;  %v16589_v51 = vld [vmem:[#allocation63_spill] sm:$0xff]  ;;  %v16591_v29 = vld [vmem:[#allocation64_spill] sm:$0xff]  ;;  %v16592_v31 = vld [vmem:[#allocation169_spill] sm:$0xff] }
 0x25b   : > { %v2228_v10 = vpop.f32.mrf.mxu0  ;;  %v2421_v63 = vpop.f32.mrf.mxu1  ;;  %v2773_v61 = vmax.f32 %v13505_v57, 0.0  ;;  %v2978_v62 = vpack.c.bf16 %v2772_v16, %v2770_v18  ;;  %4053 = vmatpush2.bf16.msra.mxu1 %v10742_v12  ;;  %3941 = vmatprep.subr.bf16.mxu0 %v10747_v26  ;;  %v1605_v50 = vadd.f32 %v16590_v38, %v16589_v51  ;;  %v10753_v3 = vld [vmem:[%s16250_s3 + $0x164] ss:$16 sps:$4 sm:$0xff]   ;;  %v1798_v20 = vadd.f32 %v16592_v31, %v16591_v29  ;;  %v16594_v12 = vld [vmem:[#allocation170_spill] sm:$0xff]  ;;  %v10757_v54 = vld [vmem:[%s16250_s3 + $0x140] ss:$16 sps:$4 sm:$0xff]  }
 0x25c   : > { %v2698_v32 = vmax.f32 %v2650_v19, %v2652_v22  ;;  %v2651_v37 = vmax.f32 %v2555_v8, %v2559_v35  ;;  %v2653_v11 = vmax.f32 %v2557_v0, %v2561_v21  ;;  %4054 = vmatprep.subr.bf16.mxu1 %v10750_v42  ;;  %v1607_v26 = vadd.f32 %v16594_v12, %v16593_v48  ;;  %v16595_v59 = vld [vmem:[#allocation66_spill] sm:$0xff]  ;;  %v16596_v42 = vld [vmem:[#allocation171_spill] sm:$0xff]  ;;  %v16598_v51 = vld [vmem:[#allocation172_spill] sm:$0xff] }
 0x25d   : > { %v2230_v56 = vpop.f32.mrf.mxu0  ;;  %v2423_v18 = vpop.f32.mrf.mxu1  ;;  %v2979_v45 = vpack.c.bf16 %v2773_v61, %v2771_v15  ;;  %v10756_v15 = vld [vmem:[%s16250_s3 + $0x16c] ss:$16 sps:$4 sm:$0xff]   ;;  %v1800_v8 = vadd.f32 %v16596_v42, %v16595_v59  ;;  %v2562_v0 = vadd.f32 %v2228_v10, %v1601_v30  ;;  %v2564_v24 = vadd.f32 %v2421_v63, %v1794_v4  ;;  %v10751_v22 = vld [vmem:[%s16250_s3 + $0x160] ss:$16 sps:$4 sm:$0xff]   ;;  %v10759_v23 = vld [vmem:[%s16250_s3 + $0x144] ss:$16 sps:$4 sm:$0xff]  }
 0x25e   : > { %v13543_v47 = vadd.f32 %v13132_v58, %v2698_v32  ;;  %v2699_v33 = vmax.f32 %v2651_v37, %v2653_v11  ;;  %3942 = vmatpush2.bf16.msra.mxu0 %v10745_v53  ;;  %v2563_v30 = vadd.f32 %v2230_v56, %v1603_v39  ;;  %v2565_v10 = vadd.f32 %v2423_v18, %v1796_v41  ;;  %v10754_v36 = vld [vmem:[%s16250_s3 + $0x168] ss:$16 sps:$4 sm:$0xff]   ;;  %v10762_v11 = vld [vmem:[%s16250_s3 + $0x14c] ss:$16 sps:$4 sm:$0xff]   ;;  %v16597_v41 = vld [vmem:[#allocation67_spill] sm:$0xff] }
 0x25f   : > { %3435 = vmatprep.mubr.bf16.mxu0 %v2979_v45  ;;  %3548 = vmatprep.mubr.bf16.mxu1 %v2979_v45  ;;  %v2232_v25 = vpop.f32.mrf.mxu0  ;;  %v2425_v19 = vpop.f32.mrf.mxu1  ;;  %v1611_v38 = vadd.f32 %v16598_v51, %v16597_v41  ;;  %v10765_v45 = vld [vmem:[%s16250_s3 + $0x124] ss:$16 sps:$4 sm:$0xff]   ;;  %v16602_v6 = vld [vmem:[#allocation174_spill] sm:$0xff] }
 0x260   : > { %v2774_v35 = vmax.f32 %v13543_v47, 0.0  ;;  %v2566_v21 = vadd.f32 %v2232_v25, %v1605_v50  ;;  %v2568_v53 = vadd.f32 %v2425_v19, %v1798_v20  ;;  %3436 = vmatmul.mubr.bf16.gmra.mxu0 %v2978_v62  ;;  %3549 = vmatmul.mubr.bf16.gmra.mxu1 %v2978_v62  ;;  %v13555_v60 = vadd.f32 %v13144_v46, %v2699_v33  ;;  %v16601_v31 = vld [vmem:[#allocation69_spill] sm:$0xff]  ;;  %v16603_v48 = vld [vmem:[#allocation70_spill] sm:$0xff]  ;;  %v16605_v42 = vld [vmem:[#allocation71_spill] sm:$0xff] }
 0x261   : > { %v2234_v63 = vpop.f32.mrf.mxu0  ;;  %v2427_v14 = vpop.f32.mrf.mxu1  ;;  %4055 = vmatpush2.bf16.msra.mxu1 %v10748_v34  ;;  %3943 = vmatprep.subr.bf16.mxu0 %v10753_v3  ;;  %v16599_v34 = vld [vmem:[#allocation68_spill] sm:$0xff]  ;;  %v16600_v3 = vld [vmem:[#allocation173_spill] sm:$0xff]  ;;  %v1613_v20 = vadd.f32 %v16602_v6, %v16601_v31  ;;  %v16613_v31 = vld [vmem:[#allocation75_spill] sm:$0xff] }
 0x262   : > { %v2654_v4 = vmax.f32 %v2562_v0, %v2566_v21  ;;  %v2656_v32 = vmax.f32 %v2564_v24, %v2568_v53  ;;  %v2567_v62 = vadd.f32 %v2234_v63, %v1607_v26  ;;  %v2569_v37 = vadd.f32 %v2427_v14, %v1800_v8  ;;  %4056 = vmatprep.subr.bf16.mxu1 %v10756_v15  ;;  %v10760_v15 = vld [vmem:[%s16250_s3 + $0x148] ss:$16 sps:$4 sm:$0xff]   ;;  %v16608_v25 = vld [vmem:[#allocation177_spill] sm:$0xff]  ;;  %v10768_v53 = vld [vmem:[%s16250_s3 + $0x12c] ss:$16 sps:$4 sm:$0xff]  }
 0x263   : > { %v2238_v28 = vpop.f32.mrf.mxu0  ;;  %v2431_v43 = vpop.f32.mrf.mxu1  ;;  %v2775_v39 = vmax.f32 %v13555_v60, 0.0  ;;  %3944 = vmatpush2.bf16.msra.mxu0 %v10751_v22  ;;  %v13574_v5 = vpack.c.bf16 %v2774_v35, %v2772_v16  ;;  %v1804_v29 = vadd.f32 %v16600_v3, %v16599_v34  ;;  %v16604_v16 = vld [vmem:[#allocation175_spill] sm:$0xff]  ;;  %v16606_v8 = vld [vmem:[#allocation176_spill] sm:$0xff]  ;;  %v16609_v57 = vld [vmem:[#allocation73_spill] sm:$0xff] }
 0x264   : > { %v2700_v50 = vmax.f32 %v2654_v4, %v2656_v32  ;;  %v2655_v56 = vmax.f32 %v2563_v30, %v2567_v62  ;;  %v2657_v18 = vmax.f32 %v2565_v10, %v2569_v37  ;;  %3945 = vmatprep.subr.bf16.mxu0 %v10759_v23  ;;  %v1806_v12 = vadd.f32 %v16604_v16, %v16603_v48  ;;  %v16607_v24 = vld [vmem:[#allocation72_spill] sm:$0xff]  ;;  %v16610_v23 = vld [vmem:[#allocation178_spill] sm:$0xff]  ;;  %v16612_v10 = vld [vmem:[#allocation179_spill] sm:$0xff] }
 0x265   : > { %v2240_v26 = vpop.f32.mrf.mxu0  ;;  %v2433_v33 = vpop.f32.mrf.mxu1  ;;  %4057 = vmatpush2.bf16.msra.mxu1 %v10754_v36  ;;  %v13594_v59 = vpack.c.bf16 %v2775_v39, %v2773_v61  ;;  %v1615_v0 = vadd.f32 %v16606_v8, %v16605_v42  ;;  %v1808_v19 = vadd.f32 %v16608_v25, %v16607_v24  ;;  %v1617_v30 = vadd.f32 %v16610_v23, %v16609_v57  ;;  %v16611_v61 = vld [vmem:[#allocation74_spill] sm:$0xff]  ;;  %v10763_v62 = vld [vmem:[%s16250_s3 + $0x120] ss:$16 sps:$4 sm:$0xff]   ;;  %v16614_v6 = vld [vmem:[#allocation180_spill] sm:$0xff] }
 0x266   : > { %v13601_v22 = vadd.f32 %v13132_v58, %v2700_v50  ;;  %v2701_v21 = vmax.f32 %v2655_v56, %v2657_v18  ;;  %4058 = vmatprep.subr.bf16.mxu1 %v10762_v11  ;;  %v1810_v63 = vadd.f32 %v16612_v10, %v16611_v61  ;;  %v2570_v14 = vadd.f32 %v2238_v28, %v1611_v38  ;;  %v10771_v28 = vld [vmem:[%s16250_s3 + $0x104] ss:$16 sps:$4 sm:$0xff]   ;;  %v10766_v56 = vld [vmem:[%s16250_s3 + $0x128] ss:$16 sps:$4 sm:$0xff]  }
 0x267   : > { %v2572_v36 = vadd.f32 %v2431_v43, %v1804_v29  ;;  %v2242_v4 = vpop.f32.mrf.mxu0  ;;  %v2435_v32 = vpop.f32.mrf.mxu1  ;;  %3946 = vmatpush2.bf16.msra.mxu0 %v10757_v54  ;;  %v2571_v43 = vadd.f32 %v2240_v26, %v1613_v20  ;;  %v2573_v38 = vadd.f32 %v2433_v33, %v1806_v12  ;;  %v1621_v20 = vadd.f32 %v16614_v6, %v16613_v31  ;;  %v16615_v33 = vld [vmem:[#allocation76_spill] sm:$0xff]  ;;  %v16617_v25 = vld [vmem:[#allocation77_spill] sm:$0xff]  ;;  %v16620_v57 = vld [vmem:[#allocation183_spill] sm:$0xff] }
 0x268   : > { %v2776_v37 = vmax.f32 %v13601_v22, 0.0  ;;  %v2574_v11 = vadd.f32 %v2242_v4, %v1615_v0  ;;  %v2576_v41 = vadd.f32 %v2435_v32, %v1808_v19  ;;  %v13615_v51 = vadd.f32 %v13144_v46, %v2701_v21  ;;  %3947 = vmatprep.subr.bf16.mxu0 %v10765_v45  ;;  %v10774_v45 = vld [vmem:[%s16250_s3 + $0x10c] ss:$16 sps:$4 sm:$0xff]   ;;  %v16624_v32 = vld [vmem:[#allocation185_spill] sm:$0xff] }
 0x269   : > { %v2244_v50 = vpop.f32.mrf.mxu0  ;;  %v2437_v54 = vpop.f32.mrf.mxu1  ;;  %4059 = vmatpush2.bf16.msra.mxu1 %v10760_v15  ;;  %v16616_v15 = vld [vmem:[#allocation181_spill] sm:$0xff]  ;;  %v16618_v19 = vld [vmem:[#allocation182_spill] sm:$0xff]  ;;  %v16622_v61 = vld [vmem:[#allocation184_spill] sm:$0xff] }
 0x26a   : > { %v2658_v18 = vmax.f32 %v2570_v14, %v2574_v11  ;;  %v2660_v34 = vmax.f32 %v2572_v36, %v2576_v41  ;;  %v2575_v3 = vadd.f32 %v2244_v50, %v1617_v30  ;;  %v2577_v29 = vadd.f32 %v2437_v54, %v1810_v63  ;;  %4060 = vmatprep.subr.bf16.mxu1 %v10768_v53  ;;  %v16619_v53 = vld [vmem:[#allocation78_spill] sm:$0xff]  ;;  %v16621_v30 = vld [vmem:[#allocation79_spill] sm:$0xff]  ;;  %v16623_v4 = vld [vmem:[#allocation80_spill] sm:$0xff] }
 0x26b   : > { %v2248_v48 = vpop.f32.mrf.mxu0  ;;  %v2441_v16 = vpop.f32.mrf.mxu1  ;;  %v2777_v12 = vmax.f32 %v13615_v51, 0.0  ;;  %v2980_v26 = vpack.c.bf16 %v2776_v37, %v2774_v35  ;;  %3948 = vmatpush2.bf16.msra.mxu0 %v10763_v62  ;;  %v1814_v42 = vadd.f32 %v16616_v15, %v16615_v33  ;;  %v1623_v21 = vadd.f32 %v16618_v19, %v16617_v25  ;;  %v10769_v14 = vld [vmem:[%s16250_s3 + $0x100] ss:$16 sps:$4 sm:$0xff]   ;;  %v10772_v36 = vld [vmem:[%s16250_s3 + $0x108] ss:$16 sps:$4 sm:$0xff]  }
 0x26c   : > { %v2702_v8 = vmax.f32 %v2658_v18, %v2660_v34  ;;  %v2659_v0 = vmax.f32 %v2571_v43, %v2575_v3  ;;  %v2661_v24 = vmax.f32 %v2573_v38, %v2577_v29  ;;  %3949 = vmatprep.subr.bf16.mxu0 %v10771_v28  ;;  %v1816_v23 = vadd.f32 %v16620_v57, %v16619_v53  ;;  %v16625_v11 = vld [vmem:[#allocation81_spill] sm:$0xff]  ;;  %v16626_v41 = vld [vmem:[#allocation186_spill] sm:$0xff]  ;;  %v16628_v38 = vld [vmem:[#allocation187_spill] sm:$0xff] }
 0x26d   : > { %v1625_v47 = vadd.f32 %v16622_v61, %v16621_v30  ;;  %v2250_v10 = vpop.f32.mrf.mxu0  ;;  %v2443_v63 = vpop.f32.mrf.mxu1  ;;  %v2981_v35 = vpack.c.bf16 %v2777_v12, %v2775_v39  ;;  %4061 = vmatpush2.bf16.msra.mxu1 %v10766_v56  ;;  %v1818_v62 = vadd.f32 %v16624_v32, %v16623_v4  ;;  %v1627_v51 = vadd.f32 %v16626_v41, %v16625_v11  ;;  %v10777_v39 = vld [vmem:[%s16250_s3 + $0x4e4] ss:$16 sps:$4 sm:$0xff]   ;;  %v16627_v43 = vld [vmem:[#allocation82_spill] sm:$0xff]  ;;  %v16630_v53 = vld [vmem:[#allocation188_spill] sm:$0xff] }
 0x26e   : > { %v13654_v28 = vadd.f32 %v13132_v58, %v2702_v8  ;;  %v2703_v60 = vmax.f32 %v2659_v0, %v2661_v24  ;;  %4062 = vmatprep.subr.bf16.mxu1 %v10774_v45  ;;  %v1820_v50 = vadd.f32 %v16628_v38, %v16627_v43  ;;  %v2578_v54 = vadd.f32 %v2248_v48, %v1621_v20  ;;  %v10780_v3 = vld [vmem:[%s16250_s3 + $0x4ec] ss:$16 sps:$4 sm:$0xff]   ;;  %v16636_v32 = vld [vmem:[#allocation191_spill] sm:$0xff] }
 0x26f   : > { %v2580_v56 = vadd.f32 %v2441_v16, %v1814_v42  ;;  %3445 = vmatprep.mubr.bf16.mxu0 %v2981_v35  ;;  %3558 = vmatprep.mubr.bf16.mxu1 %v2981_v35  ;;  %v2252_v18 = vpop.f32.mrf.mxu0  ;;  %v2445_v34 = vpop.f32.mrf.mxu1  ;;  %v2579_v33 = vadd.f32 %v2250_v10, %v1623_v21  ;;  %v2581_v20 = vadd.f32 %v2443_v63, %v1816_v23  ;;  %v16629_v21 = vld [vmem:[#allocation83_spill] sm:$0xff]  ;;  %v16632_v10 = vld [vmem:[#allocation189_spill] sm:$0xff]  ;;  %v16635_v4 = vld [vmem:[#allocation86_spill] sm:$0xff] }
 0x270   : > { %v2778_v29 = vmax.f32 %v13654_v28, 0.0  ;;  %v2582_v45 = vadd.f32 %v2252_v18, %v1625_v47  ;;  %v2584_v31 = vadd.f32 %v2445_v34, %v1818_v62  ;;  %3446 = vmatmul.mubr.bf16.gmra.mxu0 %v2980_v26  ;;  %3559 = vmatmul.mubr.bf16.gmra.mxu1 %v2980_v26  ;;  %v13666_v6 = vadd.f32 %v13144_v46, %v2703_v60  ;;  %v16631_v47 = vld [vmem:[#allocation84_spill] sm:$0xff]  ;;  %v16633_v35 = vld [vmem:[#allocation85_spill] sm:$0xff]  ;;  %v16643_v34 = vld [vmem:[#allocation90_spill] sm:$0xff] }
 0x271   : > { %v2254_v48 = vpop.f32.mrf.mxu0  ;;  %v2447_v16 = vpop.f32.mrf.mxu1  ;;  %3950 = vmatpush2.bf16.msra.mxu0 %v10769_v14  ;;  %4063 = vmatpush2.bf16.msra.mxu1 %v10772_v36  ;;  %v1631_v57 = vadd.f32 %v16630_v53, %v16629_v21  ;;  %v1824_v63 = vadd.f32 %v16632_v10, %v16631_v47  ;;  %v16634_v14 = vld [vmem:[#allocation190_spill] sm:$0xff]  ;;  %v1826_v62 = vadd.f32 %v16636_v32, %v16635_v4  ;;  %v16639_v60 = vld [vmem:[#allocation88_spill] sm:$0xff]  ;;  %v16645_v47 = vld [vmem:[#allocation91_spill] sm:$0xff] }
 0x272   : > { %v2662_v15 = vmax.f32 %v2578_v54, %v2582_v45  ;;  %v2664_v42 = vmax.f32 %v2580_v56, %v2584_v31  ;;  %v2583_v8 = vadd.f32 %v2254_v48, %v1627_v51  ;;  %v2585_v0 = vadd.f32 %v2447_v16, %v1820_v50  ;;  %4579 = vmatprep.subr.bf16.mxu0 %v10777_v39  ;;  %v16638_v51 = vld [vmem:[#allocation192_spill] sm:$0xff]  ;;  %v16640_v39 = vld [vmem:[#allocation193_spill] sm:$0xff]  ;;  %v16642_v56 = vld [vmem:[#allocation194_spill] sm:$0xff] }
 0x273   : > { %v2258_v24 = vpop.f32.mrf.mxu0  ;;  %v2451_v25 = vpop.f32.mrf.mxu1  ;;  %v2779_v19 = vmax.f32 %v13666_v6, 0.0  ;;  %4692 = vmatprep.subr.bf16.mxu1 %v10780_v3  ;;  %v13671_v26 = vpack.c.bf16 %v2778_v29, %v2776_v37  ;;  %v1633_v36 = vadd.f32 %v16634_v14, %v16633_v35  ;;  %v16637_v37 = vld [vmem:[#allocation87_spill] sm:$0xff]  ;;  %v1828_v43 = vadd.f32 %v16640_v39, %v16639_v60  ;;  %v16641_v54 = vld [vmem:[#allocation89_spill] sm:$0xff]  ;;  %v16647_v14 = vld [vmem:[#allocation92_spill] sm:$0xff] }
 0x274   : > { %v2704_v23 = vmax.f32 %v2662_v15, %v2664_v42  ;;  %v2663_v30 = vmax.f32 %v2579_v33, %v2583_v8  ;;  %v2665_v61 = vmax.f32 %v2581_v20, %v2585_v0  ;;  %v1635_v28 = vadd.f32 %v16638_v51, %v16637_v37  ;;  %v16644_v3 = vld [vmem:[#allocation195_spill] sm:$0xff]  ;;  %v16648_v4 = vld [vmem:[#allocation197_spill] sm:$0xff] }
 0x275   : > { %v2260_v11 = vpop.f32.mrf.mxu0  ;;  %v2453_v41 = vpop.f32.mrf.mxu1  ;;  %v13681_v22 = vpack.c.bf16 %v2779_v19, %v2777_v12  ;;  %v1637_v18 = vadd.f32 %v16642_v56, %v16641_v54  ;;  %v1830_v45 = vadd.f32 %v16644_v3, %v16643_v34  ;;  %v2586_v31 = vadd.f32 %v2258_v24, %v1631_v57  ;;  %v16646_v24 = vld [vmem:[#allocation196_spill] sm:$0xff]  ;;  %v16652_v60 = vld [vmem:[#allocation199_spill] sm:$0xff] }
 0x276   : > { %v13688_v38 = vadd.f32 %v13132_v58, %v2704_v23  ;;  %v2705_v50 = vmax.f32 %v2663_v30, %v2665_v61  ;;  %v2588_v6 = vadd.f32 %v2451_v25, %v1824_v63  ;;  %v2587_v42 = vadd.f32 %v2260_v11, %v1633_v36  ;;  %v16649_v11 = vld [vmem:[#allocation93_spill] sm:$0xff]  ;;  %v16655_v34 = vld [vmem:[#allocation96_spill] sm:$0xff] }
 0x277   : > { %v2262_v12 = vpop.f32.mrf.mxu0  ;;  %v2455_v33 = vpop.f32.mrf.mxu1  ;;  %v2589_v8 = vadd.f32 %v2453_v41, %v1826_v62  ;;  %v1641_v25 = vadd.f32 %v16646_v24, %v16645_v47  ;;  %v1834_v32 = vadd.f32 %v16648_v4, %v16647_v14  ;;  %v16650_v41 = vld [vmem:[#allocation198_spill] sm:$0xff] }
 0x278   : > { %v2780_v20 = vmax.f32 %v13688_v38, 0.0  ;;  %v2590_v48 = vadd.f32 %v2262_v12, %v1635_v28  ;;  %v2592_v16 = vadd.f32 %v2455_v33, %v1828_v43  ;;  %v13696_v15 = vadd.f32 %v13144_v46, %v2705_v50  ;;  %v16651_v28 = vld [vmem:[#allocation94_spill] sm:$0xff]  ;;  %v16653_v43 = vld [vmem:[#allocation95_spill] sm:$0xff]  ;;  %v16654_v38 = vld [vmem:[#allocation200_spill] sm:$0xff] }
 0x279   : > { %v2264_v0 = vpop.f32.mrf.mxu0  ;;  %v2457_v21 = vpop.f32.mrf.mxu1  ;;  %v1643_v51 = vadd.f32 %v16650_v41, %v16649_v11  ;;  %v1836_v39 = vadd.f32 %v16652_v60, %v16651_v28  ;;  %v1645_v50 = vadd.f32 %v16654_v38, %v16653_v43  ;;  %v16661_v11 = vld [vmem:[#allocation99_spill] sm:$0xff]  ;;  %v16662_v41 = vld [vmem:[#allocation204_spill] sm:$0xff] }
 0x27a   : > { %v2666_v53 = vmax.f32 %v2586_v31, %v2590_v48  ;;  %v2668_v23 = vmax.f32 %v2588_v6, %v2592_v16  ;;  %v2591_v30 = vadd.f32 %v2264_v0, %v1637_v18  ;;  %v2593_v61 = vadd.f32 %v2457_v21, %v1830_v45  ;;  %v16657_v45 = vld [vmem:[#allocation97_spill] sm:$0xff]  ;;  %v16658_v31 = vld [vmem:[#allocation202_spill] sm:$0xff]  ;;  %v16660_v16 = vld [vmem:[#allocation203_spill] sm:$0xff] }
 0x27b   : > { %v2268_v57 = vpop.f32.mrf.mxu0  ;;  %v2461_v10 = vpop.f32.mrf.mxu1  ;;  %v2781_v63 = vmax.f32 %v13696_v15, 0.0  ;;  %v2982_v35 = vpack.c.bf16 %v2780_v20, %v2778_v29  ;;  %v16656_v29 = vld [vmem:[#allocation201_spill] sm:$0xff]  ;;  %v1647_v6 = vadd.f32 %v16658_v31, %v16657_v45  ;;  %v16659_v48 = vld [vmem:[#allocation98_spill] sm:$0xff]  ;;  %v1651_v28 = vadd.f32 %v16662_v41, %v16661_v11  ;;  %v16663_v38 = vld [vmem:[#allocation100_spill] sm:$0xff] }
 0x27c   : > { %v2706_v37 = vmax.f32 %v2666_v53, %v2668_v23  ;;  %v2667_v36 = vmax.f32 %v2587_v42, %v2591_v30  ;;  %v2669_v62 = vmax.f32 %v2589_v8, %v2593_v61  ;;  %v1838_v3 = vadd.f32 %v16656_v29, %v16655_v34  ;;  %v16668_v34 = vld [vmem:[#allocation207_spill] sm:$0xff] }
 0x27d   : > { %v2270_v54 = vpop.f32.mrf.mxu0  ;;  %v2463_v56 = vpop.f32.mrf.mxu1  ;;  %v2983_v18 = vpack.c.bf16 %v2781_v63, %v2779_v19  ;;  %v1840_v15 = vadd.f32 %v16660_v16, %v16659_v48  ;;  %v2594_v42 = vadd.f32 %v2268_v57, %v1641_v25  ;;  %v2596_v8 = vadd.f32 %v2461_v10, %v1834_v32  ;;  %v16672_v48 = vld [vmem:[#allocation209_spill] sm:$0xff] }
 0x27e   : > { %v13714_v12 = vadd.f32 %v13132_v58, %v2706_v37  ;;  %v2707_v33 = vmax.f32 %v2667_v36, %v2669_v62  ;;  %v2595_v61 = vadd.f32 %v2270_v54, %v1643_v51  ;;  %v2597_v47 = vadd.f32 %v2463_v56, %v1836_v39  ;;  %v16664_v51 = vld [vmem:[#allocation205_spill] sm:$0xff]  ;;  %v16666_v54 = vld [vmem:[#allocation206_spill] sm:$0xff] }
 0x27f   : > { %3455 = vmatprep.mubr.bf16.mxu0 %v2983_v18  ;;  %3568 = vmatprep.mubr.bf16.mxu1 %v2983_v18  ;;  %v2272_v0 = vpop.f32.mrf.mxu0  ;;  %v2465_v21 = vpop.f32.mrf.mxu1  ;;  %v1844_v39 = vadd.f32 %v16664_v51, %v16663_v38  ;;  %v16667_v18 = vld [vmem:[#allocation102_spill] sm:$0xff] }
 0x280   : > { %v2782_v19 = vmax.f32 %v13714_v12, 0.0  ;;  %v2598_v53 = vadd.f32 %v2272_v0, %v1645_v50  ;;  %v2600_v23 = vadd.f32 %v2465_v21, %v1838_v3  ;;  %3456 = vmatmul.mubr.bf16.gmra.mxu0 %v2982_v35  ;;  %3569 = vmatmul.mubr.bf16.gmra.mxu1 %v2982_v35  ;;  %v2751_v30 = vadd.f32 %v13144_v46, %v2707_v33  ;;  %v16665_v50 = vld [vmem:[#allocation101_spill] sm:$0xff]  ;;  %v16671_v33 = vld [vmem:[#allocation104_spill] sm:$0xff]  ;;  %v16674_v0 = vld [vmem:[#allocation210_spill] sm:$0xff] }
 0x281   : > { %v2274_v24 = vpop.f32.mrf.mxu0  ;;  %v2467_v14 = vpop.f32.mrf.mxu1  ;;  %v1653_v56 = vadd.f32 %v16666_v54, %v16665_v50  ;;  %v1846_v29 = vadd.f32 %v16668_v34, %v16667_v18  ;;  %v1848_v16 = vadd.f32 %v16672_v48, %v16671_v33  ;;  %v16677_v50 = vld [vmem:[#allocation107_spill] sm:$0xff]  ;;  %v16678_v54 = vld [vmem:[#allocation212_spill] sm:$0xff]  ;;  %v16683_v48 = vld [vmem:[#allocation110_spill] sm:$0xff] }
 0x282   : > { %v2670_v4 = vmax.f32 %v2594_v42, %v2598_v53  ;;  %v2672_v37 = vmax.f32 %v2596_v8, %v2600_v23  ;;  %v2599_v25 = vadd.f32 %v2274_v24, %v1647_v6  ;;  %v2601_v57 = vadd.f32 %v2467_v14, %v1840_v15  ;;  %v16670_v6 = vld [vmem:[#allocation208_spill] sm:$0xff]  ;;  %v16673_v8 = vld [vmem:[#allocation105_spill] sm:$0xff]  ;;  %v16675_v53 = vld [vmem:[#allocation106_spill] sm:$0xff] }
 0x283   : > { %v2278_v10 = vpop.f32.mrf.mxu0  ;;  %v2471_v32 = vpop.f32.mrf.mxu1  ;;  %v2783_v36 = vmax.f32 %v2751_v30, 0.0  ;;  %v13720_v62 = vpack.c.bf16 %v2782_v19, %v2780_v20  ;;  %v16669_v20 = vld [vmem:[#allocation103_spill] sm:$0xff]  ;;  %v1657_v21 = vadd.f32 %v16674_v0, %v16673_v8  ;;  %v1661_v18 = vadd.f32 %v16678_v54, %v16677_v50  ;;  %v16679_v34 = vld [vmem:[#allocation108_spill] sm:$0xff] }
 0x284   : > { %v2708_v60 = vmax.f32 %v2670_v4, %v2672_v37  ;;  %v2671_v35 = vmax.f32 %v2595_v61, %v2599_v25  ;;  %v2673_v43 = vmax.f32 %v2597_v47, %v2601_v57  ;;  %v1655_v12 = vadd.f32 %v16670_v6, %v16669_v20  ;;  %v16676_v23 = vld [vmem:[#allocation211_spill] sm:$0xff]  ;;  %v16680_v20 = vld [vmem:[#allocation213_spill] sm:$0xff]  ;;  %v16686_v8 = vld [vmem:[#allocation216_spill] sm:$0xff] }
 0x285   : > { %v2280_v3 = vpop.f32.mrf.mxu0  ;;  %v2473_v45 = vpop.f32.mrf.mxu1  ;;  %v13730_v31 = vpack.c.bf16 %v2783_v36, %v2781_v63  ;;  %v1850_v30 = vadd.f32 %v16676_v23, %v16675_v53  ;;  %v2602_v61 = vadd.f32 %v2278_v10, %v1651_v28  ;;  %v2604_v47 = vadd.f32 %v2471_v32, %v1844_v39 }
 0x286   : > { %v2752_v15 = vadd.f32 %v13132_v58, %v2708_v60  ;;  %v2709_v42 = vmax.f32 %v2671_v35, %v2673_v43  ;;  %v2603_v57 = vadd.f32 %v2280_v3, %v1653_v56  ;;  %v2605_v11 = vadd.f32 %v2473_v45, %v1846_v29  ;;  %v16681_v29 = vld [vmem:[#allocation109_spill] sm:$0xff]  ;;  %v16682_v3 = vld [vmem:[#allocation214_spill] sm:$0xff] }
 0x287   : > { %v2282_v24 = vpop.f32.mrf.mxu0  ;;  %v2475_v63 = vpop.f32.mrf.mxu1  ;;  %v1854_v6 = vadd.f32 %v16680_v20, %v16679_v34  ;;  %v1663_v45 = vadd.f32 %v16682_v3, %v16681_v29 }
 0x288   : > { %v2784_v14 = vmax.f32 %v2752_v15, 0.0  ;;  %v2606_v4 = vadd.f32 %v2282_v24, %v1655_v12  ;;  %v2608_v37 = vadd.f32 %v2475_v63, %v1848_v16  ;;  %v2753_v25 = vadd.f32 %v13144_v46, %v2709_v42  ;;  %v16684_v16 = vld [vmem:[#allocation215_spill] sm:$0xff]  ;;  %v16690_v24 = vld [vmem:[#allocation218_spill] sm:$0xff] }
 0x289   : > { %v2284_v41 = vpop.f32.mrf.mxu0  ;;  %v2477_v60 = vpop.f32.mrf.mxu1  ;;  %v1856_v15 = vadd.f32 %v16684_v16, %v16683_v48  ;;  %v16685_v42 = vld [vmem:[#allocation111_spill] sm:$0xff] }
 0x28a   : > { %v2674_v35 = vmax.f32 %v2602_v61, %v2606_v4  ;;  %v2676_v43 = vmax.f32 %v2604_v47, %v2608_v37  ;;  %v2607_v38 = vadd.f32 %v2284_v41, %v1657_v21  ;;  %v2609_v51 = vadd.f32 %v2477_v60, %v1850_v30  ;;  %v16687_v30 = vld [vmem:[#allocation112_spill] sm:$0xff]  ;;  %v16689_v47 = vld [vmem:[#allocation113_spill] sm:$0xff] }
 0x28b   : > { %v2288_v10 = vpop.f32.mrf.mxu0  ;;  %v2481_v32 = vpop.f32.mrf.mxu1  ;;  %v2785_v28 = vmax.f32 %v2753_v25, 0.0  ;;  %v2984_v39 = vpack.c.bf16 %v2784_v14, %v2782_v19  ;;  %v1665_v0 = vadd.f32 %v16686_v8, %v16685_v42  ;;  %v16688_v19 = vld [vmem:[#allocation217_spill] sm:$0xff]  ;;  %v1667_v63 = vadd.f32 %v16690_v24, %v16689_v47  ;;  %v16691_v25 = vld [vmem:[#allocation114_spill] sm:$0xff] }
 0x28c   : > { %v2710_v12 = vmax.f32 %v2674_v35, %v2676_v43  ;;  %v2675_v33 = vmax.f32 %v2603_v57, %v2607_v38  ;;  %v2677_v56 = vmax.f32 %v2605_v11, %v2609_v51  ;;  %v1858_v61 = vadd.f32 %v16688_v19, %v16687_v30  ;;  %v16692_v57 = vld [vmem:[#allocation219_spill] sm:$0xff]  ;;  %v10792_v30 = vld [vmem:[%s16250_s3 + $0x4ac] ss:$16 sps:$4 sm:$0xff]  }
 0x28d   : > { %v2290_v21 = vpop.f32.mrf.mxu0  ;;  %v2483_v53 = vpop.f32.mrf.mxu1  ;;  %v2985_v23 = vpack.c.bf16 %v2785_v28, %v2783_v36  ;;  %v1860_v11 = vadd.f32 %v16692_v57, %v16691_v25  ;;  %v2610_v41 = vadd.f32 %v2288_v10, %v1661_v18  ;;  %v2612_v60 = vadd.f32 %v2481_v32, %v1854_v6  ;;  %v10787_v19 = vld [vmem:[%s16250_s3 + $0x4a0] ss:$16 sps:$4 sm:$0xff]   ;;  %v10795_v47 = vld [vmem:[%s16250_s3 + $0x484] ss:$16 sps:$4 sm:$0xff]   ;;  %v10798_v24 = vld [vmem:[%s16250_s3 + $0x48c] ss:$16 sps:$4 sm:$0xff]  }
 0x28e   : > { %v2754_v4 = vadd.f32 %v13132_v58, %v2710_v12  ;;  %v2711_v37 = vmax.f32 %v2675_v33, %v2677_v56  ;;  %v2611_v54 = vadd.f32 %v2290_v21, %v1663_v45  ;;  %v2613_v34 = vadd.f32 %v2483_v53, %v1856_v15  ;;  %v10775_v21 = vld [vmem:[%s16250_s3 + $0x4e0] ss:$16 sps:$4 sm:$0xff]   ;;  %v10778_v53 = vld [vmem:[%s16250_s3 + $0x4e8] ss:$16 sps:$4 sm:$0xff]   ;;  %v10804_v25 = vld [vmem:[%s16250_s3 + $0x46c] ss:$16 sps:$4 sm:$0xff]  }
 0x28f   : > { %3465 = vmatprep.mubr.bf16.mxu0 %v2985_v23  ;;  %3578 = vmatprep.mubr.bf16.mxu1 %v2985_v23  ;;  %v2292_v35 = vpop.f32.mrf.mxu0  ;;  %v2485_v43 = vpop.f32.mrf.mxu1  ;;  %v10789_v23 = vld [vmem:[%s16250_s3 + $0x4a4] ss:$16 sps:$4 sm:$0xff]   ;;  %v10799_v57 = vld [vmem:[%s16250_s3 + $0x460] ss:$16 sps:$4 sm:$0xff]  }
 0x290   : > { %v2786_v38 = vmax.f32 %v2754_v4, 0.0  ;;  %v2614_v36 = vadd.f32 %v2292_v35, %v1665_v0  ;;  %v2616_v51 = vadd.f32 %v2485_v43, %v1858_v61  ;;  %3466 = vmatmul.mubr.bf16.gmra.mxu0 %v2984_v39  ;;  %3579 = vmatmul.mubr.bf16.gmra.mxu1 %v2984_v39  ;;  %v2755_v50 = vadd.f32 %v13144_v46, %v2711_v37  ;;  %v10790_v61 = vld [vmem:[%s16250_s3 + $0x4a8] ss:$16 sps:$4 sm:$0xff]   ;;  %v10801_v37 = vld [vmem:[%s16250_s3 + $0x464] ss:$16 sps:$4 sm:$0xff]  }
 0x291   : > { %v2294_v20 = vpop.f32.mrf.mxu0  ;;  %v2487_v12 = vpop.f32.mrf.mxu1  ;;  %v10796_v4 = vld [vmem:[%s16250_s3 + $0x488] ss:$16 sps:$4 sm:$0xff]   ;;  %v10805_v35 = vld [vmem:[%s16250_s3 + $0x440] ss:$16 sps:$4 sm:$0xff]  }
 0x292   : > { %v2678_v33 = vmax.f32 %v2610_v41, %v2614_v36  ;;  %v2680_v56 = vmax.f32 %v2612_v60, %v2616_v51  ;;  %v2615_v29 = vadd.f32 %v2294_v20, %v1667_v63  ;;  %v2617_v18 = vadd.f32 %v2487_v12, %v1860_v11  ;;  %v10793_v63 = vld [vmem:[%s16250_s3 + $0x480] ss:$16 sps:$4 sm:$0xff]   ;;  %v10802_v11 = vld [vmem:[%s16250_s3 + $0x468] ss:$16 sps:$4 sm:$0xff]   ;;  %v10807_v41 = vld [vmem:[%s16250_s3 + $0x444] ss:$16 sps:$4 sm:$0xff]  }
 0x293   : > { %v2787_v10 = vmax.f32 %v2755_v50, 0.0  ;;  %v13760_v32 = vpack.c.bf16 %v2786_v38, %v2784_v14  ;;  %v10810_v60 = vld [vmem:[%s16250_s3 + $0x44c] ss:$16 sps:$4 sm:$0xff]   ;;  %v10808_v43 = vld [vmem:[%s16250_s3 + $0x448] ss:$16 sps:$4 sm:$0xff]  }
 0x294   : > { %v2712_v6 = vmax.f32 %v2678_v33, %v2680_v56  ;;  %v2679_v3 = vmax.f32 %v2611_v54, %v2615_v29  ;;  %v2681_v48 = vmax.f32 %v2613_v34, %v2617_v18  ;;  %v10816_v36 = vld [vmem:[%s16250_s3 + $0x42c] ss:$16 sps:$4 sm:$0xff]   ;;  %v10811_v51 = vld [vmem:[%s16250_s3 + $0x420] ss:$16 sps:$4 sm:$0xff]   ;;  %v10814_v50 = vld [vmem:[%s16250_s3 + $0x428] ss:$16 sps:$4 sm:$0xff]  }
 0x295   : > { %v13762_v16 = vpack.c.bf16 %v2787_v10, %v2785_v28  ;;  %v16265_v28 = vmov 0.0   ;;  %v10819_v54 = vld [vmem:[%s16250_s3 + $0x404] ss:$16 sps:$4 sm:$0xff]   ;;  %v10822_v34 = vld [vmem:[%s16250_s3 + $0x40c] ss:$16 sps:$4 sm:$0xff]  }
 0x296   : > { %v13765_v39 = vadd.f32 %v13132_v58, %v2712_v6  ;;  %v2713_v42 = vmax.f32 %v2679_v3, %v2681_v48  ;;  %v2861_v58 = vpack.c.bf16 %v2759_v17, %v16265_v28  ;;  %v10786_v17 = vld [vmem:[%s16250_s3 + $0x4cc] ss:$16 sps:$4 sm:$0xff]   ;;  %v10817_v20 = vld [vmem:[%s16250_s3 + $0x400] ss:$16 sps:$4 sm:$0xff]   ;;  %v10820_v12 = vld [vmem:[%s16250_s3 + $0x408] ss:$16 sps:$4 sm:$0xff]  }
 0x297   : > { %v10825_v33 = vld [vmem:[%s16250_s3 + $0x5e4] ss:$16 sps:$4 sm:$0xff]   ;;  %v10828_v56 = vld [vmem:[%s16250_s3 + $0x5ec] ss:$16 sps:$4 sm:$0xff]   ;;  %v10823_v29 = vld [vmem:[%s16250_s3 + $0x5e0] ss:$16 sps:$4 sm:$0xff]  }
 0x298   : > { %v2788_v45 = vmax.f32 %v13765_v39, 0.0  ;;  %v13769_v15 = vadd.f32 %v13144_v46, %v2713_v42  ;;  %v2860_v46 = vpack.c.bf16 %v2758_v7, %v16265_v28  ;;  %v10784_v7 = vld [vmem:[%s16250_s3 + $0x4c8] ss:$16 sps:$4 sm:$0xff]   ;;  %v10834_v6 = vld [vmem:[%s16250_s3 + $0x5cc] ss:$16 sps:$4 sm:$0xff]  }
 0x299   : > { %v10826_v18 = vld [vmem:[%s16250_s3 + $0x5e8] ss:$16 sps:$4 sm:$0xff]   ;;  %v10829_v3 = vld [vmem:[%s16250_s3 + $0x5c0] ss:$16 sps:$4 sm:$0xff]   ;;  %v10837_v42 = vld [vmem:[%s16250_s3 + $0x5a4] ss:$16 sps:$4 sm:$0xff]  }
 0x29a   : > { %v2789_v8 = vmax.f32 %v13769_v15, 0.0  ;;  %v2986_v14 = vpack.c.bf16 %v2788_v45, %v2786_v38  ;;  %v10813_v38 = vld [vmem:[%s16250_s3 + $0x424] ss:$16 sps:$4 sm:$0xff]   ;;  %v10832_v48 = vld [vmem:[%s16250_s3 + $0x5c8] ss:$16 sps:$4 sm:$0xff]  }
 0x29b   : > { %v10912_v15 = vld [vmem:[%s16252_s5 + $0x22c] ss:$16 sps:$4 sm:$0xff]   ;;  %v10921_v39 = vld [vmem:[%s16252_s5 + $0x3e4] ss:$16 sps:$4 sm:$0xff]  }
 0x29c   : > { %v2987_v0 = vpack.c.bf16 %v2789_v8, %v2787_v10  ;;  %v10831_v10 = vld [vmem:[%s16250_s3 + $0x5c4] ss:$16 sps:$4 sm:$0xff]  }
 0x29e   : > { %3475 = vmatprep.mubr.bf16.mxu0 %v2987_v0  ;;  %3588 = vmatprep.mubr.bf16.mxu1 %v2987_v0  ;;  %v10835_v0 = vld [vmem:[%s16250_s3 + $0x5a0] ss:$16 sps:$4 sm:$0xff]  }
 0x29f   : > { %3476 = vmatmul.mubr.bf16.gmra.mxu0 %v2986_v14  ;;  %3589 = vmatmul.mubr.bf16.gmra.mxu1 %v2986_v14  ;;  %v10840_v14 = vld [vmem:[%s16250_s3 + $0x5ac] ss:$16 sps:$4 sm:$0xff]  }
 0x2a0   : > { %3951 = vmatprep.mubr.bf16.mxu0 %v2861_v58  ;;  %4064 = vmatprep.mubr.bf16.mxu1 %v2861_v58  ;;  %v10838_v58 = vld [vmem:[%s16250_s3 + $0x5a8] ss:$16 sps:$4 sm:$0xff]  }
 0x2a7   : > { %3952 = vmatmul.mubr.bf16.vlgmr.msra.gmra.mxu0 %v2860_v46  ;;  %4065 = vmatmul.mubr.bf16.vlgmr.msra.gmra.mxu1 %v2860_v46  ;;  %v10843_v46 = vld [vmem:[%s16250_s3 + $0x584] ss:$16 sps:$4 sm:$0xff]  }
 0x2a8   : > { %3961 = vmatprep.mubr.bf16.mxu0 %v13255_v49  ;;  %4074 = vmatprep.mubr.bf16.mxu1 %v13255_v49 }
 0x2a9   : > { %4580 = vmatpush1.bf16.msra.mxu0 %v10775_v21  ;;  %4693 = vmatpush1.bf16.msra.mxu1 %v10778_v53  ;;  %v10846_v21 = vld [vmem:[%s16250_s3 + $0x58c] ss:$16 sps:$4 sm:$0xff]   ;;  %v10841_v53 = vld [vmem:[%s16250_s3 + $0x580] ss:$16 sps:$4 sm:$0xff]  }
 0x2aa   : > { %4581 = vmatprep.subr.bf16.mxu0 %v10783_v55  ;;  %4694 = vmatprep.subr.bf16.mxu1 %v10786_v17  ;;  %v10844_v55 = vld [vmem:[%s16250_s3 + $0x588] ss:$16 sps:$4 sm:$0xff]   ;;  %v10849_v17 = vld [vmem:[%s16250_s3 + $0x564] ss:$16 sps:$4 sm:$0xff]  }
 0x2ad   : > { %4582 = vmatpush1.bf16.msra.mxu0 %v10781_v27  ;;  %4695 = vmatpush1.bf16.msra.mxu1 %v10784_v7  ;;  %v10852_v27 = vld [vmem:[%s16250_s3 + $0x56c] ss:$16 sps:$4 sm:$0xff]   ;;  %v10847_v7 = vld [vmem:[%s16250_s3 + $0x560] ss:$16 sps:$4 sm:$0xff]  }
 0x2ae   : > { %4583 = vmatprep.subr.bf16.mxu0 %v10789_v23  ;;  %4696 = vmatprep.subr.bf16.mxu1 %v10792_v30  ;;  %v10850_v23 = vld [vmem:[%s16250_s3 + $0x568] ss:$16 sps:$4 sm:$0xff]   ;;  %v10855_v30 = vld [vmem:[%s16250_s3 + $0x544] ss:$16 sps:$4 sm:$0xff]  }
 0x2af   : > { %3962 = vmatmul.mubr.bf16.gmra.mxu0 %v13237_v2  ;;  %4075 = vmatmul.mubr.bf16.gmra.mxu1 %v13237_v2 }
 0x2b0   : > { %3971 = vmatprep.mubr.bf16.mxu0 %v13370_v52  ;;  %4084 = vmatprep.mubr.bf16.mxu1 %v13370_v52 }
 0x2b1   : > { %4584 = vmatpush1.bf16.msra.mxu0 %v10787_v19  ;;  %4697 = vmatpush1.bf16.msra.mxu1 %v10790_v61  ;;  %v10858_v19 = vld [vmem:[%s16250_s3 + $0x54c] ss:$16 sps:$4 sm:$0xff]   ;;  %v10853_v61 = vld [vmem:[%s16250_s3 + $0x540] ss:$16 sps:$4 sm:$0xff]  }
 0x2b2   : > { %4585 = vmatprep.subr.bf16.mxu0 %v10795_v47  ;;  %4698 = vmatprep.subr.bf16.mxu1 %v10798_v24  ;;  %v10856_v47 = vld [vmem:[%s16250_s3 + $0x548] ss:$16 sps:$4 sm:$0xff]   ;;  %v10861_v24 = vld [vmem:[%s16250_s3 + $0x524] ss:$16 sps:$4 sm:$0xff]  }
 0x2b5   : > { %4586 = vmatpush1.bf16.msra.mxu0 %v10793_v63  ;;  %4699 = vmatpush1.bf16.msra.mxu1 %v10796_v4  ;;  %v10864_v63 = vld [vmem:[%s16250_s3 + $0x52c] ss:$16 sps:$4 sm:$0xff]   ;;  %v10859_v4 = vld [vmem:[%s16250_s3 + $0x520] ss:$16 sps:$4 sm:$0xff]  }
 0x2b6   : > { %4587 = vmatprep.subr.bf16.mxu0 %v10801_v37  ;;  %4700 = vmatprep.subr.bf16.mxu1 %v10804_v25  ;;  %v10862_v37 = vld [vmem:[%s16250_s3 + $0x528] ss:$16 sps:$4 sm:$0xff]   ;;  %v10867_v25 = vld [vmem:[%s16250_s3 + $0x504] ss:$16 sps:$4 sm:$0xff]  }
 0x2b7   : > { %3972 = vmatmul.mubr.bf16.gmra.mxu0 %v13353_v1  ;;  %4085 = vmatmul.mubr.bf16.gmra.mxu1 %v13353_v1 }
 0x2b8   : > { %3981 = vmatprep.mubr.bf16.mxu0 %v13483_v44  ;;  %4094 = vmatprep.mubr.bf16.mxu1 %v13483_v44 }
 0x2b9   : > { %4588 = vmatpush1.bf16.msra.mxu0 %v10799_v57  ;;  %4701 = vmatpush1.bf16.msra.mxu1 %v10802_v11  ;;  %v10870_v57 = vld [vmem:[%s16250_s3 + $0x50c] ss:$16 sps:$4 sm:$0xff]   ;;  %v10865_v11 = vld [vmem:[%s16250_s3 + $0x500] ss:$16 sps:$4 sm:$0xff]  }
 0x2ba   : > { %4589 = vmatprep.subr.bf16.mxu0 %v10807_v41  ;;  %4702 = vmatprep.subr.bf16.mxu1 %v10810_v60  ;;  %v10868_v41 = vld [vmem:[%s16250_s3 + $0x508] ss:$16 sps:$4 sm:$0xff]  }
 0x2bd   : > { %4590 = vmatpush1.bf16.msra.mxu0 %v10805_v35  ;;  %4703 = vmatpush1.bf16.msra.mxu1 %v10808_v43  ;;  %v10879_v35 = vld [vmem:[%s16252_s5 + $0x2c4] ss:$16 sps:$4 sm:$0xff]   ;;  %v10882_v43 = vld [vmem:[%s16252_s5 + $0x2cc] ss:$16 sps:$4 sm:$0xff]  }
 0x2be   : > { %4591 = vmatprep.subr.bf16.mxu0 %v10813_v38  ;;  %4704 = vmatprep.subr.bf16.mxu1 %v10816_v36  ;;  %v10877_v38 = vld [vmem:[%s16252_s5 + $0x2c0] ss:$16 sps:$4 sm:$0xff]   ;;  %v10880_v36 = vld [vmem:[%s16252_s5 + $0x2c8] ss:$16 sps:$4 sm:$0xff]  }
 0x2bf   : > { %3982 = vmatmul.mubr.bf16.gmra.mxu0 %v13466_v9  ;;  %4095 = vmatmul.mubr.bf16.gmra.mxu1 %v13466_v9 }
 0x2c0   : > { %3991 = vmatprep.mubr.bf16.mxu0 %v13594_v59  ;;  %4104 = vmatprep.mubr.bf16.mxu1 %v13594_v59 }
 0x2c1   : > { %4592 = vmatpush1.bf16.msra.mxu0 %v10811_v51  ;;  %4705 = vmatpush1.bf16.msra.mxu1 %v10814_v50 }
 0x2c2   : > { %4593 = vmatprep.subr.bf16.mxu0 %v10819_v54  ;;  %4706 = vmatprep.subr.bf16.mxu1 %v10822_v34  ;;  %v10885_v54 = vld [vmem:[%s16252_s5 + $0x2a4] ss:$16 sps:$4 sm:$0xff]   ;;  %v10888_v34 = vld [vmem:[%s16252_s5 + $0x2ac] ss:$16 sps:$4 sm:$0xff]  }
 0x2c5   : > { %4594 = vmatpush1.bf16.msra.mxu0 %v10817_v20  ;;  %4707 = vmatpush1.bf16.msra.mxu1 %v10820_v12  ;;  %v10886_v20 = vld [vmem:[%s16252_s5 + $0x2a8] ss:$16 sps:$4 sm:$0xff]  }
 0x2c6   : > { %4595 = vmatprep.subr.bf16.mxu0 %v10825_v33  ;;  %4708 = vmatprep.subr.bf16.mxu1 %v10828_v56  ;;  %v10891_v33 = vld [vmem:[%s16252_s5 + $0x284] ss:$16 sps:$4 sm:$0xff]   ;;  %v10894_v56 = vld [vmem:[%s16252_s5 + $0x28c] ss:$16 sps:$4 sm:$0xff]  }
 0x2c7   : > { %3992 = vmatmul.mubr.bf16.gmra.mxu0 %v13574_v5  ;;  %4105 = vmatmul.mubr.bf16.gmra.mxu1 %v13574_v5 }
 0x2c8   : > { %4001 = vmatprep.mubr.bf16.mxu0 %v13681_v22  ;;  %4114 = vmatprep.mubr.bf16.mxu1 %v13681_v22 }
 0x2c9   : > { %4596 = vmatpush2.bf16.msra.mxu0 %v10823_v29  ;;  %4709 = vmatpush2.bf16.msra.mxu1 %v10826_v18  ;;  %v10889_v29 = vld [vmem:[%s16252_s5 + $0x280] ss:$16 sps:$4 sm:$0xff]   ;;  %v10892_v18 = vld [vmem:[%s16252_s5 + $0x288] ss:$16 sps:$4 sm:$0xff]  }
 0x2ca   : > { %4597 = vmatprep.subr.bf16.mxu0 %v10831_v10  ;;  %4710 = vmatprep.subr.bf16.mxu1 %v10834_v6 }
 0x2cd   : > { %4598 = vmatpush2.bf16.msra.mxu0 %v10829_v3  ;;  %4711 = vmatpush2.bf16.msra.mxu1 %v10832_v48  ;;  %v10897_v3 = vld [vmem:[%s16252_s5 + $0x264] ss:$16 sps:$4 sm:$0xff]   ;;  %v10900_v48 = vld [vmem:[%s16252_s5 + $0x26c] ss:$16 sps:$4 sm:$0xff]  }
 0x2ce   : > { %4599 = vmatprep.subr.bf16.mxu0 %v10837_v42  ;;  %4712 = vmatprep.subr.bf16.mxu1 %v10840_v14  ;;  %v10895_v42 = vld [vmem:[%s16252_s5 + $0x260] ss:$16 sps:$4 sm:$0xff]  }
 0x2cf   : > { %4002 = vmatmul.mubr.bf16.gmra.mxu0 %v13671_v26  ;;  %4115 = vmatmul.mubr.bf16.gmra.mxu1 %v13671_v26 }
 0x2d0   : > { %4011 = vmatprep.mubr.bf16.mxu0 %v13730_v31  ;;  %4124 = vmatprep.mubr.bf16.mxu1 %v13730_v31 }
 0x2d1   : > { %4600 = vmatpush2.bf16.msra.mxu0 %v10835_v0  ;;  %4713 = vmatpush2.bf16.msra.mxu1 %v10838_v58  ;;  %v10903_v0 = vld [vmem:[%s16252_s5 + $0x244] ss:$16 sps:$4 sm:$0xff]   ;;  %v10906_v58 = vld [vmem:[%s16252_s5 + $0x24c] ss:$16 sps:$4 sm:$0xff]  }
 0x2d2   : > { %4601 = vmatprep.subr.bf16.mxu0 %v10843_v46  ;;  %4714 = vmatprep.subr.bf16.mxu1 %v10846_v21  ;;  %v10901_v46 = vld [vmem:[%s16252_s5 + $0x240] ss:$16 sps:$4 sm:$0xff]   ;;  %v10904_v21 = vld [vmem:[%s16252_s5 + $0x248] ss:$16 sps:$4 sm:$0xff]  }
 0x2d5   : > { %4602 = vmatpush2.bf16.msra.mxu0 %v10841_v53  ;;  %4715 = vmatpush2.bf16.msra.mxu1 %v10844_v55 }
 0x2d6   : > { %4603 = vmatprep.subr.bf16.mxu0 %v10849_v17  ;;  %4716 = vmatprep.subr.bf16.mxu1 %v10852_v27  ;;  %v4193_v17 = vpack.c.bf16 %v16265_v28, %v2789_v8  ;;  %v10910_v8 = vld [vmem:[%s16252_s5 + $0x228] ss:$16 sps:$4 sm:$0xff]  }
 0x2d7   : > { %4012 = vmatmul.mubr.bf16.gmra.mxu0 %v13720_v62  ;;  %4125 = vmatmul.mubr.bf16.gmra.mxu1 %v13720_v62 }
 0x2d8   : > { %4021 = vmatprep.mubr.bf16.mxu0 %v13762_v16  ;;  %4134 = vmatprep.mubr.bf16.mxu1 %v13762_v16 }
 0x2d9   : > { %4604 = vmatpush2.bf16.msra.mxu0 %v10847_v7  ;;  %4717 = vmatpush2.bf16.msra.mxu1 %v10850_v23  ;;  %v10909_v23 = vld [vmem:[%s16252_s5 + $0x224] ss:$16 sps:$4 sm:$0xff]  }
 0x2da   : > { %4605 = vmatprep.subr.bf16.mxu0 %v10855_v30  ;;  %4718 = vmatprep.subr.bf16.mxu1 %v10858_v19 }
 0x2dd   : > { %4606 = vmatpush2.bf16.msra.mxu0 %v10853_v61  ;;  %4719 = vmatpush2.bf16.msra.mxu1 %v10856_v47  ;;  %v10915_v61 = vld [vmem:[%s16252_s5 + $0x204] ss:$16 sps:$4 sm:$0xff]   ;;  %v10918_v47 = vld [vmem:[%s16252_s5 + $0x20c] ss:$16 sps:$4 sm:$0xff]  }
 0x2de   : > { %4607 = vmatprep.subr.bf16.mxu0 %v10861_v24  ;;  %4720 = vmatprep.subr.bf16.mxu1 %v10864_v63  ;;  %v4192_v24 = vpack.c.bf16 %v16265_v28, %v2788_v45  ;;  %v10913_v63 = vld [vmem:[%s16252_s5 + $0x200] ss:$16 sps:$4 sm:$0xff]   ;;  %v10924_v45 = vld [vmem:[%s16252_s5 + $0x3ec] ss:$16 sps:$4 sm:$0xff]  }
 0x2df   : > { %4022 = vmatmul.mubr.bf16.gmra.mxu0 %v13760_v32  ;;  %4135 = vmatmul.mubr.bf16.gmra.mxu1 %v13760_v32 }
 0x2e0   : > { %4611 = vmatprep.mubr.bf16.mxu0 %v13255_v49  ;;  %4724 = vmatprep.mubr.bf16.mxu1 %v13255_v49 }
 0x2e1   : > { %4608 = vmatpush2.bf16.msra.mxu0 %v10859_v4  ;;  %4721 = vmatpush2.bf16.msra.mxu1 %v10862_v37  ;;  %v10916_v4 = vld [vmem:[%s16252_s5 + $0x208] ss:$16 sps:$4 sm:$0xff]  }
 0x2e2   : > { %4609 = vmatprep.subr.bf16.mxu0 %v10867_v25  ;;  %4722 = vmatprep.subr.bf16.mxu1 %v10870_v57  ;;  %v10919_v57 = vld [vmem:[%s16252_s5 + $0x3e0] ss:$16 sps:$4 sm:$0xff]  }
 0x2e5   : > { %4610 = vmatpush2.bf16.msra.mxu0 %v10865_v11  ;;  %4723 = vmatpush2.bf16.msra.mxu1 %v10868_v41  ;;  %v10922_v11 = vld [vmem:[%s16252_s5 + $0x3e8] ss:$16 sps:$4 sm:$0xff]  }
 0x2e8   : > { %4612 = vmatmul.mubr.bf16.vlgmr.msra.gmra.mxu0 %v13237_v2  ;;  %4725 = vmatmul.mubr.bf16.vlgmr.msra.gmra.mxu1 %v13237_v2 }
 0x2e9   : > { %4621 = vmatprep.mubr.bf16.mxu0 %v13370_v52  ;;  %4734 = vmatprep.mubr.bf16.mxu1 %v13370_v52 }
 0x2f0   : > { %4622 = vmatmul.mubr.bf16.gmra.mxu0 %v13353_v1  ;;  %4735 = vmatmul.mubr.bf16.gmra.mxu1 %v13353_v1  ;;  %v14010_v2 = vpop.f32.mrf.mxu0  ;;  %v14012_v49 = vpop.f32.mrf.mxu1 }
 0x2f1   : > { %4631 = vmatprep.mubr.bf16.mxu0 %v13483_v44  ;;  %4744 = vmatprep.mubr.bf16.mxu1 %v13483_v44  ;;  %v10876_v44 = vld [vmem:[%s16252_s5 + $0x2ec] ss:$16 sps:$4 sm:$0xff]  }
 0x2f2   : > { %v14016_v1 = vpop.f32.mrf.mxu0  ;;  %v14018_v52 = vpop.f32.mrf.mxu1  ;;  %5553 = vmatprep.subr.bf16.mxu1 %v10876_v44  ;;  %v10927_v44 = vld [vmem:[%s16252_s5 + $0x3c4] ss:$16 sps:$4 sm:$0xff]  }
 0x2f4   : > { %v14036_v60 = vpop.f32.mrf.mxu1 }
 0x2f6   : > { %v14054_v50 = vpop.f32.mrf.mxu1 }
 0x2f8   : > { %4632 = vmatmul.mubr.bf16.gmra.mxu0 %v13466_v9  ;;  %4745 = vmatmul.mubr.bf16.gmra.mxu1 %v13466_v9  ;;  %v10873_v9 = vld [vmem:[%s16252_s5 + $0x2e4] ss:$16 sps:$4 sm:$0xff]  }
 0x2f9   : > { %4641 = vmatprep.mubr.bf16.mxu0 %v13594_v59  ;;  %4754 = vmatprep.mubr.bf16.mxu1 %v13594_v59  ;;  %v10874_v59 = vld [vmem:[%s16252_s5 + $0x2e8] ss:$16 sps:$4 sm:$0xff]  }
 0x2fa   : > { %5480 = vmatprep.subr.bf16.mxu0 %v10873_v9  ;;  %5554 = vmatpush1.bf16.msra.mxu1 %v10874_v59  ;;  %v10925_v59 = vld [vmem:[%s16252_s5 + $0x3c0] ss:$16 sps:$4 sm:$0xff]  }
 0x2fb   : > { %5555 = vmatprep.subr.bf16.mxu1 %v10882_v43 }
 0x2fe   : > { %5556 = vmatpush1.bf16.msra.mxu1 %v10880_v36  ;;  %v10933_v36 = vld [vmem:[%s16252_s5 + $0x3a4] ss:$16 sps:$4 sm:$0xff]  }
 0x2ff   : > { %5557 = vmatprep.subr.bf16.mxu1 %v10888_v34  ;;  %v10931_v34 = vld [vmem:[%s16252_s5 + $0x3a0] ss:$16 sps:$4 sm:$0xff]  }
 0x300   : > { %4642 = vmatmul.mubr.bf16.gmra.mxu0 %v13574_v5  ;;  %4755 = vmatmul.mubr.bf16.gmra.mxu1 %v13574_v5  ;;  %v10871_v5 = vld [vmem:[%s16252_s5 + $0x2e0] ss:$16 sps:$4 sm:$0xff]  }
 0x301   : > { %4651 = vmatprep.mubr.bf16.mxu0 %v13681_v22  ;;  %4764 = vmatprep.mubr.bf16.mxu1 %v13681_v22  ;;  %v14034_v22 = vpop.f32.mrf.mxu0 }
 0x302   : > { %5481 = vmatpush1.bf16.msra.mxu0 %v10871_v5  ;;  %5558 = vmatpush1.bf16.msra.mxu1 %v10886_v20  ;;  %v10930_v5 = vld [vmem:[%s16252_s5 + $0x3cc] ss:$16 sps:$4 sm:$0xff]  }
 0x303   : > { %5482 = vmatprep.subr.bf16.mxu0 %v10879_v35  ;;  %v14052_v51 = vpop.f32.mrf.mxu0  ;;  %5559 = vmatprep.subr.bf16.mxu1 %v10894_v56  ;;  %v10928_v35 = vld [vmem:[%s16252_s5 + $0x3c8] ss:$16 sps:$4 sm:$0xff]   ;;  %v10939_v56 = vld [vmem:[%s16252_s5 + $0x384] ss:$16 sps:$4 sm:$0xff]  }
 0x305   : > { %v14070_v12 = vpop.f32.mrf.mxu0 }
 0x306   : > { %5483 = vmatpush1.bf16.msra.mxu0 %v10877_v38  ;;  %5560 = vmatpush1.bf16.msra.mxu1 %v10892_v18  ;;  %v10937_v18 = vld [vmem:[%s16252_s5 + $0x380] ss:$16 sps:$4 sm:$0xff]  }
 0x307   : > { %5484 = vmatprep.subr.bf16.mxu0 %v10885_v54  ;;  %v14086_v10 = vpop.f32.mrf.mxu0  ;;  %5561 = vmatprep.subr.bf16.mxu1 %v10900_v48  ;;  %v10936_v54 = vld [vmem:[%s16252_s5 + $0x3ac] ss:$16 sps:$4 sm:$0xff]  }
 0x308   : > { %4652 = vmatmul.mubr.bf16.gmra.mxu0 %v13671_v26  ;;  %4765 = vmatmul.mubr.bf16.gmra.mxu1 %v13671_v26  ;;  %v10883_v26 = vld [vmem:[%s16252_s5 + $0x2a0] ss:$16 sps:$4 sm:$0xff]  }
 0x309   : > { %4661 = vmatprep.mubr.bf16.mxu0 %v13730_v31  ;;  %4774 = vmatprep.mubr.bf16.mxu1 %v13730_v31  ;;  %v14072_v31 = vpop.f32.mrf.mxu1  ;;  %v14106_v14 = vpop.f32.mrf.mxu0 }
 0x30a   : > { %5485 = vmatpush1.bf16.msra.mxu0 %v10883_v26  ;;  %v10934_v26 = vld [vmem:[%s16252_s5 + $0x3a8] ss:$16 sps:$4 sm:$0xff]  }
 0x30b   : > { %v14088_v6 = vpop.f32.mrf.mxu1  ;;  %5486 = vmatprep.subr.bf16.mxu0 %v10891_v33  ;;  %v14122_v53 = vpop.f32.mrf.mxu0 }
 0x30e   : > { %5487 = vmatpush1.bf16.msra.mxu0 %v10889_v29  ;;  %v10942_v29 = vld [vmem:[%s16252_s5 + $0x38c] ss:$16 sps:$4 sm:$0xff]  }
 0x30f   : > { %5488 = vmatprep.subr.bf16.mxu0 %v10897_v3  ;;  %v10940_v3 = vld [vmem:[%s16252_s5 + $0x388] ss:$16 sps:$4 sm:$0xff]  }
 0x310   : > { %4662 = vmatmul.mubr.bf16.gmra.mxu0 %v13720_v62  ;;  %4775 = vmatmul.mubr.bf16.gmra.mxu1 %v13720_v62  ;;  %v10898_v62 = vld [vmem:[%s16252_s5 + $0x268] ss:$16 sps:$4 sm:$0xff]   ;;  %v14131_v27 = vpop.f32.mrf.mxu0 }
 0x311   : > { %4671 = vmatprep.mubr.bf16.mxu0 %v13762_v16  ;;  %4784 = vmatprep.mubr.bf16.mxu1 %v13762_v16  ;;  %v14108_v16 = vpop.f32.mrf.mxu1 }
 0x312   : > { %5489 = vmatpush1.bf16.msra.mxu0 %v10895_v42  ;;  %5562 = vmatpush1.bf16.msra.mxu1 %v10898_v62  ;;  %v14147_v30 = vpop.f32.mrf.mxu0  ;;  %v10945_v62 = vld [vmem:[%s16252_s5 + $0x364] ss:$16 sps:$4 sm:$0xff]  }
 0x313   : > { %v14124_v55 = vpop.f32.mrf.mxu1  ;;  %5490 = vmatprep.subr.bf16.mxu0 %v10903_v0  ;;  %5563 = vmatprep.subr.bf16.mxu1 %v10906_v58  ;;  %v10948_v0 = vld [vmem:[%s16252_s5 + $0x36c] ss:$16 sps:$4 sm:$0xff]  }
 0x314   : > { %v14166_v37 = vpop.f32.mrf.mxu0 }
 0x315   : > { %v14133_v7 = vpop.f32.mrf.mxu1 }
 0x316   : > { %5491 = vmatpush1.bf16.msra.mxu0 %v10901_v46  ;;  %5564 = vmatpush1.bf16.msra.mxu1 %v10904_v21  ;;  %v14182_v41 = vpop.f32.mrf.mxu0  ;;  %v10943_v21 = vld [vmem:[%s16252_s5 + $0x360] ss:$16 sps:$4 sm:$0xff]  }
 0x317   : > { %5492 = vmatprep.subr.bf16.mxu0 %v10909_v23  ;;  %5565 = vmatprep.subr.bf16.mxu1 %v10912_v15  ;;  %v14149_v19 = vpop.f32.mrf.mxu1 }
 0x318   : > { %4672 = vmatmul.mubr.bf16.gmra.mxu0 %v13760_v32  ;;  %4785 = vmatmul.mubr.bf16.gmra.mxu1 %v13760_v32  ;;  %v10907_v32 = vld [vmem:[%s16252_s5 + $0x220] ss:$16 sps:$4 sm:$0xff]   ;;  %16693 = vst [vmem:[#allocation115_spill] sm:$0xff] %v14149_v19 }
 0x319   : > { %4681 = vmatprep.mubr.bf16.mxu0 %v4193_v17  ;;  %4794 = vmatprep.mubr.bf16.mxu1 %v4193_v17  ;;  %v14168_v25 = vpop.f32.mrf.mxu1  ;;  %v10946_v17 = vld [vmem:[%s16252_s5 + $0x368] ss:$16 sps:$4 sm:$0xff]  }
 0x31a   : > { %5493 = vmatpush1.bf16.msra.mxu0 %v10907_v32  ;;  %5566 = vmatpush1.bf16.msra.mxu1 %v10910_v8  ;;  %v10951_v32 = vld [vmem:[%s16252_s5 + $0x344] ss:$16 sps:$4 sm:$0xff]   ;;  %v10954_v8 = vld [vmem:[%s16252_s5 + $0x34c] ss:$16 sps:$4 sm:$0xff]  }
 0x31b   : > { %5494 = vmatprep.subr.bf16.mxu0 %v10915_v61  ;;  %5567 = vmatprep.subr.bf16.mxu1 %v10918_v47  ;;  %v14184_v9 = vpop.f32.mrf.mxu1  ;;  %v10949_v61 = vld [vmem:[%s16252_s5 + $0x340] ss:$16 sps:$4 sm:$0xff]   ;;  %v10952_v47 = vld [vmem:[%s16252_s5 + $0x348] ss:$16 sps:$4 sm:$0xff]  }
 0x31c   : > { %16694 = vst [vmem:[#allocation11_spill] sm:$0xff] %v14184_v9 }
 0x31e   : > { %5495 = vmatpush1.bf16.msra.mxu0 %v10913_v63  ;;  %5568 = vmatpush1.bf16.msra.mxu1 %v10916_v4  ;;  %v10957_v4 = vld [vmem:[%s16252_s5 + $0x324] ss:$16 sps:$4 sm:$0xff]  }
 0x31f   : > { %5496 = vmatprep.subr.bf16.mxu0 %v10921_v39  ;;  %5569 = vmatprep.subr.bf16.mxu1 %v10924_v45  ;;  %v10960_v39 = vld [vmem:[%s16252_s5 + $0x32c] ss:$16 sps:$4 sm:$0xff]   ;;  %v10955_v45 = vld [vmem:[%s16252_s5 + $0x320] ss:$16 sps:$4 sm:$0xff]  }
 0x320   : > { %4682 = vmatmul.mubr.bf16.gmra.mxu0 %v4192_v24  ;;  %4795 = vmatmul.mubr.bf16.gmra.mxu1 %v4192_v24  ;;  %v14198_v43 = vpop.f32.mrf.mxu0  ;;  %v14200_v38 = vpop.f32.mrf.mxu1 }
 0x321   : > { %16695 = vst [vmem:[#allocation116_spill] sm:$0xff] %v14198_v43  ;;  %16696 = vst [vmem:[#allocation12_spill] sm:$0xff] %v14200_v38 }
 0x322   : > { %5497 = vmatpush2.bf16.msra.mxu0 %v10919_v57  ;;  %5570 = vmatpush2.bf16.msra.mxu1 %v10922_v11  ;;  %v14214_v20 = vpop.f32.mrf.mxu0  ;;  %v14216_v33 = vpop.f32.mrf.mxu1  ;;  %v10958_v57 = vld [vmem:[%s16252_s5 + $0x328] ss:$16 sps:$4 sm:$0xff]  }
 0x323   : > { %5498 = vmatprep.subr.bf16.mxu0 %v10927_v44  ;;  %5571 = vmatprep.subr.bf16.mxu1 %v10930_v5  ;;  %16697 = vst [vmem:[#allocation117_spill] sm:$0xff] %v14214_v20  ;;  %16698 = vst [vmem:[#allocation13_spill] sm:$0xff] %v14216_v33  ;;  %v10963_v5 = vld [vmem:[%s16252_s5 + $0x304] ss:$16 sps:$4 sm:$0xff]  }
 0x324   : > { %v14230_v48 = vpop.f32.mrf.mxu0  ;;  %v14232_v42 = vpop.f32.mrf.mxu1 }
 0x325   : > { %16699 = vst [vmem:[#allocation118_spill] sm:$0xff] %v14230_v48  ;;  %16700 = vst [vmem:[#allocation14_spill] sm:$0xff] %v14232_v42 }
 0x326   : > { %5499 = vmatpush2.bf16.msra.mxu0 %v10925_v59  ;;  %5572 = vmatpush2.bf16.msra.mxu1 %v10928_v35  ;;  %v14240_v58 = vpop.f32.mrf.mxu0  ;;  %v14242_v46 = vpop.f32.mrf.mxu1  ;;  %v10966_v59 = vld [vmem:[%s16252_s5 + $0x30c] ss:$16 sps:$4 sm:$0xff]   ;;  %v10961_v35 = vld [vmem:[%s16252_s5 + $0x300] ss:$16 sps:$4 sm:$0xff]  }
 0x327   : > { %5500 = vmatprep.subr.bf16.mxu0 %v10933_v36  ;;  %5573 = vmatprep.subr.bf16.mxu1 %v10936_v54  ;;  %16701 = vst [vmem:[#allocation119_spill] sm:$0xff] %v14240_v58  ;;  %16702 = vst [vmem:[#allocation15_spill] sm:$0xff] %v14242_v46  ;;  %v10964_v36 = vld [vmem:[%s16252_s5 + $0x308] ss:$16 sps:$4 sm:$0xff]  }
 0x32a   : > { %5501 = vmatpush2.bf16.msra.mxu0 %v10931_v34  ;;  %5574 = vmatpush2.bf16.msra.mxu1 %v10934_v26  ;;  %v10969_v26 = vld [vmem:[%s16252_s5 + $0xe4] ss:$16 sps:$4 sm:$0xff]  }
 0x32b   : > { %5502 = vmatprep.subr.bf16.mxu0 %v10939_v56  ;;  %5575 = vmatprep.subr.bf16.mxu1 %v10942_v29  ;;  %v10972_v56 = vld [vmem:[%s16252_s5 + $0xec] ss:$16 sps:$4 sm:$0xff]  }
 0x32e   : > { %5503 = vmatpush2.bf16.msra.mxu0 %v10937_v18  ;;  %5576 = vmatpush2.bf16.msra.mxu1 %v10940_v3 }
 0x32f   : > { %5504 = vmatprep.subr.bf16.mxu0 %v10945_v62  ;;  %5577 = vmatprep.subr.bf16.mxu1 %v10948_v0 }
 0x330   : > { %v14250_v23 = vpop.f32.mrf.mxu0  ;;  %v14252_v15 = vpop.f32.mrf.mxu1 }
 0x331   : > { %16703 = vst [vmem:[#allocation120_spill] sm:$0xff] %v14250_v23  ;;  %16704 = vst [vmem:[#allocation16_spill] sm:$0xff] %v14252_v15 }
 0x332   : > { %5505 = vmatpush2.bf16.msra.mxu0 %v10943_v21  ;;  %5578 = vmatpush2.bf16.msra.mxu1 %v10946_v17  ;;  %v14266_v24 = vpop.f32.mrf.mxu0  ;;  %v14268_v63 = vpop.f32.mrf.mxu1 }
 0x333   : > { %5506 = vmatprep.subr.bf16.mxu0 %v10951_v32  ;;  %5579 = vmatprep.subr.bf16.mxu1 %v10954_v8  ;;  %16705 = vst [vmem:[#allocation121_spill] sm:$0xff] %v14266_v24  ;;  %16706 = vst [vmem:[#allocation17_spill] sm:$0xff] %v14268_v63 }
 0x334   : > { %v14282_v11 = vpop.f32.mrf.mxu0  ;;  %v14284_v44 = vpop.f32.mrf.mxu1 }
 0x335   : > { %16707 = vst [vmem:[#allocation122_spill] sm:$0xff] %v14282_v11  ;;  %16708 = vst [vmem:[#allocation18_spill] sm:$0xff] %v14284_v44 }
 0x336   : > { %5507 = vmatpush2.bf16.msra.mxu0 %v10949_v61  ;;  %5580 = vmatpush2.bf16.msra.mxu1 %v10952_v47  ;;  %v14298_v54 = vpop.f32.mrf.mxu0  ;;  %v14300_v34 = vpop.f32.mrf.mxu1 }
 0x337   : > { %5508 = vmatprep.subr.bf16.mxu0 %v10957_v4  ;;  %5581 = vmatprep.subr.bf16.mxu1 %v10960_v39  ;;  %16709 = vst [vmem:[#allocation123_spill] sm:$0xff] %v14298_v54  ;;  %16710 = vst [vmem:[#allocation19_spill] sm:$0xff] %v14300_v34 }
 0x33a   : > { %5509 = vmatpush2.bf16.msra.mxu0 %v10955_v45  ;;  %5582 = vmatpush2.bf16.msra.mxu1 %v10958_v57 }
 0x33b   : > { %5510 = vmatprep.subr.bf16.mxu0 %v10963_v5  ;;  %5583 = vmatprep.subr.bf16.mxu1 %v10966_v59 }
 0x33e   : > { %5511 = vmatpush2.bf16.msra.mxu0 %v10961_v35  ;;  %5584 = vmatpush2.bf16.msra.mxu1 %v10964_v36 }
 0x33f   : > { %5946 = vmatprep.subr.bf16.mxu0 %v10969_v26  ;;  %6019 = vmatprep.subr.bf16.mxu1 %v10972_v56 }
 0x340   : > { %v14308_v29 = vpop.f32.mrf.mxu0  ;;  %v14310_v18 = vpop.f32.mrf.mxu1 }
 0x341   : > { %16711 = vst [vmem:[#allocation124_spill] sm:$0xff] %v14308_v29  ;;  %16712 = vst [vmem:[#allocation20_spill] sm:$0xff] %v14310_v18 }
 0x342   : > { %v14312_v3 = vpop.f32.mrf.mxu0  ;;  %v14314_v62 = vpop.f32.mrf.mxu1 }
 0x343   : > { %16713 = vst [vmem:[#allocation125_spill] sm:$0xff] %v14312_v3  ;;  %16714 = vst [vmem:[#allocation21_spill] sm:$0xff] %v14314_v62 }
 0x344   : > { %v14316_v0 = vpop.f32.mrf.mxu0  ;;  %v14318_v21 = vpop.f32.mrf.mxu1 }
 0x345   : > { %16715 = vst [vmem:[#allocation126_spill] sm:$0xff] %v14316_v0  ;;  %16716 = vst [vmem:[#allocation22_spill] sm:$0xff] %v14318_v21 }
 0x346   : > { %v14320_v17 = vpop.f32.mrf.mxu0  ;;  %v14322_v32 = vpop.f32.mrf.mxu1 }
 0x347   : > { %16717 = vst [vmem:[#allocation127_spill] sm:$0xff] %v14320_v17  ;;  %16718 = vst [vmem:[#allocation23_spill] sm:$0xff] %v14322_v32 }
 0x350   : > { %v14324_v8 = vpop.f32.mrf.mxu0  ;;  %v14326_v61 = vpop.f32.mrf.mxu1 }
 0x351   : > { %16719 = vst [vmem:[#allocation128_spill] sm:$0xff] %v14324_v8  ;;  %16720 = vst [vmem:[#allocation24_spill] sm:$0xff] %v14326_v61 }
 0x352   : > { %v14328_v47 = vpop.f32.mrf.mxu0  ;;  %v14330_v4 = vpop.f32.mrf.mxu1 }
 0x353   : > { %16721 = vst [vmem:[#allocation129_spill] sm:$0xff] %v14328_v47  ;;  %16722 = vst [vmem:[#allocation25_spill] sm:$0xff] %v14330_v4 }
 0x354   : > { %v14332_v39 = vpop.f32.mrf.mxu0  ;;  %v14334_v45 = vpop.f32.mrf.mxu1 }
 0x355   : > { %16723 = vst [vmem:[#allocation130_spill] sm:$0xff] %v14332_v39  ;;  %16724 = vst [vmem:[#allocation26_spill] sm:$0xff] %v14334_v45 }
 0x356   : > { %v14336_v57 = vpop.f32.mrf.mxu0  ;;  %v14338_v5 = vpop.f32.mrf.mxu1 }
 0x357   : > { %16725 = vst [vmem:[#allocation131_spill] sm:$0xff] %v14336_v57  ;;  %16726 = vst [vmem:[#allocation27_spill] sm:$0xff] %v14338_v5 }
 0x35f   : > { %v14340_v59 = vpop.f32.mrf.mxu0  ;;  %v14342_v35 = vpop.f32.mrf.mxu1 }
 0x361   : > { %v14344_v36 = vpop.f32.mrf.mxu0  ;;  %v14346_v26 = vpop.f32.mrf.mxu1 }
 0x363   : > { %v14348_v56 = vpop.f32.mrf.mxu0  ;;  %v14350_v28 = vpop.f32.mrf.mxu1 }
 0x365   : > { %v14352_v4 = vpop.f32.mrf.mxu0  ;;  %v14354_v39 = vpop.f32.mrf.mxu1 }
 0x366   : > { %16727 = vst [vmem:[#allocation132_spill] sm:$0xff] %v14352_v4  ;;  %16728 = vst [vmem:[#allocation28_spill] sm:$0xff] %v14354_v39 }
 0x367   : > { %v14356_v45 = vpop.f32.mrf.mxu0  ;;  %v14358_v57 = vpop.f32.mrf.mxu1 }
 0x369   : > { %v14360_v5 = vpop.f32.mrf.mxu0  ;;  %v14362_v47 = vpop.f32.mrf.mxu1 }
 0x36b   : > { %v14364_v61 = vpop.f32.mrf.mxu0  ;;  %v14366_v8 = vpop.f32.mrf.mxu1 }
 0x36d   : > { %v14368_v32 = vpop.f32.mrf.mxu0  ;;  %v14370_v17 = vpop.f32.mrf.mxu1 }
 0x36f   : > { %v14372_v21 = vpop.f32.mrf.mxu0  ;;  %v14374_v4 = vpop.f32.mrf.mxu1 }
 0x371   : > { %v14376_v39 = vpop.f32.mrf.mxu0  ;;  %v14378_v0 = vpop.f32.mrf.mxu1 }
 0x373   : > { %v14380_v62 = vpop.f32.mrf.mxu0  ;;  %v14382_v3 = vpop.f32.mrf.mxu1 }
 0x375   : > { %v14384_v18 = vpop.f32.mrf.mxu0  ;;  %v14386_v29 = vpop.f32.mrf.mxu1 }
 0x377   : > { %v14388_v34 = vpop.f32.mrf.mxu0  ;;  %v14390_v54 = vpop.f32.mrf.mxu1 }
 0x379   : > { %v14392_v44 = vpop.f32.mrf.mxu0  ;;  %v14394_v11 = vpop.f32.mrf.mxu1 }
 0x37a   : > { %16729 = vst [vmem:[#allocation133_spill] sm:$0xff] %v14394_v11 }
 0x37b   : > { %v14396_v63 = vpop.f32.mrf.mxu0  ;;  %v14398_v24 = vpop.f32.mrf.mxu1 }
 0x37d   : > { %v14400_v15 = vpop.f32.mrf.mxu0  ;;  %v14402_v23 = vpop.f32.mrf.mxu1 }
 0x37e   : > { %16730 = vst [vmem:[#allocation29_spill] sm:$0xff] %v14402_v23 }
 0x37f   : > { %v14404_v46 = vpop.f32.mrf.mxu0  ;;  %v14406_v58 = vpop.f32.mrf.mxu1 }
 0x380   : > { %16731 = vst [vmem:[#allocation134_spill] sm:$0xff] %v14404_v46  ;;  %16732 = vst [vmem:[#allocation30_spill] sm:$0xff] %v14406_v58 }
 0x381   : > { %v14408_v42 = vpop.f32.mrf.mxu0  ;;  %v14410_v48 = vpop.f32.mrf.mxu1 }
 0x382   : > { %16733 = vst [vmem:[#allocation135_spill] sm:$0xff] %v14408_v42  ;;  %16734 = vst [vmem:[#allocation31_spill] sm:$0xff] %v14410_v48 }
 0x383   : > { %v14412_v33 = vpop.f32.mrf.mxu0  ;;  %v14414_v20 = vpop.f32.mrf.mxu1 }
 0x384   : > { %16735 = vst [vmem:[#allocation136_spill] sm:$0xff] %v14412_v33  ;;  %16736 = vst [vmem:[#allocation32_spill] sm:$0xff] %v14414_v20 }
 0x385   : > { %v14416_v38 = vpop.f32.mrf.mxu0  ;;  %v14418_v43 = vpop.f32.mrf.mxu1 }
 0x386   : > { %16737 = vst [vmem:[#allocation137_spill] sm:$0xff] %v14416_v38  ;;  %16738 = vst [vmem:[#allocation33_spill] sm:$0xff] %v14418_v43 }
 0x387   : > { %v14420_v9 = vpop.f32.mrf.mxu0  ;;  %v14422_v11 = vpop.f32.mrf.mxu1 }
 0x388   : > { %16739 = vst [vmem:[#allocation138_spill] sm:$0xff] %v14420_v9  ;;  %16740 = vst [vmem:[#allocation34_spill] sm:$0xff] %v14422_v11 }
 0x389   : > { %v14424_v23 = vpop.f32.mrf.mxu0  ;;  %v14426_v46 = vpop.f32.mrf.mxu1 }
 0x38a   : > { %16741 = vst [vmem:[#allocation139_spill] sm:$0xff] %v14424_v23  ;;  %16742 = vst [vmem:[#allocation35_spill] sm:$0xff] %v14426_v46 }
 0x38b   : > { %v14428_v58 = vpop.f32.mrf.mxu0  ;;  %v14430_v42 = vpop.f32.mrf.mxu1 }
 0x38c   : > { %16743 = vst [vmem:[#allocation140_spill] sm:$0xff] %v14428_v58  ;;  %16744 = vst [vmem:[#allocation36_spill] sm:$0xff] %v14430_v42 }
 0x38d   : > { %v14432_v48 = vpop.f32.mrf.mxu0  ;;  %v14434_v33 = vpop.f32.mrf.mxu1 }
 0x38e   : > { %16745 = vst [vmem:[#allocation141_spill] sm:$0xff] %v14432_v48  ;;  %16746 = vst [vmem:[#allocation37_spill] sm:$0xff] %v14434_v33 }
 0x38f   : > { %v14436_v20 = vpop.f32.mrf.mxu0  ;;  %v14438_v38 = vpop.f32.mrf.mxu1 }
 0x390   : > { %16747 = vst [vmem:[#allocation142_spill] sm:$0xff] %v14436_v20  ;;  %16748 = vst [vmem:[#allocation38_spill] sm:$0xff] %v14438_v38 }
 0x391   : > { %v14440_v43 = vpop.f32.mrf.mxu0  ;;  %v14442_v9 = vpop.f32.mrf.mxu1 }
 0x392   : > { %16749 = vst [vmem:[#allocation143_spill] sm:$0xff] %v14440_v43  ;;  %16750 = vst [vmem:[#allocation39_spill] sm:$0xff] %v14442_v9 }
 0x393   : > { %v14444_v11 = vpop.f32.mrf.mxu0  ;;  %v14446_v23 = vpop.f32.mrf.mxu1 }
 0x394   : > { %16751 = vst [vmem:[#allocation144_spill] sm:$0xff] %v14444_v11  ;;  %16752 = vst [vmem:[#allocation40_spill] sm:$0xff] %v14446_v23 }
 0x395   : > { %v14448_v46 = vpop.f32.mrf.mxu0  ;;  %v14450_v58 = vpop.f32.mrf.mxu1 }
 0x396   : > { %16753 = vst [vmem:[#allocation145_spill] sm:$0xff] %v14448_v46  ;;  %16754 = vst [vmem:[#allocation41_spill] sm:$0xff] %v14450_v58 }
 0x397   : > { %v14452_v42 = vpop.f32.mrf.mxu0  ;;  %v14454_v48 = vpop.f32.mrf.mxu1 }
 0x398   : > { %16755 = vst [vmem:[#allocation146_spill] sm:$0xff] %v14452_v42  ;;  %16756 = vst [vmem:[#allocation42_spill] sm:$0xff] %v14454_v48 }
 0x399   : > { %v14456_v33 = vpop.f32.mrf.mxu0  ;;  %v14458_v20 = vpop.f32.mrf.mxu1 }
 0x39a   : > { %16757 = vst [vmem:[#allocation147_spill] sm:$0xff] %v14456_v33  ;;  %16758 = vst [vmem:[#allocation43_spill] sm:$0xff] %v14458_v20 }
 0x39b   : > { %v14460_v38 = vpop.f32.mrf.mxu0  ;;  %v14462_v43 = vpop.f32.mrf.mxu1 }
 0x39c   : > { %16759 = vst [vmem:[#allocation148_spill] sm:$0xff] %v14460_v38  ;;  %16760 = vst [vmem:[#allocation44_spill] sm:$0xff] %v14462_v43 }
 0x39d   : > { %v14464_v9 = vpop.f32.mrf.mxu0  ;;  %v14466_v11 = vpop.f32.mrf.mxu1 }
 0x39e   : > { %16761 = vst [vmem:[#allocation149_spill] sm:$0xff] %v14464_v9  ;;  %16762 = vst [vmem:[#allocation45_spill] sm:$0xff] %v14466_v11 }
 0x39f   : > { %v4023_v23 = vpop.f32.mrf.mxu0  ;;  %v4136_v46 = vpop.f32.mrf.mxu1 }
 0x3a0   : > { %v14469_v58 = vadd.f32 %v4023_v23, %v14340_v59  ;;  %v14472_v42 = vadd.f32 %v4136_v46, %v14342_v35 }
 0x3a1   : > { %v4025_v48 = vpop.f32.mrf.mxu0  ;;  %v4138_v33 = vpop.f32.mrf.mxu1 }
 0x3a2   : > { %16763 = vst [vmem:[#allocation150_spill] sm:$0xff] %v14472_v42  ;;  %v14475_v20 = vadd.f32 %v4025_v48, %v14344_v36  ;;  %v14478_v38 = vadd.f32 %v4138_v33, %v14346_v26  ;;  %v3954_v33 = vadd.f32 %v14356_v45, %v14010_v2  ;;  %v4067_v36 = vadd.f32 %v14358_v57, %v14012_v49 }
 0x3a3   : > { %v4027_v43 = vpop.f32.mrf.mxu0  ;;  %v4140_v9 = vpop.f32.mrf.mxu1  ;;  %v4069_v26 = vadd.f32 %v14362_v47, %v14018_v52  ;;  %v4073_v2 = vadd.f32 %v14370_v17, %v14054_v50  ;;  %v4917_v50 = vld [vmem:[%s16251_s4] sm:$0x3] }
 0x3a4   : > { %16764 = vst [vmem:[#allocation46_spill] sm:$0xff] %v14475_v20  ;;  %16765 = vst [vmem:[#allocation151_spill] sm:$0xff] %v14478_v38  ;;  %v14481_v11 = vadd.f32 %v4027_v43, %v14348_v56  ;;  %v14484_v19 = vadd.f32 %v4140_v9, %v14350_v28  ;;  %v3958_v43 = vadd.f32 %v14364_v61, %v14034_v22 }
 0x3a5   : > { %v14486_v23 = vpop.f32.mrf.mxu0  ;;  %v14488_v46 = vpop.f32.mrf.mxu1  ;;  %v4071_v28 = vadd.f32 %v14366_v8, %v14036_v60  ;;  %v3956_v9 = vadd.f32 %v14360_v5, %v14016_v1  ;;  %v3960_v56 = vadd.f32 %v14368_v32, %v14052_v51 }
 0x3a6   : > { %16766 = vst [vmem:[#allocation47_spill] sm:$0xff] %v14481_v11  ;;  %16767 = vst [vmem:[#allocation152_spill] sm:$0xff] %v14484_v19 }
 0x3a7   : > { %16768 = vst [vmem:[#allocation48_spill] sm:$0xff] %v14488_v46 }
 0x3a8   : > { %v4613_v59 = vpop.f32.mrf.mxu0  ;;  %v4726_v35 = vpop.f32.mrf.mxu1 }
 0x3a9   : > { %v4805_v57 = vadd.f32 %v4613_v59, %v3954_v33  ;;  %v4807_v38 = vadd.f32 %v4726_v35, %v4067_v36  ;;  %v3964_v59 = vadd.f32 %v14372_v21, %v14070_v12  ;;  %v3966_v36 = vadd.f32 %v14376_v39, %v14086_v10 }
 0x3aa   : > { %v4615_v42 = vpop.f32.mrf.mxu0  ;;  %v4728_v48 = vpop.f32.mrf.mxu1  ;;  %v14522_v12 = vrot.slane %v4917_v50, %v13114_v13 }
 0x3ab   : > { %v4806_v20 = vadd.f32 %v4615_v42, %v3956_v9  ;;  %v4808_v60 = vadd.f32 %v4728_v48, %v4069_v26  ;;  %v4077_v48 = vadd.f32 %v14374_v4, %v14072_v31 }
 0x3ac   : > { %v4617_v45 = vpop.f32.mrf.mxu0  ;;  %v4730_v49 = vpop.f32.mrf.mxu1 }
 0x3ad   : > { %v4809_v22 = vadd.f32 %v4617_v45, %v3958_v43  ;;  %v4811_v61 = vadd.f32 %v4730_v49, %v4071_v28  ;;  %v14532_v45 = vrot.slane %v4917_v50, %v13134_v40  ;;  %v3976_v49 = vadd.f32 %v14392_v44, %v14147_v30 }
 0x3ae   : > { %v4619_v8 = vpop.f32.mrf.mxu0  ;;  %v4732_v46 = vpop.f32.mrf.mxu1 }
 0x3af   : > { %v4869_v1 = vmax.f32 %v4805_v57, %v4809_v22  ;;  %v4871_v5 = vmax.f32 %v4807_v38, %v4811_v61  ;;  %v4810_v19 = vadd.f32 %v4619_v8, %v3960_v56  ;;  %v4812_v52 = vadd.f32 %v4732_v46, %v4073_v2 }
 0x3b0   : > { %v4623_v47 = vpop.f32.mrf.mxu0  ;;  %v4736_v11 = vpop.f32.mrf.mxu1  ;;  %v3968_v38 = vadd.f32 %v14380_v62, %v14106_v14  ;;  %v4081_v46 = vadd.f32 %v14382_v3, %v14108_v16  ;;  %v4079_v14 = vadd.f32 %v14378_v0, %v14088_v6  ;;  %v4083_v16 = vadd.f32 %v14386_v29, %v14124_v55 }
 0x3b1   : > { %v4901_v51 = vmax.f32 %v4869_v1, %v4871_v5  ;;  %v4870_v17 = vmax.f32 %v4806_v20, %v4810_v19  ;;  %v4872_v32 = vmax.f32 %v4808_v60, %v4812_v52  ;;  %v3970_v19 = vadd.f32 %v14384_v18, %v14122_v53 }
 0x3b2   : > { %v4625_v42 = vpop.f32.mrf.mxu0  ;;  %v4738_v35 = vpop.f32.mrf.mxu1  ;;  %v4813_v43 = vadd.f32 %v4623_v47, %v3964_v59  ;;  %v4815_v31 = vadd.f32 %v4736_v11, %v4077_v48  ;;  %v3974_v55 = vadd.f32 %v14388_v34, %v14131_v27  ;;  %v4087_v29 = vadd.f32 %v14390_v54, %v14133_v7  ;;  %v16770_v47 = vld [vmem:[#allocation133_spill] sm:$0xff] }
 0x3b3   : > { %v4902_v33 = vmax.f32 %v4870_v17, %v4872_v32  ;;  %v4814_v62 = vadd.f32 %v4625_v42, %v3966_v36  ;;  %v14529_v9 = vadd.f32 %v14522_v12, %v4901_v51  ;;  %v4816_v26 = vadd.f32 %v4738_v35, %v4079_v14  ;;  %v16772_v51 = vld [vmem:[#allocation29_spill] sm:$0xff]  ;;  %v16775_v14 = vld [vmem:[#allocation12_spill] sm:$0xff] }
 0x3b4   : > { %v4627_v20 = vpop.f32.mrf.mxu0  ;;  %v4740_v21 = vpop.f32.mrf.mxu1  ;;  %v3978_v60 = vadd.f32 %v14396_v63, %v14166_v37  ;;  %v4091_v8 = vadd.f32 %v14398_v24, %v14168_v25  ;;  %v3980_v1 = vadd.f32 %v14400_v15, %v14182_v41  ;;  %v16769_v24 = vld [vmem:[#allocation115_spill] sm:$0xff] }
 0x3b5   : > { %v4817_v4 = vadd.f32 %v4627_v20, %v3968_v38  ;;  %v4819_v28 = vadd.f32 %v4740_v21, %v4081_v46  ;;  %v4945_v7 = vmax.f32 %v14529_v9, 0.0  ;;  %v14551_v5 = vadd.f32 %v14532_v45, %v4902_v33  ;;  %v16771_v15 = vld [vmem:[#allocation11_spill] sm:$0xff] }
 0x3b6   : > { %v4629_v3 = vpop.f32.mrf.mxu0  ;;  %v4742_v10 = vpop.f32.mrf.mxu1  ;;  %v4089_v41 = vadd.f32 %v16770_v47, %v16769_v24  ;;  %v4093_v50 = vadd.f32 %v16772_v51, %v16771_v15  ;;  %v11069_v9 = vld [vmem:[%s16252_s5 + $0x4c0] ss:$16 sps:$4 sm:$0xff]  }
 0x3b7   : > { %v4873_v39 = vmax.f32 %v4813_v43, %v4817_v4  ;;  %v4875_v53 = vmax.f32 %v4815_v31, %v4819_v28  ;;  %v4818_v18 = vadd.f32 %v4629_v3, %v3970_v19  ;;  %v4820_v56 = vadd.f32 %v4742_v10, %v4083_v16  ;;  %v16773_v31 = vld [vmem:[#allocation116_spill] sm:$0xff]  ;;  %v16774_v4 = vld [vmem:[#allocation134_spill] sm:$0xff] }
 0x3b8   : > { %v4633_v11 = vpop.f32.mrf.mxu0  ;;  %v4746_v2 = vpop.f32.mrf.mxu1  ;;  %v4946_v21 = vmax.f32 %v14551_v5, 0.0  ;;  %v3984_v28 = vadd.f32 %v16774_v4, %v16773_v31  ;;  %v16776_v16 = vld [vmem:[#allocation30_spill] sm:$0xff] }
 0x3b9   : > { %v4903_v6 = vmax.f32 %v4873_v39, %v4875_v53  ;;  %v4874_v0 = vmax.f32 %v4814_v62, %v4818_v18  ;;  %v4876_v57 = vmax.f32 %v4816_v26, %v4820_v56  ;;  %v4821_v34 = vadd.f32 %v4633_v11, %v3974_v55  ;;  %v16777_v39 = vld [vmem:[#allocation117_spill] sm:$0xff]  ;;  %v16778_v53 = vld [vmem:[#allocation135_spill] sm:$0xff]  ;;  %v10976_v31 = vld [vmem:[%s16252_s5 + $0xc8] ss:$16 sps:$4 sm:$0xff]  }
 0x3ba   : > { %v4635_v22 = vpop.f32.mrf.mxu0  ;;  %v4748_v61 = vpop.f32.mrf.mxu1  ;;  %v4823_v63 = vadd.f32 %v4746_v2, %v4087_v29  ;;  %v4097_v3 = vadd.f32 %v16776_v16, %v16775_v14  ;;  %v3986_v18 = vadd.f32 %v16778_v53, %v16777_v39  ;;  %v16779_v26 = vld [vmem:[#allocation13_spill] sm:$0xff]  ;;  %v16780_v56 = vld [vmem:[#allocation31_spill] sm:$0xff]  ;;  %v11056_v5 = vld [vmem:[%s16252_s5 + $0x12c] ss:$16 sps:$4 sm:$0xff]  }
 0x3bb   : > { %v14547_v27 = vadd.f32 %v14522_v12, %v4903_v6  ;;  %v4904_v54 = vmax.f32 %v4874_v0, %v4876_v57  ;;  %v4822_v17 = vadd.f32 %v4635_v22, %v3976_v49  ;;  %v4824_v33 = vadd.f32 %v4748_v61, %v4089_v41  ;;  %v10967_v29 = vld [vmem:[%s16252_s5 + $0xe0] ss:$16 sps:$4 sm:$0xff]   ;;  %v10970_v49 = vld [vmem:[%s16252_s5 + $0xe8] ss:$16 sps:$4 sm:$0xff]   ;;  %v10981_v16 = vld [vmem:[%s16252_s5 + $0xa4] ss:$16 sps:$4 sm:$0xff]  }
 0x3bc   : > { %v4637_v30 = vpop.f32.mrf.mxu0  ;;  %v4750_v44 = vpop.f32.mrf.mxu1  ;;  %v4099_v11 = vadd.f32 %v16780_v56, %v16779_v26  ;;  %v16781_v57 = vld [vmem:[#allocation118_spill] sm:$0xff]  ;;  %v16782_v22 = vld [vmem:[#allocation136_spill] sm:$0xff] }
 0x3bd   : > { %v4947_v37 = vmax.f32 %v14547_v27, 0.0  ;;  %v4825_v52 = vadd.f32 %v4637_v30, %v3978_v60  ;;  %v4827_v25 = vadd.f32 %v4750_v44, %v4091_v8  ;;  %v14559_v42 = vadd.f32 %v14532_v45, %v4904_v54  ;;  %v16783_v60 = vld [vmem:[#allocation14_spill] sm:$0xff]  ;;  %v16784_v8 = vld [vmem:[#allocation32_spill] sm:$0xff]  ;;  %v16785_v54 = vld [vmem:[#allocation119_spill] sm:$0xff] }
 0x3be   : > { %v4639_v32 = vpop.f32.mrf.mxu0  ;;  %v4752_v59 = vpop.f32.mrf.mxu1  ;;  %v3988_v61 = vadd.f32 %v16782_v22, %v16781_v57  ;;  %v16794_v57 = vld [vmem:[#allocation139_spill] sm:$0xff] }
 0x3bf   : > { %v5087_v35 = vpack.c.bf16 %v4947_v37, %v4945_v7  ;;  %v4877_v48 = vmax.f32 %v4821_v34, %v4825_v52  ;;  %v4879_v38 = vmax.f32 %v4823_v63, %v4827_v25  ;;  %v4826_v46 = vadd.f32 %v4639_v32, %v3980_v1  ;;  %v16786_v34 = vld [vmem:[#allocation137_spill] sm:$0xff]  ;;  %v16787_v52 = vld [vmem:[#allocation15_spill] sm:$0xff] }
 0x3c0   : > { %v4828_v36 = vadd.f32 %v4752_v59, %v4093_v50  ;;  %v4643_v19 = vpop.f32.mrf.mxu0  ;;  %v4756_v20 = vpop.f32.mrf.mxu1  ;;  %v4948_v43 = vmax.f32 %v14559_v42, 0.0  ;;  %v4101_v1 = vadd.f32 %v16784_v8, %v16783_v60  ;;  %v3990_v30 = vadd.f32 %v16786_v34, %v16785_v54  ;;  %v10975_v63 = vld [vmem:[%s16252_s5 + $0xc4] ss:$16 sps:$4 sm:$0xff]   ;;  %v10978_v50 = vld [vmem:[%s16252_s5 + $0xcc] ss:$16 sps:$4 sm:$0xff]  }
 0x3c1   : > { %v4905_v10 = vmax.f32 %v4877_v48, %v4879_v38  ;;  %v4878_v62 = vmax.f32 %v4822_v17, %v4826_v46  ;;  %v16788_v25 = vld [vmem:[#allocation33_spill] sm:$0xff]  ;;  %v4829_v41 = vadd.f32 %v4643_v19, %v3984_v28  ;;  %v4831_v32 = vadd.f32 %v4756_v20, %v4097_v3  ;;  %v16789_v3 = vld [vmem:[#allocation120_spill] sm:$0xff]  ;;  %v16796_v60 = vld [vmem:[#allocation35_spill] sm:$0xff] }
 0x3c2   : > { %v4880_v2 = vmax.f32 %v4824_v33, %v4828_v36  ;;  %v4645_v6 = vpop.f32.mrf.mxu0  ;;  %v4758_v0 = vpop.f32.mrf.mxu1  ;;  %v5088_v55 = vpack.c.bf16 %v4948_v43, %v4946_v21  ;;  %v4103_v24 = vadd.f32 %v16788_v25, %v16787_v52  ;;  %v10973_v19 = vld [vmem:[%s16252_s5 + $0xc0] ss:$16 sps:$4 sm:$0xff]   ;;  %v10982_v54 = vld [vmem:[%s16252_s5 + $0xa8] ss:$16 sps:$4 sm:$0xff]  }
 0x3c3   : > { %v14592_v44 = vadd.f32 %v14522_v12, %v4905_v10  ;;  %v4830_v38 = vadd.f32 %v4645_v6, %v3986_v18  ;;  %v4832_v46 = vadd.f32 %v4758_v0, %v4099_v11  ;;  %v16790_v10 = vld [vmem:[#allocation138_spill] sm:$0xff]  ;;  %v16791_v11 = vld [vmem:[#allocation16_spill] sm:$0xff]  ;;  %v16801_v42 = vld [vmem:[#allocation123_spill] sm:$0xff] }
 0x3c4   : > { %v4906_v47 = vmax.f32 %v4878_v62, %v4880_v2  ;;  %5512 = vmatprep.mubr.bf16.mxu0 %v5088_v55  ;;  %5585 = vmatprep.mubr.bf16.mxu1 %v5088_v55  ;;  %v4647_v15 = vpop.f32.mrf.mxu0  ;;  %v4760_v51 = vpop.f32.mrf.mxu1  ;;  %v3994_v62 = vadd.f32 %v16790_v10, %v16789_v3  ;;  %v10984_v18 = vld [vmem:[%s16252_s5 + $0xac] ss:$16 sps:$4 sm:$0xff]  }
 0x3c5   : > { %v4949_v17 = vmax.f32 %v14592_v44, 0.0  ;;  %v4833_v59 = vadd.f32 %v4647_v15, %v3988_v61  ;;  %v4835_v48 = vadd.f32 %v4760_v51, %v4101_v1  ;;  %5513 = vmatmul.mubr.bf16.vlgmr.msra.gmra.mxu0 %v5087_v35  ;;  %5586 = vmatmul.mubr.bf16.vlgmr.msra.gmra.mxu1 %v5087_v35  ;;  %v16792_v2 = vld [vmem:[#allocation34_spill] sm:$0xff]  ;;  %v16795_v61 = vld [vmem:[#allocation17_spill] sm:$0xff] }
 0x3c6   : > { %5947 = vmatpush1.bf16.msra.mxu0 %v10967_v29  ;;  %6020 = vmatpush1.bf16.msra.mxu1 %v10970_v49  ;;  %v4649_v33 = vpop.f32.mrf.mxu0  ;;  %v4762_v36 = vpop.f32.mrf.mxu1  ;;  %v14610_v20 = vadd.f32 %v14532_v45, %v4906_v47  ;;  %v4107_v6 = vadd.f32 %v16792_v2, %v16791_v11  ;;  %v16793_v49 = vld [vmem:[#allocation121_spill] sm:$0xff]  ;;  %v4109_v8 = vadd.f32 %v16796_v60, %v16795_v61  ;;  %v16799_v25 = vld [vmem:[#allocation18_spill] sm:$0xff] }
 0x3c7   : > { %v4881_v4 = vmax.f32 %v4829_v41, %v4833_v59  ;;  %v4883_v28 = vmax.f32 %v4831_v32, %v4835_v48  ;;  %v4834_v35 = vadd.f32 %v4649_v33, %v3990_v30  ;;  %v4836_v14 = vadd.f32 %v4762_v36, %v4103_v24  ;;  %5948 = vmatprep.subr.bf16.mxu0 %v10975_v63  ;;  %v16797_v30 = vld [vmem:[#allocation122_spill] sm:$0xff]  ;;  %v16798_v63 = vld [vmem:[#allocation140_spill] sm:$0xff]  ;;  %v10987_v51 = vld [vmem:[%s16252_s5 + $0x84] ss:$16 sps:$4 sm:$0xff]  }
 0x3c8   : > { %6021 = vmatprep.subr.bf16.mxu1 %v10978_v50  ;;  %v4653_v39 = vpop.f32.mrf.mxu0  ;;  %v4766_v53 = vpop.f32.mrf.mxu1  ;;  %v4950_v26 = vmax.f32 %v14610_v20, 0.0  ;;  %v14625_v56 = vpack.c.bf16 %v4949_v17, %v4947_v37  ;;  %v3996_v22 = vadd.f32 %v16794_v57, %v16793_v49  ;;  %v10979_v37 = vld [vmem:[%s16252_s5 + $0xa0] ss:$16 sps:$4 sm:$0xff]   ;;  %v3998_v52 = vadd.f32 %v16798_v63, %v16797_v30  ;;  %v16800_v24 = vld [vmem:[#allocation36_spill] sm:$0xff]  ;;  %v16808_v57 = vld [vmem:[#allocation38_spill] sm:$0xff] }
 0x3c9   : > { %v4907_v0 = vmax.f32 %v4881_v4, %v4883_v28  ;;  %v4882_v55 = vmax.f32 %v4830_v38, %v4834_v35  ;;  %v4884_v29 = vmax.f32 %v4832_v46, %v4836_v14  ;;  %v4111_v47 = vadd.f32 %v16800_v24, %v16799_v25  ;;  %v16802_v50 = vld [vmem:[#allocation141_spill] sm:$0xff]  ;;  %v16807_v49 = vld [vmem:[#allocation20_spill] sm:$0xff] }
 0x3ca   : > { %5949 = vmatpush1.bf16.msra.mxu0 %v10973_v19  ;;  %6022 = vmatpush1.bf16.msra.mxu1 %v10976_v31  ;;  %v4655_v1 = vpop.f32.mrf.mxu0  ;;  %v4768_v27 = vpop.f32.mrf.mxu1  ;;  %v14643_v34 = vpack.c.bf16 %v4950_v26, %v4948_v43  ;;  %v4000_v32 = vadd.f32 %v16802_v50, %v16801_v42  ;;  %v16803_v43 = vld [vmem:[#allocation19_spill] sm:$0xff]  ;;  %v16804_v59 = vld [vmem:[#allocation37_spill] sm:$0xff]  ;;  %v4837_v38 = vadd.f32 %v4653_v39, %v3994_v62  ;;  %v10990_v19 = vld [vmem:[%s16252_s5 + $0x8c] ss:$16 sps:$4 sm:$0xff]  }
 0x3cb   : > { %v14650_v41 = vadd.f32 %v14522_v12, %v4907_v0  ;;  %v4908_v15 = vmax.f32 %v4882_v55, %v4884_v29  ;;  %5950 = vmatprep.subr.bf16.mxu0 %v10981_v16  ;;  %v4113_v48 = vadd.f32 %v16804_v59, %v16803_v43  ;;  %v4839_v46 = vadd.f32 %v4766_v53, %v4107_v6  ;;  %v10985_v62 = vld [vmem:[%s16252_s5 + $0x80] ss:$16 sps:$4 sm:$0xff]   ;;  %v10988_v39 = vld [vmem:[%s16252_s5 + $0x88] ss:$16 sps:$4 sm:$0xff]   ;;  %v10993_v6 = vld [vmem:[%s16252_s5 + $0x64] ss:$16 sps:$4 sm:$0xff]  }
 0x3cc   : > { %6023 = vmatprep.subr.bf16.mxu1 %v10984_v18  ;;  %v4657_v33 = vpop.f32.mrf.mxu0  ;;  %v4770_v36 = vpop.f32.mrf.mxu1  ;;  %v4838_v14 = vadd.f32 %v4655_v1, %v3996_v22  ;;  %v4840_v16 = vadd.f32 %v4768_v27, %v4109_v8  ;;  %v16805_v0 = vld [vmem:[#allocation124_spill] sm:$0xff]  ;;  %v16806_v55 = vld [vmem:[#allocation142_spill] sm:$0xff]  ;;  %v4117_v22 = vadd.f32 %v16808_v57, %v16807_v49  ;;  %v16809_v27 = vld [vmem:[#allocation125_spill] sm:$0xff] }
 0x3cd   : > { %v4951_v31 = vmax.f32 %v14650_v41, 0.0  ;;  %v4841_v4 = vadd.f32 %v4657_v33, %v3998_v52  ;;  %v4843_v28 = vadd.f32 %v4770_v36, %v4111_v47  ;;  %v14664_v35 = vadd.f32 %v14532_v45, %v4908_v15  ;;  %v10996_v25 = vld [vmem:[%s16252_s5 + $0x6c] ss:$16 sps:$4 sm:$0xff]   ;;  %v16811_v24 = vld [vmem:[#allocation21_spill] sm:$0xff]  ;;  %v16812_v47 = vld [vmem:[#allocation39_spill] sm:$0xff] }
 0x3ce   : > { %5951 = vmatpush1.bf16.msra.mxu0 %v10979_v37  ;;  %6024 = vmatpush1.bf16.msra.mxu1 %v10982_v54  ;;  %v4659_v3 = vpop.f32.mrf.mxu0  ;;  %v4772_v10 = vpop.f32.mrf.mxu1  ;;  %v4004_v29 = vadd.f32 %v16806_v55, %v16805_v0  ;;  %v16810_v37 = vld [vmem:[#allocation143_spill] sm:$0xff]  ;;  %v4119_v15 = vadd.f32 %v16812_v47, %v16811_v24  ;;  %v16814_v42 = vld [vmem:[#allocation144_spill] sm:$0xff]  ;;  %v16815_v59 = vld [vmem:[#allocation22_spill] sm:$0xff] }
 0x3cf   : > { %v4885_v53 = vmax.f32 %v4837_v38, %v4841_v4  ;;  %v4887_v18 = vmax.f32 %v4839_v46, %v4843_v28  ;;  %v4842_v11 = vadd.f32 %v4659_v3, %v4000_v32  ;;  %v4844_v2 = vadd.f32 %v4772_v10, %v4113_v48  ;;  %5952 = vmatprep.subr.bf16.mxu0 %v10987_v51  ;;  %v16813_v51 = vld [vmem:[#allocation126_spill] sm:$0xff]  ;;  %v10991_v43 = vld [vmem:[%s16252_s5 + $0x60] ss:$16 sps:$4 sm:$0xff]   ;;  %v16816_v48 = vld [vmem:[#allocation40_spill] sm:$0xff] }
 0x3d0   : > { %6025 = vmatprep.subr.bf16.mxu1 %v10990_v19  ;;  %v4663_v61 = vpop.f32.mrf.mxu0  ;;  %v4776_v60 = vpop.f32.mrf.mxu1  ;;  %v4952_v8 = vmax.f32 %v14664_v35, 0.0  ;;  %v5089_v1 = vpack.c.bf16 %v4951_v31, %v4949_v17  ;;  %v4006_v54 = vadd.f32 %v16810_v37, %v16809_v27  ;;  %v4008_v50 = vadd.f32 %v16814_v42, %v16813_v51  ;;  %v16817_v46 = vld [vmem:[#allocation127_spill] sm:$0xff]  ;;  %v16818_v33 = vld [vmem:[#allocation145_spill] sm:$0xff]  ;;  %v10994_v20 = vld [vmem:[%s16252_s5 + $0x68] ss:$16 sps:$4 sm:$0xff]  }
 0x3d1   : > { %v4909_v30 = vmax.f32 %v4885_v53, %v4887_v18  ;;  %v4886_v63 = vmax.f32 %v4838_v14, %v4842_v11  ;;  %v4888_v52 = vmax.f32 %v4840_v16, %v4844_v2  ;;  %v4121_v38 = vadd.f32 %v16816_v48, %v16815_v59  ;;  %v16820_v28 = vld [vmem:[#allocation41_spill] sm:$0xff]  ;;  %v11002_v53 = vld [vmem:[%s16252_s5 + $0x4c] ss:$16 sps:$4 sm:$0xff]   ;;  %v11000_v37 = vld [vmem:[%s16252_s5 + $0x48] ss:$16 sps:$4 sm:$0xff]  }
 0x3d2   : > { %5953 = vmatpush1.bf16.msra.mxu0 %v10985_v62  ;;  %6026 = vmatpush1.bf16.msra.mxu1 %v10988_v39  ;;  %v4665_v44 = vpop.f32.mrf.mxu0  ;;  %v4778_v17 = vpop.f32.mrf.mxu1  ;;  %v5090_v32 = vpack.c.bf16 %v4952_v8, %v4950_v26  ;;  %v4010_v36 = vadd.f32 %v16818_v33, %v16817_v46  ;;  %v16819_v26 = vld [vmem:[#allocation23_spill] sm:$0xff]  ;;  %v4845_v16 = vadd.f32 %v4663_v61, %v4004_v29  ;;  %v11008_v24 = vld [vmem:[%s16252_s5 + $0x2c] ss:$16 sps:$4 sm:$0xff]  }
 0x3d3   : > { %v14705_v19 = vadd.f32 %v14522_v12, %v4909_v30  ;;  %v4910_v4 = vmax.f32 %v4886_v63, %v4888_v52  ;;  %5954 = vmatprep.subr.bf16.mxu0 %v10993_v6  ;;  %v4123_v14 = vadd.f32 %v16820_v28, %v16819_v26  ;;  %v4847_v3 = vadd.f32 %v4776_v60, %v4117_v22  ;;  %v10999_v39 = vld [vmem:[%s16252_s5 + $0x44] ss:$16 sps:$4 sm:$0xff]   ;;  %v10997_v57 = vld [vmem:[%s16252_s5 + $0x40] ss:$16 sps:$4 sm:$0xff]   ;;  %v16821_v30 = vld [vmem:[#allocation128_spill] sm:$0xff] }
 0x3d4   : > { %5522 = vmatprep.mubr.bf16.mxu0 %v5090_v32  ;;  %5595 = vmatprep.mubr.bf16.mxu1 %v5090_v32  ;;  %v4667_v10 = vpop.f32.mrf.mxu0  ;;  %v4780_v62 = vpop.f32.mrf.mxu1  ;;  %v4846_v0 = vadd.f32 %v4665_v44, %v4006_v54  ;;  %v4848_v55 = vadd.f32 %v4778_v17, %v4119_v15  ;;  %v16822_v54 = vld [vmem:[#allocation146_spill] sm:$0xff]  ;;  %v16823_v51 = vld [vmem:[#allocation24_spill] sm:$0xff]  ;;  %v16826_v59 = vld [vmem:[#allocation147_spill] sm:$0xff] }
 0x3d5   : > { %v4953_v18 = vmax.f32 %v14705_v19, 0.0  ;;  %6027 = vmatprep.subr.bf16.mxu1 %v10996_v25  ;;  %v4849_v11 = vadd.f32 %v4667_v10, %v4008_v50  ;;  %v4851_v2 = vadd.f32 %v4780_v62, %v4121_v38  ;;  %5523 = vmatmul.mubr.bf16.gmra.mxu0 %v5089_v1  ;;  %v14720_v6 = vadd.f32 %v14532_v45, %v4910_v4  ;;  %v11005_v25 = vld [vmem:[%s16252_s5 + $0x24] ss:$16 sps:$4 sm:$0xff]   ;;  %v16824_v42 = vld [vmem:[#allocation42_spill] sm:$0xff]  ;;  %v16830_v4 = vld [vmem:[#allocation148_spill] sm:$0xff] }
 0x3d6   : > { %5596 = vmatmul.mubr.bf16.gmra.mxu1 %v5089_v1  ;;  %5955 = vmatpush1.bf16.msra.mxu0 %v10991_v43  ;;  %v4669_v29 = vpop.f32.mrf.mxu0  ;;  %v4782_v49 = vpop.f32.mrf.mxu1  ;;  %v4014_v63 = vadd.f32 %v16822_v54, %v16821_v30  ;;  %v4127_v50 = vadd.f32 %v16824_v42, %v16823_v51  ;;  %v16825_v43 = vld [vmem:[#allocation129_spill] sm:$0xff]  ;;  %v16828_v46 = vld [vmem:[#allocation43_spill] sm:$0xff] }
 0x3d7   : > { %v4889_v22 = vmax.f32 %v4845_v16, %v4849_v11  ;;  %v4891_v61 = vmax.f32 %v4847_v3, %v4851_v2  ;;  %6028 = vmatpush1.bf16.msra.mxu1 %v10994_v20  ;;  %v4850_v60 = vadd.f32 %v4669_v29, %v4010_v36  ;;  %v4852_v27 = vadd.f32 %v4782_v49, %v4123_v14  ;;  %v16827_v38 = vld [vmem:[#allocation25_spill] sm:$0xff]  ;;  %v16829_v36 = vld [vmem:[#allocation130_spill] sm:$0xff]  ;;  %v16832_v16 = vld [vmem:[#allocation44_spill] sm:$0xff] }
 0x3d8   : > { %5956 = vmatprep.subr.bf16.mxu0 %v10999_v39  ;;  %6029 = vmatprep.subr.bf16.mxu1 %v11002_v53  ;;  %v4673_v1 = vpop.f32.mrf.mxu0  ;;  %v4786_v52 = vpop.f32.mrf.mxu1  ;;  %v4954_v47 = vmax.f32 %v14720_v6, 0.0  ;;  %v14741_v15 = vpack.c.bf16 %v4953_v18, %v4951_v31  ;;  %v4016_v48 = vadd.f32 %v16826_v59, %v16825_v43  ;;  %v4129_v33 = vadd.f32 %v16828_v46, %v16827_v38  ;;  %v11003_v31 = vld [vmem:[%s16252_s5 + $0x20] ss:$16 sps:$4 sm:$0xff]   ;;  %v16831_v14 = vld [vmem:[#allocation26_spill] sm:$0xff]  ;;  %v11017_v46 = vld [vmem:[%s16252_s5 + $0x1e4] ss:$16 sps:$4 sm:$0xff]  }
 0x3d9   : > { %v4911_v44 = vmax.f32 %v4889_v22, %v4891_v61  ;;  %v4890_v17 = vmax.f32 %v4846_v0, %v4850_v60  ;;  %v4892_v32 = vmax.f32 %v4848_v55, %v4852_v27  ;;  %v4018_v20 = vadd.f32 %v16830_v4, %v16829_v36  ;;  %v16833_v10 = vld [vmem:[#allocation131_spill] sm:$0xff]  ;;  %v16834_v62 = vld [vmem:[#allocation149_spill] sm:$0xff]  ;;  %v11006_v2 = vld [vmem:[%s16252_s5 + $0x28] ss:$16 sps:$4 sm:$0xff]  }
 0x3da   : > { %5957 = vmatpush1.bf16.msra.mxu0 %v10997_v57  ;;  %v4675_v41 = vpop.f32.mrf.mxu0  ;;  %v4788_v26 = vpop.f32.mrf.mxu1  ;;  %v14756_v28 = vpack.c.bf16 %v4954_v47, %v4952_v8  ;;  %v4131_v3 = vadd.f32 %v16832_v16, %v16831_v14  ;;  %v4020_v39 = vadd.f32 %v16834_v62, %v16833_v10  ;;  %v16835_v6 = vld [vmem:[#allocation27_spill] sm:$0xff]  ;;  %v16836_v0 = vld [vmem:[#allocation45_spill] sm:$0xff]  ;;  %v4853_v8 = vadd.f32 %v4673_v1, %v4014_v63  ;;  %v11014_v22 = vld [vmem:[%s16252_s5 + $0xc] ss:$16 sps:$4 sm:$0xff]  }
 0x3db   : > { %v14763_v53 = vadd.f32 %v14522_v12, %v4911_v44  ;;  %v4912_v11 = vmax.f32 %v4890_v17, %v4892_v32  ;;  %6030 = vmatpush1.bf16.msra.mxu1 %v11000_v37  ;;  %v4133_v35 = vadd.f32 %v16836_v0, %v16835_v6  ;;  %v4855_v55 = vadd.f32 %v4786_v52, %v4127_v50  ;;  %v11011_v57 = vld [vmem:[%s16252_s5 + $0x4] ss:$16 sps:$4 sm:$0xff]   ;;  %v11009_v52 = vld [vmem:[%s16252_s5] ss:$16 sps:$4 sm:$0xff]   ;;  %v11012_v50 = vld [vmem:[%s16252_s5 + $0x8] ss:$16 sps:$4 sm:$0xff]  }
 0x3dc   : > { %5958 = vmatprep.subr.bf16.mxu0 %v11005_v25  ;;  %6031 = vmatprep.subr.bf16.mxu1 %v11008_v24  ;;  %v4677_v29 = vpop.f32.mrf.mxu0  ;;  %v4790_v49 = vpop.f32.mrf.mxu1  ;;  %v4854_v30 = vadd.f32 %v4675_v41, %v4016_v48  ;;  %v4856_v54 = vadd.f32 %v4788_v26, %v4129_v33  ;;  %v11020_v33 = vld [vmem:[%s16252_s5 + $0x1ec] ss:$16 sps:$4 sm:$0xff]   ;;  %v11018_v26 = vld [vmem:[%s16252_s5 + $0x1e8] ss:$16 sps:$4 sm:$0xff]  }
 0x3dd   : > { %v4955_v61 = vmax.f32 %v14763_v53, 0.0  ;;  %v4857_v60 = vadd.f32 %v4677_v29, %v4018_v20  ;;  %v4859_v27 = vadd.f32 %v4790_v49, %v4131_v3  ;;  %v14778_v37 = vadd.f32 %v14532_v45, %v4912_v11  ;;  %v16838_v3 = vld [vmem:[#allocation150_spill] sm:$0xff] }
 0x3de   : > { %5959 = vmatpush1.bf16.msra.mxu0 %v11003_v31  ;;  %v4679_v63 = vpop.f32.mrf.mxu0  ;;  %v4792_v1 = vpop.f32.mrf.mxu1  ;;  %v16837_v31 = vld [vmem:[#allocation132_spill] sm:$0xff]  ;;  %v16843_v49 = vld [vmem:[#allocation46_spill] sm:$0xff] }
 0x3df   : > { %v4893_v25 = vmax.f32 %v4853_v8, %v4857_v60  ;;  %v4895_v24 = vmax.f32 %v4855_v55, %v4859_v27  ;;  %6032 = vmatpush1.bf16.msra.mxu1 %v11006_v2  ;;  %v4858_v51 = vadd.f32 %v4679_v63, %v4020_v39  ;;  %v4860_v42 = vadd.f32 %v4792_v1, %v4133_v35  ;;  %v11023_v39 = vld [vmem:[%s16252_s5 + $0x1c4] ss:$16 sps:$4 sm:$0xff]   ;;  %v11026_v11 = vld [vmem:[%s16252_s5 + $0x1cc] ss:$16 sps:$4 sm:$0xff]   ;;  %v11024_v63 = vld [vmem:[%s16252_s5 + $0x1c8] ss:$16 sps:$4 sm:$0xff]  }
 0x3e0   : > { %5960 = vmatprep.subr.bf16.mxu0 %v11011_v57  ;;  %6033 = vmatprep.subr.bf16.mxu1 %v11014_v22  ;;  %v4683_v44 = vpop.f32.mrf.mxu0  ;;  %v4796_v17 = vpop.f32.mrf.mxu1  ;;  %v4956_v32 = vmax.f32 %v14778_v37, 0.0  ;;  %v5091_v43 = vpack.c.bf16 %v4955_v61, %v4953_v18  ;;  %v11015_v18 = vld [vmem:[%s16252_s5 + $0x1e0] ss:$16 sps:$4 sm:$0xff]   ;;  %v4030_v14 = vadd.f32 %v14486_v23, %v16837_v31  ;;  %v16841_v8 = vld [vmem:[#allocation28_spill] sm:$0xff] }
 0x3e1   : > { %v4913_v59 = vmax.f32 %v4893_v25, %v4895_v24  ;;  %v4894_v48 = vmax.f32 %v4854_v30, %v4858_v51  ;;  %v4896_v38 = vmax.f32 %v4856_v54, %v4860_v42  ;;  %v4861_v16 = vadd.f32 %v4683_v44, %v14469_v58  ;;  %v16839_v23 = vld [vmem:[#allocation47_spill] sm:$0xff]  ;;  %v16840_v58 = vld [vmem:[#allocation152_spill] sm:$0xff] }
 0x3e2   : > { %5961 = vmatpush1.bf16.msra.mxu0 %v11009_v52  ;;  %v4685_v36 = vpop.f32.mrf.mxu0  ;;  %v4798_v4 = vpop.f32.mrf.mxu1  ;;  %v5092_v20 = vpack.c.bf16 %v4956_v32, %v4954_v47  ;;  %v4863_v10 = vadd.f32 %v4796_v17, %v16838_v3  ;;  %v16842_v55 = vld [vmem:[#allocation48_spill] sm:$0xff]  ;;  %v11021_v54 = vld [vmem:[%s16252_s5 + $0x1c0] ss:$16 sps:$4 sm:$0xff]   ;;  %v11029_v51 = vld [vmem:[%s16252_s5 + $0x1a4] ss:$16 sps:$4 sm:$0xff]   ;;  %v16845_v3 = vmov 0.0  }
 0x3e3   : > { %v4941_v19 = vadd.f32 %v14522_v12, %v4913_v59  ;;  %v4914_v41 = vmax.f32 %v4894_v48, %v4896_v38  ;;  %6034 = vmatpush1.bf16.msra.mxu1 %v11012_v50  ;;  %5962 = vmatprep.subr.bf16.mxu0 %v11017_v46  ;;  %v4143_v29 = vadd.f32 %v16842_v55, %v16841_v8  ;;  %v16844_v52 = vld [vmem:[#allocation151_spill] sm:$0xff]  ;;  %v11032_v42 = vld [vmem:[%s16252_s5 + $0x1ac] ss:$16 sps:$4 sm:$0xff]   ;;  %v11030_v53 = vld [vmem:[%s16252_s5 + $0x1a8] ss:$16 sps:$4 sm:$0xff]  }
 0x3e4   : > { %5532 = vmatprep.mubr.bf16.mxu0 %v5092_v20  ;;  %5605 = vmatprep.mubr.bf16.mxu1 %v5092_v20  ;;  %v4687_v47 = vpop.f32.mrf.mxu0  ;;  %v4800_v62 = vpop.f32.mrf.mxu1  ;;  %v4862_v57 = vadd.f32 %v4685_v36, %v16843_v49  ;;  %v4864_v25 = vadd.f32 %v4798_v4, %v16844_v52  ;;  %v11027_v38 = vld [vmem:[%s16252_s5 + $0x1a0] ss:$16 sps:$4 sm:$0xff]   ;;  %v11036_v4 = vld [vmem:[%s16252_s5 + $0x188] ss:$16 sps:$4 sm:$0xff]   ;;  %v4999_v8 = vpack.c.bf16 %v4945_v7, %v16845_v3  ;;  %v11071_v49 = vld [vmem:[%s16252_s5 + $0x4c4] ss:$16 sps:$4 sm:$0xff]  }
 0x3e5   : > { %v4957_v2 = vmax.f32 %v4941_v19, 0.0  ;;  %6035 = vmatprep.subr.bf16.mxu1 %v11020_v33  ;;  %v4865_v6 = vadd.f32 %v4687_v47, %v16839_v23  ;;  %v4867_v0 = vadd.f32 %v4800_v62, %v16840_v58  ;;  %v4942_v35 = vadd.f32 %v14532_v45, %v4914_v41  ;;  %5533 = vmatmul.mubr.bf16.gmra.mxu0 %v5091_v43  ;;  %v11033_v36 = vld [vmem:[%s16252_s5 + $0x180] ss:$16 sps:$4 sm:$0xff]   ;;  %v11044_v41 = vld [vmem:[%s16252_s5 + $0x16c] ss:$16 sps:$4 sm:$0xff]  }
 0x3e6   : > { %5606 = vmatmul.mubr.bf16.gmra.mxu1 %v5091_v43  ;;  %v4689_v22 = vpop.f32.mrf.mxu0  ;;  %v4802_v60 = vpop.f32.mrf.mxu1  ;;  %5963 = vmatpush2.bf16.msra.mxu0 %v11015_v18  ;;  %v11042_v31 = vld [vmem:[%s16252_s5 + $0x168] ss:$16 sps:$4 sm:$0xff]   ;;  %v11045_v47 = vld [vmem:[%s16252_s5 + $0x140] ss:$16 sps:$4 sm:$0xff]   ;;  %v11062_v23 = vld [vmem:[%s16252_s5 + $0x10c] ss:$16 sps:$4 sm:$0xff]  }
 0x3e7   : > { %v4897_v27 = vmax.f32 %v4861_v16, %v4865_v6  ;;  %v4899_v37 = vmax.f32 %v4863_v10, %v4867_v0  ;;  %6036 = vmatpush2.bf16.msra.mxu1 %v11018_v26  ;;  %v4866_v30 = vadd.f32 %v4689_v22, %v4030_v14  ;;  %v4958_v1 = vmax.f32 %v4942_v35, 0.0  ;;  %5964 = vmatprep.subr.bf16.mxu0 %v11023_v39  ;;  %v11039_v26 = vld [vmem:[%s16252_s5 + $0x160] ss:$16 sps:$4 sm:$0xff]   ;;  %v11047_v14 = vld [vmem:[%s16252_s5 + $0x144] ss:$16 sps:$4 sm:$0xff]  }
 0x3e8   : > { %v4868_v24 = vadd.f32 %v4802_v60, %v4143_v29  ;;  %6037 = vmatprep.subr.bf16.mxu1 %v11026_v11  ;;  %v14835_v50 = vpack.c.bf16 %v4957_v2, %v4955_v61  ;;  %v11050_v16 = vld [vmem:[%s16252_s5 + $0x14c] ss:$16 sps:$4 sm:$0xff]   ;;  %v5000_v10 = vpack.c.bf16 %v4946_v21, %v16845_v3  ;;  %v11048_v62 = vld [vmem:[%s16252_s5 + $0x148] ss:$16 sps:$4 sm:$0xff]   ;;  %v11053_v39 = vld [vmem:[%s16252_s5 + $0x124] ss:$16 sps:$4 sm:$0xff]  }
 0x3e9   : > { %v4915_v44 = vmax.f32 %v4897_v27, %v4899_v37  ;;  %v4898_v17 = vmax.f32 %v4862_v57, %v4866_v30  ;;  %v14837_v43 = vpack.c.bf16 %v4958_v1, %v4956_v32  ;;  %v11035_v32 = vld [vmem:[%s16252_s5 + $0x184] ss:$16 sps:$4 sm:$0xff]   ;;  %v11051_v21 = vld [vmem:[%s16252_s5 + $0x120] ss:$16 sps:$4 sm:$0xff]   ;;  %v11054_v11 = vld [vmem:[%s16252_s5 + $0x128] ss:$16 sps:$4 sm:$0xff]  }
 0x3ea   : > { %v4900_v59 = vmax.f32 %v4864_v25, %v4868_v24  ;;  %5965 = vmatpush2.bf16.msra.mxu0 %v11021_v54  ;;  %v11057_v6 = vld [vmem:[%s16252_s5 + $0x100] ss:$16 sps:$4 sm:$0xff]   ;;  %v11060_v58 = vld [vmem:[%s16252_s5 + $0x108] ss:$16 sps:$4 sm:$0xff]   ;;  %v11065_v0 = vld [vmem:[%s16252_s5 + $0x4e4] ss:$16 sps:$4 sm:$0xff]  }
 0x3eb   : > { %v14840_v48 = vadd.f32 %v14522_v12, %v4915_v44  ;;  %6038 = vmatpush2.bf16.msra.mxu1 %v11024_v63  ;;  %5966 = vmatprep.subr.bf16.mxu0 %v11029_v51  ;;  %v11038_v12 = vld [vmem:[%s16252_s5 + $0x18c] ss:$16 sps:$4 sm:$0xff]   ;;  %v11063_v55 = vld [vmem:[%s16252_s5 + $0x4e0] ss:$16 sps:$4 sm:$0xff]   ;;  %v11066_v29 = vld [vmem:[%s16252_s5 + $0x4e8] ss:$16 sps:$4 sm:$0xff]  }
 0x3ec   : > { %v4916_v61 = vmax.f32 %v4898_v17, %v4900_v59  ;;  %6039 = vmatprep.subr.bf16.mxu1 %v11032_v42  ;;  %v11068_v35 = vld [vmem:[%s16252_s5 + $0x4ec] ss:$16 sps:$4 sm:$0xff]   ;;  %v11072_v7 = vld [vmem:[%s16252_s5 + $0x4c8] ss:$16 sps:$4 sm:$0xff]   ;;  %v11077_v22 = vld [vmem:[%s16252_s5 + $0x4a4] ss:$16 sps:$4 sm:$0xff]  }
 0x3ed   : > { %v4959_v46 = vmax.f32 %v14840_v48, 0.0  ;;  %v11074_v57 = vld [vmem:[%s16252_s5 + $0x4cc] ss:$16 sps:$4 sm:$0xff]   ;;  %v11075_v27 = vld [vmem:[%s16252_s5 + $0x4a0] ss:$16 sps:$4 sm:$0xff]  }
 0x3ee   : > { %v14856_v33 = vadd.f32 %v14532_v45, %v4916_v61  ;;  %5967 = vmatpush2.bf16.msra.mxu0 %v11027_v38  ;;  %v11041_v45 = vld [vmem:[%s16252_s5 + $0x164] ss:$16 sps:$4 sm:$0xff]   ;;  %v11080_v60 = vld [vmem:[%s16252_s5 + $0x4ac] ss:$16 sps:$4 sm:$0xff]   ;;  %v11078_v37 = vld [vmem:[%s16252_s5 + $0x4a8] ss:$16 sps:$4 sm:$0xff]  }
 0x3ef   : > { %6040 = vmatpush2.bf16.msra.mxu1 %v11030_v53  ;;  %v5093_v20 = vpack.c.bf16 %v4959_v46, %v4957_v2  ;;  %5968 = vmatprep.subr.bf16.mxu0 %v11035_v32  ;;  %v11059_v2 = vld [vmem:[%s16252_s5 + $0x104] ss:$16 sps:$4 sm:$0xff]   ;;  %v11086_v54 = vld [vmem:[%s16252_s5 + $0x48c] ss:$16 sps:$4 sm:$0xff]   ;;  %v11081_v63 = vld [vmem:[%s16252_s5 + $0x480] ss:$16 sps:$4 sm:$0xff]  }
 0x3f0   : > { %6041 = vmatprep.subr.bf16.mxu1 %v11038_v12  ;;  %v4960_v19 = vmax.f32 %v14856_v33, 0.0  ;;  %v11083_v30 = vld [vmem:[%s16252_s5 + $0x484] ss:$16 sps:$4 sm:$0xff]   ;;  %v11092_v25 = vld [vmem:[%s16252_s5 + $0x46c] ss:$16 sps:$4 sm:$0xff]  }
 0x3f1   : > { %v11089_v52 = vld [vmem:[%s16252_s5 + $0x464] ss:$16 sps:$4 sm:$0xff]   ;;  %v11087_v24 = vld [vmem:[%s16252_s5 + $0x460] ss:$16 sps:$4 sm:$0xff]   ;;  %v11090_v51 = vld [vmem:[%s16252_s5 + $0x468] ss:$16 sps:$4 sm:$0xff]  }
 0x3f2   : > { %v5094_v18 = vpack.c.bf16 %v4960_v19, %v4958_v1  ;;  %5969 = vmatpush2.bf16.msra.mxu0 %v11033_v36  ;;  %v11084_v1 = vld [vmem:[%s16252_s5 + $0x488] ss:$16 sps:$4 sm:$0xff]   ;;  %v11095_v42 = vld [vmem:[%s16252_s5 + $0x444] ss:$16 sps:$4 sm:$0xff]   ;;  %v11098_v44 = vld [vmem:[%s16252_s5 + $0x44c] ss:$16 sps:$4 sm:$0xff]  }
 0x3f3   : > { %6042 = vmatpush2.bf16.msra.mxu1 %v11036_v4  ;;  %5970 = vmatprep.subr.bf16.mxu0 %v11041_v45  ;;  %v11093_v17 = vld [vmem:[%s16252_s5 + $0x440] ss:$16 sps:$4 sm:$0xff]   ;;  %v11096_v59 = vld [vmem:[%s16252_s5 + $0x448] ss:$16 sps:$4 sm:$0xff]   ;;  %v11101_v38 = vld [vmem:[%s16252_s5 + $0x424] ss:$16 sps:$4 sm:$0xff]  }
 0x3f4   : > { %5542 = vmatprep.mubr.bf16.mxu0 %v5094_v18  ;;  %5615 = vmatprep.mubr.bf16.mxu1 %v5094_v18  ;;  %v11104_v53 = vld [vmem:[%s16252_s5 + $0x42c] ss:$16 sps:$4 sm:$0xff]   ;;  %v11099_v61 = vld [vmem:[%s16252_s5 + $0x420] ss:$16 sps:$4 sm:$0xff]   ;;  %v11102_v32 = vld [vmem:[%s16252_s5 + $0x428] ss:$16 sps:$4 sm:$0xff]  }
 0x3f5   : > { %6043 = vmatprep.subr.bf16.mxu1 %v11044_v41  ;;  %5543 = vmatmul.mubr.bf16.gmra.mxu0 %v5093_v20  ;;  %v11107_v12 = vld [vmem:[%s16252_s5 + $0x404] ss:$16 sps:$4 sm:$0xff]   ;;  %v11110_v36 = vld [vmem:[%s16252_s5 + $0x40c] ss:$16 sps:$4 sm:$0xff]   ;;  %v11105_v4 = vld [vmem:[%s16252_s5 + $0x400] ss:$16 sps:$4 sm:$0xff]  }
 0x3f6   : > { %5616 = vmatmul.mubr.bf16.gmra.mxu1 %v5093_v20  ;;  %5971 = vmatpush2.bf16.msra.mxu0 %v11039_v26  ;;  %v11108_v20 = vld [vmem:[%s16252_s5 + $0x408] ss:$16 sps:$4 sm:$0xff]   ;;  %v11113_v45 = vld [vmem:[%s16252_s5 + $0x5e4] ss:$16 sps:$4 sm:$0xff]   ;;  %v11111_v41 = vld [vmem:[%s16252_s5 + $0x5e0] ss:$16 sps:$4 sm:$0xff]  }
 0x3f7   : > { %6044 = vmatpush2.bf16.msra.mxu1 %v11042_v31  ;;  %5978 = vmatprep.mubr.bf16.mxu0 %v5000_v10  ;;  %v11114_v18 = vld [vmem:[%s16252_s5 + $0x5e8] ss:$16 sps:$4 sm:$0xff]   ;;  %v11119_v26 = vld [vmem:[%s16252_s5 + $0x5c4] ss:$16 sps:$4 sm:$0xff]   ;;  %v11122_v31 = vld [vmem:[%s16252_s5 + $0x5cc] ss:$16 sps:$4 sm:$0xff]  }
 0x3f8   : > { %6051 = vmatprep.mubr.bf16.mxu1 %v5000_v10  ;;  %5972 = vmatprep.subr.bf16.mxu0 %v11047_v14  ;;  %v11117_v14 = vld [vmem:[%s16252_s5 + $0x5c0] ss:$16 sps:$4 sm:$0xff]   ;;  %v11125_v10 = vld [vmem:[%s16252_s5 + $0x5a4] ss:$16 sps:$4 sm:$0xff]  }
 0x3f9   : > { %6045 = vmatprep.subr.bf16.mxu1 %v11050_v16  ;;  %v11120_v16 = vld [vmem:[%s16252_s5 + $0x5c8] ss:$16 sps:$4 sm:$0xff]   ;;  %v11167_v48 = vld [vmem:[%s16254_s7 + $0x2c4] ss:$16 sps:$4 sm:$0xff]   ;;  %v11165_v33 = vld [vmem:[%s16254_s7 + $0x2c0] ss:$16 sps:$4 sm:$0xff]  }
 0x3fa   : > { %5973 = vmatpush2.bf16.msra.mxu0 %v11045_v47  ;;  %v11128_v47 = vld [vmem:[%s16252_s5 + $0x5ac] ss:$16 sps:$4 sm:$0xff]  }
 0x3fb   : > { %6046 = vmatpush2.bf16.msra.mxu1 %v11048_v62  ;;  %5974 = vmatprep.subr.bf16.mxu0 %v11053_v39  ;;  %v11123_v62 = vld [vmem:[%s16252_s5 + $0x5a0] ss:$16 sps:$4 sm:$0xff]   ;;  %v11126_v39 = vld [vmem:[%s16252_s5 + $0x5a8] ss:$16 sps:$4 sm:$0xff]  }
 0x3fc   : > { %6047 = vmatprep.subr.bf16.mxu1 %v11056_v5  ;;  %v11131_v5 = vld [vmem:[%s16252_s5 + $0x584] ss:$16 sps:$4 sm:$0xff]  }
 0x3fe   : > { %5975 = vmatpush2.bf16.msra.mxu0 %v11051_v21  ;;  %v11134_v21 = vld [vmem:[%s16252_s5 + $0x58c] ss:$16 sps:$4 sm:$0xff]  }
 0x3ff   : > { %6048 = vmatpush2.bf16.msra.mxu1 %v11054_v11  ;;  %5976 = vmatprep.subr.bf16.mxu0 %v11059_v2  ;;  %v11129_v11 = vld [vmem:[%s16252_s5 + $0x580] ss:$16 sps:$4 sm:$0xff]   ;;  %v11132_v2 = vld [vmem:[%s16252_s5 + $0x588] ss:$16 sps:$4 sm:$0xff]  }
 0x400   : > { %6049 = vmatprep.subr.bf16.mxu1 %v11062_v23  ;;  %v11137_v23 = vld [vmem:[%s16252_s5 + $0x564] ss:$16 sps:$4 sm:$0xff]  }
 0x402   : > { %5977 = vmatpush2.bf16.msra.mxu0 %v11057_v6  ;;  %v11140_v6 = vld [vmem:[%s16252_s5 + $0x56c] ss:$16 sps:$4 sm:$0xff]  }
 0x403   : > { %6050 = vmatpush2.bf16.msra.mxu1 %v11060_v58  ;;  %6502 = vmatprep.subr.bf16.mxu0 %v11065_v0  ;;  %v11135_v58 = vld [vmem:[%s16252_s5 + $0x560] ss:$16 sps:$4 sm:$0xff]   ;;  %v11138_v0 = vld [vmem:[%s16252_s5 + $0x568] ss:$16 sps:$4 sm:$0xff]  }
 0x404   : > { %6575 = vmatprep.subr.bf16.mxu1 %v11068_v35  ;;  %v11143_v35 = vld [vmem:[%s16252_s5 + $0x544] ss:$16 sps:$4 sm:$0xff]  }
 0x405   : > { %5979 = vmatmul.mubr.bf16.vlgmr.msra.gmra.mxu0 %v4999_v8 }
 0x406   : > { %6052 = vmatmul.mubr.bf16.vlgmr.msra.gmra.mxu1 %v4999_v8  ;;  %5988 = vmatprep.mubr.bf16.mxu0 %v14643_v34  ;;  %v11146_v8 = vld [vmem:[%s16252_s5 + $0x54c] ss:$16 sps:$4 sm:$0xff]  }
 0x407   : > { %6061 = vmatprep.mubr.bf16.mxu1 %v14643_v34  ;;  %6503 = vmatpush1.bf16.msra.mxu0 %v11063_v55  ;;  %v11141_v55 = vld [vmem:[%s16252_s5 + $0x540] ss:$16 sps:$4 sm:$0xff]  }
 0x408   : > { %6576 = vmatpush1.bf16.msra.mxu1 %v11066_v29  ;;  %6504 = vmatprep.subr.bf16.mxu0 %v11071_v49  ;;  %v11144_v29 = vld [vmem:[%s16252_s5 + $0x548] ss:$16 sps:$4 sm:$0xff]   ;;  %v11149_v49 = vld [vmem:[%s16252_s5 + $0x524] ss:$16 sps:$4 sm:$0xff]  }
 0x409   : > { %6577 = vmatprep.subr.bf16.mxu1 %v11074_v57  ;;  %v11152_v57 = vld [vmem:[%s16252_s5 + $0x52c] ss:$16 sps:$4 sm:$0xff]  }
 0x40b   : > { %6505 = vmatpush1.bf16.msra.mxu0 %v11069_v9  ;;  %v11147_v9 = vld [vmem:[%s16252_s5 + $0x520] ss:$16 sps:$4 sm:$0xff]  }
 0x40c   : > { %6578 = vmatpush1.bf16.msra.mxu1 %v11072_v7  ;;  %6506 = vmatprep.subr.bf16.mxu0 %v11077_v22  ;;  %v11150_v7 = vld [vmem:[%s16252_s5 + $0x528] ss:$16 sps:$4 sm:$0xff]   ;;  %v11155_v22 = vld [vmem:[%s16252_s5 + $0x504] ss:$16 sps:$4 sm:$0xff]  }
 0x40d   : > { %6579 = vmatprep.subr.bf16.mxu1 %v11080_v60  ;;  %5989 = vmatmul.mubr.bf16.gmra.mxu0 %v14625_v56  ;;  %v11158_v60 = vld [vmem:[%s16252_s5 + $0x50c] ss:$16 sps:$4 sm:$0xff]  }
 0x40e   : > { %6062 = vmatmul.mubr.bf16.gmra.mxu1 %v14625_v56  ;;  %5998 = vmatprep.mubr.bf16.mxu0 %v14756_v28 }
 0x40f   : > { %6071 = vmatprep.mubr.bf16.mxu1 %v14756_v28  ;;  %6507 = vmatpush1.bf16.msra.mxu0 %v11075_v27  ;;  %v11153_v27 = vld [vmem:[%s16252_s5 + $0x500] ss:$16 sps:$4 sm:$0xff]  }
 0x410   : > { %6580 = vmatpush1.bf16.msra.mxu1 %v11078_v37  ;;  %6508 = vmatprep.subr.bf16.mxu0 %v11083_v30  ;;  %v11156_v37 = vld [vmem:[%s16252_s5 + $0x508] ss:$16 sps:$4 sm:$0xff]   ;;  %v6116_v30 = vpack.c.bf16 %v16845_v3, %v4960_v19 }
 0x411   : > { %6581 = vmatprep.subr.bf16.mxu1 %v11086_v54  ;;  %v11168_v19 = vld [vmem:[%s16254_s7 + $0x2c8] ss:$16 sps:$4 sm:$0xff]   ;;  %v11173_v54 = vld [vmem:[%s16254_s7 + $0x2a4] ss:$16 sps:$4 sm:$0xff]  }
 0x413   : > { %6509 = vmatpush1.bf16.msra.mxu0 %v11081_v63  ;;  %v11176_v63 = vld [vmem:[%s16254_s7 + $0x2ac] ss:$16 sps:$4 sm:$0xff]  }
 0x414   : > { %6582 = vmatpush1.bf16.msra.mxu1 %v11084_v1  ;;  %6510 = vmatprep.subr.bf16.mxu0 %v11089_v52  ;;  %v11171_v1 = vld [vmem:[%s16254_s7 + $0x2a0] ss:$16 sps:$4 sm:$0xff]   ;;  %v11174_v52 = vld [vmem:[%s16254_s7 + $0x2a8] ss:$16 sps:$4 sm:$0xff]  }
 0x415   : > { %6583 = vmatprep.subr.bf16.mxu1 %v11092_v25  ;;  %5999 = vmatmul.mubr.bf16.gmra.mxu0 %v14741_v15  ;;  %v11179_v25 = vld [vmem:[%s16254_s7 + $0x284] ss:$16 sps:$4 sm:$0xff]  }
 0x416   : > { %6072 = vmatmul.mubr.bf16.gmra.mxu1 %v14741_v15  ;;  %6008 = vmatprep.mubr.bf16.mxu0 %v14837_v43 }
 0x417   : > { %6081 = vmatprep.mubr.bf16.mxu1 %v14837_v43  ;;  %6511 = vmatpush1.bf16.msra.mxu0 %v11087_v24  ;;  %v11182_v24 = vld [vmem:[%s16254_s7 + $0x28c] ss:$16 sps:$4 sm:$0xff]  }
 0x418   : > { %6584 = vmatpush1.bf16.msra.mxu1 %v11090_v51  ;;  %6512 = vmatprep.subr.bf16.mxu0 %v11095_v42  ;;  %v11177_v51 = vld [vmem:[%s16254_s7 + $0x280] ss:$16 sps:$4 sm:$0xff]   ;;  %v11180_v42 = vld [vmem:[%s16254_s7 + $0x288] ss:$16 sps:$4 sm:$0xff]  }
 0x419   : > { %6585 = vmatprep.subr.bf16.mxu1 %v11098_v44  ;;  %v11185_v44 = vld [vmem:[%s16254_s7 + $0x264] ss:$16 sps:$4 sm:$0xff]  }
 0x41b   : > { %6513 = vmatpush1.bf16.msra.mxu0 %v11093_v17  ;;  %v11188_v17 = vld [vmem:[%s16254_s7 + $0x26c] ss:$16 sps:$4 sm:$0xff]  }
 0x41c   : > { %6586 = vmatpush1.bf16.msra.mxu1 %v11096_v59  ;;  %6514 = vmatprep.subr.bf16.mxu0 %v11101_v38  ;;  %v11183_v59 = vld [vmem:[%s16254_s7 + $0x260] ss:$16 sps:$4 sm:$0xff]   ;;  %v11186_v38 = vld [vmem:[%s16254_s7 + $0x268] ss:$16 sps:$4 sm:$0xff]  }
 0x41d   : > { %6587 = vmatprep.subr.bf16.mxu1 %v11104_v53  ;;  %6009 = vmatmul.mubr.bf16.gmra.mxu0 %v14835_v50  ;;  %v11191_v53 = vld [vmem:[%s16254_s7 + $0x244] ss:$16 sps:$4 sm:$0xff]  }
 0x41e   : > { %6082 = vmatmul.mubr.bf16.gmra.mxu1 %v14835_v50  ;;  %6534 = vmatprep.mubr.bf16.mxu0 %v14643_v34 }
 0x41f   : > { %6607 = vmatprep.mubr.bf16.mxu1 %v14643_v34  ;;  %6515 = vmatpush1.bf16.msra.mxu0 %v11099_v61  ;;  %v11116_v34 = vld [vmem:[%s16252_s5 + $0x5ec] ss:$16 sps:$4 sm:$0xff]  }
 0x420   : > { %6588 = vmatpush1.bf16.msra.mxu1 %v11102_v32  ;;  %6516 = vmatprep.subr.bf16.mxu0 %v11107_v12  ;;  %v11194_v61 = vld [vmem:[%s16254_s7 + $0x24c] ss:$16 sps:$4 sm:$0xff]   ;;  %v11189_v32 = vld [vmem:[%s16254_s7 + $0x240] ss:$16 sps:$4 sm:$0xff]   ;;  %v11192_v12 = vld [vmem:[%s16254_s7 + $0x248] ss:$16 sps:$4 sm:$0xff]  }
 0x421   : > { %6589 = vmatprep.subr.bf16.mxu1 %v11110_v36  ;;  %v11197_v36 = vld [vmem:[%s16254_s7 + $0x224] ss:$16 sps:$4 sm:$0xff]  }
 0x423   : > { %6517 = vmatpush1.bf16.msra.mxu0 %v11105_v4  ;;  %v11200_v4 = vld [vmem:[%s16254_s7 + $0x22c] ss:$16 sps:$4 sm:$0xff]  }
 0x424   : > { %6590 = vmatpush1.bf16.msra.mxu1 %v11108_v20  ;;  %6518 = vmatprep.subr.bf16.mxu0 %v11113_v45  ;;  %v11195_v20 = vld [vmem:[%s16254_s7 + $0x220] ss:$16 sps:$4 sm:$0xff]   ;;  %v11198_v45 = vld [vmem:[%s16254_s7 + $0x228] ss:$16 sps:$4 sm:$0xff]  }
 0x425   : > { %6591 = vmatprep.subr.bf16.mxu1 %v11116_v34  ;;  %v11203_v34 = vld [vmem:[%s16254_s7 + $0x204] ss:$16 sps:$4 sm:$0xff]  }
 0x427   : > { %6519 = vmatpush2.bf16.msra.mxu0 %v11111_v41  ;;  %v11206_v41 = vld [vmem:[%s16254_s7 + $0x20c] ss:$16 sps:$4 sm:$0xff]  }
 0x428   : > { %6592 = vmatpush2.bf16.msra.mxu1 %v11114_v18  ;;  %6520 = vmatprep.subr.bf16.mxu0 %v11119_v26  ;;  %v11201_v18 = vld [vmem:[%s16254_s7 + $0x200] ss:$16 sps:$4 sm:$0xff]   ;;  %v11204_v26 = vld [vmem:[%s16254_s7 + $0x208] ss:$16 sps:$4 sm:$0xff]  }
 0x429   : > { %6593 = vmatprep.subr.bf16.mxu1 %v11122_v31  ;;  %v11209_v31 = vld [vmem:[%s16254_s7 + $0x3e4] ss:$16 sps:$4 sm:$0xff]  }
 0x42b   : > { %6521 = vmatpush2.bf16.msra.mxu0 %v11117_v14  ;;  %v11212_v14 = vld [vmem:[%s16254_s7 + $0x3ec] ss:$16 sps:$4 sm:$0xff]  }
 0x42c   : > { %6594 = vmatpush2.bf16.msra.mxu1 %v11120_v16  ;;  %6522 = vmatprep.subr.bf16.mxu0 %v11125_v10  ;;  %v11207_v16 = vld [vmem:[%s16254_s7 + $0x3e0] ss:$16 sps:$4 sm:$0xff]   ;;  %v11210_v10 = vld [vmem:[%s16254_s7 + $0x3e8] ss:$16 sps:$4 sm:$0xff]  }
 0x42d   : > { %6595 = vmatprep.subr.bf16.mxu1 %v11128_v47  ;;  %v11215_v47 = vld [vmem:[%s16254_s7 + $0x3c4] ss:$16 sps:$4 sm:$0xff]  }
 0x42f   : > { %6523 = vmatpush2.bf16.msra.mxu0 %v11123_v62  ;;  %v11218_v62 = vld [vmem:[%s16254_s7 + $0x3cc] ss:$16 sps:$4 sm:$0xff]  }
 0x430   : > { %6596 = vmatpush2.bf16.msra.mxu1 %v11126_v39  ;;  %6524 = vmatprep.subr.bf16.mxu0 %v11131_v5  ;;  %v11213_v39 = vld [vmem:[%s16254_s7 + $0x3c0] ss:$16 sps:$4 sm:$0xff]   ;;  %v11216_v5 = vld [vmem:[%s16254_s7 + $0x3c8] ss:$16 sps:$4 sm:$0xff]  }
 0x431   : > { %6597 = vmatprep.subr.bf16.mxu1 %v11134_v21  ;;  %v11221_v21 = vld [vmem:[%s16254_s7 + $0x3a4] ss:$16 sps:$4 sm:$0xff]  }
 0x433   : > { %6525 = vmatpush2.bf16.msra.mxu0 %v11129_v11  ;;  %v11224_v11 = vld [vmem:[%s16254_s7 + $0x3ac] ss:$16 sps:$4 sm:$0xff]  }
 0x434   : > { %6598 = vmatpush2.bf16.msra.mxu1 %v11132_v2  ;;  %6526 = vmatprep.subr.bf16.mxu0 %v11137_v23  ;;  %v11219_v2 = vld [vmem:[%s16254_s7 + $0x3a0] ss:$16 sps:$4 sm:$0xff]   ;;  %v11222_v23 = vld [vmem:[%s16254_s7 + $0x3a8] ss:$16 sps:$4 sm:$0xff]  }
 0x435   : > { %6599 = vmatprep.subr.bf16.mxu1 %v11140_v6  ;;  %v11227_v6 = vld [vmem:[%s16254_s7 + $0x384] ss:$16 sps:$4 sm:$0xff]  }
 0x437   : > { %6527 = vmatpush2.bf16.msra.mxu0 %v11135_v58  ;;  %v11230_v58 = vld [vmem:[%s16254_s7 + $0x38c] ss:$16 sps:$4 sm:$0xff]  }
 0x438   : > { %6600 = vmatpush2.bf16.msra.mxu1 %v11138_v0  ;;  %6528 = vmatprep.subr.bf16.mxu0 %v11143_v35  ;;  %v11225_v0 = vld [vmem:[%s16254_s7 + $0x380] ss:$16 sps:$4 sm:$0xff]   ;;  %v11228_v35 = vld [vmem:[%s16254_s7 + $0x388] ss:$16 sps:$4 sm:$0xff]  }
 0x439   : > { %6601 = vmatprep.subr.bf16.mxu1 %v11146_v8 }
 0x43b   : > { %6529 = vmatpush2.bf16.msra.mxu0 %v11141_v55 }
 0x43c   : > { %6602 = vmatpush2.bf16.msra.mxu1 %v11144_v29  ;;  %6530 = vmatprep.subr.bf16.mxu0 %v11149_v49  ;;  %v11233_v29 = vld [vmem:[%s16254_s7 + $0x364] ss:$16 sps:$4 sm:$0xff]   ;;  %v11236_v49 = vld [vmem:[%s16254_s7 + $0x36c] ss:$16 sps:$4 sm:$0xff]  }
 0x43d   : > { %6603 = vmatprep.subr.bf16.mxu1 %v11152_v57  ;;  %v11231_v57 = vld [vmem:[%s16254_s7 + $0x360] ss:$16 sps:$4 sm:$0xff]  }
 0x43f   : > { %6531 = vmatpush2.bf16.msra.mxu0 %v11147_v9  ;;  %v11234_v9 = vld [vmem:[%s16254_s7 + $0x368] ss:$16 sps:$4 sm:$0xff]  }
 0x440   : > { %6604 = vmatpush2.bf16.msra.mxu1 %v11150_v7  ;;  %6532 = vmatprep.subr.bf16.mxu0 %v11155_v22 }
 0x441   : > { %6605 = vmatprep.subr.bf16.mxu1 %v11158_v60  ;;  %v11239_v60 = vld [vmem:[%s16254_s7 + $0x344] ss:$16 sps:$4 sm:$0xff]  }
 0x443   : > { %6533 = vmatpush2.bf16.msra.mxu0 %v11153_v27  ;;  %v11242_v27 = vld [vmem:[%s16254_s7 + $0x34c] ss:$16 sps:$4 sm:$0xff]  }
 0x444   : > { %6606 = vmatpush2.bf16.msra.mxu1 %v11156_v37  ;;  %v11237_v37 = vld [vmem:[%s16254_s7 + $0x340] ss:$16 sps:$4 sm:$0xff]  }
 0x446   : > { %6535 = vmatmul.mubr.bf16.vlgmr.msra.gmra.mxu0 %v14625_v56 }
 0x447   : > { %6608 = vmatmul.mubr.bf16.vlgmr.msra.gmra.mxu1 %v14625_v56  ;;  %6544 = vmatprep.mubr.bf16.mxu0 %v14756_v28  ;;  %v6115_v56 = vpack.c.bf16 %v16845_v3, %v4959_v46  ;;  %v11170_v46 = vld [vmem:[%s16254_s7 + $0x2cc] ss:$16 sps:$4 sm:$0xff]  }
 0x448   : > { %6617 = vmatprep.mubr.bf16.mxu1 %v14756_v28  ;;  %v11164_v28 = vld [vmem:[%s16254_s7 + $0x2ec] ss:$16 sps:$4 sm:$0xff]  }
 0x449   : > { %7272 = vmatprep.subr.bf16.mxu1 %v11164_v28  ;;  %v11245_v28 = vld [vmem:[%s16254_s7 + $0x324] ss:$16 sps:$4 sm:$0xff]  }
 0x44e   : > { %6545 = vmatmul.mubr.bf16.gmra.mxu0 %v14741_v15 }
 0x44f   : > { %6618 = vmatmul.mubr.bf16.gmra.mxu1 %v14741_v15  ;;  %6554 = vmatprep.mubr.bf16.mxu0 %v14837_v43  ;;  %v11161_v15 = vld [vmem:[%s16254_s7 + $0x2e4] ss:$16 sps:$4 sm:$0xff]  }
 0x450   : > { %6627 = vmatprep.mubr.bf16.mxu1 %v14837_v43  ;;  %v11162_v43 = vld [vmem:[%s16254_s7 + $0x2e8] ss:$16 sps:$4 sm:$0xff]   ;;  %7219 = vmatprep.subr.bf16.mxu0 %v11161_v15 }
 0x451   : > { %7273 = vmatpush1.bf16.msra.mxu1 %v11162_v43  ;;  %v11243_v43 = vld [vmem:[%s16254_s7 + $0x320] ss:$16 sps:$4 sm:$0xff]  }
 0x452   : > { %7274 = vmatprep.subr.bf16.mxu1 %v11170_v46 }
 0x455   : > { %7275 = vmatpush1.bf16.msra.mxu1 %v11168_v19  ;;  %v11251_v19 = vld [vmem:[%s16254_s7 + $0x304] ss:$16 sps:$4 sm:$0xff]  }
 0x456   : > { %6555 = vmatmul.mubr.bf16.gmra.mxu0 %v14835_v50  ;;  %7276 = vmatprep.subr.bf16.mxu1 %v11176_v63  ;;  %v11249_v63 = vld [vmem:[%s16254_s7 + $0x300] ss:$16 sps:$4 sm:$0xff]  }
 0x457   : > { %6628 = vmatmul.mubr.bf16.gmra.mxu1 %v14835_v50  ;;  %6564 = vmatprep.mubr.bf16.mxu0 %v6116_v30  ;;  %v11159_v50 = vld [vmem:[%s16254_s7 + $0x2e0] ss:$16 sps:$4 sm:$0xff]  }
 0x458   : > { %6637 = vmatprep.mubr.bf16.mxu1 %v6116_v30  ;;  %7220 = vmatpush1.bf16.msra.mxu0 %v11159_v50  ;;  %v11240_v30 = vld [vmem:[%s16254_s7 + $0x348] ss:$16 sps:$4 sm:$0xff]   ;;  %v11248_v50 = vld [vmem:[%s16254_s7 + $0x32c] ss:$16 sps:$4 sm:$0xff]  }
 0x459   : > { %7221 = vmatprep.subr.bf16.mxu0 %v11167_v48  ;;  %7277 = vmatpush1.bf16.msra.mxu1 %v11174_v52  ;;  %v11246_v48 = vld [vmem:[%s16254_s7 + $0x328] ss:$16 sps:$4 sm:$0xff]  }
 0x45a   : > { %7278 = vmatprep.subr.bf16.mxu1 %v11182_v24  ;;  %v11257_v24 = vld [vmem:[%s16254_s7 + $0xe4] ss:$16 sps:$4 sm:$0xff]  }
 0x45c   : > { %7222 = vmatpush1.bf16.msra.mxu0 %v11165_v33 }
 0x45d   : > { %7223 = vmatprep.subr.bf16.mxu0 %v11173_v54  ;;  %7279 = vmatpush1.bf16.msra.mxu1 %v11180_v42  ;;  %v11254_v54 = vld [vmem:[%s16254_s7 + $0x30c] ss:$16 sps:$4 sm:$0xff]  }
 0x45e   : > { %6565 = vmatmul.mubr.bf16.gmra.mxu0 %v6115_v56  ;;  %7280 = vmatprep.subr.bf16.mxu1 %v11188_v17 }
 0x45f   : > { %6638 = vmatmul.mubr.bf16.gmra.mxu1 %v6115_v56 }
 0x460   : > { %7224 = vmatpush1.bf16.msra.mxu0 %v11171_v1  ;;  %v11252_v1 = vld [vmem:[%s16254_s7 + $0x308] ss:$16 sps:$4 sm:$0xff]  }
 0x461   : > { %7225 = vmatprep.subr.bf16.mxu0 %v11179_v25  ;;  %7281 = vmatpush1.bf16.msra.mxu1 %v11186_v38 }
 0x462   : > { %7282 = vmatprep.subr.bf16.mxu1 %v11194_v61 }
 0x464   : > { %7226 = vmatpush1.bf16.msra.mxu0 %v11177_v51  ;;  %v11260_v51 = vld [vmem:[%s16254_s7 + $0xec] ss:$16 sps:$4 sm:$0xff]  }
 0x465   : > { %7227 = vmatprep.subr.bf16.mxu0 %v11185_v44  ;;  %7283 = vmatpush1.bf16.msra.mxu1 %v11192_v12 }
 0x466   : > { %7284 = vmatprep.subr.bf16.mxu1 %v11200_v4 }
 0x468   : > { %7228 = vmatpush1.bf16.msra.mxu0 %v11183_v59 }
 0x469   : > { %7229 = vmatprep.subr.bf16.mxu0 %v11191_v53  ;;  %7285 = vmatpush1.bf16.msra.mxu1 %v11198_v45 }
 0x46a   : > { %7286 = vmatprep.subr.bf16.mxu1 %v11206_v41 }
 0x46c   : > { %7230 = vmatpush1.bf16.msra.mxu0 %v11189_v32 }
 0x46d   : > { %7231 = vmatprep.subr.bf16.mxu0 %v11197_v36  ;;  %7287 = vmatpush1.bf16.msra.mxu1 %v11204_v26 }
 0x46e   : > { %7288 = vmatprep.subr.bf16.mxu1 %v11212_v14 }
 0x470   : > { %7232 = vmatpush1.bf16.msra.mxu0 %v11195_v20 }
 0x471   : > { %7233 = vmatprep.subr.bf16.mxu0 %v11203_v34  ;;  %7289 = vmatpush2.bf16.msra.mxu1 %v11210_v10 }
 0x472   : > { %7290 = vmatprep.subr.bf16.mxu1 %v11218_v62 }
 0x474   : > { %7234 = vmatpush1.bf16.msra.mxu0 %v11201_v18 }
 0x475   : > { %7235 = vmatprep.subr.bf16.mxu0 %v11209_v31  ;;  %7291 = vmatpush2.bf16.msra.mxu1 %v11216_v5 }
 0x476   : > { %7292 = vmatprep.subr.bf16.mxu1 %v11224_v11 }
 0x478   : > { %7236 = vmatpush2.bf16.msra.mxu0 %v11207_v16 }
 0x479   : > { %7237 = vmatprep.subr.bf16.mxu0 %v11215_v47  ;;  %7293 = vmatpush2.bf16.msra.mxu1 %v11222_v23 }
 0x47a   : > { %7294 = vmatprep.subr.bf16.mxu1 %v11230_v58 }
 0x47c   : > { %7238 = vmatpush2.bf16.msra.mxu0 %v11213_v39 }
 0x47d   : > { %7239 = vmatprep.subr.bf16.mxu0 %v11221_v21  ;;  %7295 = vmatpush2.bf16.msra.mxu1 %v11228_v35 }
 0x47e   : > { %7296 = vmatprep.subr.bf16.mxu1 %v11236_v49 }
 0x480   : > { %7240 = vmatpush2.bf16.msra.mxu0 %v11219_v2 }
 0x481   : > { %7241 = vmatprep.subr.bf16.mxu0 %v11227_v6  ;;  %7297 = vmatpush2.bf16.msra.mxu1 %v11234_v9 }
 0x482   : > { %7298 = vmatprep.subr.bf16.mxu1 %v11242_v27 }
 0x484   : > { %7242 = vmatpush2.bf16.msra.mxu0 %v11225_v0 }
 0x485   : > { %v15289_v8 = vpop.f32.mrf.mxu0  ;;  %v15291_v55 = vpop.f32.mrf.mxu1  ;;  %7243 = vmatprep.subr.bf16.mxu0 %v11233_v29  ;;  %7299 = vmatpush2.bf16.msra.mxu1 %v11240_v30 }
 0x486   : > { %7300 = vmatprep.subr.bf16.mxu1 %v11248_v50 }
 0x487   : > { %v15305_v7 = vpop.f32.mrf.mxu0  ;;  %v15307_v22 = vpop.f32.mrf.mxu1 }
 0x488   : > { %7244 = vmatpush2.bf16.msra.mxu0 %v11231_v57 }
 0x489   : > { %7245 = vmatprep.subr.bf16.mxu0 %v11239_v60  ;;  %v15321_v56 = vpop.f32.mrf.mxu0  ;;  %v15323_v15 = vpop.f32.mrf.mxu1  ;;  %7301 = vmatpush2.bf16.msra.mxu1 %v11246_v48 }
 0x48a   : > { %7302 = vmatprep.subr.bf16.mxu1 %v11254_v54 }
 0x48b   : > { %v15337_v46 = vpop.f32.mrf.mxu0  ;;  %v15339_v33 = vpop.f32.mrf.mxu1 }
 0x48c   : > { %7246 = vmatpush2.bf16.msra.mxu0 %v11237_v37 }
 0x48d   : > { %7247 = vmatprep.subr.bf16.mxu0 %v11245_v28  ;;  %7303 = vmatpush2.bf16.msra.mxu1 %v11252_v1 }
 0x48e   : > { %7698 = vmatprep.subr.bf16.mxu1 %v11260_v51 }
 0x490   : > { %7248 = vmatpush2.bf16.msra.mxu0 %v11243_v43 }
 0x491   : > { %7249 = vmatprep.subr.bf16.mxu0 %v11251_v19 }
 0x494   : > { %7250 = vmatpush2.bf16.msra.mxu0 %v11249_v63 }
 0x495   : > { %v15353_v52 = vpop.f32.mrf.mxu0  ;;  %7645 = vmatprep.subr.bf16.mxu0 %v11257_v24 }
 0x496   : > { %v15355_v25 = vpop.f32.mrf.mxu1 }
 0x497   : > { %v15363_v42 = vpop.f32.mrf.mxu0 }
 0x498   : > { %v15365_v44 = vpop.f32.mrf.mxu1 }
 0x499   : > { %v15367_v17 = vpop.f32.mrf.mxu0 }
 0x49a   : > { %v15369_v59 = vpop.f32.mrf.mxu1 }
 0x49b   : > { %v15371_v38 = vpop.f32.mrf.mxu0 }
 0x49c   : > { %v15373_v53 = vpop.f32.mrf.mxu1 }
 0x4a5   : > { %v15375_v61 = vpop.f32.mrf.mxu0 }
 0x4a6   : > { %v15377_v32 = vpop.f32.mrf.mxu1 }
 0x4a7   : > { %v15379_v12 = vpop.f32.mrf.mxu0 }
 0x4a8   : > { %v15381_v36 = vpop.f32.mrf.mxu1 }
 0x4a9   : > { %v15383_v4 = vpop.f32.mrf.mxu0 }
 0x4aa   : > { %v15385_v20 = vpop.f32.mrf.mxu1 }
 0x4ab   : > { %v15387_v45 = vpop.f32.mrf.mxu0 }
 0x4ac   : > { %v15389_v34 = vpop.f32.mrf.mxu1 }
 0x4ad   : > { %16846 = vst [vmem:[#allocation153_spill] sm:$0xff] %v15389_v34 }
 0x4b5   : > { %v15391_v41 = vpop.f32.mrf.mxu0 }
 0x4b6   : > { %16847 = vst [vmem:[#allocation49_spill] sm:$0xff] %v15391_v41  ;;  %v15393_v18 = vpop.f32.mrf.mxu1 }
 0x4b7   : > { %16848 = vst [vmem:[#allocation154_spill] sm:$0xff] %v15393_v18  ;;  %v15395_v26 = vpop.f32.mrf.mxu0 }
 0x4b8   : > { %16849 = vst [vmem:[#allocation50_spill] sm:$0xff] %v15395_v26  ;;  %v15397_v31 = vpop.f32.mrf.mxu1 }
 0x4b9   : > { %16850 = vst [vmem:[#allocation155_spill] sm:$0xff] %v15397_v31  ;;  %v15399_v14 = vpop.f32.mrf.mxu0 }
 0x4ba   : > { %16851 = vst [vmem:[#allocation51_spill] sm:$0xff] %v15399_v14  ;;  %v15401_v16 = vpop.f32.mrf.mxu1 }
 0x4bb   : > { %16852 = vst [vmem:[#allocation156_spill] sm:$0xff] %v15401_v16  ;;  %v15403_v10 = vpop.f32.mrf.mxu0 }
 0x4bc   : > { %16853 = vst [vmem:[#allocation52_spill] sm:$0xff] %v15403_v10  ;;  %v15405_v47 = vpop.f32.mrf.mxu1 }
 0x4bd   : > { %16854 = vst [vmem:[#allocation157_spill] sm:$0xff] %v15405_v47 }
 0x4c5   : > { %v5980_v62 = vpop.f32.mrf.mxu0 }
 0x4c6   : > { %v6053_v39 = vpop.f32.mrf.mxu1  ;;  %v5981_v18 = vadd.f32 %v5980_v62, %v15289_v8 }
 0x4c7   : > { %v5982_v5 = vpop.f32.mrf.mxu0 }
 0x4c8   : > { %v6055_v21 = vpop.f32.mrf.mxu1 }
 0x4c9   : > { %v5984_v11 = vpop.f32.mrf.mxu0 }
 0x4ca   : > { %v6057_v2 = vpop.f32.mrf.mxu1 }
 0x4cb   : > { %v5986_v23 = vpop.f32.mrf.mxu0 }
 0x4cc   : > { %v6059_v6 = vpop.f32.mrf.mxu1 }
 0x4cd   : > { %v5990_v58 = vpop.f32.mrf.mxu0 }
 0x4ce   : > { %v6063_v0 = vpop.f32.mrf.mxu1 }
 0x4cf   : > { %v5992_v35 = vpop.f32.mrf.mxu0 }
 0x4d0   : > { %v15407_v29 = vpop.f32.mrf.mxu1 }
 0x4d1   : > { %v5994_v49 = vpop.f32.mrf.mxu0 }
 0x4d2   : > { %v6067_v57 = vpop.f32.mrf.mxu1 }
 0x4d3   : > { %v5996_v9 = vpop.f32.mrf.mxu0 }
 0x4d4   : > { %v15409_v60 = vpop.f32.mrf.mxu1 }
 0x4d5   : > { %v15411_v27 = vpop.f32.mrf.mxu0 }
 0x4d6   : > { %v15413_v37 = vpop.f32.mrf.mxu1 }
 0x4d7   : > { %v15415_v30 = vpop.f32.mrf.mxu0 }
 0x4d8   : > { %v15417_v28 = vpop.f32.mrf.mxu1 }
 0x4d9   : > { %16855 = vst [vmem:[#allocation53_spill] sm:$0xff] %v15417_v28  ;;  %v15419_v50 = vpop.f32.mrf.mxu0 }
 0x4da   : > { %v15421_v43 = vpop.f32.mrf.mxu1 }
 0x4db   : > { %v15423_v48 = vpop.f32.mrf.mxu0 }
 0x4dc   : > { %v15425_v19 = vpop.f32.mrf.mxu1 }
 0x4dd   : > { %16856 = vst [vmem:[#allocation158_spill] sm:$0xff] %v15425_v19  ;;  %v15427_v54 = vpop.f32.mrf.mxu0 }
 0x4de   : > { %16857 = vst [vmem:[#allocation54_spill] sm:$0xff] %v15427_v54  ;;  %v15429_v63 = vpop.f32.mrf.mxu1 }
 0x4df   : > { %16858 = vst [vmem:[#allocation159_spill] sm:$0xff] %v15429_v63  ;;  %v15431_v1 = vpop.f32.mrf.mxu0  ;;  %v6054_v63 = vadd.f32 %v6053_v39, %v15291_v55 }
 0x4e0   : > { %16859 = vst [vmem:[#allocation55_spill] sm:$0xff] %v15431_v1  ;;  %v15433_v24 = vpop.f32.mrf.mxu1  ;;  %v5985_v1 = vadd.f32 %v5984_v11, %v15321_v56 }
 0x4e1   : > { %16860 = vst [vmem:[#allocation160_spill] sm:$0xff] %v15433_v24  ;;  %v15435_v51 = vpop.f32.mrf.mxu0  ;;  %v6058_v24 = vadd.f32 %v6057_v2, %v15323_v15 }
 0x4e2   : > { %16861 = vst [vmem:[#allocation56_spill] sm:$0xff] %v15435_v51  ;;  %v15437_v3 = vpop.f32.mrf.mxu1  ;;  %v5983_v51 = vadd.f32 %v5982_v5, %v15305_v7 }
 0x4e3   : > { %16862 = vst [vmem:[#allocation161_spill] sm:$0xff] %v15437_v3  ;;  %v15439_v47 = vpop.f32.mrf.mxu0  ;;  %v6056_v3 = vadd.f32 %v6055_v21, %v15307_v22 }
 0x4e4   : > { %16863 = vst [vmem:[#allocation57_spill] sm:$0xff] %v15439_v47  ;;  %v15441_v10 = vpop.f32.mrf.mxu1  ;;  %v5987_v47 = vadd.f32 %v5986_v23, %v15337_v46  ;;  %v6704_v46 = vld [vmem:[%s16253_s6] sm:$0x3] }
 0x4e5   : > { %16864 = vst [vmem:[#allocation162_spill] sm:$0xff] %v15441_v10  ;;  %v6060_v10 = vadd.f32 %v6059_v6, %v15339_v33  ;;  %v15461_v23 = vrot.slane %v6704_v46, %v13114_v13 }
 0x506   : > { %v6536_v16 = vpop.f32.mrf.mxu0 }
 0x507   : > { %v6609_v14 = vpop.f32.mrf.mxu1  ;;  %v6648_v19 = vadd.f32 %v6536_v16, %v5981_v18 }
 0x508   : > { %v6538_v31 = vpop.f32.mrf.mxu0  ;;  %v6650_v34 = vadd.f32 %v6609_v14, %v6054_v63  ;;  %v5991_v14 = vadd.f32 %v5990_v58, %v15353_v52 }
 0x509   : > { %v6611_v26 = vpop.f32.mrf.mxu1  ;;  %v6649_v62 = vadd.f32 %v6538_v31, %v5983_v51  ;;  %v15471_v51 = vrot.slane %v6704_v46, %v13134_v40 }
 0x50a   : > { %v6540_v54 = vpop.f32.mrf.mxu0  ;;  %v6651_v55 = vadd.f32 %v6611_v26, %v6056_v3  ;;  %v6064_v3 = vadd.f32 %v6063_v0, %v15355_v25  ;;  %v5995_v26 = vadd.f32 %v5994_v49, %v15367_v17  ;;  %v6066_v25 = vadd.f32 %v15407_v29, %v15365_v44 }
 0x50b   : > { %v6613_v41 = vpop.f32.mrf.mxu1  ;;  %v6652_v28 = vadd.f32 %v6540_v54, %v5985_v1  ;;  %v6070_v17 = vadd.f32 %v15409_v60, %v15373_v53  ;;  %v6001_v53 = vadd.f32 %v15411_v27, %v15375_v61  ;;  %v6074_v60 = vadd.f32 %v15413_v37, %v15377_v32 }
 0x50c   : > { %v6654_v8 = vadd.f32 %v6613_v41, %v6058_v24  ;;  %v6542_v39 = vpop.f32.mrf.mxu0 }
 0x50d   : > { %v6615_v56 = vpop.f32.mrf.mxu1  ;;  %v6680_v11 = vmax.f32 %v6648_v19, %v6652_v28  ;;  %v6653_v2 = vadd.f32 %v6542_v39, %v5987_v47  ;;  %v5997_v47 = vadd.f32 %v5996_v9, %v15371_v38 }
 0x50e   : > { %v6682_v15 = vmax.f32 %v6650_v34, %v6654_v8  ;;  %v6655_v7 = vadd.f32 %v6615_v56, %v6060_v10  ;;  %v6546_v5 = vpop.f32.mrf.mxu0  ;;  %v6068_v34 = vadd.f32 %v6067_v57, %v15369_v59  ;;  %v5993_v10 = vadd.f32 %v5992_v35, %v15363_v42 }
 0x50f   : > { %v6619_v22 = vpop.f32.mrf.mxu1  ;;  %v6681_v33 = vmax.f32 %v6649_v62, %v6653_v2  ;;  %v6656_v19 = vadd.f32 %v6546_v5, %v5991_v14  ;;  %v6003_v8 = vadd.f32 %v15415_v30, %v15379_v12  ;;  %v6005_v56 = vadd.f32 %v15419_v50, %v15383_v4  ;;  %v16867_v5 = vld [vmem:[#allocation158_spill] sm:$0xff] }
 0x510   : > { %v6696_v21 = vmax.f32 %v6680_v11, %v6682_v15  ;;  %v6683_v18 = vmax.f32 %v6651_v55, %v6655_v7  ;;  %v6548_v41 = vpop.f32.mrf.mxu0  ;;  %v6658_v52 = vadd.f32 %v6619_v22, %v6064_v3  ;;  %v6078_v11 = vadd.f32 %v15421_v43, %v15385_v20  ;;  %v16865_v43 = vld [vmem:[#allocation53_spill] sm:$0xff] }
 0x511   : > { %v6621_v31 = vpop.f32.mrf.mxu1  ;;  %v6657_v42 = vadd.f32 %v6548_v41, %v5993_v10  ;;  %v6007_v15 = vadd.f32 %v15423_v48, %v15387_v45  ;;  %v6076_v45 = vadd.f32 %v16865_v43, %v15381_v36  ;;  %v16866_v48 = vld [vmem:[#allocation153_spill] sm:$0xff] }
 0x512   : > { %v6697_v16 = vmax.f32 %v6681_v33, %v6683_v18  ;;  %v6550_v6 = vpop.f32.mrf.mxu0  ;;  %v15468_v57 = vadd.f32 %v15461_v23, %v6696_v21  ;;  %v6659_v9 = vadd.f32 %v6621_v31, %v6066_v25  ;;  %v6080_v22 = vadd.f32 %v16867_v5, %v16866_v48  ;;  %v11266_v48 = vld [vmem:[%s16254_s7 + $0xcc] ss:$16 sps:$4 sm:$0xff]  }
 0x513   : > { %v6623_v28 = vpop.f32.mrf.mxu1  ;;  %v6660_v58 = vadd.f32 %v6550_v6, %v5995_v26  ;;  %v16868_v6 = vld [vmem:[#allocation49_spill] sm:$0xff] }
 0x514   : > { %v6662_v54 = vadd.f32 %v6623_v28, %v6068_v34  ;;  %v6552_v59 = vpop.f32.mrf.mxu0  ;;  %v6724_v32 = vmax.f32 %v15468_v57, 0.0  ;;  %v15490_v2 = vadd.f32 %v15471_v51, %v6697_v16  ;;  %v16869_v28 = vld [vmem:[#allocation54_spill] sm:$0xff]  ;;  %v11357_v57 = vld [vmem:[%s16254_s7 + $0x4c0] ss:$16 sps:$4 sm:$0xff]  }
 0x515   : > { %v6625_v0 = vpop.f32.mrf.mxu1  ;;  %v6684_v35 = vmax.f32 %v6656_v19, %v6660_v58  ;;  %v6661_v49 = vadd.f32 %v6552_v59, %v5997_v47  ;;  %v6011_v19 = vadd.f32 %v16869_v28, %v16868_v6  ;;  %v16871_v58 = vld [vmem:[#allocation159_spill] sm:$0xff]  ;;  %v16872_v59 = vld [vmem:[#allocation50_spill] sm:$0xff] }
 0x516   : > { %v6686_v38 = vmax.f32 %v6658_v52, %v6662_v54  ;;  %v6663_v63 = vadd.f32 %v6625_v0, %v6070_v17  ;;  %v6556_v1 = vpop.f32.mrf.mxu0  ;;  %v6725_v10 = vmax.f32 %v15490_v2, 0.0  ;;  %v16870_v52 = vld [vmem:[#allocation154_spill] sm:$0xff]  ;;  %v16873_v0 = vld [vmem:[#allocation55_spill] sm:$0xff] }
 0x517   : > { %v6629_v24 = vpop.f32.mrf.mxu1  ;;  %v6685_v29 = vmax.f32 %v6657_v42, %v6661_v49  ;;  %v6664_v37 = vadd.f32 %v6556_v1, %v6001_v53  ;;  %v6084_v54 = vadd.f32 %v16871_v58, %v16870_v52  ;;  %v6013_v42 = vadd.f32 %v16873_v0, %v16872_v59  ;;  %v16876_v53 = vld [vmem:[#allocation51_spill] sm:$0xff]  ;;  %v11270_v0 = vld [vmem:[%s16254_s7 + $0xa8] ss:$16 sps:$4 sm:$0xff]   ;;  %v11296_v2 = vld [vmem:[%s16254_s7 + $0x2c] ss:$16 sps:$4 sm:$0xff]  }
 0x518   : > { %v6698_v44 = vmax.f32 %v6684_v35, %v6686_v38  ;;  %v6687_v62 = vmax.f32 %v6659_v9, %v6663_v63  ;;  %v6558_v55 = vpop.f32.mrf.mxu0  ;;  %v6666_v50 = vadd.f32 %v6629_v24, %v6074_v60  ;;  %v16874_v35 = vld [vmem:[#allocation155_spill] sm:$0xff]  ;;  %v16875_v38 = vld [vmem:[#allocation160_spill] sm:$0xff] }
 0x519   : > { %v6631_v39 = vpop.f32.mrf.mxu1  ;;  %v6665_v21 = vadd.f32 %v6558_v55, %v6003_v8  ;;  %v6086_v49 = vadd.f32 %v16875_v38, %v16874_v35  ;;  %v16877_v60 = vld [vmem:[#allocation56_spill] sm:$0xff]  ;;  %v16879_v55 = vld [vmem:[#allocation161_spill] sm:$0xff] }
 0x51a   : > { %v15486_v61 = vadd.f32 %v15461_v23, %v6698_v44  ;;  %v6699_v27 = vmax.f32 %v6685_v29, %v6687_v62  ;;  %v6560_v12 = vpop.f32.mrf.mxu0  ;;  %v6667_v26 = vadd.f32 %v6631_v39, %v6076_v45  ;;  %v11255_v44 = vld [vmem:[%s16254_s7 + $0xe0] ss:$16 sps:$4 sm:$0xff]   ;;  %v11258_v29 = vld [vmem:[%s16254_s7 + $0xe8] ss:$16 sps:$4 sm:$0xff]   ;;  %v6015_v8 = vadd.f32 %v16877_v60, %v16876_v53  ;;  %v11269_v28 = vld [vmem:[%s16254_s7 + $0xa4] ss:$16 sps:$4 sm:$0xff]  }
 0x51b   : > { %v6633_v30 = vpop.f32.mrf.mxu1  ;;  %v6668_v7 = vadd.f32 %v6560_v12, %v6005_v56  ;;  %v16878_v62 = vld [vmem:[#allocation156_spill] sm:$0xff]  ;;  %v16882_v12 = vld [vmem:[#allocation157_spill] sm:$0xff] }
 0x51c   : > { %v6726_v4 = vmax.f32 %v15486_v61, 0.0  ;;  %v6670_v20 = vadd.f32 %v6633_v30, %v6078_v11  ;;  %v6562_v46 = vpop.f32.mrf.mxu0  ;;  %v15498_v18 = vadd.f32 %v15471_v51, %v6699_v27  ;;  %v6088_v39 = vadd.f32 %v16879_v55, %v16878_v62  ;;  %v16880_v56 = vld [vmem:[#allocation52_spill] sm:$0xff]  ;;  %v16881_v11 = vld [vmem:[#allocation57_spill] sm:$0xff]  ;;  %v16883_v30 = vld [vmem:[#allocation162_spill] sm:$0xff] }
 0x51d   : > { %v6635_v33 = vpop.f32.mrf.mxu1  ;;  %v6688_v41 = vmax.f32 %v6664_v37, %v6668_v7  ;;  %v6669_v3 = vadd.f32 %v6562_v46, %v6007_v15  ;;  %v6017_v15 = vadd.f32 %v16881_v11, %v16880_v56  ;;  %v11263_v37 = vld [vmem:[%s16254_s7 + $0xc4] ss:$16 sps:$4 sm:$0xff]   ;;  %v11267_v59 = vld [vmem:[%s16254_s7 + $0xa0] ss:$16 sps:$4 sm:$0xff]   ;;  %v11278_v38 = vld [vmem:[%s16254_s7 + $0x8c] ss:$16 sps:$4 sm:$0xff]  }
 0x51e   : > { %v6830_v14 = vpack.c.bf16 %v6726_v4, %v6724_v32  ;;  %v6690_v31 = vmax.f32 %v6666_v50, %v6670_v20  ;;  %v6671_v34 = vadd.f32 %v6635_v33, %v6080_v22  ;;  %v6566_v36 = vpop.f32.mrf.mxu0  ;;  %v6727_v47 = vmax.f32 %v15498_v18, 0.0  ;;  %v11282_v53 = vld [vmem:[%s16254_s7 + $0x68] ss:$16 sps:$4 sm:$0xff]   ;;  %v11287_v60 = vld [vmem:[%s16254_s7 + $0x44] ss:$16 sps:$4 sm:$0xff]  }
 0x51f   : > { %v6639_v16 = vpop.f32.mrf.mxu1  ;;  %v6689_v17 = vmax.f32 %v6665_v21, %v6669_v3  ;;  %v6090_v50 = vadd.f32 %v16883_v30, %v16882_v12  ;;  %v6672_v20 = vadd.f32 %v6566_v36, %v6011_v19  ;;  %v11261_v3 = vld [vmem:[%s16254_s7 + $0xc0] ss:$16 sps:$4 sm:$0xff]   ;;  %v11272_v19 = vld [vmem:[%s16254_s7 + $0xac] ss:$16 sps:$4 sm:$0xff]   ;;  %v16884_v62 = vmov 0.0  }
 0x520   : > { %v6700_v25 = vmax.f32 %v6688_v41, %v6690_v31  ;;  %v6691_v9 = vmax.f32 %v6667_v26, %v6671_v34  ;;  %v6568_v63 = vpop.f32.mrf.mxu0  ;;  %v6831_v24 = vpack.c.bf16 %v6727_v47, %v6725_v10  ;;  %v6674_v22 = vadd.f32 %v6639_v16, %v6084_v54  ;;  %v11264_v26 = vld [vmem:[%s16254_s7 + $0xc8] ss:$16 sps:$4 sm:$0xff]   ;;  %v11293_v11 = vld [vmem:[%s16254_s7 + $0x24] ss:$16 sps:$4 sm:$0xff]   ;;  %v11297_v12 = vld [vmem:[%s16254_s7] ss:$16 sps:$4 sm:$0xff]  }
 0x521   : > { %v6641_v1 = vpop.f32.mrf.mxu1  ;;  %v6673_v33 = vadd.f32 %v6568_v63, %v6013_v42  ;;  %v6755_v55 = vpack.c.bf16 %v6725_v10, %v16884_v62  ;;  %v11288_v56 = vld [vmem:[%s16254_s7 + $0x48] ss:$16 sps:$4 sm:$0xff]   ;;  %v11291_v10 = vld [vmem:[%s16254_s7 + $0x20] ss:$16 sps:$4 sm:$0xff]  }
 0x522   : > { %v6720_v27 = vadd.f32 %v15461_v23, %v6700_v25  ;;  %v6701_v7 = vmax.f32 %v6689_v17, %v6691_v9  ;;  %7251 = vmatprep.mubr.bf16.mxu0 %v6831_v24  ;;  %7304 = vmatprep.mubr.bf16.mxu1 %v6831_v24  ;;  %v6570_v43 = vpop.f32.mrf.mxu0  ;;  %v6675_v18 = vadd.f32 %v6641_v1, %v6086_v49  ;;  %v11284_v24 = vld [vmem:[%s16254_s7 + $0x6c] ss:$16 sps:$4 sm:$0xff]   ;;  %v11300_v30 = vld [vmem:[%s16254_s7 + $0x8] ss:$16 sps:$4 sm:$0xff]  }
 0x523   : > { %v6643_v45 = vpop.f32.mrf.mxu1  ;;  %v6676_v21 = vadd.f32 %v6570_v43, %v6015_v8  ;;  %7252 = vmatmul.mubr.bf16.vlgmr.msra.gmra.mxu0 %v6830_v14  ;;  %7305 = vmatmul.mubr.bf16.vlgmr.msra.gmra.mxu1 %v6830_v14  ;;  %v11290_v8 = vld [vmem:[%s16254_s7 + $0x4c] ss:$16 sps:$4 sm:$0xff]   ;;  %v11306_v43 = vld [vmem:[%s16254_s7 + $0x1e8] ss:$16 sps:$4 sm:$0xff]  }
 0x524   : > { %v6728_v5 = vmax.f32 %v6720_v27, 0.0  ;;  %v6678_v46 = vadd.f32 %v6643_v45, %v6088_v39  ;;  %7646 = vmatpush1.bf16.msra.mxu0 %v11255_v44  ;;  %7699 = vmatpush1.bf16.msra.mxu1 %v11258_v29  ;;  %v6572_v41 = vpop.f32.mrf.mxu0  ;;  %v6721_v34 = vadd.f32 %v15471_v51, %v6701_v7  ;;  %v11279_v29 = vld [vmem:[%s16254_s7 + $0x60] ss:$16 sps:$4 sm:$0xff]   ;;  %v11299_v27 = vld [vmem:[%s16254_s7 + $0x4] ss:$16 sps:$4 sm:$0xff]  }
 0x525   : > { %v6645_v31 = vpop.f32.mrf.mxu1  ;;  %v6692_v36 = vmax.f32 %v6672_v20, %v6676_v21  ;;  %v6677_v6 = vadd.f32 %v6572_v41, %v6017_v15  ;;  %7647 = vmatprep.subr.bf16.mxu0 %v11263_v37  ;;  %7700 = vmatprep.subr.bf16.mxu1 %v11266_v48  ;;  %v11285_v39 = vld [vmem:[%s16254_s7 + $0x40] ss:$16 sps:$4 sm:$0xff]   ;;  %v11294_v15 = vld [vmem:[%s16254_s7 + $0x28] ss:$16 sps:$4 sm:$0xff]   ;;  %v11302_v37 = vld [vmem:[%s16254_s7 + $0xc] ss:$16 sps:$4 sm:$0xff]  }
 0x526   : > { %v6694_v16 = vmax.f32 %v6674_v22, %v6678_v46  ;;  %v6679_v14 = vadd.f32 %v6645_v31, %v6090_v50  ;;  %v6729_v52 = vmax.f32 %v6721_v34, 0.0  ;;  %v15552_v58 = vpack.c.bf16 %v6728_v5, %v6726_v4  ;;  %v11275_v4 = vld [vmem:[%s16254_s7 + $0x84] ss:$16 sps:$4 sm:$0xff]   ;;  %v11308_v7 = vld [vmem:[%s16254_s7 + $0x1ec] ss:$16 sps:$4 sm:$0xff]  }
 0x527   : > { %v6693_v25 = vmax.f32 %v6673_v33, %v6677_v6  ;;  %v11305_v50 = vld [vmem:[%s16254_s7 + $0x1e4] ss:$16 sps:$4 sm:$0xff]   ;;  %v11303_v20 = vld [vmem:[%s16254_s7 + $0x1e0] ss:$16 sps:$4 sm:$0xff]   ;;  %v11314_v48 = vld [vmem:[%s16254_s7 + $0x1cc] ss:$16 sps:$4 sm:$0xff]  }
 0x528   : > { %v6702_v54 = vmax.f32 %v6692_v36, %v6694_v16  ;;  %v6695_v17 = vmax.f32 %v6675_v18, %v6679_v14  ;;  %7648 = vmatpush1.bf16.msra.mxu0 %v11261_v3  ;;  %7701 = vmatpush1.bf16.msra.mxu1 %v11264_v26  ;;  %v15560_v42 = vpack.c.bf16 %v6729_v52, %v6727_v47  ;;  %v11276_v47 = vld [vmem:[%s16254_s7 + $0x88] ss:$16 sps:$4 sm:$0xff]   ;;  %v11311_v45 = vld [vmem:[%s16254_s7 + $0x1c4] ss:$16 sps:$4 sm:$0xff]   ;;  %v11320_v46 = vld [vmem:[%s16254_s7 + $0x1ac] ss:$16 sps:$4 sm:$0xff]  }
 0x529   : > { %7649 = vmatprep.subr.bf16.mxu0 %v11269_v28  ;;  %7702 = vmatprep.subr.bf16.mxu1 %v11272_v19  ;;  %v11312_v22 = vld [vmem:[%s16254_s7 + $0x1c8] ss:$16 sps:$4 sm:$0xff]   ;;  %v11317_v21 = vld [vmem:[%s16254_s7 + $0x1a4] ss:$16 sps:$4 sm:$0xff]   ;;  %v11315_v33 = vld [vmem:[%s16254_s7 + $0x1a0] ss:$16 sps:$4 sm:$0xff]  }
 0x52a   : > { %v15563_v35 = vadd.f32 %v15461_v23, %v6702_v54  ;;  %v6703_v61 = vmax.f32 %v6693_v25, %v6695_v17  ;;  %v11273_v23 = vld [vmem:[%s16254_s7 + $0x80] ss:$16 sps:$4 sm:$0xff]   ;;  %v11318_v18 = vld [vmem:[%s16254_s7 + $0x1a8] ss:$16 sps:$4 sm:$0xff]   ;;  %v11323_v41 = vld [vmem:[%s16254_s7 + $0x184] ss:$16 sps:$4 sm:$0xff]  }
 0x52b   : > { %v11326_v31 = vld [vmem:[%s16254_s7 + $0x18c] ss:$16 sps:$4 sm:$0xff]   ;;  %v11321_v3 = vld [vmem:[%s16254_s7 + $0x180] ss:$16 sps:$4 sm:$0xff]   ;;  %v11324_v26 = vld [vmem:[%s16254_s7 + $0x188] ss:$16 sps:$4 sm:$0xff]  }
 0x52c   : > { %v6730_v49 = vmax.f32 %v15563_v35, 0.0  ;;  %v15573_v9 = vadd.f32 %v15471_v51, %v6703_v61  ;;  %7650 = vmatpush1.bf16.msra.mxu0 %v11267_v59  ;;  %7703 = vmatpush1.bf16.msra.mxu1 %v11270_v0  ;;  %v11281_v51 = vld [vmem:[%s16254_s7 + $0x64] ss:$16 sps:$4 sm:$0xff]   ;;  %v11332_v36 = vld [vmem:[%s16254_s7 + $0x16c] ss:$16 sps:$4 sm:$0xff]  }
 0x52d   : > { %7651 = vmatprep.subr.bf16.mxu0 %v11275_v4  ;;  %7704 = vmatprep.subr.bf16.mxu1 %v11278_v38  ;;  %v11329_v34 = vld [vmem:[%s16254_s7 + $0x164] ss:$16 sps:$4 sm:$0xff]   ;;  %v11327_v16 = vld [vmem:[%s16254_s7 + $0x160] ss:$16 sps:$4 sm:$0xff]   ;;  %v11330_v6 = vld [vmem:[%s16254_s7 + $0x168] ss:$16 sps:$4 sm:$0xff]  }
 0x52e   : > { %v6731_v63 = vmax.f32 %v15573_v9, 0.0  ;;  %v6832_v1 = vpack.c.bf16 %v6730_v49, %v6728_v5  ;;  %v11309_v5 = vld [vmem:[%s16254_s7 + $0x1c0] ss:$16 sps:$4 sm:$0xff]   ;;  %v11335_v14 = vld [vmem:[%s16254_s7 + $0x144] ss:$16 sps:$4 sm:$0xff]  }
 0x52f   : > { %v11338_v28 = vld [vmem:[%s16254_s7 + $0x14c] ss:$16 sps:$4 sm:$0xff]   ;;  %v11333_v19 = vld [vmem:[%s16254_s7 + $0x140] ss:$16 sps:$4 sm:$0xff]   ;;  %v11341_v54 = vld [vmem:[%s16254_s7 + $0x124] ss:$16 sps:$4 sm:$0xff]  }
 0x530   : > { %v6833_v44 = vpack.c.bf16 %v6731_v63, %v6729_v52  ;;  %7652 = vmatpush1.bf16.msra.mxu0 %v11273_v23  ;;  %7705 = vmatpush1.bf16.msra.mxu1 %v11276_v47  ;;  %v11336_v52 = vld [vmem:[%s16254_s7 + $0x148] ss:$16 sps:$4 sm:$0xff]   ;;  %v11344_v25 = vld [vmem:[%s16254_s7 + $0x12c] ss:$16 sps:$4 sm:$0xff]   ;;  %v11339_v17 = vld [vmem:[%s16254_s7 + $0x120] ss:$16 sps:$4 sm:$0xff]  }
 0x531   : > { %7653 = vmatprep.subr.bf16.mxu0 %v11281_v51  ;;  %7706 = vmatprep.subr.bf16.mxu1 %v11284_v24  ;;  %v11342_v59 = vld [vmem:[%s16254_s7 + $0x128] ss:$16 sps:$4 sm:$0xff]   ;;  %v11347_v0 = vld [vmem:[%s16254_s7 + $0x104] ss:$16 sps:$4 sm:$0xff]   ;;  %v11350_v61 = vld [vmem:[%s16254_s7 + $0x10c] ss:$16 sps:$4 sm:$0xff]  }
 0x532   : > { %7261 = vmatprep.mubr.bf16.mxu0 %v6833_v44  ;;  %7314 = vmatprep.mubr.bf16.mxu1 %v6833_v44  ;;  %v11345_v4 = vld [vmem:[%s16254_s7 + $0x100] ss:$16 sps:$4 sm:$0xff]   ;;  %v11348_v38 = vld [vmem:[%s16254_s7 + $0x108] ss:$16 sps:$4 sm:$0xff]   ;;  %v11353_v23 = vld [vmem:[%s16254_s7 + $0x4e4] ss:$16 sps:$4 sm:$0xff]  }
 0x533   : > { %7262 = vmatmul.mubr.bf16.gmra.mxu0 %v6832_v1  ;;  %7315 = vmatmul.mubr.bf16.gmra.mxu1 %v6832_v1  ;;  %v11356_v47 = vld [vmem:[%s16254_s7 + $0x4ec] ss:$16 sps:$4 sm:$0xff]   ;;  %v6754_v1 = vpack.c.bf16 %v6724_v32, %v16884_v62  ;;  %v11351_v51 = vld [vmem:[%s16254_s7 + $0x4e0] ss:$16 sps:$4 sm:$0xff]   ;;  %v11354_v24 = vld [vmem:[%s16254_s7 + $0x4e8] ss:$16 sps:$4 sm:$0xff]  }
 0x534   : > { %7654 = vmatpush1.bf16.msra.mxu0 %v11279_v29  ;;  %7707 = vmatpush1.bf16.msra.mxu1 %v11282_v53  ;;  %v11359_v44 = vld [vmem:[%s16254_s7 + $0x4c4] ss:$16 sps:$4 sm:$0xff]   ;;  %v11362_v29 = vld [vmem:[%s16254_s7 + $0x4cc] ss:$16 sps:$4 sm:$0xff]   ;;  %v11360_v32 = vld [vmem:[%s16254_s7 + $0x4c8] ss:$16 sps:$4 sm:$0xff]  }
 0x535   : > { %7677 = vmatprep.mubr.bf16.mxu0 %v6755_v55  ;;  %7730 = vmatprep.mubr.bf16.mxu1 %v6755_v55  ;;  %v11365_v53 = vld [vmem:[%s16254_s7 + $0x4a4] ss:$16 sps:$4 sm:$0xff]   ;;  %v11366_v55 = vld [vmem:[%s16254_s7 + $0x4a8] ss:$16 sps:$4 sm:$0xff]  }
 0x536   : > { %7655 = vmatprep.subr.bf16.mxu0 %v11287_v60  ;;  %7708 = vmatprep.subr.bf16.mxu1 %v11290_v8  ;;  %v11368_v60 = vld [vmem:[%s16254_s7 + $0x4ac] ss:$16 sps:$4 sm:$0xff]   ;;  %v11363_v8 = vld [vmem:[%s16254_s7 + $0x4a0] ss:$16 sps:$4 sm:$0xff]  }
 0x537   : > { %v11449_v9 = vld [vmem:[%s16256_s9 + $0x74] ss:$8 sps:$4 sm:$0xff]   ;;  %v11453_v35 = vld [vmem:[%s16256_s9 + $0x170] ss:$8 sps:$4 sm:$0xff]  }
 0x538   : > { %7656 = vmatpush1.bf16.msra.mxu0 %v11285_v39  ;;  %7709 = vmatpush1.bf16.msra.mxu1 %v11288_v56  ;;  %v11371_v39 = vld [vmem:[%s16254_s7 + $0x484] ss:$16 sps:$4 sm:$0xff]   ;;  %v11374_v56 = vld [vmem:[%s16254_s7 + $0x48c] ss:$16 sps:$4 sm:$0xff]  }
 0x539   : > { %7657 = vmatprep.subr.bf16.mxu0 %v11293_v11  ;;  %7710 = vmatprep.subr.bf16.mxu1 %v11296_v2  ;;  %v11369_v11 = vld [vmem:[%s16254_s7 + $0x480] ss:$16 sps:$4 sm:$0xff]   ;;  %v11372_v2 = vld [vmem:[%s16254_s7 + $0x488] ss:$16 sps:$4 sm:$0xff]  }
 0x53c   : > { %7658 = vmatpush1.bf16.msra.mxu0 %v11291_v10  ;;  %7711 = vmatpush1.bf16.msra.mxu1 %v11294_v15  ;;  %v11377_v10 = vld [vmem:[%s16254_s7 + $0x464] ss:$16 sps:$4 sm:$0xff]   ;;  %v11375_v15 = vld [vmem:[%s16254_s7 + $0x460] ss:$16 sps:$4 sm:$0xff]  }
 0x53d   : > { %7659 = vmatprep.subr.bf16.mxu0 %v11299_v27  ;;  %7712 = vmatprep.subr.bf16.mxu1 %v11302_v37  ;;  %v11378_v27 = vld [vmem:[%s16254_s7 + $0x468] ss:$16 sps:$4 sm:$0xff]   ;;  %v11383_v37 = vld [vmem:[%s16254_s7 + $0x444] ss:$16 sps:$4 sm:$0xff]  }
 0x540   : > { %7660 = vmatpush1.bf16.msra.mxu0 %v11297_v12  ;;  %7713 = vmatpush1.bf16.msra.mxu1 %v11300_v30  ;;  %v11386_v12 = vld [vmem:[%s16254_s7 + $0x44c] ss:$16 sps:$4 sm:$0xff]   ;;  %v11381_v30 = vld [vmem:[%s16254_s7 + $0x440] ss:$16 sps:$4 sm:$0xff]  }
 0x541   : > { %7661 = vmatprep.subr.bf16.mxu0 %v11305_v50  ;;  %7714 = vmatprep.subr.bf16.mxu1 %v11308_v7  ;;  %v11384_v50 = vld [vmem:[%s16254_s7 + $0x448] ss:$16 sps:$4 sm:$0xff]   ;;  %v11389_v7 = vld [vmem:[%s16254_s7 + $0x424] ss:$16 sps:$4 sm:$0xff]  }
 0x544   : > { %7662 = vmatpush2.bf16.msra.mxu0 %v11303_v20  ;;  %7715 = vmatpush2.bf16.msra.mxu1 %v11306_v43  ;;  %v11392_v20 = vld [vmem:[%s16254_s7 + $0x42c] ss:$16 sps:$4 sm:$0xff]   ;;  %v11387_v43 = vld [vmem:[%s16254_s7 + $0x420] ss:$16 sps:$4 sm:$0xff]  }
 0x545   : > { %7663 = vmatprep.subr.bf16.mxu0 %v11311_v45  ;;  %7716 = vmatprep.subr.bf16.mxu1 %v11314_v48  ;;  %v11390_v45 = vld [vmem:[%s16254_s7 + $0x428] ss:$16 sps:$4 sm:$0xff]   ;;  %v11395_v48 = vld [vmem:[%s16254_s7 + $0x404] ss:$16 sps:$4 sm:$0xff]  }
 0x548   : > { %7664 = vmatpush2.bf16.msra.mxu0 %v11309_v5  ;;  %7717 = vmatpush2.bf16.msra.mxu1 %v11312_v22  ;;  %v11398_v5 = vld [vmem:[%s16254_s7 + $0x40c] ss:$16 sps:$4 sm:$0xff]   ;;  %v11393_v22 = vld [vmem:[%s16254_s7 + $0x400] ss:$16 sps:$4 sm:$0xff]  }
 0x549   : > { %7665 = vmatprep.subr.bf16.mxu0 %v11317_v21  ;;  %7718 = vmatprep.subr.bf16.mxu1 %v11320_v46  ;;  %v11396_v21 = vld [vmem:[%s16254_s7 + $0x408] ss:$16 sps:$4 sm:$0xff]   ;;  %v11401_v46 = vld [vmem:[%s16254_s7 + $0x5e4] ss:$16 sps:$4 sm:$0xff]  }
 0x54c   : > { %7666 = vmatpush2.bf16.msra.mxu0 %v11315_v33  ;;  %7719 = vmatpush2.bf16.msra.mxu1 %v11318_v18  ;;  %v11404_v33 = vld [vmem:[%s16254_s7 + $0x5ec] ss:$16 sps:$4 sm:$0xff]   ;;  %v11399_v18 = vld [vmem:[%s16254_s7 + $0x5e0] ss:$16 sps:$4 sm:$0xff]  }
 0x54d   : > { %7667 = vmatprep.subr.bf16.mxu0 %v11323_v41  ;;  %7720 = vmatprep.subr.bf16.mxu1 %v11326_v31  ;;  %v11402_v41 = vld [vmem:[%s16254_s7 + $0x5e8] ss:$16 sps:$4 sm:$0xff]   ;;  %v11407_v31 = vld [vmem:[%s16254_s7 + $0x5c4] ss:$16 sps:$4 sm:$0xff]  }
 0x550   : > { %7668 = vmatpush2.bf16.msra.mxu0 %v11321_v3  ;;  %7721 = vmatpush2.bf16.msra.mxu1 %v11324_v26  ;;  %v11410_v3 = vld [vmem:[%s16254_s7 + $0x5cc] ss:$16 sps:$4 sm:$0xff]   ;;  %v11405_v26 = vld [vmem:[%s16254_s7 + $0x5c0] ss:$16 sps:$4 sm:$0xff]  }
 0x551   : > { %7669 = vmatprep.subr.bf16.mxu0 %v11329_v34  ;;  %7722 = vmatprep.subr.bf16.mxu1 %v11332_v36  ;;  %v11408_v34 = vld [vmem:[%s16254_s7 + $0x5c8] ss:$16 sps:$4 sm:$0xff]   ;;  %v11413_v36 = vld [vmem:[%s16254_s7 + $0x5a4] ss:$16 sps:$4 sm:$0xff]  }
 0x554   : > { %7670 = vmatpush2.bf16.msra.mxu0 %v11327_v16  ;;  %7723 = vmatpush2.bf16.msra.mxu1 %v11330_v6  ;;  %v11416_v16 = vld [vmem:[%s16254_s7 + $0x5ac] ss:$16 sps:$4 sm:$0xff]   ;;  %v11411_v6 = vld [vmem:[%s16254_s7 + $0x5a0] ss:$16 sps:$4 sm:$0xff]  }
 0x555   : > { %7671 = vmatprep.subr.bf16.mxu0 %v11335_v14  ;;  %7724 = vmatprep.subr.bf16.mxu1 %v11338_v28  ;;  %v11414_v14 = vld [vmem:[%s16254_s7 + $0x5a8] ss:$16 sps:$4 sm:$0xff]   ;;  %v11419_v28 = vld [vmem:[%s16254_s7 + $0x584] ss:$16 sps:$4 sm:$0xff]  }
 0x558   : > { %7672 = vmatpush2.bf16.msra.mxu0 %v11333_v19  ;;  %7725 = vmatpush2.bf16.msra.mxu1 %v11336_v52  ;;  %v11422_v19 = vld [vmem:[%s16254_s7 + $0x58c] ss:$16 sps:$4 sm:$0xff]   ;;  %v11417_v52 = vld [vmem:[%s16254_s7 + $0x580] ss:$16 sps:$4 sm:$0xff]  }
 0x559   : > { %7673 = vmatprep.subr.bf16.mxu0 %v11341_v54  ;;  %7726 = vmatprep.subr.bf16.mxu1 %v11344_v25  ;;  %v11420_v54 = vld [vmem:[%s16254_s7 + $0x588] ss:$16 sps:$4 sm:$0xff]   ;;  %v11425_v25 = vld [vmem:[%s16254_s7 + $0x564] ss:$16 sps:$4 sm:$0xff]  }
 0x55c   : > { %7674 = vmatpush2.bf16.msra.mxu0 %v11339_v17  ;;  %7727 = vmatpush2.bf16.msra.mxu1 %v11342_v59  ;;  %v11428_v17 = vld [vmem:[%s16254_s7 + $0x56c] ss:$16 sps:$4 sm:$0xff]   ;;  %v11423_v59 = vld [vmem:[%s16254_s7 + $0x560] ss:$16 sps:$4 sm:$0xff]  }
 0x55d   : > { %7675 = vmatprep.subr.bf16.mxu0 %v11347_v0  ;;  %7728 = vmatprep.subr.bf16.mxu1 %v11350_v61  ;;  %v11426_v0 = vld [vmem:[%s16254_s7 + $0x568] ss:$16 sps:$4 sm:$0xff]   ;;  %v11431_v61 = vld [vmem:[%s16254_s7 + $0x544] ss:$16 sps:$4 sm:$0xff]  }
 0x560   : > { %7676 = vmatpush2.bf16.msra.mxu0 %v11345_v4  ;;  %7729 = vmatpush2.bf16.msra.mxu1 %v11348_v38  ;;  %v11434_v4 = vld [vmem:[%s16254_s7 + $0x54c] ss:$16 sps:$4 sm:$0xff]   ;;  %v11429_v38 = vld [vmem:[%s16254_s7 + $0x540] ss:$16 sps:$4 sm:$0xff]  }
 0x561   : > { %8149 = vmatprep.subr.bf16.mxu0 %v11353_v23  ;;  %8202 = vmatprep.subr.bf16.mxu1 %v11356_v47  ;;  %v11432_v23 = vld [vmem:[%s16254_s7 + $0x548] ss:$16 sps:$4 sm:$0xff]   ;;  %v11437_v47 = vld [vmem:[%s16254_s7 + $0x524] ss:$16 sps:$4 sm:$0xff]  }
 0x563   : > { %7678 = vmatmul.mubr.bf16.vlgmr.msra.gmra.mxu0 %v6754_v1  ;;  %7731 = vmatmul.mubr.bf16.vlgmr.msra.gmra.mxu1 %v6754_v1  ;;  %v11440_v1 = vld [vmem:[%s16254_s7 + $0x52c] ss:$16 sps:$4 sm:$0xff]  }
 0x564   : > { %7687 = vmatprep.mubr.bf16.mxu0 %v15560_v42  ;;  %7740 = vmatprep.mubr.bf16.mxu1 %v15560_v42 }
 0x565   : > { %8150 = vmatpush1.bf16.msra.mxu0 %v11351_v51  ;;  %8203 = vmatpush1.bf16.msra.mxu1 %v11354_v24  ;;  %v11435_v51 = vld [vmem:[%s16254_s7 + $0x520] ss:$16 sps:$4 sm:$0xff]   ;;  %v11438_v24 = vld [vmem:[%s16254_s7 + $0x528] ss:$16 sps:$4 sm:$0xff]  }
 0x566   : > { %8151 = vmatprep.subr.bf16.mxu0 %v11359_v44  ;;  %8204 = vmatprep.subr.bf16.mxu1 %v11362_v29  ;;  %v11443_v44 = vld [vmem:[%s16254_s7 + $0x504] ss:$16 sps:$4 sm:$0xff]   ;;  %v11446_v29 = vld [vmem:[%s16254_s7 + $0x50c] ss:$16 sps:$4 sm:$0xff]  }
 0x569   : > { %8152 = vmatpush1.bf16.msra.mxu0 %v11357_v57  ;;  %8205 = vmatpush1.bf16.msra.mxu1 %v11360_v32  ;;  %v11441_v57 = vld [vmem:[%s16254_s7 + $0x500] ss:$16 sps:$4 sm:$0xff]   ;;  %v11444_v32 = vld [vmem:[%s16254_s7 + $0x508] ss:$16 sps:$4 sm:$0xff]  }
 0x56a   : > { %8153 = vmatprep.subr.bf16.mxu0 %v11365_v53  ;;  %8206 = vmatprep.subr.bf16.mxu1 %v11368_v60  ;;  %v7763_v53 = vpack.c.bf16 %v16884_v62, %v6731_v63  ;;  %v7762_v60 = vpack.c.bf16 %v16884_v62, %v6730_v49  ;;  %v11455_v49 = vld [vmem:[%s16256_s9 + $0x174] ss:$8 sps:$4 sm:$0xff]   ;;  %v11450_v63 = vld [vmem:[%s16256_s9 + $0x60] ss:$8 sps:$4 sm:$0xff]   ;;  %v11461_v62 = vld [vmem:[%s16256_s9 + $0x164] ss:$8 sps:$4 sm:$0xff]  }
 0x56b   : > { %7688 = vmatmul.mubr.bf16.gmra.mxu0 %v15552_v58  ;;  %7741 = vmatmul.mubr.bf16.gmra.mxu1 %v15552_v58 }
 0x56c   : > { %8181 = vmatprep.mubr.bf16.mxu0 %v15560_v42  ;;  %8234 = vmatprep.mubr.bf16.mxu1 %v15560_v42  ;;  %v11380_v42 = vld [vmem:[%s16254_s7 + $0x46c] ss:$16 sps:$4 sm:$0xff]  }
 0x56d   : > { %8154 = vmatpush1.bf16.msra.mxu0 %v11363_v8  ;;  %8207 = vmatpush1.bf16.msra.mxu1 %v11366_v55  ;;  %v11447_v8 = vld [vmem:[%s16256_s9 + $0x70] ss:$8 sps:$4 sm:$0xff]   ;;  %v11458_v55 = vld [vmem:[%s16256_s9 + $0x54] ss:$8 sps:$4 sm:$0xff]  }
 0x56e   : > { %8155 = vmatprep.subr.bf16.mxu0 %v11371_v39  ;;  %8208 = vmatprep.subr.bf16.mxu1 %v11374_v56  ;;  %v11459_v39 = vld [vmem:[%s16256_s9 + $0x160] ss:$8 sps:$4 sm:$0xff]   ;;  %v11467_v56 = vld [vmem:[%s16256_s9 + $0x154] ss:$8 sps:$4 sm:$0xff]  }
 0x571   : > { %8156 = vmatpush1.bf16.msra.mxu0 %v11369_v11  ;;  %8209 = vmatpush1.bf16.msra.mxu1 %v11372_v2  ;;  %v11456_v11 = vld [vmem:[%s16256_s9 + $0x50] ss:$8 sps:$4 sm:$0xff]   ;;  %v11464_v2 = vld [vmem:[%s16256_s9 + $0x44] ss:$8 sps:$4 sm:$0xff]  }
 0x572   : > { %8157 = vmatprep.subr.bf16.mxu0 %v11377_v10  ;;  %8210 = vmatprep.subr.bf16.mxu1 %v11380_v42  ;;  %v11465_v10 = vld [vmem:[%s16256_s9 + $0x150] ss:$8 sps:$4 sm:$0xff]   ;;  %v11473_v42 = vld [vmem:[%s16256_s9 + $0x144] ss:$8 sps:$4 sm:$0xff]  }
 0x575   : > { %8158 = vmatpush1.bf16.msra.mxu0 %v11375_v15  ;;  %8211 = vmatpush1.bf16.msra.mxu1 %v11378_v27  ;;  %v11462_v15 = vld [vmem:[%s16256_s9 + $0x40] ss:$8 sps:$4 sm:$0xff]   ;;  %v11470_v27 = vld [vmem:[%s16256_s9 + $0x34] ss:$8 sps:$4 sm:$0xff]  }
 0x576   : > { %8159 = vmatprep.subr.bf16.mxu0 %v11383_v37  ;;  %8212 = vmatprep.subr.bf16.mxu1 %v11386_v12  ;;  %v11471_v37 = vld [vmem:[%s16256_s9 + $0x140] ss:$8 sps:$4 sm:$0xff]   ;;  %v11479_v12 = vld [vmem:[%s16256_s9 + $0x134] ss:$8 sps:$4 sm:$0xff]  }
 0x579   : > { %8160 = vmatpush1.bf16.msra.mxu0 %v11381_v30  ;;  %8213 = vmatpush1.bf16.msra.mxu1 %v11384_v50  ;;  %v11468_v30 = vld [vmem:[%s16256_s9 + $0x30] ss:$8 sps:$4 sm:$0xff]   ;;  %v11476_v50 = vld [vmem:[%s16256_s9 + $0x24] ss:$8 sps:$4 sm:$0xff]  }
 0x57a   : > { %8161 = vmatprep.subr.bf16.mxu0 %v11389_v7  ;;  %8214 = vmatprep.subr.bf16.mxu1 %v11392_v20  ;;  %v11477_v7 = vld [vmem:[%s16256_s9 + $0x130] ss:$8 sps:$4 sm:$0xff]   ;;  %v11485_v20 = vld [vmem:[%s16256_s9 + $0x124] ss:$8 sps:$4 sm:$0xff]  }
 0x57d   : > { %8162 = vmatpush1.bf16.msra.mxu0 %v11387_v43  ;;  %8215 = vmatpush1.bf16.msra.mxu1 %v11390_v45  ;;  %v11474_v43 = vld [vmem:[%s16256_s9 + $0x20] ss:$8 sps:$4 sm:$0xff]   ;;  %v11482_v45 = vld [vmem:[%s16256_s9 + $0x14] ss:$8 sps:$4 sm:$0xff]  }
 0x57e   : > { %8163 = vmatprep.subr.bf16.mxu0 %v11395_v48  ;;  %8216 = vmatprep.subr.bf16.mxu1 %v11398_v5  ;;  %v11483_v48 = vld [vmem:[%s16256_s9 + $0x120] ss:$8 sps:$4 sm:$0xff]   ;;  %v11491_v5 = vld [vmem:[%s16256_s9 + $0x114] ss:$8 sps:$4 sm:$0xff]  }
 0x581   : > { %8164 = vmatpush1.bf16.msra.mxu0 %v11393_v22  ;;  %8217 = vmatpush1.bf16.msra.mxu1 %v11396_v21  ;;  %v11480_v22 = vld [vmem:[%s16256_s9 + $0x10] ss:$8 sps:$4 sm:$0xff]   ;;  %v11488_v21 = vld [vmem:[%s16256_s9 + $0x4] ss:$8 sps:$4 sm:$0xff]  }
 0x582   : > { %8165 = vmatprep.subr.bf16.mxu0 %v11401_v46  ;;  %8218 = vmatprep.subr.bf16.mxu1 %v11404_v33  ;;  %v11489_v46 = vld [vmem:[%s16256_s9 + $0x110] ss:$8 sps:$4 sm:$0xff]   ;;  %v11497_v33 = vld [vmem:[%s16256_s9 + $0x104] ss:$8 sps:$4 sm:$0xff]  }
 0x585   : > { %8166 = vmatpush2.bf16.msra.mxu0 %v11399_v18  ;;  %8219 = vmatpush2.bf16.msra.mxu1 %v11402_v41  ;;  %v11486_v18 = vld [vmem:[%s16256_s9] ss:$8 sps:$4 sm:$0xff]   ;;  %v11494_v41 = vld [vmem:[%s16256_s9 + $0xf4] ss:$8 sps:$4 sm:$0xff]  }
 0x586   : > { %8167 = vmatprep.subr.bf16.mxu0 %v11407_v31  ;;  %8220 = vmatprep.subr.bf16.mxu1 %v11410_v3  ;;  %v11495_v31 = vld [vmem:[%s16256_s9 + $0x100] ss:$8 sps:$4 sm:$0xff]   ;;  %v11503_v3 = vld [vmem:[%s16256_s9 + $0x1f4] ss:$8 sps:$4 sm:$0xff]  }
 0x589   : > { %8168 = vmatpush2.bf16.msra.mxu0 %v11405_v26  ;;  %8221 = vmatpush2.bf16.msra.mxu1 %v11408_v34  ;;  %v11492_v26 = vld [vmem:[%s16256_s9 + $0xf0] ss:$8 sps:$4 sm:$0xff]   ;;  %v11500_v34 = vld [vmem:[%s16256_s9 + $0xe4] ss:$8 sps:$4 sm:$0xff]  }
 0x58a   : > { %8169 = vmatprep.subr.bf16.mxu0 %v11413_v36  ;;  %8222 = vmatprep.subr.bf16.mxu1 %v11416_v16  ;;  %v11501_v36 = vld [vmem:[%s16256_s9 + $0x1f0] ss:$8 sps:$4 sm:$0xff]   ;;  %v11498_v16 = vld [vmem:[%s16256_s9 + $0xe0] ss:$8 sps:$4 sm:$0xff]  }
 0x58d   : > { %8170 = vmatpush2.bf16.msra.mxu0 %v11411_v6  ;;  %8223 = vmatpush2.bf16.msra.mxu1 %v11414_v14  ;;  %v11506_v6 = vld [vmem:[%s16256_s9 + $0xd4] ss:$8 sps:$4 sm:$0xff]   ;;  %v11504_v14 = vld [vmem:[%s16256_s9 + $0xd0] ss:$8 sps:$4 sm:$0xff]  }
 0x58e   : > { %8171 = vmatprep.subr.bf16.mxu0 %v11419_v28  ;;  %8224 = vmatprep.subr.bf16.mxu1 %v11422_v19  ;;  %v11509_v28 = vld [vmem:[%s16256_s9 + $0x1e4] ss:$8 sps:$4 sm:$0xff]  }
 0x58f   : > { %v11512_v19 = vld [vmem:[%s16256_s9 + $0xc4] ss:$8 sps:$4 sm:$0xff]  }
 0x591   : > { %8172 = vmatpush2.bf16.msra.mxu0 %v11417_v52  ;;  %8225 = vmatpush2.bf16.msra.mxu1 %v11420_v54  ;;  %v11507_v52 = vld [vmem:[%s16256_s9 + $0x1e0] ss:$8 sps:$4 sm:$0xff]  }
 0x592   : > { %8173 = vmatprep.subr.bf16.mxu0 %v11425_v25  ;;  %8226 = vmatprep.subr.bf16.mxu1 %v11428_v17  ;;  %v11510_v54 = vld [vmem:[%s16256_s9 + $0xc0] ss:$8 sps:$4 sm:$0xff]   ;;  %v11515_v25 = vld [vmem:[%s16256_s9 + $0x1d4] ss:$8 sps:$4 sm:$0xff]  }
 0x593   : > { %v11518_v17 = vld [vmem:[%s16256_s9 + $0xb4] ss:$8 sps:$4 sm:$0xff]  }
 0x595   : > { %8174 = vmatpush2.bf16.msra.mxu0 %v11423_v59  ;;  %8227 = vmatpush2.bf16.msra.mxu1 %v11426_v0  ;;  %v11513_v59 = vld [vmem:[%s16256_s9 + $0x1d0] ss:$8 sps:$4 sm:$0xff]  }
 0x596   : > { %8175 = vmatprep.subr.bf16.mxu0 %v11431_v61  ;;  %8228 = vmatprep.subr.bf16.mxu1 %v11434_v4  ;;  %v11516_v0 = vld [vmem:[%s16256_s9 + $0xb0] ss:$8 sps:$4 sm:$0xff]   ;;  %v11521_v61 = vld [vmem:[%s16256_s9 + $0x1c4] ss:$8 sps:$4 sm:$0xff]  }
 0x597   : > { %v11524_v4 = vld [vmem:[%s16256_s9 + $0xa4] ss:$8 sps:$4 sm:$0xff]  }
 0x599   : > { %8176 = vmatpush2.bf16.msra.mxu0 %v11429_v38  ;;  %8229 = vmatpush2.bf16.msra.mxu1 %v11432_v23  ;;  %v11519_v38 = vld [vmem:[%s16256_s9 + $0x1c0] ss:$8 sps:$4 sm:$0xff]  }
 0x59a   : > { %8177 = vmatprep.subr.bf16.mxu0 %v11437_v47  ;;  %8230 = vmatprep.subr.bf16.mxu1 %v11440_v1  ;;  %v11522_v23 = vld [vmem:[%s16256_s9 + $0xa0] ss:$8 sps:$4 sm:$0xff]   ;;  %v11527_v47 = vld [vmem:[%s16256_s9 + $0x1b4] ss:$8 sps:$4 sm:$0xff]  }
 0x59b   : > { %v11530_v1 = vld [vmem:[%s16256_s9 + $0x94] ss:$8 sps:$4 sm:$0xff]  }
 0x59d   : > { %8178 = vmatpush2.bf16.msra.mxu0 %v11435_v51  ;;  %8231 = vmatpush2.bf16.msra.mxu1 %v11438_v24  ;;  %v11525_v51 = vld [vmem:[%s16256_s9 + $0x1b0] ss:$8 sps:$4 sm:$0xff]  }
 0x59e   : > { %8179 = vmatprep.subr.bf16.mxu0 %v11443_v44  ;;  %8232 = vmatprep.subr.bf16.mxu1 %v11446_v29  ;;  %v11528_v24 = vld [vmem:[%s16256_s9 + $0x90] ss:$8 sps:$4 sm:$0xff]   ;;  %v11533_v44 = vld [vmem:[%s16256_s9 + $0x1a4] ss:$8 sps:$4 sm:$0xff]  }
 0x59f   : > { %v11536_v29 = vld [vmem:[%s16256_s9 + $0x84] ss:$8 sps:$4 sm:$0xff]  }
 0x5a1   : > { %8180 = vmatpush2.bf16.msra.mxu0 %v11441_v57  ;;  %8233 = vmatpush2.bf16.msra.mxu1 %v11444_v32  ;;  %v11531_v57 = vld [vmem:[%s16256_s9 + $0x1a0] ss:$8 sps:$4 sm:$0xff]  }
 0x5a2   : > { %8733 = vmatprep.subr.bf16.mxu1 %v11449_v9  ;;  %8532 = vmatprep.subr.bf16.mxu0 %v11455_v49  ;;  %v11534_v32 = vld [vmem:[%s16256_s9 + $0x80] ss:$8 sps:$4 sm:$0xff]   ;;  %v11542_v9 = vld [vmem:[%s16256_s9 + $0x184] ss:$8 sps:$4 sm:$0xff]  }
 0x5a4   : > { %8182 = vmatmul.mubr.bf16.vlgmr.msra.gmra.mxu0 %v15552_v58  ;;  %8235 = vmatmul.mubr.bf16.vlgmr.msra.gmra.mxu1 %v15552_v58  ;;  %v11452_v58 = vld [vmem:[%s16256_s9 + $0x64] ss:$8 sps:$4 sm:$0xff]  }
 0x5a5   : > { %8191 = vmatprep.mubr.bf16.mxu0 %v7763_v53  ;;  %8244 = vmatprep.mubr.bf16.mxu1 %v7763_v53  ;;  %v11539_v53 = vld [vmem:[%s16256_s9 + $0x194] ss:$8 sps:$4 sm:$0xff]  }
 0x5a6   : > { %8734 = vmatpush1.bf16.msra.mxu1 %v11447_v8  ;;  %8533 = vmatpush1.bf16.msra.mxu0 %v11453_v35  ;;  %v11540_v8 = vld [vmem:[%s16256_s9 + $0x180] ss:$8 sps:$4 sm:$0xff]  }
 0x5a7   : > { %8735 = vmatprep.subr.bf16.mxu1 %v11452_v58  ;;  %8534 = vmatprep.subr.bf16.mxu0 %v11461_v62  ;;  %v11543_v58 = vld [vmem:[%s16258_s11 + $0x78] sm:$0xff]  }
 0x5aa   : > { %8736 = vmatpush1.bf16.msra.mxu1 %v11450_v63  ;;  %8535 = vmatpush1.bf16.msra.mxu0 %v11459_v39 }
 0x5ab   : > { %8737 = vmatprep.subr.bf16.mxu1 %v11458_v55  ;;  %8536 = vmatprep.subr.bf16.mxu0 %v11467_v56 }
 0x5ac   : > { %8192 = vmatmul.mubr.bf16.gmra.mxu0 %v7762_v60  ;;  %8245 = vmatmul.mubr.bf16.gmra.mxu1 %v7762_v60  ;;  %v11537_v60 = vld [vmem:[%s16256_s9 + $0x190] ss:$8 sps:$4 sm:$0xff]  }
 0x5ae   : > { %8738 = vmatpush1.bf16.msra.mxu1 %v11456_v11  ;;  %8537 = vmatpush1.bf16.msra.mxu0 %v11465_v10 }
 0x5af   : > { %8739 = vmatprep.subr.bf16.mxu1 %v11464_v2  ;;  %8538 = vmatprep.subr.bf16.mxu0 %v11473_v42 }
 0x5b2   : > { %8740 = vmatpush1.bf16.msra.mxu1 %v11462_v15  ;;  %8539 = vmatpush1.bf16.msra.mxu0 %v11471_v37 }
 0x5b3   : > { %8741 = vmatprep.subr.bf16.mxu1 %v11470_v27  ;;  %8540 = vmatprep.subr.bf16.mxu0 %v11479_v12 }
 0x5b6   : > { %8742 = vmatpush1.bf16.msra.mxu1 %v11468_v30  ;;  %8541 = vmatpush1.bf16.msra.mxu0 %v11477_v7 }
 0x5b7   : > { %8743 = vmatprep.subr.bf16.mxu1 %v11476_v50  ;;  %8542 = vmatprep.subr.bf16.mxu0 %v11485_v20 }
 0x5ba   : > { %8744 = vmatpush1.bf16.msra.mxu1 %v11474_v43  ;;  %8543 = vmatpush1.bf16.msra.mxu0 %v11483_v48 }
 0x5bb   : > { %8745 = vmatprep.subr.bf16.mxu1 %v11482_v45  ;;  %8544 = vmatprep.subr.bf16.mxu0 %v11491_v5 }
 0x5be   : > { %8746 = vmatpush1.bf16.msra.mxu1 %v11480_v22  ;;  %8545 = vmatpush1.bf16.msra.mxu0 %v11489_v46 }
 0x5bf   : > { %8747 = vmatprep.subr.bf16.mxu1 %v11488_v21  ;;  %8546 = vmatprep.subr.bf16.mxu0 %v11497_v33 }
 0x5c2   : > { %8748 = vmatpush1.bf16.msra.mxu1 %v11486_v18  ;;  %8547 = vmatpush1.bf16.msra.mxu0 %v11495_v31 }
 0x5c3   : > { %8749 = vmatprep.subr.bf16.mxu1 %v11494_v41  ;;  %8548 = vmatprep.subr.bf16.mxu0 %v11503_v3 }
 0x5c6   : > { %8750 = vmatpush2.bf16.msra.mxu1 %v11492_v26  ;;  %8549 = vmatpush2.bf16.msra.mxu0 %v11501_v36 }
 0x5c7   : > { %8751 = vmatprep.subr.bf16.mxu1 %v11500_v34  ;;  %8550 = vmatprep.subr.bf16.mxu0 %v11509_v28 }
 0x5ca   : > { %8752 = vmatpush2.bf16.msra.mxu1 %v11498_v16  ;;  %8551 = vmatpush2.bf16.msra.mxu0 %v11507_v52 }
 0x5cb   : > { %8753 = vmatprep.subr.bf16.mxu1 %v11506_v6  ;;  %8552 = vmatprep.subr.bf16.mxu0 %v11515_v25 }
 0x5ce   : > { %8754 = vmatpush2.bf16.msra.mxu1 %v11504_v14  ;;  %8553 = vmatpush2.bf16.msra.mxu0 %v11513_v59 }
 0x5cf   : > { %8755 = vmatprep.subr.bf16.mxu1 %v11512_v19  ;;  %8554 = vmatprep.subr.bf16.mxu0 %v11521_v61 }
 0x5d2   : > { %8756 = vmatpush2.bf16.msra.mxu1 %v11510_v54  ;;  %8555 = vmatpush2.bf16.msra.mxu0 %v11519_v38  ;;  %v8283_v54 = vld [vmem:[%s16255_s8] sm:$0x3] }
 0x5d3   : > { %8757 = vmatprep.subr.bf16.mxu1 %v11518_v17  ;;  %8556 = vmatprep.subr.bf16.mxu0 %v11527_v47 }
 0x5d6   : > { %8758 = vmatpush2.bf16.msra.mxu1 %v11516_v0  ;;  %8557 = vmatpush2.bf16.msra.mxu0 %v11525_v51 }
 0x5d7   : > { %8759 = vmatprep.subr.bf16.mxu1 %v11524_v4  ;;  %8558 = vmatprep.subr.bf16.mxu0 %v11533_v44  ;;  %v8288_v44 = vrot.slane %v8283_v54, %v13114_v13 }
 0x5da   : > { %8760 = vmatpush2.bf16.msra.mxu1 %v11522_v23  ;;  %8559 = vmatpush2.bf16.msra.mxu0 %v11531_v57 }
 0x5db   : > { %8761 = vmatprep.subr.bf16.mxu1 %v11530_v1  ;;  %8560 = vmatprep.subr.bf16.mxu0 %v11539_v53 }
 0x5de   : > { %8762 = vmatpush2.bf16.msra.mxu1 %v11528_v24  ;;  %8561 = vmatpush2.bf16.msra.mxu0 %v11537_v60 }
 0x5df   : > { %8763 = vmatprep.subr.bf16.mxu1 %v11536_v29  ;;  %8562 = vmatprep.subr.bf16.mxu0 %v11542_v9 }
 0x5e2   : > { %8764 = vmatpush2.bf16.msra.mxu1 %v11534_v32  ;;  %8563 = vmatpush2.bf16.msra.mxu0 %v11540_v8 }
 0x5e3   : > { %10410 = vmatprep.subr.bf16.mxu0 %v11543_v58  ;;  %v7253_v35 = vpop.f32.mrf.mxu0  ;;  %v7306_v49 = vpop.f32.mrf.mxu1 }
 0x5e5   : > { %v7255_v63 = vpop.f32.mrf.mxu0  ;;  %v7308_v62 = vpop.f32.mrf.mxu1 }
 0x5e7   : > { %v7257_v55 = vpop.f32.mrf.mxu0  ;;  %v7310_v39 = vpop.f32.mrf.mxu1 }
 0x5e9   : > { %v7259_v56 = vpop.f32.mrf.mxu0  ;;  %v7312_v11 = vpop.f32.mrf.mxu1 }
 0x5f3   : > { %v7263_v2 = vpop.f32.mrf.mxu0  ;;  %v7316_v10 = vpop.f32.mrf.mxu1 }
 0x5f5   : > { %v16137_v42 = vpop.f32.mrf.mxu0  ;;  %v16139_v15 = vpop.f32.mrf.mxu1 }
 0x5f7   : > { %v7267_v27 = vpop.f32.mrf.mxu0  ;;  %v7320_v37 = vpop.f32.mrf.mxu1 }
 0x5f9   : > { %v7269_v12 = vpop.f32.mrf.mxu0  ;;  %v16141_v30 = vpop.f32.mrf.mxu1 }
 0x623   : > { %v7679_v50 = vpop.f32.mrf.mxu0  ;;  %v7732_v7 = vpop.f32.mrf.mxu1 }
 0x624   : > { %v7680_v14 = vadd.f32 %v7679_v50, %v7253_v35  ;;  %v7733_v28 = vadd.f32 %v7732_v7, %v7306_v49 }
 0x625   : > { %v7681_v20 = vpop.f32.mrf.mxu0  ;;  %v7734_v43 = vpop.f32.mrf.mxu1 }
 0x626   : > { %v7682_v25 = vadd.f32 %v7681_v20, %v7255_v63  ;;  %v7735_v17 = vadd.f32 %v7734_v43, %v7308_v62  ;;  %v8292_v62 = vrot.slane %v8283_v54, %v13134_v40 }
 0x627   : > { %v7683_v45 = vpop.f32.mrf.mxu0  ;;  %v7736_v48 = vpop.f32.mrf.mxu1 }
 0x628   : > { %v7684_v19 = vadd.f32 %v7683_v45, %v7257_v55  ;;  %v7737_v52 = vadd.f32 %v7736_v48, %v7310_v39 }
 0x629   : > { %v7685_v5 = vpop.f32.mrf.mxu0  ;;  %v7738_v22 = vpop.f32.mrf.mxu1 }
 0x62a   : > { %v7686_v59 = vadd.f32 %v7685_v5, %v7259_v56  ;;  %v7739_v0 = vadd.f32 %v7738_v22, %v7312_v11 }
 0x62b   : > { %v7689_v21 = vpop.f32.mrf.mxu0  ;;  %v7742_v46 = vpop.f32.mrf.mxu1 }
 0x62c   : > { %v7690_v55 = vadd.f32 %v7689_v21, %v7263_v2  ;;  %v7743_v39 = vadd.f32 %v7742_v46, %v7316_v10 }
 0x62d   : > { %v7691_v33 = vpop.f32.mrf.mxu0  ;;  %v7744_v18 = vpop.f32.mrf.mxu1 }
 0x62e   : > { %v7692_v45 = vadd.f32 %v7691_v33, %v16137_v42 }
 0x62f   : > { %v7693_v41 = vpop.f32.mrf.mxu0  ;;  %v7746_v31 = vpop.f32.mrf.mxu1 }
 0x630   : > { %v7694_v50 = vadd.f32 %v7693_v41, %v7267_v27  ;;  %v7747_v7 = vadd.f32 %v7746_v31, %v7320_v37 }
 0x631   : > { %v7695_v3 = vpop.f32.mrf.mxu0  ;;  %v7748_v26 = vpop.f32.mrf.mxu1 }
 0x632   : > { %v7696_v48 = vadd.f32 %v7695_v3, %v7269_v12  ;;  %v7749_v2 = vadd.f32 %v7748_v26, %v16141_v30 }
 0x664   : > { %v8183_v34 = vpop.f32.mrf.mxu0  ;;  %v8236_v36 = vpop.f32.mrf.mxu1 }
 0x665   : > { %v8255_v38 = vadd.f32 %v8183_v34, %v7680_v14  ;;  %v8257_v23 = vadd.f32 %v8236_v36, %v7733_v28  ;;  %v7745_v28 = vadd.f32 %v7744_v18, %v16139_v15 }
 0x666   : > { %v8185_v16 = vpop.f32.mrf.mxu0  ;;  %v8238_v6 = vpop.f32.mrf.mxu1 }
 0x667   : > { %v8256_v51 = vadd.f32 %v8185_v16, %v7682_v25  ;;  %v8258_v24 = vadd.f32 %v8238_v6, %v7735_v17 }
 0x668   : > { %v8187_v61 = vpop.f32.mrf.mxu0  ;;  %v8240_v4 = vpop.f32.mrf.mxu1 }
 0x669   : > { %v8259_v47 = vadd.f32 %v8187_v61, %v7684_v19  ;;  %v8261_v1 = vadd.f32 %v8240_v4, %v7737_v52  ;;  %v11545_v4 = vld [vmem:[%s16258_s11 + $0x70] sm:$0xff]  }
 0x66a   : > { %v8189_v29 = vpop.f32.mrf.mxu0  ;;  %v8242_v57 = vpop.f32.mrf.mxu1 }
 0x66b   : > { %v8271_v32 = vmax.f32 %v8255_v38, %v8259_v47  ;;  %v8273_v53 = vmax.f32 %v8257_v23, %v8261_v1  ;;  %v8260_v60 = vadd.f32 %v8189_v29, %v7686_v59  ;;  %v8262_v8 = vadd.f32 %v8242_v57, %v7739_v0  ;;  %v11544_v0 = vld [vmem:[%s16258_s11 + $0x38] sm:$0xff]   ;;  %v11546_v38 = vld [vmem:[%s16258_s11 + $0x30] sm:$0xff]   ;;  %v11547_v23 = vld [vmem:[%s16258_s11 + $0x68] sm:$0xff]  }
 0x66c   : > { %v8193_v9 = vpop.f32.mrf.mxu0  ;;  %v8246_v58 = vpop.f32.mrf.mxu1  ;;  %v11548_v47 = vld [vmem:[%s16258_s11 + $0x28] sm:$0xff]   ;;  %v11549_v1 = vld [vmem:[%s16258_s11 + $0x60] sm:$0xff]   ;;  %v11553_v29 = vld [vmem:[%s16258_s11 + $0x50] sm:$0xff]  }
 0x66d   : > { %v8279_v35 = vmax.f32 %v8271_v32, %v8273_v53  ;;  %v8272_v49 = vmax.f32 %v8256_v51, %v8260_v60  ;;  %v8274_v63 = vmax.f32 %v8258_v24, %v8262_v8  ;;  %v8263_v5 = vadd.f32 %v8193_v9, %v7690_v55  ;;  %v11550_v51 = vld [vmem:[%s16258_s11 + $0x20] sm:$0xff]   ;;  %v11551_v24 = vld [vmem:[%s16258_s11 + $0x58] sm:$0xff]   ;;  %v11554_v57 = vld [vmem:[%s16258_s11 + $0x10] sm:$0xff]  }
 0x66e   : > { %v8195_v56 = vpop.f32.mrf.mxu0  ;;  %v8248_v11 = vpop.f32.mrf.mxu1  ;;  %v8265_v36 = vadd.f32 %v8246_v58, %v7743_v39  ;;  %v11555_v32 = vld [vmem:[%s16258_s11 + $0x48] sm:$0xff]   ;;  %v11557_v60 = vld [vmem:[%s16258_s11 + $0x40] sm:$0xff]  }
 0x66f   : > { %v8295_v20 = vadd.f32 %v8288_v44, %v8279_v35  ;;  %v8280_v43 = vmax.f32 %v8272_v49, %v8274_v63  ;;  %v8264_v10 = vadd.f32 %v8195_v56, %v7692_v45  ;;  %v8266_v42 = vadd.f32 %v8248_v11, %v7745_v28  ;;  %v11556_v53 = vld [vmem:[%s16258_s11 + $0x8] sm:$0xff]   ;;  %v11558_v8 = vld [vmem:[%s16258_s11] sm:$0xff]  }
 0x670   : > { %v8197_v22 = vpop.f32.mrf.mxu0  ;;  %v8250_v34 = vpop.f32.mrf.mxu1  ;;  %v8774_v49 = vld [vmem:[%s16257_s10] sm:$0x3] }
 0x671   : > { %v8267_v16 = vadd.f32 %v8197_v22, %v7694_v50  ;;  %v8269_v6 = vadd.f32 %v8250_v34, %v7747_v7  ;;  %v8296_v14 = vadd.f32 %v8292_v62, %v8280_v43  ;;  %v8299_v37 = vmax.f32 %v8295_v20, 0.0 }
 0x672   : > { %v8199_v21 = vpop.f32.mrf.mxu0  ;;  %v8252_v27 = vpop.f32.mrf.mxu1  ;;  %v8783_v56 = vrot.slane %v8774_v49, %v13134_v40  ;;  %v10389_v40 = vld [vmem:[%s16259_s12] ss:$0 sm:$0xff] }
 0x673   : > { %v8275_v46 = vmax.f32 %v8263_v5, %v8267_v16  ;;  %v8277_v41 = vmax.f32 %v8265_v36, %v8269_v6  ;;  %v8268_v31 = vadd.f32 %v8199_v21, %v7696_v48  ;;  %v8270_v12 = vadd.f32 %v8252_v27, %v7749_v2 }
 0x674   : > { %v8300_v33 = vmax.f32 %v8296_v14, 0.0  ;;  %v8303_v25 = vpack.c.bf16 %v8299_v37, %v8299_v37 }
 0x675   : > { %v8281_v3 = vmax.f32 %v8275_v46, %v8277_v41  ;;  %v8276_v19 = vmax.f32 %v8264_v10, %v8268_v31  ;;  %v8278_v52 = vmax.f32 %v8266_v42, %v8270_v12 }
 0x676   : > { %v8304_v54 = vpack.c.bf16 %v8300_v33, %v8300_v33 }
 0x677   : > { %v8297_v17 = vadd.f32 %v8288_v44, %v8281_v3  ;;  %v8282_v59 = vmax.f32 %v8276_v19, %v8278_v52  ;;  %v11552_v44 = vld [vmem:[%s16258_s11 + $0x18] sm:$0xff]  }
 0x678   : > { %8765 = vmatprep.mubr.bf16.mxu1 %v8304_v54 }
 0x679   : > { %8766 = vmatmul.mubr.bf16.vlgmr.msra.gmra.mxu1 %v8303_v25  ;;  %v8298_v15 = vadd.f32 %v8292_v62, %v8282_v59  ;;  %v8301_v30 = vmax.f32 %v8297_v17, 0.0  ;;  %v8779_v62 = vrot.slane %v8774_v49, %v13114_v13 }
 0x67b   : > { %v8302_v18 = vmax.f32 %v8298_v15, 0.0  ;;  %v8337_v61 = vpack.c.bf16 %v8301_v30, %v8301_v30 }
 0x67d   : > { %v8338_v26 = vpack.c.bf16 %v8302_v18, %v8302_v18 }
 0x67f   : > { %8564 = vmatprep.mubr.bf16.mxu0 %v8338_v26 }
 0x680   : > { %8565 = vmatmul.mubr.bf16.vlgmr.msra.gmra.mxu0 %v8337_v61 }
 0x681   : > { %10411 = vmatpush3.bf16.msra.mxu0 %v11544_v0 }
 0x682   : > { %10412 = vmatprep.subr.bf16.mxu0 %v11545_v4 }
 0x685   : > { %10413 = vmatpush3.bf16.msra.mxu0 %v11546_v38 }
 0x686   : > { %10414 = vmatprep.subr.bf16.mxu0 %v11547_v23 }
 0x689   : > { %10415 = vmatpush3.bf16.msra.mxu0 %v11548_v47 }
 0x68a   : > { %10416 = vmatprep.subr.bf16.mxu0 %v11549_v1 }
 0x68d   : > { %10417 = vmatpush3.bf16.msra.mxu0 %v11550_v51 }
 0x68e   : > { %10418 = vmatprep.subr.bf16.mxu0 %v11551_v24 }
 0x691   : > { %10419 = vmatpush3.bf16.msra.mxu0 %v11552_v44 }
 0x692   : > { %10420 = vmatprep.subr.bf16.mxu0 %v11553_v29 }
 0x695   : > { %10421 = vmatpush3.bf16.msra.mxu0 %v11554_v57 }
 0x696   : > { %10422 = vmatprep.subr.bf16.mxu0 %v11555_v32 }
 0x699   : > { %10423 = vmatpush3.bf16.msra.mxu0 %v11556_v53 }
 0x69a   : > { %10424 = vmatprep.subr.bf16.mxu0 %v11557_v60 }
 0x69d   : > { %10425 = vmatpush3.bf16.msra.mxu0 %v11558_v8 }
 0x739   : > { %v8767_v9 = vpop.f32.mrf.mxu1 }
 0x73b   : > { %v8769_v58 = vpop.f32.mrf.mxu1 }
 0x73d   : > { %v8771_v35 = vpop.f32.mrf.mxu1 }
 0x73f   : > { %v8772_v63 = vpop.f32.mrf.mxu1 }
 0x740   : > { %v8566_v55 = vpop.f32.mrf.mxu0 }
 0x741   : > { %v8768_v39 = vadd.f32 %v8767_v9, %v8566_v55 }
 0x742   : > { %v8568_v11 = vpop.f32.mrf.mxu0 }
 0x743   : > { %v8786_v50 = vadd.f32 %v8779_v62, %v8768_v39  ;;  %v8770_v7 = vadd.f32 %v8769_v58, %v8568_v11 }
 0x744   : > { %v8570_v20 = vpop.f32.mrf.mxu0 }
 0x745   : > { %v8787_v43 = vadd.f32 %v8783_v56, %v8770_v7  ;;  %v8788_v45 = vmax.f32 %v8786_v50, 0.0 }
 0x746   : > { %v8571_v48 = vpop.f32.mrf.mxu0 }
 0x747   : > { %v8789_v5 = vmax.f32 %v8787_v43, 0.0  ;;  %v8790_v34 = vpack.c.bf16 %v8788_v45, %v8788_v45 }
 0x749   : > { %v8791_v22 = vpack.c.bf16 %v8789_v5, %v8789_v5 }
 0x74b   : > { %8959 = vmatprep.mubr.bf16.mxu0 %v8791_v22 }
 0x74c   : > { %8960 = vmatmul.mubr.bf16.vlgmr.msra.gmra.mxu0 %v8790_v34 }
 0x80c   : > { %v10426_v13 = vpop.f32.mrf.mxu0 }
 0x80e   : > { %v10427_v36 = vpop.f32.mrf.mxu0 }
 0x80f   : > { %v10428_v16 = vadd.f32 %v10427_v36, %v10426_v13 }
 0x810   : > { %v10429_v6 = vpop.f32.mrf.mxu0 }
 0x811   : > { %v8962_v14 = vadd.f32 %v10428_v16, %v10389_v40 }
 0x812   : > { %v10430_v28 = vpop.f32.mrf.mxu0 }
 0x813   : > { %8967 = vst [vmem:[%s605_s17] sm:$0xff] %v8962_v14 }
 0x814   : > { %11586 = shalt.err (!%p11583_p5)
}
 0x815   : > { %s11587_s29 = scalar_lea.hbm %s16210_s15, 128  ;;  %s11591_s23 = scalar_lea.hbm %s16260_s13, 256 }
 0x816   : > { %p11588_p7 = scmp.ne.s32.totalorder %s16210_s15, %s11587_s29  ;;  %p11592_p12 = scmp.lt.s32.totalorder %s16210_s15, %s16260_s13 }
 0x817   : > { %p11593_p13 = scmp.lt.s32.totalorder %s11591_s23, %s11587_s29 }
 0x818   : > { %p11589_p10 = pnand %p11588_p7, %p11746_p6 }
 0x819   : > { %p11594_p0 = por %p11593_p13, %p11592_p12 }
 0x81a   : > { %p11590_p11 = pneg %p11589_p10 }
 0x81c   : > { %p11595_p1 = pnand %p11594_p0, %p11590_p11 }
 0x81e   : > { %11598 = shalt.err (!%p11595_p1)
}
 0x81f   : > { %10434 = dma.vmem_to_hbm [thread:$0]  (%p11746_p6), %s8983_s30, 128, %s16210_s15, %s8969_s20  }
 0x820 PF: > { %s8994_s22 = sand.u32 1, %s11621_s25   ;;  %p10437_p2 = pnand %p9049_p9, %p11750_p8 }
 0x821   : > { %s8995_s21 = scalar_lea.sflag [#allocation7], %s8994_s22 }
 0x822   : > { %p10438_p3 = pneg %p10437_p2 }
 0x824   : > { %11616 = dma.done.wait (%p10438_p3), %s8995_s21, 128  }
 0x825   : > { %11618 = vsyncadd (%p10438_p3), %s8995_s21, 4294967168  ;;  %s16886_s27 = sld [smem:[#allocation9_spill]]  ;;  %p23_p4 = scmp.ge.s32.totalorder %s11731_s14, 4  }
 0x826   : > { %s16887_s29 = sld [smem:[#allocation10_spill]]  ;;  %s16888_s25 = smov %s11625_s26 }
 0x827   : > { %s16891_s28 = smov %s11731_s14 }
 0x828   :  { %25 = sbr.rel (!%p23_p4) target bundleno = 5 (0x5), region = 170 }
 0x82b   : > { %s16889_s26 = smov %s16886_s27 }
 0x82c   : > { %s16890_s27 = smov %s16887_s29 }
 0x82d   :  { %9000 = vsyncpa [#allocation7], 1 }
 0x82e   :  { %9002 = vsyncpa [#allocation7 + $0x1], 1 }

</bundles_post_ra>
